<compile_context>
chip_gen: v5e
topology: v5e:2x2
jax: 0.10.0
libtpu: 0.0.40
codegen_flags: <defaults>
</compile_context>

<pallas_src>
import math
from functools import partial

import jax
import jax.numpy as jnp
from jax.experimental import pallas as pl
from jax.experimental.pallas import tpu as pltpu


# ---------------------------------------------------------------------------
# Kernel 1: streaming objectness base term  sum_grid BCE_with_logits(x, 0)
# ---------------------------------------------------------------------------
def _obj_base_kernel(x_ref, s_ref, o_ref, *, n_rows, tile_rows):
    """Partial sum of softplus over the objectness channel of one row-tile.

    x_ref : (tile_rows, W*no) raw head-output block (any float dtype)
    s_ref : (W*no, W) 0/1 selection matrix; column w picks channel w*no+obj
    o_ref : (1, 8, 128) f32 partial sum (scalar broadcast across the block)
    """
    g = pl.program_id(0)
    last = pl.num_programs(0) - 1
    # MXU compaction: only the objectness logit of each grid cell survives,
    # so the transcendentals below run on 1/no of the streamed elements.
    compact = jnp.dot(x_ref[...], s_ref[...],
                      preferred_element_type=jnp.float32)       # (tile_rows, W)

    @pl.when(g < last)
    def _():  # full tile: mask-free fast path
        sp = jnp.maximum(compact, 0.0) + jnp.log1p(jnp.exp(-jnp.abs(compact)))
        o_ref[...] = jnp.broadcast_to(jnp.sum(sp), (1, 8, 128))

    @pl.when(g == last)
    def _():  # ragged tail: zero out-of-range rows (keeps OOB garbage finite)
        row = jax.lax.broadcasted_iota(jnp.int32, compact.shape, 0) + g * tile_rows
        ok = row < n_rows
        v = jnp.where(ok, compact, 0.0)
        sp = jnp.maximum(v, 0.0) + jnp.log1p(jnp.exp(-jnp.abs(v)))
        o_ref[...] = jnp.broadcast_to(jnp.sum(sp * ok.astype(jnp.float32)),
                                      (1, 8, 128))


def _round_up8(v):
    return ((v + 7) // 8) * 8


def _pick_tile_rows(n_rows, n_cols, itemsize, target_bytes=8 << 20):
    """Largest 8-multiple row-tile of ~target_bytes, but force grid >= 2."""
    if n_rows <= 8:
        return n_rows
    by_bytes = max(8, (target_bytes // max(n_cols * itemsize, 1)) // 8 * 8)
    half = _round_up8(-(-n_rows // 2))      # grid >= 2: both v7x TCs stay busy
    return min(by_bytes, half)


def obj_base_softplus_sum(pred, *, obj_channel=4, tile_rows=None,
                          vmem_limit=48 << 20):
    """sum over all grid cells of BCE_with_logits(pred[..., obj_channel], 0)."""
    B, A, H, W, no = pred.shape
    R, C = B * A * H, W * no
    x2 = pred.reshape(R, C)                 # free: merges contiguous dims
    itemsize = jnp.dtype(pred.dtype).itemsize
    if tile_rows is None:
        tile_rows = _pick_tile_rows(R, C, itemsize)
    else:
        tile_rows = R if tile_rows >= R else max(8, (tile_rows // 8) * 8)
    grid = -(-R // tile_rows)

    # 0/1 selection matrix: folds the channel mask into an (idle-MXU) matmul.
    cidx = jnp.arange(C, dtype=jnp.int32)[:, None]
    sel = cidx == (jnp.arange(W, dtype=jnp.int32)[None, :] * no + obj_channel)
    smat = sel.astype(pred.dtype)

    partials = pl.pallas_call(
        partial(_obj_base_kernel, n_rows=R, tile_rows=tile_rows),
        out_shape=jax.ShapeDtypeStruct((grid, 8, 128), jnp.float32),
        grid=(grid,),
        in_specs=[pl.BlockSpec((tile_rows, C), lambda g: (g, 0)),
                  pl.BlockSpec((C, W), lambda g: (0, 0))],
        out_specs=pl.BlockSpec((1, 8, 128), lambda g: (g, 0, 0)),
        compiler_params=pltpu.CompilerParams(
            dimension_semantics=("parallel",),   # shard across TCs on v7x
            vmem_limit_bytes=vmem_limit),
        cost_estimate=pl.CostEstimate(
            flops=2 * R * C * W + 6 * R * W,
            transcendentals=2 * R * W,
            bytes_accessed=R * C * itemsize + C * W * itemsize
                           + grid * 8 * 128 * 4),
    )(x2, smat)
    return jnp.sum(partials[:, 0, 0])


# ---------------------------------------------------------------------------
# Kernel 2: fused matched-candidate kernel (one launch per level)
#   class BCE + box decode + IoU/center geometry + objectness BCE delta
# ---------------------------------------------------------------------------
def _matched_kernel(sub_ref, tbox_ref, anch_ref, cls_ref, m_ref, o_ref, *,
                    obj_channel, cls_start, cls_pos, obj_pos,
                    smooth_pos, smooth_neg):
    """sub_ref  : (K, no) gathered head logits
       tbox_ref : (K, 4)  target boxes (cx, cy, w, h) in grid units
       anch_ref : (K, 2)  matched anchor (w, h)
       cls_ref  : (K, 1)  int32 class id
       m_ref    : (K, 1)  f32 validity mask
       o_ref    : (K, 8)  lanes = [iou, rho2/c2, w1/h1, w2/h2,
                                   obj_pos*sp(-x_obj)-sp(x_obj), cls_row, 0, 0]
    """
    eps = 1e-7
    x = sub_ref[...].astype(jnp.float32)
    k, no = x.shape
    m = m_ref[...]
    cls_id = cls_ref[...]
    lane = jax.lax.broadcasted_iota(jnp.int32, (k, no), 1)

    sp_pos = jnp.maximum(x, 0.0) + jnp.log1p(jnp.exp(-jnp.abs(x)))  # softplus(x)
    sp_neg = sp_pos - x                                             # softplus(-x)

    # classification BCE (smoothed one-hot target built in-kernel), per row
    t = jnp.where(lane - cls_start == cls_id, smooth_pos, smooth_neg)
    cls_lane = (lane >= cls_start).astype(jnp.float32)
    cls_elem = (cls_pos * t * sp_neg + (1.0 - t) * sp_pos) * cls_lane
    cls_row = jnp.sum(cls_elem, axis=1, keepdims=True) * m          # (K, 1)

    # objectness delta:  BCE(x, t; obj_pos) - BCE(x, 0) = t * objdelta
    obj_sel = (lane == obj_channel).astype(jnp.float32)
    objdelta = jnp.sum((obj_pos * sp_neg - sp_pos) * obj_sel,
                       axis=1, keepdims=True)                       # (K, 1)

    def col(vals, idx):
        li = jax.lax.broadcasted_iota(jnp.int32, vals.shape, 1)
        return jnp.sum(jnp.where(li == idx, vals, 0.0), axis=1, keepdims=True)

    # box decode (encode_single)
    sx = jax.nn.sigmoid(col(x, 0))
    sy = jax.nn.sigmoid(col(x, 1))
    sw = jax.nn.sigmoid(col(x, 2))
    sh = jax.nn.sigmoid(col(x, 3))
    anch = anch_ref[...].astype(jnp.float32)
    tbox = tbox_ref[...].astype(jnp.float32)
    aw, ah = col(anch, 0), col(anch, 1)
    tx, ty, tw, th = col(tbox, 0), col(tbox, 1), col(tbox, 2), col(tbox, 3)

    px = sx * 2.0 - 0.5
    py = sy * 2.0 - 0.5
    pw = (sw * 2.0) ** 2 * aw
    ph = (sh * 2.0) ** 2 * ah

    b1x1, b1x2 = px - pw * 0.5, px + pw * 0.5
    b1y1, b1y2 = py - ph * 0.5, py + ph * 0.5
    b2x1, b2x2 = tx - tw * 0.5, tx + tw * 0.5
    b2y1, b2y2 = ty - th * 0.5, ty + th * 0.5

    iw = jnp.maximum(jnp.minimum(b1x2, b2x2) - jnp.maximum(b1x1, b2x1), 0.0)
    ih = jnp.maximum(jnp.minimum(b1y2, b2y2) - jnp.maximum(b1y1, b2y1), 0.0)
    inter = iw * ih
    w1, h1 = b1x2 - b1x1, b1y2 - b1y1 + eps
    w2, h2 = b2x2 - b2x1, b2y2 - b2y1 + eps
    union = w1 * h1 + w2 * h2 - inter + eps
    iou = inter / union

    cw = jnp.maximum(b1x2, b2x2) - jnp.minimum(b1x1, b2x1)
    chh = jnp.maximum(b1y2, b2y2) - jnp.minimum(b1y1, b2y1)
    c2 = cw * cw + chh * chh + eps
    rho2 = ((b2x1 + b2x2 - b1x1 - b1x2) ** 2 +
            (b2y1 + b2y2 - b1y1 - b1y2) ** 2) * 0.25

    lane8 = jax.lax.broadcasted_iota(jnp.int32, (k, 8), 1)
    out = jnp.zeros((k, 8), jnp.float32)
    for idx, v in enumerate((iou, rho2 / c2, w1 / h1, w2 / h2,
                             objdelta, cls_row)):
        out = jnp.where(lane8 == idx, v, out)
    o_ref[...] = out


def matched_candidates(sub, tbox, anch, cls_id, maskf, *, cls_pos, obj_pos,
                       smooth_pos, smooth_neg, obj_channel=4,
                       vmem_limit=32 << 20):
    K = sub.shape[0]
    return pl.pallas_call(
        partial(_matched_kernel, obj_channel=obj_channel, cls_start=5,
                cls_pos=float(cls_pos), obj_pos=float(obj_pos),
                smooth_pos=float(smooth_pos), smooth_neg=float(smooth_neg)),
        out_shape=jax.ShapeDtypeStruct((K, 8), jnp.float32),
        in_specs=[pl.BlockSpec(memory_space=pltpu.MemorySpace.VMEM)] * 5,
        out_specs=pl.BlockSpec(memory_space=pltpu.MemorySpace.VMEM),
        compiler_params=pltpu.CompilerParams(vmem_limit_bytes=vmem_limit),
    )(sub, tbox.astype(jnp.float32), anch.astype(jnp.float32),
      cls_id.reshape(K, 1).astype(jnp.int32),
      maskf.reshape(K, 1).astype(jnp.float32))


# ---------------------------------------------------------------------------
# build_targets (masked, fixed-size candidate sets) -- plain JAX glue
# ---------------------------------------------------------------------------
def build_targets_masked(targets, shapes, anchors_per_level, anchor_thresh):
    nt = targets.shape[0]
    nl, na, _ = anchors_per_level.shape
    g_bias = 0.5
    offset = jnp.array([[0, 0], [1, 0], [0, 1], [-1, 0], [0, -1]],
                       jnp.float32) * g_bias                     # (5, 2)

    ai = jnp.broadcast_to(jnp.arange(na, dtype=jnp.float32)[:, None], (na, nt))
    t_all = jnp.concatenate(
        [jnp.broadcast_to(targets[None], (na, nt, 6)), ai[..., None]], axis=2)

    per_level = []
    for i in range(nl):
        H, W = shapes[i]
        anchors = anchors_per_level[i]                           # (na, 2)
        gain = jnp.array([1, 1, W, H, W, H, 1], jnp.float32)
        tg = t_all * gain                                        # (na, nt, 7)

        r = tg[:, :, 4:6] / anchors[:, None, :]
        amask = jnp.max(jnp.maximum(r, 1.0 / r), axis=2) < anchor_thresh

        tg_f = tg.reshape(na * nt, 7)
        am_f = amask.reshape(na * nt)
        gxy = tg_f[:, 2:4]
        gxi = jnp.array([W, H], jnp.float32) - gxy
        jk = ((gxy % 1.0) < g_bias) & (gxy > 1.0)
        lm = ((gxi % 1.0) < g_bias) & (gxi > 1.0)
        sel = jnp.stack([jnp.ones_like(jk[:, 0]), jk[:, 0], jk[:, 1],
                         lm[:, 0], lm[:, 1]], axis=0)            # (5, M)
        mask = (sel & am_f[None, :]).reshape(-1)                 # (5*M,)

        t_rep = jnp.broadcast_to(tg_f[None], (5, na * nt, 7)).reshape(-1, 7)
        offs = jnp.broadcast_to(offset[:, None, :], (5, na * nt, 2)).reshape(-1, 2)

        b = t_rep[:, 0].astype(jnp.int32)
        c = t_rep[:, 1].astype(jnp.int32)
        gxy2 = t_rep[:, 2:4]
        gwh = t_rep[:, 4:6]
        gij = (gxy2 - offs).astype(jnp.int32)                    # trunc == .long()
        gi = jnp.clip(gij[:, 0], 0, W - 1)
        gj = jnp.clip(gij[:, 1], 0, H - 1)
        a = t_rep[:, 6].astype(jnp.int32)
        # PyTorch clamps gij in place (idx_gij view) before target_box uses it.
        gij_c = jnp.stack([gi, gj], axis=1).astype(jnp.float32)
        tbox = jnp.concatenate([gxy2 - gij_c, gwh], axis=1)
        anch = anchors[a]
        per_level.append(dict(b=b, a=a, gj=gj, gi=gi, tbox=tbox, anch=anch,
                              cls=c, mask=mask))
    return per_level


# ---------------------------------------------------------------------------
# SetCriterion forward
# ---------------------------------------------------------------------------
def set_criterion_forward(targets, head_outputs, *, strides, anchor_grids,
                          num_classes, box_gain=0.05, cls_gain=0.5, cls_pos=1.0,
                          obj_gain=1.0, obj_pos=1.0, anchor_thresh=4.0,
                          label_smoothing=0.0, obj_tile_rows=None):
    na = len(anchor_grids[0]) // 2
    balance = [4.0, 1.0, 0.4]
    gr = 1.0
    smooth_pos = 1.0 - 0.5 * label_smoothing
    smooth_neg = 0.5 * label_smoothing
    eps = 1e-7

    strides_a = jnp.array(strides, jnp.float32).reshape(-1, 1, 1)
    ag = jnp.array(anchor_grids, jnp.float32).reshape(na, -1, 2) / strides_a

    shapes = [(h.shape[2], h.shape[3]) for h in head_outputs]
    levels = build_targets_masked(targets, shapes, ag, anchor_thresh)

    loss_cls = jnp.zeros((), jnp.float32)
    loss_box = jnp.zeros((), jnp.float32)
    loss_obj = jnp.zeros((), jnp.float32)

    for i, pred in enumerate(head_outputs):
        B, A, H, W, no = pred.shape
        n_cells = B * A * H * W
        L = levels[i]
        mask = L['mask']
        maskf = mask.astype(jnp.float32)
        n_valid = jnp.sum(maskf)
        K = mask.shape[0]

        # objectness base term: streaming kernel reads the raw head output once
        base = obj_base_softplus_sum(pred, obj_channel=4,
                                     tile_rows=obj_tile_rows)
        obj_corr = jnp.zeros((), jnp.float32)

        if K > 0:
            # gather indices are always in range (b from targets, a < na,
            # gj/gi clipped in build_targets), so no sanitizing wheres needed.
            sub = pred[L['b'], L['a'], L['gj'], L['gi']]          # (K, no)

            geo = matched_candidates(
                sub, L['tbox'], L['anch'],
                jnp.clip(L['cls'], 0, num_classes - 1), maskf,
                cls_pos=cls_pos, obj_pos=obj_pos,
                smooth_pos=smooth_pos, smooth_neg=smooth_neg)
            iou0, dterm = geo[:, 0], geo[:, 1]
            r1, r2 = geo[:, 2], geo[:, 3]
            objdelta, cls_row = geo[:, 4], geo[:, 5]

            # CIoU aspect term (arctan kept in JAX: no guaranteed Mosaic lowering)
            v = (4.0 / math.pi ** 2) * (jnp.arctan(r2) - jnp.arctan(r1)) ** 2
            alpha = jax.lax.stop_gradient(v / (v - iou0 + (1.0 + eps)))
            ciou = iou0 - (dterm + v * alpha)

            loss_box = loss_box + jnp.sum((1.0 - ciou) * maskf) \
                / jnp.maximum(n_valid, 1.0)

            if num_classes > 1:
                loss_cls = loss_cls + jnp.sum(cls_row) \
                    / jnp.maximum(n_valid * num_classes, 1.0)

            # objectness correction over matched cells; duplicates resolved by
            # "last valid write wins" via an O(K log K) stable sort.
            score_iou = jnp.clip(jax.lax.stop_gradient(ciou), 0.0)
            t_obj = (1.0 - gr) + gr * score_iou
            contrib = t_obj * objdelta

            flat = ((L['b'] * A + L['a']) * H + L['gj']) * W + L['gi']
            key = jnp.where(mask, flat, n_cells)     # invalid rows -> sentinel
            order = jnp.argsort(key, stable=True)
            sk = key[order]
            last_in_run = jnp.concatenate([sk[1:] != sk[:-1],
                                           jnp.array([True])])
            winner = last_in_run & (sk < n_cells)
            obj_corr = jnp.sum(jnp.where(winner, contrib[order], 0.0))

        obji = (base + obj_corr) / n_cells
        loss_obj = loss_obj + obji * balance[i]

    loss_box = loss_box * box_gain
    loss_obj = loss_obj * obj_gain
    loss_cls = loss_cls * cls_gain
    return {
        'cls_logits': jnp.reshape(loss_cls, (1,)),
        'bbox_regression': jnp.reshape(loss_box, (1,)),
        'objectness': jnp.reshape(loss_obj, (1,)),
    }


# ---------------------------------------------------------------------------
# main
# ---------------------------------------------------------------------------
if __name__ == "__main__":
    key = jax.random.PRNGKey(0)

    strides = [8, 16, 32]
    anchor_grids = [[10., 13., 16., 30., 33., 23.],
                    [30., 61., 62., 45., 59., 119.],
                    [116., 90., 156., 198., 373., 326.]]
    num_classes = 3
    B, A = 2, 3
    img_size = 64
    spatial = [img_size // s for s in strides]               # [8, 4, 2]
    no = 5 + num_classes

    keys = jax.random.split(key, 4)
    head_outputs = []
    for li, hw in enumerate(spatial):
        head_outputs.append(
            0.5 * jax.random.normal(keys[li], (B, A, hw, hw, no), jnp.float32))

    nt = 6
    tk = jax.random.split(keys[3], 3)
    img_idx = jax.random.randint(tk[0], (nt, 1), 0, B).astype(jnp.float32)
    cls_idx = jax.random.randint(tk[1], (nt, 1), 0, num_classes).astype(jnp.float32)
    xywh = jax.random.uniform(tk[2], (nt, 4), jnp.float32, 0.15, 0.85)
    wh = 0.1 + 0.4 * xywh[:, 2:]                             # keep w,h in (0.1, 0.5)
    targets = jnp.concatenate([img_idx, cls_idx, xywh[:, :2], wh], axis=1)

    fwd = jax.jit(partial(
        set_criterion_forward,
        strides=strides, anchor_grids=anchor_grids, num_classes=num_classes))

    losses = fwd(targets, head_outputs)
    for v in losses.values():
        jax.block_until_ready(v)

    print("KERNEL_OK")
</pallas_src>

<mosaic_0001>
module attributes {stable_mosaic.version = 11 : i64} {
  func.func @_matched_kernel(%arg0: memref<90x8xf32, #tpu.memory_space<vmem>>, %arg1: memref<90x4xf32, #tpu.memory_space<vmem>>, %arg2: memref<90x2xf32, #tpu.memory_space<vmem>>, %arg3: memref<90x1xi32, #tpu.memory_space<vmem>>, %arg4: memref<90x1xf32, #tpu.memory_space<vmem>>, %arg5: memref<90x8xf32, #tpu.memory_space<vmem>>) attributes {dimension_semantics = [], scalar_prefetch = 0 : i64, scratch_operands = 0 : i64, tpu.core_type = #tpu.core_type<tc>} {
    %c0 = arith.constant 0 : index
    %c0_0 = arith.constant 0 : index
    %0 = vector.load %arg0[%c0, %c0_0] : memref<90x8xf32, #tpu.memory_space<vmem>>, vector<90x8xf32>
    %c0_1 = arith.constant 0 : index
    %c0_2 = arith.constant 0 : index
    %1 = vector.load %arg4[%c0_1, %c0_2] : memref<90x1xf32, #tpu.memory_space<vmem>>, vector<90x1xf32>
    %c0_3 = arith.constant 0 : index
    %c0_4 = arith.constant 0 : index
    %2 = vector.load %arg3[%c0_3, %c0_4] : memref<90x1xi32, #tpu.memory_space<vmem>>, vector<90x1xi32>
    %3 = tpu.iota {dimensions = array<i32: 1>} : vector<90x8xi32>
    %cst = arith.constant 0.000000e+00 : f32
    %4 = vector.broadcast %cst : f32 to vector<90x8xf32>
    %5 = arith.maximumf %0, %4 : vector<90x8xf32>
    %6 = math.absf %0 : vector<90x8xf32>
    %cst_5 = arith.constant 0.000000e+00 : f32
    %7 = vector.broadcast %cst_5 : f32 to vector<90x8xf32>
    %8 = arith.subf %7, %6 : vector<90x8xf32>
    %9 = math.exp %8 : vector<90x8xf32>
    %10 = math.log1p %9 : vector<90x8xf32>
    %11 = arith.addf %5, %10 : vector<90x8xf32>
    %12 = arith.subf %11, %0 : vector<90x8xf32>
    %c5_i32 = arith.constant 5 : i32
    %13 = vector.broadcast %c5_i32 : i32 to vector<90x8xi32>
    %14 = arith.subi %3, %13 : vector<90x8xi32>
    %15 = vector.broadcast %2 : vector<90x1xi32> to vector<90x8xi32>
    %16 = arith.cmpi eq, %14, %15 : vector<90x8xi32>
    %cst_6 = arith.constant 1.000000e+00 : f32
    %cst_7 = arith.constant 0.000000e+00 : f32
    %17 = vector.broadcast %cst_6 : f32 to vector<90x8xf32>
    %18 = vector.broadcast %cst_7 : f32 to vector<90x8xf32>
    %19 = arith.select %16, %17, %18 : vector<90x8xi1>, vector<90x8xf32>
    %c5_i32_8 = arith.constant 5 : i32
    %20 = vector.broadcast %c5_i32_8 : i32 to vector<90x8xi32>
    %21 = arith.cmpi sge, %3, %20 : vector<90x8xi32>
    %22 = arith.extui %21 : vector<90x8xi1> to vector<90x8xi32>
    %23 = arith.sitofp %22 : vector<90x8xi32> to vector<90x8xf32>
    %cst_9 = arith.constant 1.000000e+00 : f32
    %24 = vector.broadcast %cst_9 : f32 to vector<90x8xf32>
    %25 = arith.mulf %24, %19 : vector<90x8xf32>
    %26 = arith.mulf %25, %12 : vector<90x8xf32>
    %cst_10 = arith.constant 1.000000e+00 : f32
    %27 = vector.broadcast %cst_10 : f32 to vector<90x8xf32>
    %28 = arith.subf %27, %19 : vector<90x8xf32>
    %29 = arith.mulf %28, %11 : vector<90x8xf32>
    %30 = arith.addf %26, %29 : vector<90x8xf32>
    %31 = arith.mulf %30, %23 : vector<90x8xf32>
    %cst_11 = arith.constant dense<0.000000e+00> : vector<90xf32>
    %32 = vector.multi_reduction <add>, %31, %cst_11 [1] : vector<90x8xf32> to vector<90xf32>
    %33 = vector.shape_cast %32 : vector<90xf32> to vector<90x1xf32>
    %34 = arith.mulf %33, %1 : vector<90x1xf32>
    %c4_i32 = arith.constant 4 : i32
    %35 = vector.broadcast %c4_i32 : i32 to vector<90x8xi32>
    %36 = arith.cmpi eq, %3, %35 : vector<90x8xi32>
    %37 = arith.extui %36 : vector<90x8xi1> to vector<90x8xi32>
    %38 = arith.sitofp %37 : vector<90x8xi32> to vector<90x8xf32>
    %cst_12 = arith.constant 1.000000e+00 : f32
    %39 = vector.broadcast %cst_12 : f32 to vector<90x8xf32>
    %40 = arith.mulf %39, %12 : vector<90x8xf32>
    %41 = arith.subf %40, %11 : vector<90x8xf32>
    %42 = arith.mulf %41, %38 : vector<90x8xf32>
    %cst_13 = arith.constant dense<0.000000e+00> : vector<90xf32>
    %43 = vector.multi_reduction <add>, %42, %cst_13 [1] : vector<90x8xf32> to vector<90xf32>
    %44 = vector.shape_cast %43 : vector<90xf32> to vector<90x1xf32>
    %45 = tpu.iota {dimensions = array<i32: 1>} : vector<90x8xi32>
    %c0_i32 = arith.constant 0 : i32
    %46 = vector.broadcast %c0_i32 : i32 to vector<90x8xi32>
    %47 = arith.cmpi eq, %45, %46 : vector<90x8xi32>
    %cst_14 = arith.constant 0.000000e+00 : f32
    %48 = vector.broadcast %cst_14 : f32 to vector<90x8xf32>
    %49 = arith.select %47, %0, %48 : vector<90x8xi1>, vector<90x8xf32>
    %cst_15 = arith.constant dense<0.000000e+00> : vector<90xf32>
    %50 = vector.multi_reduction <add>, %49, %cst_15 [1] : vector<90x8xf32> to vector<90xf32>
    %51 = vector.shape_cast %50 : vector<90xf32> to vector<90x1xf32>
    %52 = arith.negf %51 : vector<90x1xf32>
    %53 = math.exp %52 : vector<90x1xf32>
    %cst_16 = arith.constant 1.000000e+00 : f32
    %54 = vector.broadcast %cst_16 : f32 to vector<90x1xf32>
    %55 = arith.addf %54, %53 : vector<90x1xf32>
    %56 = arith.divf %54, %55 : vector<90x1xf32>
    %57 = tpu.iota {dimensions = array<i32: 1>} : vector<90x8xi32>
    %c1_i32 = arith.constant 1 : i32
    %58 = vector.broadcast %c1_i32 : i32 to vector<90x8xi32>
    %59 = arith.cmpi eq, %57, %58 : vector<90x8xi32>
    %cst_17 = arith.constant 0.000000e+00 : f32
    %60 = vector.broadcast %cst_17 : f32 to vector<90x8xf32>
    %61 = arith.select %59, %0, %60 : vector<90x8xi1>, vector<90x8xf32>
    %cst_18 = arith.constant dense<0.000000e+00> : vector<90xf32>
    %62 = vector.multi_reduction <add>, %61, %cst_18 [1] : vector<90x8xf32> to vector<90xf32>
    %63 = vector.shape_cast %62 : vector<90xf32> to vector<90x1xf32>
    %64 = arith.negf %63 : vector<90x1xf32>
    %65 = math.exp %64 : vector<90x1xf32>
    %cst_19 = arith.constant 1.000000e+00 : f32
    %66 = vector.broadcast %cst_19 : f32 to vector<90x1xf32>
    %67 = arith.addf %66, %65 : vector<90x1xf32>
    %68 = arith.divf %66, %67 : vector<90x1xf32>
    %69 = tpu.iota {dimensions = array<i32: 1>} : vector<90x8xi32>
    %c2_i32 = arith.constant 2 : i32
    %70 = vector.broadcast %c2_i32 : i32 to vector<90x8xi32>
    %71 = arith.cmpi eq, %69, %70 : vector<90x8xi32>
    %cst_20 = arith.constant 0.000000e+00 : f32
    %72 = vector.broadcast %cst_20 : f32 to vector<90x8xf32>
    %73 = arith.select %71, %0, %72 : vector<90x8xi1>, vector<90x8xf32>
    %cst_21 = arith.constant dense<0.000000e+00> : vector<90xf32>
    %74 = vector.multi_reduction <add>, %73, %cst_21 [1] : vector<90x8xf32> to vector<90xf32>
    %75 = vector.shape_cast %74 : vector<90xf32> to vector<90x1xf32>
    %76 = arith.negf %75 : vector<90x1xf32>
    %77 = math.exp %76 : vector<90x1xf32>
    %cst_22 = arith.constant 1.000000e+00 : f32
    %78 = vector.broadcast %cst_22 : f32 to vector<90x1xf32>
    %79 = arith.addf %78, %77 : vector<90x1xf32>
    %80 = arith.divf %78, %79 : vector<90x1xf32>
    %81 = tpu.iota {dimensions = array<i32: 1>} : vector<90x8xi32>
    %c3_i32 = arith.constant 3 : i32
    %82 = vector.broadcast %c3_i32 : i32 to vector<90x8xi32>
    %83 = arith.cmpi eq, %81, %82 : vector<90x8xi32>
    %cst_23 = arith.constant 0.000000e+00 : f32
    %84 = vector.broadcast %cst_23 : f32 to vector<90x8xf32>
    %85 = arith.select %83, %0, %84 : vector<90x8xi1>, vector<90x8xf32>
    %cst_24 = arith.constant dense<0.000000e+00> : vector<90xf32>
    %86 = vector.multi_reduction <add>, %85, %cst_24 [1] : vector<90x8xf32> to vector<90xf32>
    %87 = vector.shape_cast %86 : vector<90xf32> to vector<90x1xf32>
    %88 = arith.negf %87 : vector<90x1xf32>
    %89 = math.exp %88 : vector<90x1xf32>
    %cst_25 = arith.constant 1.000000e+00 : f32
    %90 = vector.broadcast %cst_25 : f32 to vector<90x1xf32>
    %91 = arith.addf %90, %89 : vector<90x1xf32>
    %92 = arith.divf %90, %91 : vector<90x1xf32>
    %c0_26 = arith.constant 0 : index
    %c0_27 = arith.constant 0 : index
    %93 = vector.load %arg2[%c0_26, %c0_27] : memref<90x2xf32, #tpu.memory_space<vmem>>, vector<90x2xf32>
    %c0_28 = arith.constant 0 : index
    %c0_29 = arith.constant 0 : index
    %94 = vector.load %arg1[%c0_28, %c0_29] : memref<90x4xf32, #tpu.memory_space<vmem>>, vector<90x4xf32>
    %95 = tpu.iota {dimensions = array<i32: 1>} : vector<90x2xi32>
    %c0_i32_30 = arith.constant 0 : i32
    %96 = vector.broadcast %c0_i32_30 : i32 to vector<90x2xi32>
    %97 = arith.cmpi eq, %95, %96 : vector<90x2xi32>
    %cst_31 = arith.constant 0.000000e+00 : f32
    %98 = vector.broadcast %cst_31 : f32 to vector<90x2xf32>
    %99 = arith.select %97, %93, %98 : vector<90x2xi1>, vector<90x2xf32>
    %cst_32 = arith.constant dense<0.000000e+00> : vector<90xf32>
    %100 = vector.multi_reduction <add>, %99, %cst_32 [1] : vector<90x2xf32> to vector<90xf32>
    %101 = vector.shape_cast %100 : vector<90xf32> to vector<90x1xf32>
    %102 = tpu.iota {dimensions = array<i32: 1>} : vector<90x2xi32>
    %c1_i32_33 = arith.constant 1 : i32
    %103 = vector.broadcast %c1_i32_33 : i32 to vector<90x2xi32>
    %104 = arith.cmpi eq, %102, %103 : vector<90x2xi32>
    %cst_34 = arith.constant 0.000000e+00 : f32
    %105 = vector.broadcast %cst_34 : f32 to vector<90x2xf32>
    %106 = arith.select %104, %93, %105 : vector<90x2xi1>, vector<90x2xf32>
    %cst_35 = arith.constant dense<0.000000e+00> : vector<90xf32>
    %107 = vector.multi_reduction <add>, %106, %cst_35 [1] : vector<90x2xf32> to vector<90xf32>
    %108 = vector.shape_cast %107 : vector<90xf32> to vector<90x1xf32>
    %109 = tpu.iota {dimensions = array<i32: 1>} : vector<90x4xi32>
    %c0_i32_36 = arith.constant 0 : i32
    %110 = vector.broadcast %c0_i32_36 : i32 to vector<90x4xi32>
    %111 = arith.cmpi eq, %109, %110 : vector<90x4xi32>
    %cst_37 = arith.constant 0.000000e+00 : f32
    %112 = vector.broadcast %cst_37 : f32 to vector<90x4xf32>
    %113 = arith.select %111, %94, %112 : vector<90x4xi1>, vector<90x4xf32>
    %cst_38 = arith.constant dense<0.000000e+00> : vector<90xf32>
    %114 = vector.multi_reduction <add>, %113, %cst_38 [1] : vector<90x4xf32> to vector<90xf32>
    %115 = vector.shape_cast %114 : vector<90xf32> to vector<90x1xf32>
    %116 = tpu.iota {dimensions = array<i32: 1>} : vector<90x4xi32>
    %c1_i32_39 = arith.constant 1 : i32
    %117 = vector.broadcast %c1_i32_39 : i32 to vector<90x4xi32>
    %118 = arith.cmpi eq, %116, %117 : vector<90x4xi32>
    %cst_40 = arith.constant 0.000000e+00 : f32
    %119 = vector.broadcast %cst_40 : f32 to vector<90x4xf32>
    %120 = arith.select %118, %94, %119 : vector<90x4xi1>, vector<90x4xf32>
    %cst_41 = arith.constant dense<0.000000e+00> : vector<90xf32>
    %121 = vector.multi_reduction <add>, %120, %cst_41 [1] : vector<90x4xf32> to vector<90xf32>
    %122 = vector.shape_cast %121 : vector<90xf32> to vector<90x1xf32>
    %123 = tpu.iota {dimensions = array<i32: 1>} : vector<90x4xi32>
    %c2_i32_42 = arith.constant 2 : i32
    %124 = vector.broadcast %c2_i32_42 : i32 to vector<90x4xi32>
    %125 = arith.cmpi eq, %123, %124 : vector<90x4xi32>
    %cst_43 = arith.constant 0.000000e+00 : f32
    %126 = vector.broadcast %cst_43 : f32 to vector<90x4xf32>
    %127 = arith.select %125, %94, %126 : vector<90x4xi1>, vector<90x4xf32>
    %cst_44 = arith.constant dense<0.000000e+00> : vector<90xf32>
    %128 = vector.multi_reduction <add>, %127, %cst_44 [1] : vector<90x4xf32> to vector<90xf32>
    %129 = vector.shape_cast %128 : vector<90xf32> to vector<90x1xf32>
    %130 = tpu.iota {dimensions = array<i32: 1>} : vector<90x4xi32>
    %c3_i32_45 = arith.constant 3 : i32
    %131 = vector.broadcast %c3_i32_45 : i32 to vector<90x4xi32>
    %132 = arith.cmpi eq, %130, %131 : vector<90x4xi32>
    %cst_46 = arith.constant 0.000000e+00 : f32
    %133 = vector.broadcast %cst_46 : f32 to vector<90x4xf32>
    %134 = arith.select %132, %94, %133 : vector<90x4xi1>, vector<90x4xf32>
    %cst_47 = arith.constant dense<0.000000e+00> : vector<90xf32>
    %135 = vector.multi_reduction <add>, %134, %cst_47 [1] : vector<90x4xf32> to vector<90xf32>
    %136 = vector.shape_cast %135 : vector<90xf32> to vector<90x1xf32>
    %cst_48 = arith.constant 2.000000e+00 : f32
    %137 = vector.broadcast %cst_48 : f32 to vector<90x1xf32>
    %138 = arith.mulf %56, %137 : vector<90x1xf32>
    %cst_49 = arith.constant 5.000000e-01 : f32
    %139 = vector.broadcast %cst_49 : f32 to vector<90x1xf32>
    %140 = arith.subf %138, %139 : vector<90x1xf32>
    %cst_50 = arith.constant 2.000000e+00 : f32
    %141 = vector.broadcast %cst_50 : f32 to vector<90x1xf32>
    %142 = arith.mulf %68, %141 : vector<90x1xf32>
    %cst_51 = arith.constant 5.000000e-01 : f32
    %143 = vector.broadcast %cst_51 : f32 to vector<90x1xf32>
    %144 = arith.subf %142, %143 : vector<90x1xf32>
    %cst_52 = arith.constant 2.000000e+00 : f32
    %145 = vector.broadcast %cst_52 : f32 to vector<90x1xf32>
    %146 = arith.mulf %80, %145 : vector<90x1xf32>
    %147 = arith.mulf %146, %146 : vector<90x1xf32>
    %148 = arith.mulf %147, %101 : vector<90x1xf32>
    %cst_53 = arith.constant 2.000000e+00 : f32
    %149 = vector.broadcast %cst_53 : f32 to vector<90x1xf32>
    %150 = arith.mulf %92, %149 : vector<90x1xf32>
    %151 = arith.mulf %150, %150 : vector<90x1xf32>
    %152 = arith.mulf %151, %108 : vector<90x1xf32>
    %cst_54 = arith.constant 5.000000e-01 : f32
    %153 = vector.broadcast %cst_54 : f32 to vector<90x1xf32>
    %154 = arith.mulf %148, %153 : vector<90x1xf32>
    %155 = arith.subf %140, %154 : vector<90x1xf32>
    %cst_55 = arith.constant 5.000000e-01 : f32
    %156 = vector.broadcast %cst_55 : f32 to vector<90x1xf32>
    %157 = arith.mulf %148, %156 : vector<90x1xf32>
    %158 = arith.addf %140, %157 : vector<90x1xf32>
    %cst_56 = arith.constant 5.000000e-01 : f32
    %159 = vector.broadcast %cst_56 : f32 to vector<90x1xf32>
    %160 = arith.mulf %152, %159 : vector<90x1xf32>
    %161 = arith.subf %144, %160 : vector<90x1xf32>
    %cst_57 = arith.constant 5.000000e-01 : f32
    %162 = vector.broadcast %cst_57 : f32 to vector<90x1xf32>
    %163 = arith.mulf %152, %162 : vector<90x1xf32>
    %164 = arith.addf %144, %163 : vector<90x1xf32>
    %cst_58 = arith.constant 5.000000e-01 : f32
    %165 = vector.broadcast %cst_58 : f32 to vector<90x1xf32>
    %166 = arith.mulf %129, %165 : vector<90x1xf32>
    %167 = arith.subf %115, %166 : vector<90x1xf32>
    %cst_59 = arith.constant 5.000000e-01 : f32
    %168 = vector.broadcast %cst_59 : f32 to vector<90x1xf32>
    %169 = arith.mulf %129, %168 : vector<90x1xf32>
    %170 = arith.addf %115, %169 : vector<90x1xf32>
    %cst_60 = arith.constant 5.000000e-01 : f32
    %171 = vector.broadcast %cst_60 : f32 to vector<90x1xf32>
    %172 = arith.mulf %136, %171 : vector<90x1xf32>
    %173 = arith.subf %122, %172 : vector<90x1xf32>
    %cst_61 = arith.constant 5.000000e-01 : f32
    %174 = vector.broadcast %cst_61 : f32 to vector<90x1xf32>
    %175 = arith.mulf %136, %174 : vector<90x1xf32>
    %176 = arith.addf %122, %175 : vector<90x1xf32>
    %177 = arith.minimumf %158, %170 : vector<90x1xf32>
    %178 = arith.maximumf %155, %167 : vector<90x1xf32>
    %179 = arith.subf %177, %178 : vector<90x1xf32>
    %cst_62 = arith.constant 0.000000e+00 : f32
    %180 = vector.broadcast %cst_62 : f32 to vector<90x1xf32>
    %181 = arith.maximumf %179, %180 : vector<90x1xf32>
    %182 = arith.minimumf %164, %176 : vector<90x1xf32>
    %183 = arith.maximumf %161, %173 : vector<90x1xf32>
    %184 = arith.subf %182, %183 : vector<90x1xf32>
    %cst_63 = arith.constant 0.000000e+00 : f32
    %185 = vector.broadcast %cst_63 : f32 to vector<90x1xf32>
    %186 = arith.maximumf %184, %185 : vector<90x1xf32>
    %187 = arith.mulf %181, %186 : vector<90x1xf32>
    %188 = arith.subf %158, %155 : vector<90x1xf32>
    %189 = arith.subf %164, %161 : vector<90x1xf32>
    %cst_64 = arith.constant 1.000000e-07 : f32
    %190 = vector.broadcast %cst_64 : f32 to vector<90x1xf32>
    %191 = arith.addf %189, %190 : vector<90x1xf32>
    %192 = arith.subf %170, %167 : vector<90x1xf32>
    %193 = arith.subf %176, %173 : vector<90x1xf32>
    %cst_65 = arith.constant 1.000000e-07 : f32
    %194 = vector.broadcast %cst_65 : f32 to vector<90x1xf32>
    %195 = arith.addf %193, %194 : vector<90x1xf32>
    %196 = arith.mulf %188, %191 : vector<90x1xf32>
    %197 = arith.mulf %192, %195 : vector<90x1xf32>
    %198 = arith.addf %196, %197 : vector<90x1xf32>
    %199 = arith.subf %198, %187 : vector<90x1xf32>
    %cst_66 = arith.constant 1.000000e-07 : f32
    %200 = vector.broadcast %cst_66 : f32 to vector<90x1xf32>
    %201 = arith.addf %199, %200 : vector<90x1xf32>
    %202 = arith.divf %187, %201 : vector<90x1xf32>
    %203 = arith.maximumf %158, %170 : vector<90x1xf32>
    %204 = arith.minimumf %155, %167 : vector<90x1xf32>
    %205 = arith.subf %203, %204 : vector<90x1xf32>
    %206 = arith.maximumf %164, %176 : vector<90x1xf32>
    %207 = arith.minimumf %161, %173 : vector<90x1xf32>
    %208 = arith.subf %206, %207 : vector<90x1xf32>
    %209 = arith.mulf %205, %205 : vector<90x1xf32>
    %210 = arith.mulf %208, %208 : vector<90x1xf32>
    %211 = arith.addf %209, %210 : vector<90x1xf32>
    %cst_67 = arith.constant 1.000000e-07 : f32
    %212 = vector.broadcast %cst_67 : f32 to vector<90x1xf32>
    %213 = arith.addf %211, %212 : vector<90x1xf32>
    %214 = arith.addf %167, %170 : vector<90x1xf32>
    %215 = arith.subf %214, %155 : vector<90x1xf32>
    %216 = arith.subf %215, %158 : vector<90x1xf32>
    %217 = arith.mulf %216, %216 : vector<90x1xf32>
    %218 = arith.addf %173, %176 : vector<90x1xf32>
    %219 = arith.subf %218, %161 : vector<90x1xf32>
    %220 = arith.subf %219, %164 : vector<90x1xf32>
    %221 = arith.mulf %220, %220 : vector<90x1xf32>
    %222 = arith.addf %217, %221 : vector<90x1xf32>
    %cst_68 = arith.constant 2.500000e-01 : f32
    %223 = vector.broadcast %cst_68 : f32 to vector<90x1xf32>
    %224 = arith.mulf %222, %223 : vector<90x1xf32>
    %225 = tpu.iota {dimensions = array<i32: 1>} : vector<90x8xi32>
    %cst_69 = arith.constant 0.000000e+00 : f32
    %226 = vector.broadcast %cst_69 : f32 to vector<90x8xf32>
    %227 = arith.divf %224, %213 : vector<90x1xf32>
    %228 = arith.divf %188, %191 : vector<90x1xf32>
    %229 = arith.divf %192, %195 : vector<90x1xf32>
    %c0_i32_70 = arith.constant 0 : i32
    %230 = vector.broadcast %c0_i32_70 : i32 to vector<90x8xi32>
    %231 = arith.cmpi eq, %225, %230 : vector<90x8xi32>
    %232 = vector.shape_cast %202 : vector<90x1xf32> to vector<90x1xf32>
    %233 = vector.broadcast %232 : vector<90x1xf32> to vector<90x8xf32>
    %234 = arith.select %231, %233, %226 : vector<90x8xi1>, vector<90x8xf32>
    %c1_i32_71 = arith.constant 1 : i32
    %235 = vector.broadcast %c1_i32_71 : i32 to vector<90x8xi32>
    %236 = arith.cmpi eq, %225, %235 : vector<90x8xi32>
    %237 = vector.shape_cast %227 : vector<90x1xf32> to vector<90x1xf32>
    %238 = vector.broadcast %237 : vector<90x1xf32> to vector<90x8xf32>
    %239 = arith.select %236, %238, %234 : vector<90x8xi1>, vector<90x8xf32>
    %c2_i32_72 = arith.constant 2 : i32
    %240 = vector.broadcast %c2_i32_72 : i32 to vector<90x8xi32>
    %241 = arith.cmpi eq, %225, %240 : vector<90x8xi32>
    %242 = vector.shape_cast %228 : vector<90x1xf32> to vector<90x1xf32>
    %243 = vector.broadcast %242 : vector<90x1xf32> to vector<90x8xf32>
    %244 = arith.select %241, %243, %239 : vector<90x8xi1>, vector<90x8xf32>
    %c3_i32_73 = arith.constant 3 : i32
    %245 = vector.broadcast %c3_i32_73 : i32 to vector<90x8xi32>
    %246 = arith.cmpi eq, %225, %245 : vector<90x8xi32>
    %247 = vector.shape_cast %229 : vector<90x1xf32> to vector<90x1xf32>
    %248 = vector.broadcast %247 : vector<90x1xf32> to vector<90x8xf32>
    %249 = arith.select %246, %248, %244 : vector<90x8xi1>, vector<90x8xf32>
    %c4_i32_74 = arith.constant 4 : i32
    %250 = vector.broadcast %c4_i32_74 : i32 to vector<90x8xi32>
    %251 = arith.cmpi eq, %225, %250 : vector<90x8xi32>
    %252 = vector.shape_cast %44 : vector<90x1xf32> to vector<90x1xf32>
    %253 = vector.broadcast %252 : vector<90x1xf32> to vector<90x8xf32>
    %254 = arith.select %251, %253, %249 : vector<90x8xi1>, vector<90x8xf32>
    %c5_i32_75 = arith.constant 5 : i32
    %255 = vector.broadcast %c5_i32_75 : i32 to vector<90x8xi32>
    %256 = arith.cmpi eq, %225, %255 : vector<90x8xi32>
    %257 = vector.shape_cast %34 : vector<90x1xf32> to vector<90x1xf32>
    %258 = vector.broadcast %257 : vector<90x1xf32> to vector<90x8xf32>
    %259 = arith.select %256, %258, %254 : vector<90x8xi1>, vector<90x8xf32>
    %c0_76 = arith.constant 0 : index
    %c0_77 = arith.constant 0 : index
    %260 = vector.load %arg5[%c0_76, %c0_77] : memref<90x8xf32, #tpu.memory_space<vmem>>, vector<90x8xf32>
    tpu.vector_store %arg5[%c0_76, %c0_77], %259 {strides = array<i32>} : memref<90x8xf32, #tpu.memory_space<vmem>>, vector<90x8xf32>,
    return
  }
}

module attributes {stable_mosaic.version = 11 : i64} {
  func.func @_obj_base_kernel(%arg0: i32, %arg1: memref<24x64xf32, #tpu.memory_space<vmem>>, %arg2: memref<64x8xf32, #tpu.memory_space<vmem>>, %arg3: memref<1x8x128xf32, #tpu.memory_space<vmem>>) attributes {dimension_semantics = [#tpu.dimension_semantics<parallel>], iteration_bounds = array<i64: 2>, scalar_prefetch = 0 : i64, scratch_operands = 0 : i64, tpu.core_type = #tpu.core_type<tc>, window_params = [{transform_indices = @transform_0, window_bounds = array<i64: 24, 64>}, {pipeline_mode = #tpu.pipeline_mode<synchronous>, transform_indices = @transform_1, window_bounds = array<i64: 64, 8>}, {transform_indices = @transform_2, window_bounds = array<i64: 1, 8, 128>}]} {
    %c0 = arith.constant 0 : index
    %c0_0 = arith.constant 0 : index
    %0 = vector.load %arg1[%c0, %c0_0] : memref<24x64xf32, #tpu.memory_space<vmem>>, vector<24x64xf32>
    %c0_1 = arith.constant 0 : index
    %c0_2 = arith.constant 0 : index
    %1 = vector.load %arg2[%c0_1, %c0_2] : memref<64x8xf32, #tpu.memory_space<vmem>>, vector<64x8xf32>
    %cst = arith.constant dense<0.000000e+00> : vector<24x8xf32>
    %2 = tpu.matmul %0, %1, %cst {dimension_numbers = #tpu.dot_dimension_numbers<[1], [0], [0], [1], [0, 0, 1, 1], [], []>} : vector<24x64xf32>, vector<64x8xf32>, vector<24x8xf32> -> vector<24x8xf32>
    %c1_i32 = arith.constant 1 : i32
    %3 = arith.cmpi slt, %arg0, %c1_i32 : i32
    %4 = arith.extui %3 : i1 to i32
    %c0_i32 = arith.constant 0 : i32
    %5 = arith.cmpi ne, %4, %c0_i32 : i32
    scf.if %5 {
      %cst_5 = arith.constant 0.000000e+00 : f32
      %9 = vector.broadcast %cst_5 : f32 to vector<24x8xf32>
      %10 = arith.maximumf %2, %9 : vector<24x8xf32>
      %11 = math.absf %2 : vector<24x8xf32>
      %cst_6 = arith.constant 0.000000e+00 : f32
      %12 = vector.broadcast %cst_6 : f32 to vector<24x8xf32>
      %13 = arith.subf %12, %11 : vector<24x8xf32>
      %14 = math.exp %13 : vector<24x8xf32>
      %15 = math.log1p %14 : vector<24x8xf32>
      %16 = arith.addf %10, %15 : vector<24x8xf32>
      %17 = vector.shape_cast %16 : vector<24x8xf32> to vector<1x24x8xf32>
      %cst_7 = arith.constant dense<0.000000e+00> : vector<1xf32>
      %18 = vector.multi_reduction <add>, %17, %cst_7 [1, 2] : vector<1x24x8xf32> to vector<1xf32>
      %19 = vector.shape_cast %18 : vector<1xf32> to vector<1x1x1xf32>
      %20 = vector.extract %19[0, 0, 0] : f32 from vector<1x1x1xf32>
      %21 = vector.broadcast %20 : f32 to vector<1x8x128xf32>
      %c0_8 = arith.constant 0 : index
      %c0_9 = arith.constant 0 : index
      %c0_10 = arith.constant 0 : index
      %22 = vector.load %arg3[%c0_8, %c0_9, %c0_10] : memref<1x8x128xf32, #tpu.memory_space<vmem>>, vector<1x8x128xf32>
      tpu.vector_store %arg3[%c0_8, %c0_9, %c0_10], %21 {strides = array<i32>} : memref<1x8x128xf32, #tpu.memory_space<vmem>>, vector<1x8x128xf32>,
    } else {
    }
    %c1_i32_3 = arith.constant 1 : i32
    %6 = arith.cmpi eq, %arg0, %c1_i32_3 : i32
    %7 = arith.extui %6 : i1 to i32
    %c0_i32_4 = arith.constant 0 : i32
    %8 = arith.cmpi ne, %7, %c0_i32_4 : i32
    scf.if %8 {
      %9 = tpu.iota {dimensions = array<i32: 0>} : vector<24x8xi32>
      %c24_i32 = arith.constant 24 : i32
      %10 = arith.muli %arg0, %c24_i32 : i32
      %11 = vector.broadcast %10 : i32 to vector<24x8xi32>
      %12 = arith.addi %9, %11 : vector<24x8xi32>
      %c48_i32 = arith.constant 48 : i32
      %13 = vector.broadcast %c48_i32 : i32 to vector<24x8xi32>
      %14 = arith.cmpi slt, %12, %13 : vector<24x8xi32>
      %cst_5 = arith.constant 0.000000e+00 : f32
      %15 = vector.broadcast %cst_5 : f32 to vector<24x8xf32>
      %16 = arith.select %14, %2, %15 : vector<24x8xi1>, vector<24x8xf32>
      %cst_6 = arith.constant 0.000000e+00 : f32
      %17 = vector.broadcast %cst_6 : f32 to vector<24x8xf32>
      %18 = arith.maximumf %16, %17 : vector<24x8xf32>
      %19 = math.absf %16 : vector<24x8xf32>
      %cst_7 = arith.constant 0.000000e+00 : f32
      %20 = vector.broadcast %cst_7 : f32 to vector<24x8xf32>
      %21 = arith.subf %20, %19 : vector<24x8xf32>
      %22 = math.exp %21 : vector<24x8xf32>
      %23 = math.log1p %22 : vector<24x8xf32>
      %24 = arith.addf %18, %23 : vector<24x8xf32>
      %25 = arith.extui %14 : vector<24x8xi1> to vector<24x8xi32>
      %26 = arith.sitofp %25 : vector<24x8xi32> to vector<24x8xf32>
      %27 = arith.mulf %24, %26 : vector<24x8xf32>
      %28 = vector.shape_cast %27 : vector<24x8xf32> to vector<1x24x8xf32>
      %cst_8 = arith.constant dense<0.000000e+00> : vector<1xf32>
      %29 = vector.multi_reduction <add>, %28, %cst_8 [1, 2] : vector<1x24x8xf32> to vector<1xf32>
      %30 = vector.shape_cast %29 : vector<1xf32> to vector<1x1x1xf32>
      %31 = vector.extract %30[0, 0, 0] : f32 from vector<1x1x1xf32>
      %32 = vector.broadcast %31 : f32 to vector<1x8x128xf32>
      %c0_9 = arith.constant 0 : index
      %c0_10 = arith.constant 0 : index
      %c0_11 = arith.constant 0 : index
      %33 = vector.load %arg3[%c0_9, %c0_10, %c0_11] : memref<1x8x128xf32, #tpu.memory_space<vmem>>, vector<1x8x128xf32>
      tpu.vector_store %arg3[%c0_9, %c0_10, %c0_11], %32 {strides = array<i32>} : memref<1x8x128xf32, #tpu.memory_space<vmem>>, vector<1x8x128xf32>,
    } else {
    }
    return
  }
  func.func @transform_0(%arg0: i32) -> (i32, i32) {
    %c0_i32 = arith.constant 0 : i32
    %c0_i32_0 = arith.constant 0 : i32
    return %arg0, %c0_i32 : i32, i32
  }
  func.func @transform_1(%arg0: i32) -> (i32, i32) {
    %c0_i32 = arith.constant 0 : i32
    %c0_i32_0 = arith.constant 0 : i32
    %c0_i32_1 = arith.constant 0 : i32
    return %c0_i32, %c0_i32_0 : i32, i32
  }
  func.func @transform_2(%arg0: i32) -> (i32, i32, i32) {
    %c0_i32 = arith.constant 0 : i32
    %c0_i32_0 = arith.constant 0 : i32
    %c0_i32_1 = arith.constant 0 : i32
    return %arg0, %c0_i32, %c0_i32_0 : i32, i32, i32
  }
}

module attributes {stable_mosaic.version = 11 : i64} {
  func.func @_obj_base_kernel(%arg0: i32, %arg1: memref<16x32xf32, #tpu.memory_space<vmem>>, %arg2: memref<32x4xf32, #tpu.memory_space<vmem>>, %arg3: memref<1x8x128xf32, #tpu.memory_space<vmem>>) attributes {dimension_semantics = [#tpu.dimension_semantics<parallel>], iteration_bounds = array<i64: 2>, scalar_prefetch = 0 : i64, scratch_operands = 0 : i64, tpu.core_type = #tpu.core_type<tc>, window_params = [{transform_indices = @transform_0, window_bounds = array<i64: 16, 32>}, {pipeline_mode = #tpu.pipeline_mode<synchronous>, transform_indices = @transform_1, window_bounds = array<i64: 32, 4>}, {transform_indices = @transform_2, window_bounds = array<i64: 1, 8, 128>}]} {
    %c0 = arith.constant 0 : index
    %c0_0 = arith.constant 0 : index
    %0 = vector.load %arg1[%c0, %c0_0] : memref<16x32xf32, #tpu.memory_space<vmem>>, vector<16x32xf32>
    %c0_1 = arith.constant 0 : index
    %c0_2 = arith.constant 0 : index
    %1 = vector.load %arg2[%c0_1, %c0_2] : memref<32x4xf32, #tpu.memory_space<vmem>>, vector<32x4xf32>
    %cst = arith.constant dense<0.000000e+00> : vector<16x4xf32>
    %2 = tpu.matmul %0, %1, %cst {dimension_numbers = #tpu.dot_dimension_numbers<[1], [0], [0], [1], [0, 0, 1, 1], [], []>} : vector<16x32xf32>, vector<32x4xf32>, vector<16x4xf32> -> vector<16x4xf32>
    %c1_i32 = arith.constant 1 : i32
    %3 = arith.cmpi slt, %arg0, %c1_i32 : i32
    %4 = arith.extui %3 : i1 to i32
    %c0_i32 = arith.constant 0 : i32
    %5 = arith.cmpi ne, %4, %c0_i32 : i32
    scf.if %5 {
      %cst_5 = arith.constant 0.000000e+00 : f32
      %9 = vector.broadcast %cst_5 : f32 to vector<16x4xf32>
      %10 = arith.maximumf %2, %9 : vector<16x4xf32>
      %11 = math.absf %2 : vector<16x4xf32>
      %cst_6 = arith.constant 0.000000e+00 : f32
      %12 = vector.broadcast %cst_6 : f32 to vector<16x4xf32>
      %13 = arith.subf %12, %11 : vector<16x4xf32>
      %14 = math.exp %13 : vector<16x4xf32>
      %15 = math.log1p %14 : vector<16x4xf32>
      %16 = arith.addf %10, %15 : vector<16x4xf32>
      %17 = vector.shape_cast %16 : vector<16x4xf32> to vector<1x16x4xf32>
      %cst_7 = arith.constant dense<0.000000e+00> : vector<1xf32>
      %18 = vector.multi_reduction <add>, %17, %cst_7 [1, 2] : vector<1x16x4xf32> to vector<1xf32>
      %19 = vector.shape_cast %18 : vector<1xf32> to vector<1x1x1xf32>
      %20 = vector.extract %19[0, 0, 0] : f32 from vector<1x1x1xf32>
      %21 = vector.broadcast %20 : f32 to vector<1x8x128xf32>
      %c0_8 = arith.constant 0 : index
      %c0_9 = arith.constant 0 : index
      %c0_10 = arith.constant 0 : index
      %22 = vector.load %arg3[%c0_8, %c0_9, %c0_10] : memref<1x8x128xf32, #tpu.memory_space<vmem>>, vector<1x8x128xf32>
      tpu.vector_store %arg3[%c0_8, %c0_9, %c0_10], %21 {strides = array<i32>} : memref<1x8x128xf32, #tpu.memory_space<vmem>>, vector<1x8x128xf32>,
    } else {
    }
    %c1_i32_3 = arith.constant 1 : i32
    %6 = arith.cmpi eq, %arg0, %c1_i32_3 : i32
    %7 = arith.extui %6 : i1 to i32
    %c0_i32_4 = arith.constant 0 : i32
    %8 = arith.cmpi ne, %7, %c0_i32_4 : i32
    scf.if %8 {
      %9 = tpu.iota {dimensions = array<i32: 0>} : vector<16x4xi32>
      %c16_i32 = arith.constant 16 : i32
      %10 = arith.muli %arg0, %c16_i32 : i32
      %11 = vector.broadcast %10 : i32 to vector<16x4xi32>
      %12 = arith.addi %9, %11 : vector<16x4xi32>
      %c24_i32 = arith.constant 24 : i32
      %13 = vector.broadcast %c24_i32 : i32 to vector<16x4xi32>
      %14 = arith.cmpi slt, %12, %13 : vector<16x4xi32>
      %cst_5 = arith.constant 0.000000e+00 : f32
      %15 = vector.broadcast %cst_5 : f32 to vector<16x4xf32>
      %16 = arith.select %14, %2, %15 : vector<16x4xi1>, vector<16x4xf32>
      %cst_6 = arith.constant 0.000000e+00 : f32
      %17 = vector.broadcast %cst_6 : f32 to vector<16x4xf32>
      %18 = arith.maximumf %16, %17 : vector<16x4xf32>
      %19 = math.absf %16 : vector<16x4xf32>
      %cst_7 = arith.constant 0.000000e+00 : f32
      %20 = vector.broadcast %cst_7 : f32 to vector<16x4xf32>
      %21 = arith.subf %20, %19 : vector<16x4xf32>
      %22 = math.exp %21 : vector<16x4xf32>
      %23 = math.log1p %22 : vector<16x4xf32>
      %24 = arith.addf %18, %23 : vector<16x4xf32>
      %25 = arith.extui %14 : vector<16x4xi1> to vector<16x4xi32>
      %26 = arith.sitofp %25 : vector<16x4xi32> to vector<16x4xf32>
      %27 = arith.mulf %24, %26 : vector<16x4xf32>
      %28 = vector.shape_cast %27 : vector<16x4xf32> to vector<1x16x4xf32>
      %cst_8 = arith.constant dense<0.000000e+00> : vector<1xf32>
      %29 = vector.multi_reduction <add>, %28, %cst_8 [1, 2] : vector<1x16x4xf32> to vector<1xf32>
      %30 = vector.shape_cast %29 : vector<1xf32> to vector<1x1x1xf32>
      %31 = vector.extract %30[0, 0, 0] : f32 from vector<1x1x1xf32>
      %32 = vector.broadcast %31 : f32 to vector<1x8x128xf32>
      %c0_9 = arith.constant 0 : index
      %c0_10 = arith.constant 0 : index
      %c0_11 = arith.constant 0 : index
      %33 = vector.load %arg3[%c0_9, %c0_10, %c0_11] : memref<1x8x128xf32, #tpu.memory_space<vmem>>, vector<1x8x128xf32>
      tpu.vector_store %arg3[%c0_9, %c0_10, %c0_11], %32 {strides = array<i32>} : memref<1x8x128xf32, #tpu.memory_space<vmem>>, vector<1x8x128xf32>,
    } else {
    }
    return
  }
  func.func @transform_0(%arg0: i32) -> (i32, i32) {
    %c0_i32 = arith.constant 0 : i32
    %c0_i32_0 = arith.constant 0 : i32
    return %arg0, %c0_i32 : i32, i32
  }
  func.func @transform_1(%arg0: i32) -> (i32, i32) {
    %c0_i32 = arith.constant 0 : i32
    %c0_i32_0 = arith.constant 0 : i32
    %c0_i32_1 = arith.constant 0 : i32
    return %c0_i32, %c0_i32_0 : i32, i32
  }
  func.func @transform_2(%arg0: i32) -> (i32, i32, i32) {
    %c0_i32 = arith.constant 0 : i32
    %c0_i32_0 = arith.constant 0 : i32
    %c0_i32_1 = arith.constant 0 : i32
    return %arg0, %c0_i32, %c0_i32_0 : i32, i32, i32
  }
}

module attributes {stable_mosaic.version = 11 : i64} {
  func.func @_obj_base_kernel(%arg0: i32, %arg1: memref<8x16xf32, #tpu.memory_space<vmem>>, %arg2: memref<16x2xf32, #tpu.memory_space<vmem>>, %arg3: memref<1x8x128xf32, #tpu.memory_space<vmem>>) attributes {dimension_semantics = [#tpu.dimension_semantics<parallel>], iteration_bounds = array<i64: 2>, scalar_prefetch = 0 : i64, scratch_operands = 0 : i64, tpu.core_type = #tpu.core_type<tc>, window_params = [{transform_indices = @transform_0, window_bounds = array<i64: 8, 16>}, {pipeline_mode = #tpu.pipeline_mode<synchronous>, transform_indices = @transform_1, window_bounds = array<i64: 16, 2>}, {transform_indices = @transform_2, window_bounds = array<i64: 1, 8, 128>}]} {
    %c0 = arith.constant 0 : index
    %c0_0 = arith.constant 0 : index
    %0 = vector.load %arg1[%c0, %c0_0] : memref<8x16xf32, #tpu.memory_space<vmem>>, vector<8x16xf32>
    %c0_1 = arith.constant 0 : index
    %c0_2 = arith.constant 0 : index
    %1 = vector.load %arg2[%c0_1, %c0_2] : memref<16x2xf32, #tpu.memory_space<vmem>>, vector<16x2xf32>
    %cst = arith.constant dense<0.000000e+00> : vector<8x2xf32>
    %2 = tpu.matmul %0, %1, %cst {dimension_numbers = #tpu.dot_dimension_numbers<[1], [0], [0], [1], [0, 0, 1, 1], [], []>} : vector<8x16xf32>, vector<16x2xf32>, vector<8x2xf32> -> vector<8x2xf32>
    %c1_i32 = arith.constant 1 : i32
    %3 = arith.cmpi slt, %arg0, %c1_i32 : i32
    %4 = arith.extui %3 : i1 to i32
    %c0_i32 = arith.constant 0 : i32
    %5 = arith.cmpi ne, %4, %c0_i32 : i32
    scf.if %5 {
      %cst_5 = arith.constant 0.000000e+00 : f32
      %9 = vector.broadcast %cst_5 : f32 to vector<8x2xf32>
      %10 = arith.maximumf %2, %9 : vector<8x2xf32>
      %11 = math.absf %2 : vector<8x2xf32>
      %cst_6 = arith.constant 0.000000e+00 : f32
      %12 = vector.broadcast %cst_6 : f32 to vector<8x2xf32>
      %13 = arith.subf %12, %11 : vector<8x2xf32>
      %14 = math.exp %13 : vector<8x2xf32>
      %15 = math.log1p %14 : vector<8x2xf32>
      %16 = arith.addf %10, %15 : vector<8x2xf32>
      %17 = vector.shape_cast %16 : vector<8x2xf32> to vector<1x8x2xf32>
      %cst_7 = arith.constant dense<0.000000e+00> : vector<1xf32>
      %18 = vector.multi_reduction <add>, %17, %cst_7 [1, 2] : vector<1x8x2xf32> to vector<1xf32>
      %19 = vector.shape_cast %18 : vector<1xf32> to vector<1x1x1xf32>
      %20 = vector.extract %19[0, 0, 0] : f32 from vector<1x1x1xf32>
      %21 = vector.broadcast %20 : f32 to vector<1x8x128xf32>
      %c0_8 = arith.constant 0 : index
      %c0_9 = arith.constant 0 : index
      %c0_10 = arith.constant 0 : index
      %22 = vector.load %arg3[%c0_8, %c0_9, %c0_10] : memref<1x8x128xf32, #tpu.memory_space<vmem>>, vector<1x8x128xf32>
      tpu.vector_store %arg3[%c0_8, %c0_9, %c0_10], %21 {strides = array<i32>} : memref<1x8x128xf32, #tpu.memory_space<vmem>>, vector<1x8x128xf32>,
    } else {
    }
    %c1_i32_3 = arith.constant 1 : i32
    %6 = arith.cmpi eq, %arg0, %c1_i32_3 : i32
    %7 = arith.extui %6 : i1 to i32
    %c0_i32_4 = arith.constant 0 : i32
    %8 = arith.cmpi ne, %7, %c0_i32_4 : i32
    scf.if %8 {
      %9 = tpu.iota {dimensions = array<i32: 0>} : vector<8x2xi32>
      %c8_i32 = arith.constant 8 : i32
      %10 = arith.muli %arg0, %c8_i32 : i32
      %11 = vector.broadcast %10 : i32 to vector<8x2xi32>
      %12 = arith.addi %9, %11 : vector<8x2xi32>
      %c12_i32 = arith.constant 12 : i32
      %13 = vector.broadcast %c12_i32 : i32 to vector<8x2xi32>
      %14 = arith.cmpi slt, %12, %13 : vector<8x2xi32>
      %cst_5 = arith.constant 0.000000e+00 : f32
      %15 = vector.broadcast %cst_5 : f32 to vector<8x2xf32>
      %16 = arith.select %14, %2, %15 : vector<8x2xi1>, vector<8x2xf32>
      %cst_6 = arith.constant 0.000000e+00 : f32
      %17 = vector.broadcast %cst_6 : f32 to vector<8x2xf32>
      %18 = arith.maximumf %16, %17 : vector<8x2xf32>
      %19 = math.absf %16 : vector<8x2xf32>
      %cst_7 = arith.constant 0.000000e+00 : f32
      %20 = vector.broadcast %cst_7 : f32 to vector<8x2xf32>
      %21 = arith.subf %20, %19 : vector<8x2xf32>
      %22 = math.exp %21 : vector<8x2xf32>
      %23 = math.log1p %22 : vector<8x2xf32>
      %24 = arith.addf %18, %23 : vector<8x2xf32>
      %25 = arith.extui %14 : vector<8x2xi1> to vector<8x2xi32>
      %26 = arith.sitofp %25 : vector<8x2xi32> to vector<8x2xf32>
      %27 = arith.mulf %24, %26 : vector<8x2xf32>
      %28 = vector.shape_cast %27 : vector<8x2xf32> to vector<1x8x2xf32>
      %cst_8 = arith.constant dense<0.000000e+00> : vector<1xf32>
      %29 = vector.multi_reduction <add>, %28, %cst_8 [1, 2] : vector<1x8x2xf32> to vector<1xf32>
      %30 = vector.shape_cast %29 : vector<1xf32> to vector<1x1x1xf32>
      %31 = vector.extract %30[0, 0, 0] : f32 from vector<1x1x1xf32>
      %32 = vector.broadcast %31 : f32 to vector<1x8x128xf32>
      %c0_9 = arith.constant 0 : index
      %c0_10 = arith.constant 0 : index
      %c0_11 = arith.constant 0 : index
      %33 = vector.load %arg3[%c0_9, %c0_10, %c0_11] : memref<1x8x128xf32, #tpu.memory_space<vmem>>, vector<1x8x128xf32>
      tpu.vector_store %arg3[%c0_9, %c0_10, %c0_11], %32 {strides = array<i32>} : memref<1x8x128xf32, #tpu.memory_space<vmem>>, vector<1x8x128xf32>,
    } else {
    }
    return
  }
  func.func @transform_0(%arg0: i32) -> (i32, i32) {
    %c0_i32 = arith.constant 0 : i32
    %c0_i32_0 = arith.constant 0 : i32
    return %arg0, %c0_i32 : i32, i32
  }
  func.func @transform_1(%arg0: i32) -> (i32, i32) {
    %c0_i32 = arith.constant 0 : i32
    %c0_i32_0 = arith.constant 0 : i32
    %c0_i32_1 = arith.constant 0 : i32
    return %c0_i32, %c0_i32_0 : i32, i32
  }
  func.func @transform_2(%arg0: i32) -> (i32, i32, i32) {
    %c0_i32 = arith.constant 0 : i32
    %c0_i32_0 = arith.constant 0 : i32
    %c0_i32_1 = arith.constant 0 : i32
    return %arg0, %c0_i32, %c0_i32_0 : i32, i32, i32
  }
}

</mosaic_0001>

<bundles_post_ra>
// kernel: set_criterion_forward.7
= control target key start
LH: loop header
LB: loop body
LE: loop exit
PB: predicated region body
PF: predicated region fallthrough
CT: control target
= control target key end

     0   :  { %v3957_v0 = vmov 0   ;;  %v56_v31 = vlaneseq  ;;  %v3958_v59 = vmov 0.0   ;;  %vm374_vm3 = vcmask 64512   ;;  %s8437_s3 = inlined_call_operand.vmem [shape: s32[90,1], index: 3, kind: input, shape index: {}]   ;;  %s8438_s0 = inlined_call_operand.vmem [shape: f32[90,8], index: 0, kind: input, shape index: {}]   ;;  %s8439_s2 = inlined_call_operand.vmem [shape: f32[90,2], index: 2, kind: input, shape index: {}]   ;;  %s8440_s1 = inlined_call_operand.vmem [shape: f32[90,4], index: 1, kind: input, shape index: {}]   ;;  %s8441_s4 = inlined_call_operand.vmem [shape: f32[90,1], index: 4, kind: input, shape index: {}]   ;;  %s8442_s5 = inlined_call_operand.vmem [shape: f32[90,8], index: 5, kind: output, shape index: {}]  }
   0x1   :  { %3602 = vset.pattern.permute.xlu1 %v3957_v0  ;;  %3601 = vset.pattern.permute.xlu0 %v3957_v0  ;;  %v46_v1 = vld [vmem:[%s8437_s3 + $0x10] sm:$0xff]  ;;  %v44_v2 = vld [vmem:[%s8437_s3] sm:$0xff]  ;;  %v4001_v4 = vld [vmem:[%s8438_s0 + $0x8] sm:$0xff]  ;;  %vm8528_vm14 = vcmask 58368  }
   0x2   :  { %v48_v3 = vld [vmem:[%s8437_s3 + $0x20] sm:$0xff]  ;;  %258 = vperm.xlu1 %3602, %v46_v1   ;;  %252 = vperm.xlu0 %3601, %v44_v2   ;;  %v71_v5 = vand.u32 2147483647, %v4001_v4  ;;  %v47_v6 = vld [vmem:[%s8437_s3 + $0x18] sm:$0xff]  ;;  %v45_v7 = vld [vmem:[%s8437_s3 + $0x8] sm:$0xff]  ;;  %v59_v29 = vmax.f32 %v4001_v4, 0.0 }
   0x3   :  { %3603 = vset.pattern.permute.xlu2 %v3957_v0  ;;  %v49_v9 = vld [vmem:[%s8437_s3 + $0x28] sm:$0xff]  ;;  %v51_v11 = vld [vmem:[%s8437_s3 + $0x38] sm:$0xff]  ;;  %v50_v12 = vld [vmem:[%s8437_s3 + $0x30] sm:$0xff]  ;;  %v4058_v42 = vand.u32 127, %v56_v31 }
   0x4   :  { %264 = vperm.xlu2 %3603, %v48_v3   ;;  %v83_v8 = vsub.f32 0.0, %v71_v5  ;;  %v52_v13 = vld [vmem:[%s8437_s3 + $0x40] sm:$0xff]  ;;  %v54_v16 = vld [vmem:[%s8437_s3 + $0x50] sm:$0xff]  ;;  %v53_v17 = vld [vmem:[%s8437_s3 + $0x48] sm:$0xff] }
   0x5   :  { %v55_v19 = vld [vmem:[%s8437_s3 + $0x58] sm:$0x3]  ;;  %v4034_v23 = vld [vmem:[%s8438_s0] sm:$0xff]  ;;  %v4046_v33 = vld [vmem:[%s8438_s0 + $0x10] sm:$0xff]  ;;  %8727 = vst [vmem:[#allocation2_spill] sm:$0xff] %v4058_v42  ;;  %vm424_vm1 = vcmp.eq.s32.totalorder %v4058_v42, 4 }
   0x6   :  { %v96_v10 = vmul.f32 1.442695, %v83_v8  ;;  %v70_v24 = vand.u32 2147483647, %v4034_v23  ;;  %v4041_v32 = vld [vmem:[%s8438_s0 + $0x20] sm:$0xff]  ;;  %v4051_v34 = vld [vmem:[%s8438_s0 + $0x18] sm:$0xff] }
   0x7   :  { %v74_v35 = vand.u32 2147483647, %v4041_v32  ;;  %v72_v36 = vand.u32 2147483647, %v4046_v33  ;;  %v73_v37 = vand.u32 2147483647, %v4051_v34 }
   0x8   :  { %3604 = vpow2.f32 %v96_v10  ;;  %v82_v27 = vsub.f32 0.0, %v70_v24  ;;  %v4068_v51 = vld [vmem:[%s8438_s0 + $0x28] sm:$0xff]  ;;  %v4073_v52 = vld [vmem:[%s8438_s0 + $0x38] sm:$0xff]  ;;  %v4078_v53 = vld [vmem:[%s8438_s0 + $0x30] sm:$0xff]  ;;  %v4088_v60 = vsel %vm424_vm1, 1.0, %v3958_v59 }
   0x9   :  { %v86_v39 = vsub.f32 0.0, %v74_v35  ;;  %v84_v40 = vsub.f32 0.0, %v72_v36  ;;  %v85_v41 = vsub.f32 0.0, %v73_v37  ;;  %v75_v54 = vand.u32 2147483647, %v4068_v51 }
   0xa   :  { %261 = vperm.xlu1 %3602, %v47_v6   ;;  %255 = vperm.xlu0 %3601, %v45_v7   ;;  %v94_v28 = vmul.f32 1.442695, %v82_v27  ;;  %v77_v55 = vand.u32 2147483647, %v4073_v52  ;;  %v76_v56 = vand.u32 2147483647, %v4078_v53 }
   0xb   :  { %v102_v44 = vmul.f32 1.442695, %v86_v39  ;;  %v98_v45 = vmul.f32 1.442695, %v84_v40  ;;  %v100_v49 = vmul.f32 1.442695, %v85_v41 }
   0xc   :  { %267 = vperm.xlu2 %3603, %v49_v9   ;;  %v87_v61 = vsub.f32 0.0, %v75_v54  ;;  %v89_v62 = vsub.f32 0.0, %v77_v55  ;;  %v88_v63 = vsub.f32 0.0, %v76_v56  ;;  %v58_v7 = vmax.f32 %v4034_v23, 0.0 }
   0xd   :  { %v62_v56 = vmax.f32 %v4041_v32, 0.0 }
   0xe   :  { %v3605_v14 = vpop.eup %3604  ;;  %v104_v2 = vmul.f32 1.442695, %v87_v61  ;;  %v108_v3 = vmul.f32 1.442695, %v89_v62 }
   0xf   :  { %v127_v15 = vadd.f32 1.0, %v3605_v14  ;;  %v130_v18 = vmul.f32 -0.5, %v3605_v14  ;;  %v133_v22 = vand.u32 2147483647, %v3605_v14 }
  0x11   :  { %3606 = vlog2.f32 %v127_v15  ;;  %v131_v20 = vadd.f32 1.0, %v130_v18  ;;  %vm134_vm0 = vcmp.lt.f32.partialorder %v133_v22, 0.0004427343  ;;  %v4099_v15 = vld [vmem:[%s8438_s0 + $0x40] sm:$0xff] }
  0x12   :  { %273 = vperm.xlu1 %3602, %v51_v11   ;;  %270 = vperm.xlu0 %3601, %v50_v12   ;;  %3608 = vpow2.f32 %v94_v28  ;;  %v78_v18 = vand.u32 2147483647, %v4099_v15 }
  0x13   :  { %v132_v26 = vmul.f32 %v3605_v14, %v131_v20  ;;  %3610 = vpow2.f32 %v102_v44  ;;  %v106_v14 = vmul.f32 1.442695, %v88_v63  ;;  %v4112_v20 = vld [vmem:[%s8438_s0 + $0x48] sm:$0xff]  ;;  %v61_v63 = vmax.f32 %v4051_v34, 0.0 }
  0x14   :  { %276 = vperm.xlu2 %3603, %v52_v13   ;;  %v4123_v37 = vsub.f32 0.0, %v78_v18 }
  0x17   :  { %v3607_v21 = vpop.eup %3606 }
  0x18   :  { %v129_v25 = vmul.f32 0.6931472, %v3607_v21  ;;  %v3609_v43 = vpop.eup %3608 }
  0x19   :  { %v118_v47 = vadd.f32 1.0, %v3609_v43  ;;  %v121_v48 = vmul.f32 -0.5, %v3609_v43  ;;  %v124_v58 = vand.u32 2147483647, %v3609_v43  ;;  %v3611_v0 = vpop.eup %3610 }
  0x1a   :  { %282 = vperm.xlu1 %3602, %v54_v16   ;;  %279 = vperm.xlu0 %3601, %v53_v17   ;;  %v135_v30 = vsel %vm134_vm0, %v132_v26, %v129_v25  ;;  %v154_v9 = vadd.f32 1.0, %v3611_v0  ;;  %v157_v24 = vmul.f32 -0.5, %v3611_v0  ;;  %v160_v41 = vand.u32 2147483647, %v3611_v0 }
  0x1b   :  { %v4056_v38 = vadd.f32 %v135_v30, %v59_v29  ;;  %3612 = vlog2.f32 %v118_v47  ;;  %v122_v50 = vadd.f32 1.0, %v121_v48  ;;  %vm4092_vm2 = vcmp.lt.f32.partialorder %v124_v58, 0.0004427343 }
  0x1c   :  { %285 = vperm.xlu2 %3603, %v55_v19   ;;  %3614 = vpow2.f32 %v98_v45  ;;  %v4107_v19 = vld [vmem:[%s8438_s0 + $0x50] sm:$0xff]  ;;  %v79_v29 = vand.u32 2147483647, %v4112_v20  ;;  %v158_v31 = vadd.f32 1.0, %v157_v24  ;;  %vm161_vm4 = vcmp.lt.f32.partialorder %v160_v41, 0.0004427343 }
  0x1d   :  { %v4062_v46 = vsub.f32 %v4056_v38, %v4001_v4  ;;  %3616 = vpow2.f32 %v100_v49  ;;  %v123_v1 = vmul.f32 %v3609_v43, %v122_v50  ;;  %v80_v28 = vand.u32 2147483647, %v4107_v19 }
  0x1e   :  { %3618 = vpow2.f32 %v104_v2  ;;  %v159_v48 = vmul.f32 %v3611_v0, %v158_v31  ;;  %v91_v41 = vsub.f32 0.0, %v79_v29  ;;  %v4174_v29 = vld [vmem:[%s8438_s0 + $0x58] sm:$0x3] }
  0x1f   :  { %v428_v57 = vsub.f32 %v4062_v46, %v4056_v38  ;;  %3620 = vlog2.f32 %v154_v9 }
  0x20   :  { %3622 = vpow2.f32 %v108_v3 }
  0x21   :  { %v3613_v5 = vpop.eup %3612  ;;  %v440_v6 = vmul.f32 %v4088_v60, %v428_v57  ;;  %v60_v57 = vmax.f32 %v4046_v33, 0.0 }
  0x22   :  { %v3615_v10 = vpop.eup %3614  ;;  %v120_v11 = vmul.f32 0.6931472, %v3613_v5 }
  0x23   :  { %v3617_v12 = vpop.eup %3616  ;;  %v136_v13 = vadd.f32 1.0, %v3615_v10  ;;  %v454_v21 = vsel %vm374_vm3, %v440_v6, 0.0  ;;  %v139_v25 = vmul.f32 -0.5, %v3615_v10  ;;  %v142_v43 = vand.u32 2147483647, %v3615_v10 }
  0x24   :  { %v126_v16 = vsel %vm4092_vm2, %v123_v1, %v120_v11  ;;  %v145_v17 = vadd.f32 1.0, %v3617_v12  ;;  %v148_v26 = vmul.f32 -0.5, %v3617_v12  ;;  %v3619_v30 = vpop.eup %3618  ;;  %v151_v44 = vand.u32 2147483647, %v3617_v12 }
  0x25   :  { %v4115_v22 = vadd.f32 %v126_v16, %v58_v7  ;;  %3624 = vlog2.f32 %v136_v13  ;;  %v140_v35 = vadd.f32 1.0, %v139_v25  ;;  %v3621_v39 = vpop.eup %3620  ;;  %vm143_vm5 = vcmp.lt.f32.partialorder %v142_v43, 0.0004427343 }
  0x26   :  { %3626 = vlog2.f32 %v145_v17  ;;  %v149_v36 = vadd.f32 1.0, %v148_v26  ;;  %v3623_v45 = vpop.eup %3622  ;;  %v156_v47 = vmul.f32 0.6931472, %v3621_v39  ;;  %vm152_vm6 = vcmp.lt.f32.partialorder %v151_v44, 0.0004427343 }
  0x27   :  { %v4119_v27 = vsub.f32 %v4115_v22, %v4034_v23  ;;  %3628 = vpow2.f32 %v106_v14  ;;  %v141_v49 = vmul.f32 %v3615_v10, %v140_v35  ;;  %v163_v6 = vadd.f32 1.0, %v3619_v30 }
  0x28   :  { %v150_v50 = vmul.f32 %v3617_v12, %v149_v36  ;;  %v162_v61 = vsel %vm161_vm4, %v159_v48, %v156_v47  ;;  %v166_v7 = vmul.f32 -0.5, %v3619_v30  ;;  %v181_v8 = vadd.f32 1.0, %v3623_v45 }
  0x29   :  { %v427_v40 = vsub.f32 %v4119_v27, %v4115_v22  ;;  %v4134_v2 = vadd.f32 %v162_v61, %v62_v56  ;;  %v184_v12 = vmul.f32 -0.5, %v3623_v45  ;;  %3630 = vlog2.f32 %v163_v6 }
  0x2a   :  { %v167_v14 = vadd.f32 1.0, %v166_v7  ;;  %v169_v24 = vand.u32 2147483647, %v3619_v30  ;;  %3632 = vlog2.f32 %v181_v8  ;;  %v187_v31 = vand.u32 2147483647, %v3623_v45 }
  0x2b   :  { %v3625_v54 = vpop.eup %3624  ;;  %v439_v55 = vmul.f32 %v4088_v60, %v427_v40  ;;  %v4138_v9 = vsub.f32 %v4134_v2, %v4041_v32  ;;  %v185_v26 = vadd.f32 1.0, %v184_v12  ;;  %v92_v35 = vsub.f32 0.0, %v80_v28 }
  0x2c   :  { %v3627_v58 = vpop.eup %3626  ;;  %v138_v62 = vmul.f32 0.6931472, %v3625_v54  ;;  %v168_v40 = vmul.f32 %v3619_v30, %v167_v14  ;;  %vm4161_vm7 = vcmp.lt.f32.partialorder %v169_v24, 0.0004427343  ;;  %v65_v47 = vmax.f32 %v4073_v52, 0.0 }
  0x2d   :  { %v4131_v1 = vpop.eup %3628  ;;  %v451_v0 = vsel %vm374_vm3, %v439_v55, 0.0  ;;  %v147_v3 = vmul.f32 0.6931472, %v3627_v58  ;;  %v431_v18 = vsub.f32 %v4138_v9, %v4134_v2  ;;  %v186_v48 = vmul.f32 %v3623_v45, %v185_v26 }
  0x2e   :  { %v144_v5 = vsel %vm143_vm5, %v141_v49, %v138_v62  ;;  %v172_v16 = vadd.f32 1.0, %v4131_v1  ;;  %vm4167_vm8 = vcmp.lt.f32.partialorder %v187_v31, 0.0004427343  ;;  %v175_v54 = vmul.f32 -0.5, %v4131_v1 }
  0x2f   :  { %v4140_v10 = vadd.f32 %v144_v5, %v60_v57  ;;  %v153_v11 = vsel %vm152_vm6, %v150_v50, %v147_v3  ;;  %v443_v39 = vmul.f32 %v4088_v60, %v431_v18  ;;  %v3631_v30 = vpop.eup %3630  ;;  %v178_v55 = vand.u32 2147483647, %v4131_v1 }
  0x30   :  { %v4142_v13 = vadd.f32 %v153_v11, %v61_v63  ;;  %3634 = vlog2.f32 %v172_v16  ;;  %v110_v56 = vmul.f32 1.442695, %v4123_v37  ;;  %v3633_v45 = vpop.eup %3632  ;;  %v165_v61 = vmul.f32 0.6931472, %v3631_v30 }
  0x31   :  { %v4147_v17 = vsub.f32 %v4140_v10, %v4046_v33  ;;  %v463_v58 = vsel %vm374_vm3, %v443_v39, 0.0  ;;  %v114_v62 = vmul.f32 1.442695, %v92_v35  ;;  %v176_v3 = vadd.f32 1.0, %v175_v54 }
  0x32   :  { %v4153_v25 = vsub.f32 %v4142_v13, %v4051_v34  ;;  %v171_v5 = vsel %vm4161_vm7, %v168_v40, %v165_v61  ;;  %3636 = vpow2.f32 %v110_v56  ;;  %v112_v6 = vmul.f32 1.442695, %v91_v41 }
  0x33   :  { %v429_v36 = vsub.f32 %v4147_v17, %v4140_v10  ;;  %v81_v7 = vand.u32 2147483647, %v4174_v29  ;;  %v177_v11 = vmul.f32 %v4131_v1, %v176_v3  ;;  %3638 = vpow2.f32 %v114_v62 }
  0x34   :  { %v430_v43 = vsub.f32 %v4153_v25, %v4142_v13  ;;  %v64_v16 = vmax.f32 %v4078_v53, 0.0  ;;  %vm179_vm9 = vcmp.lt.f32.partialorder %v178_v55, 0.0004427343  ;;  %3640 = vpow2.f32 %v112_v6 }
  0x35   :  { %v441_v28 = vmul.f32 %v4088_v60, %v429_v36  ;;  %v93_v35 = vsub.f32 0.0, %v81_v7  ;;  %vm311_vm4 = vcmp.ge.s32.totalorder %v4058_v42, 5 }
  0x36   :  { %v442_v50 = vmul.f32 %v4088_v60, %v430_v43  ;;  %v3635_v12 = vpop.eup %3634 }
  0x37   :  { %v457_v57 = vsel %vm374_vm3, %v441_v28, 0.0  ;;  %v174_v24 = vmul.f32 0.6931472, %v3635_v12  ;;  %v116_v54 = vmul.f32 1.442695, %v93_v35 }
  0x38   :  { %v460_v63 = vsel %vm374_vm3, %v442_v50, 0.0  ;;  %v3637_v36 = vpop.eup %3636 }
  0x39   :  { %v180_v31 = vsel %vm179_vm9, %v177_v11, %v174_v24  ;;  %v3639_v41 = vpop.eup %3638  ;;  %v193_v44 = vmul.f32 -0.5, %v3637_v36 }
  0x3a   :  { %v4206_v40 = vadd.f32 %v180_v31, %v64_v16  ;;  %v211_v49 = vmul.f32 -0.5, %v3639_v41  ;;  %v3641_v30 = vpop.eup %3640 }
  0x3b   :  { %v199_v61 = vadd.f32 1.0, %v3641_v30  ;;  %v202_v62 = vmul.f32 -0.5, %v3641_v30  ;;  %v205_v12 = vand.u32 2147483647, %v3641_v30 }
  0x3c   :  { %v4212_v28 = vsub.f32 %v4206_v40, %v4078_v53 }
  0x3d   :  { %v203_v6 = vadd.f32 1.0, %v202_v62  ;;  %vm206_vm12 = vcmp.lt.f32.partialorder %v205_v12, 0.0004427343 }
  0x3e   :  { %v433_v56 = vsub.f32 %v4212_v28, %v4206_v40 }
  0x44   :  { %455 = vadd.xlane.f32.xlu0 %v454_v21  ;;  %v63_v21 = vmax.f32 %v4068_v51, 0.0  ;;  %458 = vadd.xlane.f32.xlu1 %v457_v57  ;;  %v196_v57 = vand.u32 2147483647, %v3637_v36 }
  0x45   :  { %452 = vadd.xlane.f32.xlu2 %v451_v0  ;;  %v183_v0 = vmul.f32 0.6931472, %v3633_v45  ;;  %v194_v45 = vadd.f32 1.0, %v193_v44  ;;  %v67_v44 = vmax.f32 %v4112_v20, 0.0 }
  0x46   :  { %v4186_v37 = vadd.f32 %v171_v5, %v63_v21  ;;  %v190_v21 = vadd.f32 1.0, %v3637_v36  ;;  %vm197_vm10 = vcmp.lt.f32.partialorder %v196_v57, 0.0004427343 }
  0x47   :  { %v189_v8 = vsel %vm4167_vm8, %v186_v48, %v183_v0  ;;  %v208_v48 = vadd.f32 1.0, %v3639_v41  ;;  %v214_v0 = vand.u32 2147483647, %v3639_v41  ;;  %v195_v5 = vmul.f32 %v3637_v36, %v194_v45 }
  0x48   :  { %v4191_v14 = vadd.f32 %v189_v8, %v65_v47  ;;  %v4196_v18 = vsub.f32 %v4186_v37, %v4068_v51  ;;  %3642 = vlog2.f32 %v190_v21  ;;  %v66_v8 = vmax.f32 %v4099_v15, 0.0 }
  0x49   :  { %3644 = vlog2.f32 %v208_v48  ;;  %vm215_vm11 = vcmp.lt.f32.partialorder %v214_v0, 0.0004427343 }
  0x4a   :  { %v4200_v26 = vsub.f32 %v4191_v14, %v4073_v52  ;;  %v432_v1 = vsub.f32 %v4196_v18, %v4186_v37  ;;  %3646 = vlog2.f32 %v199_v61 }
  0x4b   :  { %3648 = vpow2.f32 %v116_v54 }
  0x4c   :  { %464 = vadd.xlane.f32.xlu0 %v463_v58  ;;  %v434_v39 = vsub.f32 %v4200_v26, %v4191_v14  ;;  %v444_v43 = vmul.f32 %v4088_v60, %v432_v1  ;;  %v212_v58 = vadd.f32 1.0, %v211_v49  ;;  %v68_v1 = vmax.f32 %v4107_v19, 0.0 }
  0x4d   :  { %461 = vadd.xlane.f32.xlu2 %v460_v63  ;;  %v445_v63 = vmul.f32 %v4088_v60, %v433_v56 }
  0x4e   :  { %v446_v47 = vmul.f32 %v4088_v60, %v434_v39  ;;  %v466_v50 = vsel %vm374_vm3, %v444_v43, 0.0  ;;  %v3643_v7 = vpop.eup %3642  ;;  %v213_v11 = vmul.f32 %v3639_v41, %v212_v58  ;;  %v204_v39 = vmul.f32 %v3641_v30, %v203_v6 }
  0x4f   :  { %467 = vadd.xlane.f32.xlu1 %v466_v50  ;;  %v469_v3 = vsel %vm374_vm3, %v445_v63, 0.0  ;;  %v3645_v16 = vpop.eup %3644  ;;  %v192_v24 = vmul.f32 0.6931472, %v3643_v7 }
  0x50   :  { %v472_v55 = vsel %vm374_vm3, %v446_v47, 0.0  ;;  %v210_v31 = vmul.f32 0.6931472, %v3645_v16  ;;  %v3647_v43 = vpop.eup %3646  ;;  %v69_v16 = vmax.f32 %v4174_v29, 0.0 }
  0x51   :  { %v198_v35 = vsel %vm197_vm10, %v195_v5, %v192_v24  ;;  %v3649_v47 = vpop.eup %3648  ;;  %v201_v41 = vmul.f32 0.6931472, %v3647_v43  ;;  %v4261_v43 = vadd.s32 4294967291, %v4058_v42 }
  0x52   :  { %v4222_v21 = vadd.f32 %v198_v35, %v66_v8  ;;  %v216_v36 = vsel %vm215_vm11, %v213_v11, %v210_v31  ;;  %v217_v50 = vadd.f32 1.0, %v3649_v47  ;;  %v220_v54 = vmul.f32 -0.5, %v3649_v47 }
  0x53   :  { %v4225_v48 = vadd.f32 %v216_v36, %v68_v1  ;;  %v223_v63 = vand.u32 2147483647, %v3649_v47 }
  0x54   :  { %473 = vadd.xlane.f32.xlu0 %v472_v55  ;;  %v4229_v49 = vsub.f32 %v4222_v21, %v4099_v15  ;;  %v207_v55 = vsel %vm206_vm12, %v204_v39, %v201_v41  ;;  %3650 = vlog2.f32 %v217_v50  ;;  %v221_v58 = vadd.f32 1.0, %v220_v54 }
  0x55   :  { %470 = vadd.xlane.f32.xlu2 %v469_v3  ;;  %v4233_v30 = vsub.f32 %v4225_v48, %v4107_v19  ;;  %v4237_v45 = vadd.f32 %v207_v55, %v67_v44  ;;  %vm224_vm13 = vcmp.lt.f32.partialorder %v223_v63, 0.0004427343 }
  0x56   :  { %v435_v56 = vsub.f32 %v4229_v49, %v4222_v21  ;;  %v222_v8 = vmul.f32 %v3649_v47, %v221_v58 }
  0x57   :  { %v437_v57 = vsub.f32 %v4233_v30, %v4225_v48  ;;  %v4244_v62 = vsub.f32 %v4237_v45, %v4112_v20 }
  0x58   :  { %v447_v61 = vmul.f32 %v4088_v60, %v435_v56 }
  0x59   :  { %v449_v0 = vmul.f32 %v4088_v60, %v437_v57  ;;  %v436_v5 = vsub.f32 %v4244_v62, %v4237_v45 }
  0x5a   :  { %v475_v3 = vsel %vm374_vm3, %v447_v61, 0.0  ;;  %v3651_v11 = vpop.eup %3650 }
  0x5b   :  { %476 = vadd.xlane.f32.xlu1 %v475_v3  ;;  %v481_v7 = vsel %vm374_vm3, %v449_v0, 0.0  ;;  %v448_v12 = vmul.f32 %v4088_v60, %v436_v5  ;;  %v219_v24 = vmul.f32 0.6931472, %v3651_v11 }
  0x5c   :  { %482 = vadd.xlane.f32.xlu0 %v481_v7 }
  0x5d   :  { %v478_v1 = vsel %vm374_vm3, %v448_v12, 0.0  ;;  %v225_v31 = vsel %vm224_vm13, %v222_v8, %v219_v24 }
  0x5e   :  { %v265_v6 = vpop.permute.xlu2 %264  ;;  %479 = vadd.xlane.f32.xlu2 %v478_v1  ;;  %v4254_v35 = vadd.f32 %v225_v31, %v69_v16 }
  0x5f   :  { %vm291_vm15 = vcmp.eq.s32.totalorder %v4261_v43, %v265_v6  ;;  %v4280_v6 = vsel %vm311_vm4, 1.0, %v3958_v59  ;;  %vm1318_vm4 = vcmp.eq.s32.totalorder %v4058_v42, 3 }
  0x60   :  { %v4258_v39 = vsub.f32 %v4254_v35, %v4174_v29  ;;  %v303_v55 = vsel %vm291_vm15, 1.0, %v3958_v59  ;;  %vm487_vm15 = vcmp.eq.s32.totalorder %v4058_v42, 0 }
  0x61   :  { %v318_v12 = vmul.f32 %v303_v55, %v4138_v9 }
  0x62   :  { %v438_v36 = vsub.f32 %v4258_v39, %v4254_v35 }
  0x64   :  { %v450_v47 = vmul.f32 %v4088_v60, %v438_v36  ;;  %v330_v60 = vsub.f32 1.0, %v303_v55 }
  0x66   :  { %v268_v44 = vpop.permute.xlu2 %267  ;;  %v484_v54 = vsel %vm8528_vm14, %v450_v47, 0.0  ;;  %v342_v16 = vmul.f32 %v330_v60, %v4134_v2 }
  0x67   :  { %485 = vadd.xlane.f32.xlu1 %v484_v54  ;;  %vm292_vm5 = vcmp.eq.s32.totalorder %v4261_v43, %v268_v44 }
  0x68   :  { %v304_v7 = vsel %vm292_vm5, 1.0, %v3958_v59  ;;  %vm1631_vm5 = vcmask 15360  }
  0x6e   :  { %v277_v8 = vpop.permute.xlu2 %276 }
  0x6f   :  { %vm295_vm8 = vcmp.eq.s32.totalorder %v4261_v43, %v277_v8 }
  0x74   :  { %v259_v41 = vpop.permute.xlu1 %258  ;;  %v253_v50 = vpop.permute.xlu0 %252 }
  0x75   :  { %vm289_vm0 = vcmp.eq.s32.totalorder %v4261_v43, %v259_v41  ;;  %vm287_vm2 = vcmp.eq.s32.totalorder %v4261_v43, %v253_v50  ;;  %v354_v50 = vadd.f32 %v342_v16, %v318_v12 }
  0x76   :  { %v301_v56 = vsel %vm289_vm0, 1.0, %v3958_v59  ;;  %v299_v57 = vsel %vm287_vm2, 1.0, %v3958_v59  ;;  %vm764_vm0 = vcmp.eq.s32.totalorder %v4058_v42, 1  ;;  %vm1041_vm2 = vcmp.eq.s32.totalorder %v4058_v42, 2 }
  0x77   :  { %v316_v58 = vmul.f32 %v301_v56, %v4147_v17  ;;  %v328_v61 = vsub.f32 1.0, %v301_v56  ;;  %v326_v63 = vsub.f32 1.0, %v299_v57  ;;  %v314_v3 = vmul.f32 %v299_v57, %v4119_v27 }
  0x78   :  { %v319_v57 = vmul.f32 %v304_v7, %v4196_v18 }
  0x79   :  { %v340_v0 = vmul.f32 %v328_v61, %v4140_v10  ;;  %v338_v5 = vmul.f32 %v326_v63, %v4115_v22  ;;  %v331_v10 = vsub.f32 1.0, %v304_v7  ;;  %v307_v63 = vsel %vm295_vm8, 1.0, %v3958_v59 }
  0x7a   :  { %v334_v7 = vsub.f32 1.0, %v307_v63  ;;  %vm1665_vm8 = vcmask 9216  }
  0x7b   :  { %v352_v17 = vadd.f32 %v340_v0, %v316_v58  ;;  %v350_v11 = vadd.f32 %v338_v5, %v314_v3  ;;  %v366_v3 = vmul.f32 %v4280_v6, %v354_v50  ;;  %v286_v5 = vpop.permute.xlu2 %285 }
  0x7c   :  { %v262_v24 = vpop.permute.xlu1 %261  ;;  %v256_v1 = vpop.permute.xlu0 %255  ;;  %vm298_vm11 = vcmp.eq.s32.totalorder %v4261_v43, %v286_v5 }
  0x7d   :  { %vm290_vm6 = vcmp.eq.s32.totalorder %v4261_v43, %v262_v24  ;;  %vm288_vm7 = vcmp.eq.s32.totalorder %v4261_v43, %v256_v1  ;;  %v364_v22 = vmul.f32 %v4280_v6, %v352_v17  ;;  %v362_v27 = vmul.f32 %v4280_v6, %v350_v11 }
  0x7e   :  { %v302_v31 = vsel %vm290_vm6, 1.0, %v3958_v59  ;;  %v300_v36 = vsel %vm288_vm7, 1.0, %v3958_v59 }
  0x7f   :  { %v317_v44 = vmul.f32 %v302_v31, %v4153_v25  ;;  %v329_v9 = vsub.f32 1.0, %v302_v31  ;;  %v327_v47 = vsub.f32 1.0, %v300_v36  ;;  %v381_v2 = vsel %vm374_vm3, %v364_v22, 0.0 }
  0x80   :  { %v375_v41 = vsel %vm374_vm3, %v362_v27, 0.0  ;;  %v315_v55 = vmul.f32 %v300_v36, %v4062_v46  ;;  %382 = vadd.xlane.f32.xlu2 %v381_v2  ;;  %v343_v25 = vmul.f32 %v331_v10, %v4186_v37  ;;  %v387_v27 = vsel %vm374_vm3, %v366_v3, 0.0 }
  0x81   :  { %v341_v54 = vmul.f32 %v329_v9, %v4142_v13  ;;  %v339_v56 = vmul.f32 %v327_v47, %v4056_v38  ;;  %376 = vadd.xlane.f32.xlu0 %v375_v41  ;;  %v322_v31 = vmul.f32 %v307_v63, %v4229_v49 }
  0x82   :  { %v355_v18 = vadd.f32 %v343_v25, %v319_v57 }
  0x83   :  { %v351_v58 = vadd.f32 %v339_v56, %v315_v55  ;;  %v353_v61 = vadd.f32 %v341_v54, %v317_v44 }
  0x84   :  { %v274_v60 = vpop.permute.xlu1 %273  ;;  %v271_v0 = vpop.permute.xlu0 %270  ;;  %v367_v10 = vmul.f32 %v4280_v6, %v355_v18 }
  0x85   :  { %vm294_vm9 = vcmp.eq.s32.totalorder %v4261_v43, %v274_v60  ;;  %vm293_vm10 = vcmp.eq.s32.totalorder %v4261_v43, %v271_v0  ;;  %v363_v38 = vmul.f32 %v4280_v6, %v351_v58  ;;  %v365_v46 = vmul.f32 %v4280_v6, %v353_v61 }
  0x86   :  { %v306_v13 = vsel %vm294_vm9, 1.0, %v3958_v59  ;;  %v305_v37 = vsel %vm293_vm10, 1.0, %v3958_v59  ;;  %v390_v50 = vsel %vm374_vm3, %v367_v10, 0.0 }
  0x87   :  { %v333_v8 = vsub.f32 1.0, %v306_v13  ;;  %v332_v17 = vsub.f32 1.0, %v305_v37  ;;  %v321_v11 = vmul.f32 %v306_v13, %v4200_v26  ;;  %v378_v12 = vsel %vm374_vm3, %v363_v38, 0.0 }
  0x88   :  { %v384_v16 = vsel %vm374_vm3, %v365_v46, 0.0  ;;  %v320_v1 = vmul.f32 %v305_v37, %v4212_v28  ;;  %379 = vadd.xlane.f32.xlu1 %v378_v12  ;;  %v346_v26 = vmul.f32 %v334_v7, %v4222_v21  ;;  %v489_v46 = vsel %vm487_vm15, %v4001_v4, 0.0 }
  0x89   :  { %v345_v24 = vmul.f32 %v333_v8, %v4191_v14  ;;  %v344_v22 = vmul.f32 %v332_v17, %v4206_v40  ;;  %385 = vadd.xlane.f32.xlu2 %v384_v16  ;;  %388 = vadd.xlane.f32.xlu0 %v387_v27  ;;  %v310_v14 = vsel %vm298_vm11, 1.0, %v3958_v59  ;;  %v503_v37 = vsel %vm374_vm3, %v489_v46, 0.0 }
  0x8a   :  { %v358_v54 = vadd.f32 %v346_v26, %v322_v31  ;;  %v337_v55 = vsub.f32 1.0, %v310_v14  ;;  %v325_v60 = vmul.f32 %v310_v14, %v4258_v39  ;;  %v490_v7 = vsel %vm487_vm15, %v4046_v33, 0.0 }
  0x8b   :  { %v356_v36 = vadd.f32 %v344_v22, %v320_v1  ;;  %v357_v44 = vadd.f32 %v345_v24, %v321_v11  ;;  %v492_v8 = vsel %vm487_vm15, %v4041_v32, 0.0  ;;  %v506_v17 = vsel %vm374_vm3, %v490_v7, 0.0 }
  0x8c   :  { %v283_v28 = vpop.permute.xlu1 %282  ;;  %v280_v9 = vpop.permute.xlu0 %279  ;;  %v349_v0 = vmul.f32 %v337_v55, %v4254_v35  ;;  %v488_v35 = vsel %vm487_vm15, %v4034_v23, 0.0  ;;  %v512_v12 = vsel %vm374_vm3, %v492_v8, 0.0  ;;  %v493_v16 = vsel %vm487_vm15, %v4068_v51, 0.0 }
  0x8d   :  { %vm297_vm12 = vcmp.eq.s32.totalorder %v4261_v43, %v283_v28  ;;  %vm296_vm13 = vcmp.eq.s32.totalorder %v4261_v43, %v280_v9  ;;  %v368_v40 = vmul.f32 %v4280_v6, %v356_v36  ;;  %v369_v47 = vmul.f32 %v4280_v6, %v357_v44 }
  0x8e   :  { %v309_v49 = vsel %vm297_vm12, 1.0, %v3958_v59  ;;  %v308_v21 = vsel %vm296_vm13, 1.0, %v3958_v59  ;;  %v361_v38 = vadd.f32 %v349_v0, %v325_v60  ;;  %v500_v13 = vsel %vm374_vm3, %v488_v35, 0.0 }
  0x8f   :  { %v336_v2 = vsub.f32 1.0, %v309_v49  ;;  %v335_v41 = vsub.f32 1.0, %v308_v21  ;;  %v324_v56 = vmul.f32 %v309_v49, %v4233_v30  ;;  %v393_v57 = vsel %vm374_vm3, %v368_v40, 0.0 }
  0x90   :  { %v396_v43 = vsel %vm374_vm3, %v369_v47, 0.0  ;;  %v323_v58 = vmul.f32 %v308_v21, %v4244_v62  ;;  %391 = vadd.xlane.f32.xlu1 %v390_v50  ;;  %v370_v30 = vmul.f32 %v4280_v6, %v358_v54  ;;  %v373_v39 = vmul.f32 %v4280_v6, %v361_v38 }
  0x91   :  { %v348_v25 = vmul.f32 %v336_v2, %v4225_v48  ;;  %v347_v61 = vmul.f32 %v335_v41, %v4237_v45  ;;  %394 = vadd.xlane.f32.xlu2 %v393_v57  ;;  %397 = vadd.xlane.f32.xlu0 %v396_v43  ;;  %v494_v24 = vsel %vm487_vm15, %v4078_v53, 0.0  ;;  %v495_v1 = vsel %vm487_vm15, %v4073_v52, 0.0 }
  0x92   :  { %v399_v45 = vsel %vm374_vm3, %v370_v30, 0.0  ;;  %v409_v18 = vsel %vm8528_vm14, %v373_v39, 0.0  ;;  %v515_v22 = vsel %vm374_vm3, %v493_v16, 0.0  ;;  %v518_v27 = vsel %vm374_vm3, %v494_v24, 0.0 }
  0x93   :  { %v359_v59 = vadd.f32 %v347_v61, %v323_v58  ;;  %v360_v63 = vadd.f32 %v348_v25, %v324_v56  ;;  %v521_v10 = vsel %vm374_vm3, %v495_v1, 0.0  ;;  %v496_v31 = vsel %vm487_vm15, %v4099_v15, 0.0 }
  0x94   :  { %v497_v26 = vsel %vm487_vm15, %v4112_v20, 0.0  ;;  %v498_v36 = vsel %vm487_vm15, %v4107_v19, 0.0  ;;  %v524_v44 = vsel %vm374_vm3, %v496_v31, 0.0  ;;  %v499_v9 = vsel %vm487_vm15, %v4174_v29, 0.0 }
  0x95   :  { %v371_v3 = vmul.f32 %v4280_v6, %v359_v59  ;;  %v372_v5 = vmul.f32 %v4280_v6, %v360_v63  ;;  %v491_v6 = vsel %vm487_vm15, %v4051_v34, 0.0  ;;  %v527_v14 = vsel %vm374_vm3, %v497_v26, 0.0 }
  0x96   :  { %v509_v11 = vsel %vm374_vm3, %v491_v6, 0.0  ;;  %v530_v28 = vsel %vm374_vm3, %v498_v36, 0.0  ;;  %v765_v40 = vsel %vm764_vm0, %v4034_v23, 0.0  ;;  %v766_v47 = vsel %vm764_vm0, %v4001_v4, 0.0 }
  0x97   :  { %v402_v48 = vsel %vm374_vm3, %v371_v3, 0.0  ;;  %v405_v62 = vsel %vm374_vm3, %v372_v5, 0.0  ;;  %v533_v49 = vsel %vm8528_vm14, %v499_v9, 0.0  ;;  %v777_v21 = vsel %vm374_vm3, %v765_v40, 0.0 }
  0x98   :  { %400 = vadd.xlane.f32.xlu1 %v399_v45  ;;  %v780_v2 = vsel %vm374_vm3, %v766_v47, 0.0  ;;  %v767_v41 = vsel %vm764_vm0, %v4046_v33, 0.0  ;;  %v768_v50 = vsel %vm764_vm0, %v4051_v34, 0.0  ;;  %v769_v54 = vsel %vm764_vm0, %v4041_v32, 0.0 }
  0x99   :  { %403 = vadd.xlane.f32.xlu2 %v402_v48  ;;  %406 = vadd.xlane.f32.xlu0 %v405_v62  ;;  %v783_v55 = vsel %vm374_vm3, %v767_v41, 0.0  ;;  %v786_v56 = vsel %vm374_vm3, %v768_v50, 0.0  ;;  %v789_v57 = vsel %vm374_vm3, %v769_v54, 0.0  ;;  %v770_v43 = vsel %vm764_vm0, %v4068_v51, 0.0  ;;  %v3940_v50 = vld [vmem:[%s8438_s0] sm:$0xff] }
  0x9a   :  { %v771_v25 = vsel %vm764_vm0, %v4078_v53, 0.0  ;;  %v772_v58 = vsel %vm764_vm0, %v4073_v52, 0.0  ;;  %v792_v63 = vsel %vm374_vm3, %v770_v43, 0.0  ;;  %v773_v30 = vsel %vm764_vm0, %v4099_v15, 0.0 }
  0x9b   :  { %v795_v60 = vsel %vm374_vm3, %v771_v25, 0.0  ;;  %v798_v0 = vsel %vm374_vm3, %v772_v58, 0.0  ;;  %v774_v3 = vsel %vm764_vm0, %v4112_v20, 0.0  ;;  %v775_v5 = vsel %vm764_vm0, %v4107_v19, 0.0 }
  0x9c   :  { %v801_v62 = vsel %vm374_vm3, %v773_v30, 0.0  ;;  %v804_v45 = vsel %vm374_vm3, %v774_v3, 0.0  ;;  %v807_v39 = vsel %vm374_vm3, %v775_v5, 0.0  ;;  %v776_v46 = vsel %vm764_vm0, %v4174_v29, 0.0  ;;  %v3943_v3 = vld [vmem:[%s8438_s0 + $0x18] sm:$0xff] }
  0x9d   :  { %v1052_v47 = vsel %vm1041_vm2, %v4107_v19, 0.0  ;;  %v1053_v41 = vsel %vm1041_vm2, %v4174_v29, 0.0  ;;  %v1319_v54 = vsel %vm1318_vm4, %v3940_v50, 0.0  ;;  %v1322_v5 = vsel %vm1318_vm4, %v3943_v3, 0.0  ;;  %v4626_v3 = vld [vmem:[%s8439_s2 + $0x18] sm:$0xff] }
  0x9e   :  { %v1087_v58 = vsel %vm8528_vm14, %v1053_v41, 0.0 }
  0xa0   :  { %410 = vadd.xlane.f32.xlu1 %v409_v18  ;;  %v810_v18 = vsel %vm8528_vm14, %v776_v46, 0.0 }
  0xa1   :  { %501 = vadd.xlane.f32.xlu2 %v500_v13  ;;  %504 = vadd.xlane.f32.xlu0 %v503_v37  ;;  %v1042_v13 = vsel %vm1041_vm2, %v4034_v23, 0.0  ;;  %v1043_v37 = vsel %vm1041_vm2, %v4001_v4, 0.0  ;;  %v1044_v23 = vsel %vm1041_vm2, %v4046_v33, 0.0  ;;  %v1045_v4 = vsel %vm1041_vm2, %v4051_v34, 0.0 }
  0xa2   :  { %v1054_v7 = vsel %vm374_vm3, %v1042_v13, 0.0  ;;  %v1057_v8 = vsel %vm374_vm3, %v1043_v37, 0.0  ;;  %v1060_v16 = vsel %vm374_vm3, %v1044_v23, 0.0  ;;  %v1063_v24 = vsel %vm374_vm3, %v1045_v4, 0.0 }
  0xa3   :  { %v1047_v34 = vsel %vm1041_vm2, %v4068_v51, 0.0  ;;  %v1325_v23 = vsel %vm1318_vm4, %v4078_v53, 0.0 }
  0xa4   :  { %v1069_v31 = vsel %vm374_vm3, %v1047_v34, 0.0  ;;  %v1349_v34 = vsel %vm374_vm3, %v1325_v23, 0.0 }
  0xa8   :  { %507 = vadd.xlane.f32.xlu1 %v506_v17 }
  0xa9   :  { %510 = vadd.xlane.f32.xlu2 %v509_v11  ;;  %513 = vadd.xlane.f32.xlu0 %v512_v12  ;;  %v1046_v12 = vsel %vm1041_vm2, %v4041_v32, 0.0  ;;  %v1048_v32 = vsel %vm1041_vm2, %v4078_v53, 0.0  ;;  %v1327_v53 = vsel %vm1318_vm4, %v4099_v15, 0.0 }
  0xaa   :  { %v1066_v1 = vsel %vm374_vm3, %v1046_v12, 0.0  ;;  %v1072_v26 = vsel %vm374_vm3, %v1048_v32, 0.0  ;;  %v1328_v32 = vsel %vm1318_vm4, %v4112_v20, 0.0 }
  0xb0   :  { %516 = vadd.xlane.f32.xlu1 %v515_v22 }
  0xb1   :  { %519 = vadd.xlane.f32.xlu2 %v518_v27  ;;  %522 = vadd.xlane.f32.xlu0 %v521_v10  ;;  %v1049_v10 = vsel %vm1041_vm2, %v4073_v52, 0.0 }
  0xb2   :  { %v1075_v36 = vsel %vm374_vm3, %v1049_v10, 0.0 }
  0xb7   :  { %v4424_v61 = vpop.xlane.xlu0 %455  ;;  %v4440_v48 = vpop.xlane.xlu1 %458 }
  0xb8   :  { %525 = vadd.xlane.f32.xlu1 %v524_v44  ;;  %8734 = vst [vmem:[#allocation3_spill] sm:$0xff] %v4424_v61  ;;  %v4426_v59 = vpop.xlane.xlu2 %452 }
  0xb9   :  { %528 = vadd.xlane.f32.xlu2 %v527_v14  ;;  %531 = vadd.xlane.f32.xlu0 %v530_v28  ;;  %8735 = vst [vmem:[#allocation4_spill] sm:$0xff] %v4426_v59  ;;  %v1050_v14 = vsel %vm1041_vm2, %v4099_v15, 0.0  ;;  %v1051_v28 = vsel %vm1041_vm2, %v4112_v20, 0.0  ;;  %v4598_v20 = vld [vmem:[%s8439_s2] sm:$0xff] }
  0xba   :  { %8736 = vst [vmem:[#allocation5_spill] sm:$0xff] %v4440_v48 }
  0xbf   :  { %v4444_v38 = vpop.xlane.xlu0 %464 }
  0xc0   :  { %534 = vadd.xlane.f32.xlu1 %v533_v49  ;;  %8737 = vst [vmem:[#allocation6_spill] sm:$0xff] %v4444_v38  ;;  %v4446_v35 = vpop.xlane.xlu2 %461  ;;  %v1078_v49 = vsel %vm374_vm3, %v1050_v14, 0.0 }
  0xc1   :  { %778 = vadd.xlane.f32.xlu2 %v777_v21  ;;  %781 = vadd.xlane.f32.xlu0 %v780_v2  ;;  %8738 = vst [vmem:[#allocation7_spill] sm:$0xff] %v4446_v35  ;;  %v1081_v21 = vsel %vm374_vm3, %v1051_v28, 0.0  ;;  %v1084_v2 = vsel %vm374_vm3, %v1052_v47, 0.0  ;;  %v1355_v28 = vsel %vm374_vm3, %v1327_v53, 0.0  ;;  %v1358_v47 = vsel %vm374_vm3, %v1328_v32, 0.0 }
  0xc2   :  { %v4461_v6 = vpop.xlane.xlu1 %467 }
  0xc3   :  { %8739 = vst [vmem:[#allocation8_spill] sm:$0xff] %v4461_v6 }
  0xc7   :  { %v4464_v17 = vpop.xlane.xlu0 %473 }
  0xc8   :  { %784 = vadd.xlane.f32.xlu1 %v783_v55  ;;  %8740 = vst [vmem:[#allocation9_spill] sm:$0xff] %v4464_v17  ;;  %v4466_v11 = vpop.xlane.xlu2 %470 }
  0xc9   :  { %787 = vadd.xlane.f32.xlu2 %v786_v56  ;;  %790 = vadd.xlane.f32.xlu0 %v789_v57  ;;  %8741 = vst [vmem:[#allocation10_spill] sm:$0xff] %v4466_v11  ;;  %v3941_v57 = vld [vmem:[%s8438_s0 + $0x8] sm:$0xff] }
  0xca   :  { %v1320_v43 = vsel %vm1318_vm4, %v3941_v57, 0.0 }
  0xce   :  { %v4480_v22 = vpop.xlane.xlu1 %476 }
  0xcf   :  { %8742 = vst [vmem:[#allocation11_spill] sm:$0xff] %v4480_v22  ;;  %v4482_v33 = vpop.xlane.xlu0 %482 }
  0xd0   :  { %793 = vadd.xlane.f32.xlu1 %v792_v63  ;;  %8743 = vst [vmem:[#allocation12_spill] sm:$0xff] %v4482_v33  ;;  %v1331_v63 = vsel %vm374_vm3, %v1319_v54, 0.0 }
  0xd1   :  { %796 = vadd.xlane.f32.xlu2 %v795_v60  ;;  %799 = vadd.xlane.f32.xlu0 %v798_v0  ;;  %v4484_v27 = vpop.xlane.xlu2 %479  ;;  %v1334_v60 = vsel %vm374_vm3, %v1320_v43, 0.0  ;;  %v3942_v0 = vld [vmem:[%s8438_s0 + $0x10] sm:$0xff] }
  0xd2   :  { %8744 = vst [vmem:[#allocation13_spill] sm:$0xff] %v4484_v27  ;;  %v1321_v30 = vsel %vm1318_vm4, %v3942_v0, 0.0 }
  0xd3   :  { %v1337_v37 = vsel %vm374_vm3, %v1321_v30, 0.0  ;;  %v4621_v30 = vld [vmem:[%s8439_s2 + $0x10] sm:$0xff] }
  0xd8   :  { %802 = vadd.xlane.f32.xlu1 %v801_v62 }
  0xd9   :  { %805 = vadd.xlane.f32.xlu2 %v804_v45  ;;  %808 = vadd.xlane.f32.xlu0 %v807_v39  ;;  %v3944_v39 = vld [vmem:[%s8438_s0 + $0x20] sm:$0xff] }
  0xda   :  { %v4498_v44 = vpop.xlane.xlu1 %485  ;;  %v1323_v46 = vsel %vm1318_vm4, %v3944_v39, 0.0 }
  0xdb   :  { %8745 = vst [vmem:[#allocation14_spill] sm:$0xff] %v4498_v44 }
  0xe0   :  { %811 = vadd.xlane.f32.xlu1 %v810_v18  ;;  %v1340_v18 = vsel %vm374_vm3, %v1322_v5, 0.0 }
  0xe1   :  { %1055 = vadd.xlane.f32.xlu2 %v1054_v7  ;;  %1058 = vadd.xlane.f32.xlu0 %v1057_v8  ;;  %v1343_v7 = vsel %vm374_vm3, %v1323_v46, 0.0  ;;  %v1324_v8 = vsel %vm1318_vm4, %v4068_v51, 0.0 }
  0xe8   :  { %1061 = vadd.xlane.f32.xlu1 %v1060_v16  ;;  %v1326_v16 = vsel %vm1318_vm4, %v4073_v52, 0.0 }
  0xe9   :  { %1064 = vadd.xlane.f32.xlu2 %v1063_v24  ;;  %1067 = vadd.xlane.f32.xlu0 %v1066_v1  ;;  %v1346_v1 = vsel %vm374_vm3, %v1324_v8, 0.0  ;;  %v1352_v51 = vsel %vm374_vm3, %v1326_v16, 0.0  ;;  %v4647_v8 = vld [vmem:[%s8439_s2 + $0x28] sm:$0xff]  ;;  %v4655_v16 = vld [vmem:[%s8439_s2 + $0x30] sm:$0xff] }
  0xea   :  { %v1624_v32 = vsel %vm487_vm15, %v4647_v8, 0.0 }
  0xf0   :  { %1070 = vadd.xlane.f32.xlu1 %v1069_v31  ;;  %v1329_v31 = vsel %vm1318_vm4, %v4107_v19, 0.0  ;;  %v4603_v19 = vld [vmem:[%s8439_s2 + $0x8] sm:$0xff] }
  0xf1   :  { %1073 = vadd.xlane.f32.xlu2 %v1072_v26  ;;  %1076 = vadd.xlane.f32.xlu0 %v1075_v36  ;;  %v1361_v15 = vsel %vm374_vm3, %v1329_v31, 0.0  ;;  %v1620_v50 = vsel %vm487_vm15, %v4603_v19, 0.0  ;;  %v4670_v31 = vld [vmem:[%s8439_s2 + $0x40] sm:$0xff] }
  0xf2   :  { %v1635_v46 = vsel %vm1631_vm5, %v1620_v50, 0.0  ;;  %v1625_v50 = vsel %vm487_vm15, %v4655_v16, 0.0 }
  0xf3   :  { %v4506_v9 = vpop.xlane.xlu2 %382 }
  0xf4   :  { %8746 = vst [vmem:[#allocation15_spill] sm:$0xff] %v4506_v9  ;;  %v4508_v40 = vpop.xlane.xlu0 %376 }
  0xf5   :  { %8747 = vst [vmem:[#allocation16_spill] sm:$0xff] %v4508_v40 }
  0xf8   :  { %1079 = vadd.xlane.f32.xlu1 %v1078_v49  ;;  %v1330_v49 = vsel %vm1318_vm4, %v4174_v29, 0.0 }
  0xf9   :  { %1082 = vadd.xlane.f32.xlu2 %v1081_v21  ;;  %1085 = vadd.xlane.f32.xlu0 %v1084_v2  ;;  %v1619_v21 = vsel %vm487_vm15, %v4598_v20, 0.0 }
  0xfa   :  { %v1632_v0 = vsel %vm1631_vm5, %v1619_v21, 0.0 }
  0xfb   :  { %v4525_v55 = vpop.xlane.xlu1 %379 }
  0xfc   :  { %8748 = vst [vmem:[#allocation17_spill] sm:$0xff] %v4525_v55  ;;  %v4527_v56 = vpop.xlane.xlu2 %385  ;;  %v4534_v25 = vpop.xlane.xlu0 %388 }
  0xfd   :  { %8749 = vst [vmem:[#allocation18_spill] sm:$0xff] %v4527_v56 }
  0xfe   :  { %8750 = vst [vmem:[#allocation19_spill] sm:$0xff] %v4534_v25 }
 0x100   :  { %1088 = vadd.xlane.f32.xlu1 %v1087_v58  ;;  %v1364_v58 = vsel %vm8528_vm14, %v1330_v49, 0.0 }
 0x101   :  { %1332 = vadd.xlane.f32.xlu2 %v1331_v63  ;;  %1335 = vadd.xlane.f32.xlu0 %v1334_v60 }
 0x103   :  { %v4549_v62 = vpop.xlane.xlu1 %391 }
 0x104   :  { %8751 = vst [vmem:[#allocation20_spill] sm:$0xff] %v4549_v62  ;;  %v4551_v45 = vpop.xlane.xlu2 %394  ;;  %v4558_v13 = vpop.xlane.xlu0 %397 }
 0x105   :  { %8752 = vst [vmem:[#allocation21_spill] sm:$0xff] %v4551_v45 }
 0x106   :  { %8753 = vst [vmem:[#allocation22_spill] sm:$0xff] %v4558_v13 }
 0x108   :  { %1338 = vadd.xlane.f32.xlu1 %v1337_v37  ;;  %v4635_v37 = vld [vmem:[%s8439_s2 + $0x20] sm:$0xff] }
 0x109   :  { %1341 = vadd.xlane.f32.xlu2 %v1340_v18  ;;  %1344 = vadd.xlane.f32.xlu0 %v1343_v7  ;;  %v1621_v18 = vsel %vm487_vm15, %v4621_v30, 0.0  ;;  %v1622_v7 = vsel %vm487_vm15, %v4626_v3, 0.0  ;;  %v1623_v23 = vsel %vm487_vm15, %v4635_v37, 0.0 }
 0x10a   :  { %v1641_v53 = vsel %vm1631_vm5, %v1622_v7, 0.0  ;;  %v1650_v7 = vsel %vm1631_vm5, %v1625_v50, 0.0 }
 0x10b   :  { %v4569_v4 = vpop.xlane.xlu1 %400 }
 0x10c   :  { %8754 = vst [vmem:[#allocation23_spill] sm:$0xff] %v4569_v4  ;;  %v4571_v12 = vpop.xlane.xlu2 %403  ;;  %v4576_v24 = vpop.xlane.xlu0 %406 }
 0x10d   :  { %8755 = vst [vmem:[#allocation24_spill] sm:$0xff] %v4571_v12 }
 0x10e   :  { %8756 = vst [vmem:[#allocation25_spill] sm:$0xff] %v4576_v24 }
 0x110   :  { %1347 = vadd.xlane.f32.xlu1 %v1346_v1 }
 0x111   :  { %1350 = vadd.xlane.f32.xlu2 %v1349_v34  ;;  %1353 = vadd.xlane.f32.xlu0 %v1352_v51  ;;  %v1638_v51 = vsel %vm1631_vm5, %v1621_v18, 0.0 }
 0x113   :  { %v4587_v52 = vpop.xlane.xlu1 %410 }
 0x114   :  { %8757 = vst [vmem:[#allocation26_spill] sm:$0xff] %v4587_v52  ;;  %v502_v10 = vpop.xlane.xlu2 %501  ;;  %v505_v36 = vpop.xlane.xlu0 %504 }
 0x115   :  { %v3527_v26 = vmul.f32 -1.442695, %v502_v10  ;;  %v3528_v14 = vmul.f32 -1.442695, %v505_v36  ;;  %v4665_v10 = vld [vmem:[%s8439_s2 + $0x38] sm:$0xff] }
 0x117   :  { %3652 = vpow2.f32 %v3527_v26 }
 0x118   :  { %3654 = vpow2.f32 %v3528_v14  ;;  %1356 = vadd.xlane.f32.xlu1 %v1355_v28 }
 0x119   :  { %1359 = vadd.xlane.f32.xlu2 %v1358_v47  ;;  %1362 = vadd.xlane.f32.xlu0 %v1361_v15  ;;  %v4675_v47 = vld [vmem:[%s8439_s2 + $0x48] sm:$0xff]  ;;  %v4680_v15 = vld [vmem:[%s8439_s2 + $0x50] sm:$0xff] }
 0x11b   :  { %v508_v2 = vpop.xlane.xlu1 %507 }
 0x11c   :  { %v511_v41 = vpop.xlane.xlu2 %510  ;;  %v3529_v57 = vmul.f32 -1.442695, %v508_v2  ;;  %v514_v43 = vpop.xlane.xlu0 %513 }
 0x11d   :  { %v3653_v54 = vpop.eup %3652  ;;  %v3530_v29 = vmul.f32 -1.442695, %v511_v41  ;;  %v3531_v39 = vmul.f32 -1.442695, %v514_v43  ;;  %v1644_v41 = vsel %vm1631_vm5, %v1623_v23, 0.0  ;;  %v1626_v43 = vsel %vm487_vm15, %v4665_v10, 0.0 }
 0x11e   :  { %v3655_v63 = vpop.eup %3654  ;;  %v4615_v60 = vadd.f32 1.0, %v3653_v54  ;;  %3656 = vpow2.f32 %v3529_v57 }
 0x11f   :  { %v4628_v5 = vadd.f32 1.0, %v3655_v63 }
 0x120   :  { %3658 = vrcp.f32 %v4615_v60  ;;  %1365 = vadd.xlane.f32.xlu1 %v1364_v58  ;;  %v1627_v58 = vsel %vm487_vm15, %v4670_v31, 0.0  ;;  %v593_v23 = vand.u32 2147483647, %v4615_v60  ;;  %vm589_vm6 = vweird.f32 %v4615_v60 }
 0x121   :  { %3660 = vrcp.f32 %v4628_v5  ;;  %1633 = vadd.xlane.f32.xlu2 %v1632_v0  ;;  %1636 = vadd.xlane.f32.xlu0 %v1635_v46  ;;  %v1628_v0 = vsel %vm487_vm15, %v4675_v47, 0.0  ;;  %v610_v44 = vand.u32 2147483648, %v4628_v5  ;;  %vm604_vm10 = vweird.f32 %v4628_v5 }
 0x122   :  { %3662 = vpow2.f32 %v3530_v29  ;;  %v1647_v29 = vsel %vm1631_vm5, %v1624_v32, 0.0  ;;  %v4714_v32 = vsel %vm1631_vm5, %v1627_v58, 0.0  ;;  %vm4735_vm7 = vcmp.eq.f32.partialorder %v593_v23, 8.507059e+37 }
 0x123   :  { %3664 = vpow2.f32 %v3531_v39  ;;  %v517_v1 = vpop.xlane.xlu1 %516  ;;  %v1629_v39 = vsel %vm487_vm15, %v4680_v15, 0.0 }
 0x124   :  { %v520_v34 = vpop.xlane.xlu2 %519  ;;  %v3657_v26 = vpop.eup %3656  ;;  %v3532_v36 = vmul.f32 -1.442695, %v517_v1 }
 0x125   :  { %v3533_v14 = vmul.f32 -1.442695, %v520_v34  ;;  %v523_v28 = vpop.xlane.xlu0 %522  ;;  %v4684_v21 = vadd.f32 1.0, %v3657_v26  ;;  %v1653_v34 = vsel %vm1631_vm5, %v1626_v43, 0.0  ;;  %v4717_v26 = vsel %vm1631_vm5, %v1628_v0, 0.0 }
 0x126   :  { %v4682_v49 = vpop.eup %3658  ;;  %v3534_v2 = vmul.f32 -1.442695, %v523_v28  ;;  %3666 = vpow2.f32 %v3532_v36  ;;  %v4720_v36 = vsel %vm1631_vm5, %v1629_v39, 0.0 }
 0x127   :  { %v4690_v54 = vpop.eup %3660  ;;  %v585_v57 = vmul.f32 %v4682_v49, %v4615_v60  ;;  %3668 = vrcp.f32 %v4684_v21  ;;  %vm590_vm9 = vweird.f32 %v4682_v49 }
 0x128   :  { %v3663_v63 = vpop.eup %3662  ;;  %3670 = vpow2.f32 %v3533_v14  ;;  %1639 = vadd.xlane.f32.xlu1 %v1638_v51  ;;  %v4725_v51 = vld [vmem:[%s8439_s2 + $0x58] sm:$0x3]  ;;  %v600_v14 = vmul.f32 %v4690_v54, %v4628_v5  ;;  %vm4766_vm11 = vmor %vm589_vm6, %vm590_vm9  ;;  %vm605_vm12 = vweird.f32 %v4690_v54  ;;  %vm619_vm6 = vweird.f32 %v4684_v21 }
 0x129   :  { %v3665_v46 = vpop.eup %3664  ;;  %v586_v18 = vsub.f32 1.0, %v585_v57  ;;  %1642 = vadd.xlane.f32.xlu2 %v1641_v53  ;;  %v4710_v1 = vadd.f32 1.0, %v3663_v63  ;;  %3672 = vpow2.f32 %v3534_v2  ;;  %1645 = vadd.xlane.f32.xlu0 %v1644_v41  ;;  %v595_v53 = vand.u32 2147483648, %v4615_v60  ;;  %vm4837_vm9 = vmor %vm604_vm10, %vm605_vm12 }
 0x12a   :  { %v4731_v28 = vadd.f32 1.0, %v3665_v46  ;;  %v608_v57 = vand.u32 2147483647, %v4628_v5  ;;  %v1630_v46 = vsel %vm487_vm15, %v4725_v51, 0.0  ;;  %v601_v6 = vsub.f32 1.0, %v600_v14 }
 0x12b   :  { %v526_v2 = vpop.xlane.xlu1 %525  ;;  %v587_v50 = vmul.f32 %v4682_v49, %v586_v18  ;;  %3674 = vrcp.f32 %v4710_v1 }
 0x12c   :  { %v529_v41 = vpop.xlane.xlu2 %528  ;;  %v3667_v43 = vpop.eup %3666  ;;  %v3535_v58 = vmul.f32 -1.442695, %v526_v2  ;;  %v1669_v2 = vsel %vm764_vm0, %v4598_v20, 0.0  ;;  %vm4797_vm13 = vcmp.eq.f32.partialorder %v608_v57, 8.507059e+37  ;;  %v623_v20 = vand.u32 2147483647, %v4684_v21 }
 0x12d   :  { %v3536_v63 = vmul.f32 -1.442695, %v529_v41  ;;  %v532_v0 = vpop.xlane.xlu0 %531  ;;  %v4740_v22 = vpop.eup %3668  ;;  %v4748_v23 = vadd.f32 1.0, %v3667_v43  ;;  %v1670_v41 = vsel %vm764_vm0, %v4603_v19, 0.0  ;;  %v588_v33 = vadd.f32 %v4682_v49, %v587_v50 }
 0x12e   :  { %v3671_v18 = vpop.eup %3670  ;;  %3676 = vpow2.f32 %v3535_v58  ;;  %v3537_v11 = vmul.f32 -1.442695, %v532_v0  ;;  %v615_v43 = vmul.f32 %v4740_v22, %v4684_v21  ;;  %v596_v19 = vor.u32 1.1754944e-38, %v595_v53 }
 0x12f   :  { %v3673_v27 = vpop.eup %3672  ;;  %3678 = vrcp.f32 %v4731_v28  ;;  %v4760_v48 = vadd.f32 1.0, %v3671_v18  ;;  %v4773_v50 = vsel %vm1665_vm8, %v1630_v46, 0.0  ;;  %v4776_v58 = vsel %vm1631_vm5, %v1669_v2, 0.0 }
 0x130   :  { %3680 = vpow2.f32 %v3536_v63  ;;  %1648 = vadd.xlane.f32.xlu1 %v1647_v29  ;;  %v4770_v14 = vadd.f32 1.0, %v3673_v27  ;;  %v4778_v29 = vor.u32 1.1754944e-38, %v610_v44  ;;  %v4782_v60 = vsel %vm1631_vm5, %v1670_v41, 0.0 }
 0x131   :  { %1651 = vadd.xlane.f32.xlu2 %v1650_v7  ;;  %1654 = vadd.xlane.f32.xlu0 %v1653_v34  ;;  %3682 = vrcp.f32 %v4748_v23  ;;  %v1671_v7 = vsel %vm764_vm0, %v4621_v30, 0.0  ;;  %v4788_v27 = vpop.eup %3674  ;;  %v1672_v44 = vsel %vm764_vm0, %v4626_v3, 0.0  ;;  %v592_v63 = vsel %vm4766_vm11, %v4682_v49, %v588_v33 }
 0x132   :  { %3684 = vpow2.f32 %v3537_v11  ;;  %v602_v0 = vmul.f32 %v4690_v54, %v601_v6  ;;  %v616_v18 = vsub.f32 1.0, %v615_v43  ;;  %v1673_v6 = vsel %vm764_vm0, %v4635_v37, 0.0 }
 0x133   :  { %v535_v34 = vpop.xlane.xlu1 %534  ;;  %3686 = vrcp.f32 %v4760_v48  ;;  %v625_v33 = vand.u32 2147483648, %v4684_v21  ;;  %v4813_v57 = vmul.f32 %v4788_v27, %v4710_v1  ;;  %v597_v37 = vsel %vm4735_vm7, %v596_v19, %v592_v63 }
 0x134   :  { %v779_v53 = vpop.xlane.xlu2 %778  ;;  %v3677_v30 = vpop.eup %3676  ;;  %v3538_v11 = vmul.f32 -1.442695, %v535_v34  ;;  %3688 = vrcp.f32 %v4770_v14  ;;  %v4818_v34 = vsel %vm1631_vm5, %v1671_v7, 0.0  ;;  %v617_v39 = vmul.f32 %v4740_v22, %v616_v18 }
 0x135   :  { %v3539_v2 = vmul.f32 -1.442695, %v779_v53  ;;  %v782_v41 = vpop.xlane.xlu0 %781  ;;  %v4802_v35 = vpop.eup %3678  ;;  %v4805_v3 = vadd.f32 1.0, %v3677_v30  ;;  %v4821_v53 = vsel %vm1631_vm5, %v1672_v44, 0.0  ;;  %v603_v30 = vadd.f32 %v4690_v54, %v602_v0 }
 0x136   :  { %v3681_v49 = vpop.eup %3680  ;;  %3690 = vpow2.f32 %v3538_v11  ;;  %v3540_v43 = vmul.f32 -1.442695, %v782_v41  ;;  %v4831_v11 = vsel %vm1631_vm5, %v1673_v6, 0.0  ;;  %vm620_vm7 = vweird.f32 %v4740_v22 }
 0x137   :  { %8764 = vst [vmem:[#allocation27_spill] sm:$0xff] %v4805_v3  ;;  %v4826_v17 = vpop.eup %3682  ;;  %3692 = vpow2.f32 %v3539_v2  ;;  %v626_v5 = vor.u32 1.1754944e-38, %v625_v33  ;;  %v1674_v0 = vsel %vm764_vm0, %v4647_v8, 0.0  ;;  %v1911_v18 = vmul.f32 2.0, %v597_v37 }
 0x138   :  { %1657 = vadd.xlane.f32.xlu1 %v4714_v32  ;;  %v3685_v19 = vpop.eup %3684  ;;  %v4845_v32 = vmul.f32 %v4802_v35, %v4731_v28  ;;  %3694 = vrcp.f32 %v4805_v3  ;;  %vm4857_vm10 = vcmp.eq.f32.partialorder %v623_v20, 8.507059e+37  ;;  %v607_v8 = vsel %vm4837_vm9, %v4690_v54, %v603_v30 }
 0x139   :  { %1660 = vadd.xlane.f32.xlu2 %v4717_v26  ;;  %v4848_v26 = vadd.f32 1.0, %v3681_v49  ;;  %1663 = vadd.xlane.f32.xlu0 %v4720_v36  ;;  %v4851_v44 = vpop.eup %3686  ;;  %3696 = vpow2.f32 %v3540_v43  ;;  %v4863_v6 = vadd.f32 1.0, %v3685_v19  ;;  %v1675_v49 = vsel %vm764_vm0, %v4655_v16, 0.0 }
 0x13a   :  { %v4861_v41 = vpop.eup %3688  ;;  %v1676_v43 = vsel %vm764_vm0, %v4665_v10, 0.0  ;;  %v4876_v37 = vmul.f32 %v4826_v17, %v4748_v23  ;;  %v618_v38 = vadd.f32 %v4740_v22, %v617_v39  ;;  %v4884_v10 = vsel %vm1631_vm5, %v1674_v0, 0.0 }
 0x13b   :  { %8767 = vst [vmem:[#allocation28_spill] sm:$0xff] %v4848_v26  ;;  %v785_v36 = vpop.xlane.xlu1 %784  ;;  %3698 = vrcp.f32 %v4848_v26  ;;  %v4888_v30 = vmul.f32 %v4851_v44, %v4760_v48  ;;  %v612_v39 = vsel %vm4797_vm13, %v4778_v29, %v607_v8  ;;  %vm634_vm11 = vweird.f32 %v4710_v1  ;;  %vm4912_vm13 = vmor %vm619_vm6, %vm620_vm7 }
 0x13c   :  { %8770 = vst [vmem:[#allocation29_spill] sm:$0xff] %v4863_v6  ;;  %v788_v33 = vpop.xlane.xlu2 %787  ;;  %v3691_v20 = vpop.eup %3690  ;;  %v3541_v19 = vmul.f32 -1.442695, %v785_v36  ;;  %vm635_vm12 = vweird.f32 %v4788_v27  ;;  %v4899_v0 = vmul.f32 %v4861_v41, %v4770_v14  ;;  %v638_v2 = vand.u32 2147483647, %v4710_v1 }
 0x13d   :  { %v3542_v63 = vmul.f32 -1.442695, %v788_v33  ;;  %v791_v61 = vpop.xlane.xlu0 %790  ;;  %v4881_v59 = vadd.f32 1.0, %v3691_v20  ;;  %v3693_v54 = vpop.eup %3692  ;;  %v4903_v33 = vsel %vm1631_vm5, %v1675_v49, 0.0  ;;  %v4919_v49 = vadd.f32 -0.5, %v1911_v18 }
 0x13e   :  { %3700 = vpow2.f32 %v3541_v19  ;;  %v3543_v7 = vmul.f32 -1.442695, %v791_v61  ;;  %v4895_v36 = vpop.eup %3694  ;;  %v4906_v61 = vsel %vm1631_vm5, %v1676_v43, 0.0  ;;  %v622_v43 = vsel %vm4912_vm13, %v4740_v22, %v618_v38 }
 0x13f   :  { %8771 = vst [vmem:[#allocation30_spill] sm:$0xff] %v4881_v59  ;;  %3702 = vrcp.f32 %v4863_v6  ;;  %v3697_v46 = vpop.eup %3696  ;;  %v4925_v21 = vadd.f32 1.0, %v3693_v54  ;;  %v1912_v20 = vmul.f32 2.0, %v612_v39  ;;  %v1679_v38 = vsel %vm764_vm0, %v4680_v15, 0.0 }
 0x140   :  { %8772 = vst [vmem:[#allocation31_spill] sm:$0xff] %v4895_v36  ;;  %3704 = vpow2.f32 %v3542_v63  ;;  %1667 = vadd.xlane.f32.xlu1 %v4773_v50  ;;  %v1677_v63 = vsel %vm764_vm0, %v4670_v31, 0.0  ;;  %v4943_v18 = vmul.f32 %v4895_v36, %v4805_v3  ;;  %v4945_v31 = vadd.f32 1.0, %v3697_v46 }
 0x141   :  { %1682 = vadd.xlane.f32.xlu2 %v4776_v58  ;;  %3706 = vrcp.f32 %v4881_v59  ;;  %8775 = vst [vmem:[#allocation32_spill] sm:$0xff] %v4925_v21  ;;  %1685 = vadd.xlane.f32.xlu0 %v4782_v60  ;;  %v1678_v58 = vsel %vm764_vm0, %v4675_v47, 0.0  ;;  %v4938_v22 = vpop.eup %3698  ;;  %v4950_v15 = vsel %vm1631_vm5, %v1677_v63, 0.0  ;;  %v8779_v60 = vsub.f32 1.0, %v4813_v57 }
 0x142   :  { %3708 = vpow2.f32 %v3543_v7  ;;  %8776 = vst [vmem:[#allocation33_spill] sm:$0xff] %v4938_v22  ;;  %v627_v7 = vsel %vm4857_vm10, %v626_v5, %v622_v43  ;;  %v4959_v46 = vsel %vm1631_vm5, %v1678_v58, 0.0  ;;  %v4962_v5 = vsel %vm1631_vm5, %v1679_v38, 0.0  ;;  %v4976_v58 = vld [vmem:[%s8440_s1] sm:$0xff]  ;;  %vm5004_vm5 = vmor %vm634_vm11, %vm635_vm12 }
 0x143   :  { %8777 = vst [vmem:[#allocation34_spill] sm:$0xff] %v4943_v18  ;;  %v794_v19 = vpop.xlane.xlu1 %793  ;;  %v632_v8 = vmul.f32 %v4788_v27, %v8779_v60  ;;  %3710 = vrcp.f32 %v4925_v21  ;;  %v1913_v57 = vmul.f32 2.0, %v627_v7  ;;  %v640_v38 = vand.u32 2147483648, %v4710_v1  ;;  %v4990_v7 = vld [vmem:[%s8440_s1 + $0x8] sm:$0xff] }
 0x144   :  { %8778 = vst [vmem:[#allocation35_spill] sm:$0xff] %v4945_v31  ;;  %v797_v54 = vpop.xlane.xlu2 %796  ;;  %v3701_v47 = vpop.eup %3700  ;;  %v3544_v39 = vmul.f32 -1.442695, %v794_v19  ;;  %v4965_v19 = vadd.f32 -0.5, %v1912_v20  ;;  %v4981_v20 = vmul.f32 %v4938_v22, %v4848_v26  ;;  %vm5008_vm6 = vcmp.eq.f32.partialorder %v638_v2, 8.507059e+37 }
 0x145   :  { %v3545_v29 = vmul.f32 -1.442695, %v797_v54  ;;  %v800_v50 = vpop.xlane.xlu0 %799  ;;  %v4955_v16 = vpop.eup %3702  ;;  %v4971_v52 = vadd.f32 1.0, %v3701_v47  ;;  %v633_v47 = vadd.f32 %v4788_v27, %v632_v8  ;;  %v8791_v8 = vsub.f32 1.0, %v4845_v32 }
 0x146   :  { %8780 = vst [vmem:[#allocation36_spill] sm:$0xff] %v4955_v16  ;;  %v3705_v43 = vpop.eup %3704  ;;  %3712 = vpow2.f32 %v3544_v39  ;;  %v3546_v63 = vmul.f32 -1.442695, %v800_v50  ;;  %v4995_v60 = vmul.f32 %v4955_v16, %v4863_v6  ;;  %v1717_v1 = vsel %vm487_vm15, %v4976_v58, 0.0 }
 0x147   :  { %v4967_v54 = vpop.eup %3706  ;;  %3714 = vrcp.f32 %v4945_v31  ;;  %8782 = vst [vmem:[#allocation38_spill] sm:$0xff] %v4971_v52  ;;  %v4983_v50 = vadd.f32 1.0, %v3705_v43  ;;  %vm1729_vm9 = vcmask 31744   ;;  %v637_v62 = vsel %vm5004_vm5, %v4788_v27, %v633_v47 }
 0x148   :  { %8781 = vst [vmem:[#allocation37_spill] sm:$0xff] %v4967_v54  ;;  %v3709_v39 = vpop.eup %3708  ;;  %3716 = vpow2.f32 %v3545_v29  ;;  %1688 = vadd.xlane.f32.xlu1 %v4818_v34  ;;  %v647_v29 = vmul.f32 %v4802_v35, %v8791_v8  ;;  %v5025_v2 = vmul.f32 %v4967_v54, %v4881_v59  ;;  %v5052_v34 = vsel %vm1729_vm9, %v1717_v1, 0.0 }
 0x149   :  { %8783 = vst [vmem:[#allocation39_spill] sm:$0xff] %v4981_v20  ;;  %1691 = vadd.xlane.f32.xlu2 %v4821_v53  ;;  %v4997_v24 = vadd.f32 1.0, %v3709_v39  ;;  %1694 = vadd.xlane.f32.xlu0 %v4831_v11  ;;  %3718 = vpow2.f32 %v3546_v63  ;;  %v1680_v11 = vsel %vm764_vm0, %v4725_v51, 0.0  ;;  %v5021_v43 = vpop.eup %3710  ;;  %v1718_v63 = vsel %vm487_vm15, %v4990_v7, 0.0 }
 0x14a   :  { %8784 = vst [vmem:[#allocation40_spill] sm:$0xff] %v4983_v50  ;;  %3720 = vrcp.f32 %v4971_v52  ;;  %v641_v51 = vor.u32 1.1754944e-38, %v640_v38  ;;  %v5040_v9 = vsel %vm1665_vm8, %v1680_v11, 0.0  ;;  %v5042_v38 = vadd.f32 -0.5, %v1913_v57 }
 0x14b   :  { %8785 = vst [vmem:[#allocation41_spill] sm:$0xff] %v4995_v60  ;;  %v803_v32 = vpop.xlane.xlu1 %802  ;;  %3722 = vrcp.f32 %v4983_v50  ;;  %v5055_v25 = vsel %vm1729_vm9, %v1718_v63, 0.0  ;;  %vm649_vm8 = vweird.f32 %v4731_v28  ;;  %vm650_vm7 = vweird.f32 %v4802_v35 }
 0x14c   :  { %8786 = vst [vmem:[#allocation42_spill] sm:$0xff] %v4997_v24  ;;  %v806_v39 = vpop.xlane.xlu2 %805  ;;  %v3713_v8 = vpop.eup %3712  ;;  %v3547_v4 = vmul.f32 -1.442695, %v803_v32  ;;  %3724 = vrcp.f32 %v4997_v24  ;;  %v642_v57 = vsel %vm5008_vm6, %v641_v51, %v637_v62  ;;  %v648_v62 = vadd.f32 %v4802_v35, %v647_v29  ;;  %vm5113_vm10 = vmor %vm649_vm8, %vm650_vm7 }
 0x14d   :  { %8792 = vst [vmem:[#allocation43_spill] sm:$0xff] %v5021_v43  ;;  %v3548_v12 = vmul.f32 -1.442695, %v806_v39  ;;  %v809_v13 = vpop.xlane.xlu0 %808  ;;  %v5035_v45 = vpop.eup %3714  ;;  %v5047_v39 = vmul.f32 %v5021_v43, %v4925_v21  ;;  %v5049_v47 = vadd.f32 1.0, %v3713_v8  ;;  %v1914_v1 = vmul.f32 2.0, %v642_v57 }
 0x14e   :  { %8793 = vst [vmem:[#allocation44_spill] sm:$0xff] %v5025_v2  ;;  %v3717_v56 = vpop.eup %3716  ;;  %3726 = vpow2.f32 %v3547_v4  ;;  %v3549_v27 = vmul.f32 -1.442695, %v809_v13  ;;  %v5067_v13 = vld [vmem:[%s8440_s1 + $0x10] sm:$0xff]  ;;  %v5072_v4 = vld [vmem:[%s8440_s1 + $0x18] sm:$0xff]  ;;  %v655_v63 = vand.u32 2147483648, %v4731_v28  ;;  %vm664_vm12 = vweird.f32 %v4748_v23 }
 0x14f   :  { %8794 = vst [vmem:[#allocation45_spill] sm:$0xff] %v5035_v45  ;;  %v3719_v11 = vpop.eup %3718  ;;  %v5060_v40 = vadd.f32 1.0, %v3717_v56  ;;  %3728 = vpow2.f32 %v3548_v12  ;;  %v5079_v56 = vmul.f32 %v5035_v45, %v4945_v31  ;;  %v1720_v32 = vsel %vm487_vm15, %v5072_v4, 0.0 }
 0x150   :  { %8795 = vst [vmem:[#allocation46_spill] sm:$0xff] %v5047_v39  ;;  %1697 = vadd.xlane.f32.xlu1 %v4884_v10  ;;  %v5075_v53 = vpop.eup %3720  ;;  %v5081_v12 = vadd.f32 1.0, %v3719_v11  ;;  %v5087_v10 = vld [vmem:[%s8440_s1 + $0x20] sm:$0xff]  ;;  %3730 = vpow2.f32 %v3549_v27  ;;  %v1719_v11 = vsel %vm487_vm15, %v5067_v13, 0.0  ;;  %v653_v29 = vand.u32 2147483647, %v4731_v28 }
 0x151   :  { %8796 = vst [vmem:[#allocation47_spill] sm:$0xff] %v5049_v47  ;;  %1700 = vadd.xlane.f32.xlu2 %v4903_v33  ;;  %1703 = vadd.xlane.f32.xlu0 %v4906_v61  ;;  %v5091_v33 = vpop.eup %3722  ;;  %3732 = vrcp.f32 %v5049_v47  ;;  %v1721_v45 = vsel %vm487_vm15, %v5087_v10, 0.0  ;;  %v5120_v39 = vmul.f32 %v5075_v53, %v4971_v52  ;;  %v5128_v28 = vsel %vm1729_vm9, %v1719_v11, 0.0 }
 0x152   :  { %8797 = vst [vmem:[#allocation48_spill] sm:$0xff] %v5060_v40  ;;  %v5095_v51 = vpop.eup %3724  ;;  %3734 = vrcp.f32 %v5060_v40  ;;  %v656_v54 = vor.u32 1.1754944e-38, %v655_v63  ;;  %vm5149_vm11 = vcmp.eq.f32.partialorder %v653_v29, 8.507059e+37  ;;  %vm665_vm13 = vweird.f32 %v4826_v17 }
 0x153   :  { %8798 = vst [vmem:[#allocation49_spill] sm:$0xff] %v5067_v13  ;;  %v812_v61 = vpop.xlane.xlu1 %811  ;;  %3736 = vrcp.f32 %v5081_v12  ;;  %v5132_v43 = vmul.f32 %v5095_v51, %v4997_v24  ;;  %v5158_v24 = vsel %vm1729_vm9, %v1720_v32, 0.0  ;;  %vm5280_vm5 = vmor %vm664_vm12, %vm665_vm13  ;;  %vm1763_vm6 = vcmask 25600  }
 0x154   :  { %8799 = vst [vmem:[#allocation50_spill] sm:$0xff] %v5072_v4  ;;  %v1056_v8 = vpop.xlane.xlu2 %1055  ;;  %v3727_v27 = vpop.eup %3726  ;;  %v3550_v57 = vmul.f32 -1.442695, %v812_v61  ;;  %v5124_v61 = vmul.f32 %v5091_v33, %v4983_v50  ;;  %v5139_v50 = vld [vmem:[%s8440_s1 + $0x28] sm:$0xff] }
 0x155   :  { %8800 = vst [vmem:[#allocation51_spill] sm:$0xff] %v5075_v53  ;;  %v3551_v55 = vmul.f32 -1.442695, %v1056_v8  ;;  %v1059_v31 = vpop.xlane.xlu0 %1058  ;;  %v3729_v8 = vpop.eup %3728 }
 0x156   :  { %8801 = vst [vmem:[#allocation52_spill] sm:$0xff] %v5079_v56  ;;  %3738 = vpow2.f32 %v3550_v57  ;;  %v3552_v59 = vmul.f32 -1.442695, %v1059_v31  ;;  %v5134_v56 = vadd.f32 1.0, %v3727_v27  ;;  %v5144_v57 = vld [vmem:[%s8440_s1 + $0x30] sm:$0xff]  ;;  %v652_v31 = vsel %vm5113_vm10, %v4802_v35, %v648_v62  ;;  %v3731_v11 = vpop.eup %3730  ;;  %v5166_v35 = vld [vmem:[%s8440_s1 + $0x38] sm:$0xff] }
 0x157   :  { %8802 = vst [vmem:[#allocation53_spill] sm:$0xff] %v5081_v12  ;;  %v5153_v27 = vadd.f32 1.0, %v3729_v8  ;;  %3740 = vpow2.f32 %v3551_v55  ;;  %v5168_v21 = vpop.eup %3732  ;;  %v1723_v29 = vsel %vm487_vm15, %v5144_v57, 0.0  ;;  %v657_v8 = vsel %vm5149_vm11, %v656_v54, %v652_v31 }
 0x158   :  { %8803 = vst [vmem:[#allocation54_spill] sm:$0xff] %v5087_v10  ;;  %1706 = vadd.xlane.f32.xlu1 %v4950_v15  ;;  %v5172_v15 = vadd.f32 1.0, %v3731_v11  ;;  %v5177_v32 = vpop.eup %3734  ;;  %3742 = vpow2.f32 %v3552_v59  ;;  %v1724_v59 = vsel %vm487_vm15, %v5166_v35, 0.0  ;;  %v8819_v62 = vsub.f32 1.0, %v4876_v37  ;;  %v5212_v37 = vld [vmem:[%s8440_s1 + $0x40] sm:$0xff] }
 0x159   :  { %8804 = vst [vmem:[#allocation55_spill] sm:$0xff] %v5091_v33  ;;  %1709 = vadd.xlane.f32.xlu2 %v4959_v46  ;;  %1712 = vadd.xlane.f32.xlu0 %v4962_v5  ;;  %v5175_v46 = vadd.f32 -0.5, %v1914_v1  ;;  %v5187_v11 = vpop.eup %3736  ;;  %3744 = vrcp.f32 %v5134_v56  ;;  %v5199_v54 = vmul.f32 %v5168_v21, %v5049_v47  ;;  %v5207_v52 = vsel %vm1729_vm9, %v1723_v29, 0.0 }
 0x15a   :  { %8805 = vst [vmem:[#allocation56_spill] sm:$0xff] %v5095_v51  ;;  %v5161_v51 = vsel %vm1729_vm9, %v1721_v45, 0.0  ;;  %v1722_v45 = vsel %vm487_vm15, %v5139_v50, 0.0  ;;  %v662_v33 = vmul.f32 %v4826_v17, %v8819_v62  ;;  %3746 = vrcp.f32 %v5153_v27 }
 0x15b   :  { %8808 = vst [vmem:[#allocation57_spill] sm:$0xff] %v5120_v39  ;;  %v1062_v1 = vpop.xlane.xlu1 %1061  ;;  %3748 = vrcp.f32 %v5172_v15  ;;  %v1915_v62 = vmul.f32 2.0, %v657_v8  ;;  %v5225_v29 = vmul.f32 %v5187_v11, %v5081_v12  ;;  %v5232_v8 = vld [vmem:[%s8440_s1 + $0x48] sm:$0xff] }
 0x15c   :  { %8809 = vst [vmem:[#allocation58_spill] sm:$0xff] %v5124_v61  ;;  %v1065_v55 = vpop.xlane.xlu2 %1064  ;;  %v3739_v61 = vpop.eup %3738  ;;  %v3553_v31 = vmul.f32 -1.442695, %v1062_v1  ;;  %v5216_v1 = vmul.f32 %v5177_v32, %v5060_v40  ;;  %v5235_v40 = vadd.f32 %v4826_v17, %v662_v33 }
 0x15d   :  { %8810 = vst [vmem:[#allocation59_spill] sm:$0xff] %v5132_v43  ;;  %v3554_v63 = vmul.f32 -1.442695, %v1065_v55  ;;  %v1068_v5 = vpop.xlane.xlu0 %1067  ;;  %v5204_v43 = vsel %vm1729_vm9, %v1722_v45, 0.0  ;;  %v3741_v47 = vpop.eup %3740  ;;  %v5218_v55 = vadd.f32 1.0, %v3739_v61  ;;  %v5221_v45 = vsel %vm1729_vm9, %v1724_v59, 0.0 }
 0x15e   :  { %8811 = vst [vmem:[#allocation60_spill] sm:$0xff] %v5134_v56  ;;  %3750 = vpow2.f32 %v3553_v31  ;;  %v3743_v61 = vpop.eup %3742  ;;  %v5247_v31 = vld [vmem:[%s8440_s1 + $0x50] sm:$0xff] }
 0x15f   :  { %8814 = vst [vmem:[#allocation61_spill] sm:$0xff] %v5153_v27  ;;  %3752 = vpow2.f32 %v3554_v63  ;;  %v5250_v33 = vpop.eup %3744  ;;  %v5253_v63 = vadd.f32 1.0, %v3743_v61  ;;  %v1727_v12 = vsel %vm487_vm15, %v5247_v31, 0.0 }
 0x160   :  { %8815 = vst [vmem:[#allocation62_spill] sm:$0xff] %v5168_v21  ;;  %v5227_v21 = vadd.f32 1.0, %v3741_v47  ;;  %1715 = vadd.xlane.f32.xlu1 %v5040_v9  ;;  %v1725_v47 = vsel %vm487_vm15, %v5212_v37, 0.0  ;;  %v3555_v9 = vmul.f32 -1.442695, %v1068_v5  ;;  %v5258_v59 = vpop.eup %3746  ;;  %v5295_v2 = vmul.f32 %v5250_v33, %v5134_v56 }
 0x161   :  { %8816 = vst [vmem:[#allocation63_spill] sm:$0xff] %v5172_v15  ;;  %1731 = vadd.xlane.f32.xlu2 %v5052_v34  ;;  %1734 = vadd.xlane.f32.xlu0 %v5055_v25  ;;  %v5256_v34 = vadd.f32 -0.5, %v1915_v62  ;;  %v5271_v61 = vsel %vm1729_vm9, %v1725_v47, 0.0  ;;  %v5287_v47 = vld [vmem:[%s8440_s1 + $0x58] sm:$0x3]  ;;  %v5302_v16 = vmul.f32 %v5258_v59, %v5153_v27  ;;  %v5308_v39 = vsel %vm1729_vm9, %v1727_v12, 0.0 }
 0x162   :  { %8817 = vst [vmem:[#allocation64_spill] sm:$0xff] %v5177_v32  ;;  %3754 = vrcp.f32 %v5227_v21  ;;  %v1767_v12 = vsel %vm764_vm0, %v4976_v58, 0.0  ;;  %vm1143_vm8 = vweird.f32 %v5227_v21  ;;  %vm1158_vm12 = vweird.f32 %v5253_v63 }
 0x163   :  { %8818 = vst [vmem:[#allocation65_spill] sm:$0xff] %v5187_v11  ;;  %3756 = vrcp.f32 %v5218_v55  ;;  %v1726_v11 = vsel %vm487_vm15, %v5232_v8, 0.0  ;;  %v1071_v25 = vpop.xlane.xlu1 %1070 }
 0x164   :  { %8820 = vst [vmem:[#allocation66_spill] sm:$0xff] %v5199_v54  ;;  %v5266_v54 = vpop.eup %3748  ;;  %3758 = vrcp.f32 %v5253_v63  ;;  %v1074_v62 = vpop.xlane.xlu2 %1073  ;;  %v5305_v60 = vsel %vm1729_vm9, %v1726_v11, 0.0 }
 0x165   :  { %8821 = vst [vmem:[#allocation67_spill] sm:$0xff] %v5216_v1  ;;  %v3751_v5 = vpop.eup %3750  ;;  %v3557_v1 = vmul.f32 -1.442695, %v1074_v62  ;;  %v1077_v53 = vpop.xlane.xlu0 %1076  ;;  %3760 = vpow2.f32 %v3555_v9  ;;  %v1728_v9 = vsel %vm487_vm15, %v5287_v47, 0.0 }
 0x166   :  { %8822 = vst [vmem:[#allocation68_spill] sm:$0xff] %v5218_v55  ;;  %v5297_v6 = vadd.f32 1.0, %v3751_v5  ;;  %v3753_v62 = vpop.eup %3752  ;;  %v5314_v5 = vmul.f32 %v5266_v54, %v5172_v15  ;;  %v3558_v11 = vmul.f32 -1.442695, %v1077_v53  ;;  %v1149_v53 = vand.u32 2147483648, %v5227_v21 }
 0x167   :  { %8823 = vst [vmem:[#allocation69_spill] sm:$0xff] %v5225_v29  ;;  %v3556_v29 = vmul.f32 -1.442695, %v1071_v25  ;;  %v670_v25 = vand.u32 2147483648, %v4748_v23  ;;  %v5346_v20 = vsel %vm1763_vm6, %v1728_v9, 0.0 }
 0x168   :  { %8824 = vst [vmem:[#allocation70_spill] sm:$0xff] %v5250_v33  ;;  %v5310_v26 = vpop.eup %3754  ;;  %1737 = vadd.xlane.f32.xlu1 %v5128_v28 }
 0x169   :  { %8825 = vst [vmem:[#allocation71_spill] sm:$0xff] %v5256_v34  ;;  %3762 = vpow2.f32 %v3556_v29  ;;  %v5320_v29 = vpop.eup %3756  ;;  %1740 = vadd.xlane.f32.xlu2 %v5158_v24  ;;  %v1139_v15 = vmul.f32 %v5310_v26, %v5227_v21  ;;  %1743 = vadd.xlane.f32.xlu0 %v5161_v51  ;;  %v5335_v28 = vor.u32 1.1754944e-38, %v670_v25  ;;  %v5337_v24 = vadd.f32 1.0, %v3753_v62 }
 0x16a   :  { %8826 = vst [vmem:[#allocation72_spill] sm:$0xff] %v5258_v59  ;;  %3764 = vrcp.f32 %v5297_v6  ;;  %v1768_v59 = vsel %vm764_vm0, %v4990_v7, 0.0  ;;  %v5349_v25 = vsel %vm1729_vm9, %v1767_v12, 0.0  ;;  %v5353_v3 = vmul.f32 %v5320_v29, %v5218_v55 }
 0x16b   :  { %8827 = vst [vmem:[#allocation73_spill] sm:$0xff] %v5266_v54  ;;  %3766 = vpow2.f32 %v3557_v1  ;;  %v5329_v54 = vpop.eup %3758  ;;  %v1147_v1 = vand.u32 2147483647, %v5227_v21  ;;  %v1140_v56 = vsub.f32 1.0, %v1139_v15  ;;  %vm1144_vm10 = vweird.f32 %v5310_v26 }
 0x16c   :  { %8830 = vst [vmem:[#allocation74_spill] sm:$0xff] %v5295_v2  ;;  %v3761_v33 = vpop.eup %3760  ;;  %v1080_v2 = vpop.xlane.xlu1 %1079  ;;  %3768 = vpow2.f32 %v3558_v11  ;;  %v1154_v27 = vmul.f32 %v5329_v54, %v5253_v63  ;;  %vm5392_vm11 = vmor %vm1143_vm8, %vm1144_vm10  ;;  %vm1159_vm13 = vweird.f32 %v5329_v54  ;;  %vm1173_vm10 = vweird.f32 %v5297_v6 }
 0x16d   :  { %8831 = vst [vmem:[#allocation75_spill] sm:$0xff] %v5302_v16  ;;  %v1083_v22 = vpop.xlane.xlu2 %1082  ;;  %v3559_v15 = vmul.f32 -1.442695, %v1080_v2  ;;  %v1086_v36 = vpop.xlane.xlu0 %1085  ;;  %v1141_v9 = vmul.f32 %v5310_v26, %v1140_v56  ;;  %vm5363_vm7 = vcmp.eq.f32.partialorder %v1147_v1, 8.507059e+37  ;;  %v1150_v16 = vor.u32 1.1754944e-38, %v1149_v53 }
 0x16e   :  { %8832 = vst [vmem:[#allocation76_spill] sm:$0xff] %v5314_v5  ;;  %v5360_v5 = vsel %vm1729_vm9, %v1768_v59, 0.0  ;;  %3770 = vrcp.f32 %v5337_v24  ;;  %v5368_v2 = vadd.f32 1.0, %v3761_v33  ;;  %v3560_v11 = vmul.f32 -1.442695, %v1083_v22 }
 0x16f   :  { %8833 = vst [vmem:[#allocation77_spill] sm:$0xff] %v5320_v29  ;;  %v3763_v62 = vpop.eup %3762  ;;  %3772 = vpow2.f32 %v3559_v15  ;;  %v1769_v59 = vsel %vm764_vm0, %v5067_v13, 0.0  ;;  %v1770_v56 = vsel %vm764_vm0, %v5072_v4, 0.0  ;;  %v1771_v22 = vsel %vm764_vm0, %v5087_v10, 0.0 }
 0x170   :  { %8834 = vst [vmem:[#allocation78_spill] sm:$0xff] %v5353_v3  ;;  %v5357_v51 = vpop.eup %3764  ;;  %v5379_v53 = vadd.f32 1.0, %v3763_v62  ;;  %1746 = vadd.xlane.f32.xlu1 %v5204_v43  ;;  %v1142_v33 = vadd.f32 %v5310_v26, %v1141_v9  ;;  %v1155_v15 = vsub.f32 1.0, %v1154_v27  ;;  %v1164_v43 = vand.u32 2147483648, %v5253_v63 }
 0x171   :  { %v3767_v55 = vpop.eup %3766  ;;  %v1169_v1 = vmul.f32 %v5357_v51, %v5297_v6  ;;  %1749 = vadd.xlane.f32.xlu2 %v5207_v52  ;;  %1752 = vadd.xlane.f32.xlu0 %v5221_v45  ;;  %v1162_v52 = vand.u32 2147483647, %v5253_v63  ;;  %3774 = vpow2.f32 %v3560_v11  ;;  %v3561_v9 = vmul.f32 -1.442695, %v1086_v36 }
 0x172   :  { %v5387_v29 = vadd.f32 1.0, %v3767_v55  ;;  %v3769_v3 = vpop.eup %3768  ;;  %3776 = vrcp.f32 %v5368_v2  ;;  %v5402_v45 = vsel %vm1729_vm9, %v1769_v59, 0.0  ;;  %v5405_v18 = vsel %vm1729_vm9, %v1770_v56, 0.0 }
 0x173   :  { %v1170_v27 = vsub.f32 1.0, %v1169_v1  ;;  %v5408_v10 = vsel %vm1729_vm9, %v1771_v22, 0.0  ;;  %3778 = vrcp.f32 %v5379_v53  ;;  %v1146_v1 = vsel %vm5392_vm11, %v5310_v26, %v1142_v33 }
 0x174   :  { %v1089_v55 = vpop.xlane.xlu1 %1088  ;;  %v5410_v4 = vpop.eup %3770  ;;  %v1156_v13 = vmul.f32 %v5329_v54, %v1155_v15  ;;  %3780 = vrcp.f32 %v5387_v29  ;;  %v5418_v56 = vadd.f32 1.0, %v3769_v3  ;;  %vm5420_vm8 = vcmp.eq.f32.partialorder %v1162_v52, 8.507059e+37 }
 0x175   :  { %v1333_v21 = vpop.xlane.xlu2 %1332  ;;  %v3562_v36 = vmul.f32 -1.442695, %v1089_v55  ;;  %v1336_v11 = vpop.xlane.xlu0 %1335  ;;  %v5424_v34 = vor.u32 1.1754944e-38, %v1164_v43  ;;  %3782 = vpow2.f32 %v3561_v9  ;;  %v1171_v62 = vmul.f32 %v5357_v51, %v1170_v27 }
 0x176   :  { %v3773_v59 = vpop.eup %3772  ;;  %8839 = vst [vmem:[#allocation79_spill] sm:$0xff] %v5418_v56  ;;  %v3563_v55 = vmul.f32 -1.442695, %v1333_v21  ;;  %vm1174_vm11 = vweird.f32 %v5357_v51  ;;  %v3564_v26 = vmul.f32 -1.442695, %v1336_v11  ;;  %v1772_v3 = vsel %vm764_vm0, %v5139_v50, 0.0 }
 0x177   :  { %v1773_v33 = vsel %vm764_vm0, %v5144_v57, 0.0  ;;  %v1151_v15 = vsel %vm5363_vm7, %v1150_v16, %v1146_v1  ;;  %v3775_v52 = vpop.eup %3774  ;;  %v5437_v43 = vadd.f32 1.0, %v3773_v59  ;;  %3784 = vpow2.f32 %v3562_v36  ;;  %vm5454_vm7 = vmor %vm1158_vm12, %vm1159_vm13 }
 0x178   :  { %1755 = vadd.xlane.f32.xlu1 %v5271_v61  ;;  %v1157_v9 = vadd.f32 %v5329_v54, %v1156_v13  ;;  %v1177_v27 = vand.u32 2147483647, %v5297_v6  ;;  %v5443_v50 = vpop.eup %3776  ;;  %3786 = vrcp.f32 %v5418_v56  ;;  %v1774_v16 = vsel %vm764_vm0, %v5166_v35, 0.0  ;;  %vm5482_vm12 = vmor %vm1173_vm10, %vm1174_vm11 }
 0x179   :  { %1758 = vadd.xlane.f32.xlu2 %v5305_v60  ;;  %1761 = vadd.xlane.f32.xlu0 %v5308_v39  ;;  %v1172_v13 = vadd.f32 %v5357_v51, %v1171_v62  ;;  %v1184_v57 = vmul.f32 %v5410_v4, %v5337_v24  ;;  %v5461_v61 = vpop.eup %3778  ;;  %3788 = vpow2.f32 %v3563_v55  ;;  %v5464_v39 = vsel %vm1729_vm9, %v1772_v3, 0.0 }
 0x17a   :  { %v5467_v35 = vsel %vm1729_vm9, %v1773_v33, 0.0  ;;  %v1959_v12 = vmul.f32 2.0, %v1151_v15  ;;  %v5469_v63 = vpop.eup %3780  ;;  %v5471_v21 = vadd.f32 1.0, %v3775_v52  ;;  %3790 = vpow2.f32 %v3564_v26 }
 0x17b   :  { %v1179_v1 = vand.u32 2147483648, %v5297_v6  ;;  %v1185_v59 = vsub.f32 1.0, %v1184_v57  ;;  %v3783_v62 = vpop.eup %3782  ;;  %3792 = vrcp.f32 %v5437_v43  ;;  %v1161_v33 = vsel %vm5454_vm7, %v5329_v54, %v1157_v9 }
 0x17c   :  { %8844 = vst [vmem:[#allocation80_spill] sm:$0xff] %v5471_v21  ;;  %v1339_v36 = vpop.xlane.xlu1 %1338  ;;  %v1176_v15 = vsel %vm5482_vm12, %v5357_v51, %v1172_v13  ;;  %vm1188_vm13 = vweird.f32 %v5337_v24  ;;  %vm1189_vm14 = vweird.f32 %v5410_v4  ;;  %v1192_v52 = vand.u32 2147483647, %v5337_v24 }
 0x17d   :  { %v1342_v11 = vpop.xlane.xlu2 %1341  ;;  %v3565_v55 = vmul.f32 -1.442695, %v1339_v36  ;;  %v1345_v56 = vpop.xlane.xlu0 %1344  ;;  %v1186_v54 = vmul.f32 %v5410_v4, %v1185_v59  ;;  %v1194_v6 = vand.u32 2147483648, %v5337_v24  ;;  %v1199_v9 = vmul.f32 %v5443_v50, %v5368_v2  ;;  %vm5518_vm11 = vmor %vm1188_vm13, %vm1189_vm14 }
 0x17e   :  { %v3566_v3 = vmul.f32 -1.442695, %v1342_v11  ;;  %v3785_v60 = vpop.eup %3784  ;;  %v3567_v51 = vmul.f32 -1.442695, %v1345_v56  ;;  %v5500_v13 = vsel %vm1729_vm9, %v1774_v16, 0.0  ;;  %v1180_v36 = vor.u32 1.1754944e-38, %v1179_v1 }
 0x17f   :  { %3794 = vpow2.f32 %v3565_v55  ;;  %v5496_v57 = vpop.eup %3786  ;;  %v5504_v59 = vmul.f32 %v1959_v12, %v1959_v12  ;;  %v1166_v55 = vsel %vm5420_vm8, %v5424_v34, %v1161_v33  ;;  %vm1178_vm10 = vcmp.eq.f32.partialorder %v1177_v27, 8.507059e+37 }
 0x180   :  { %3796 = vrcp.f32 %v5471_v21  ;;  %v3789_v11 = vpop.eup %3788  ;;  %1765 = vadd.xlane.f32.xlu1 %v5346_v20  ;;  %v5509_v21 = vadd.f32 1.0, %v3783_v62  ;;  %v5511_v56 = vadd.f32 1.0, %v3785_v60  ;;  %v1181_v16 = vsel %vm1178_vm10, %v1180_v36, %v1176_v15 }
 0x181   :  { %3798 = vpow2.f32 %v3566_v3  ;;  %1780 = vadd.xlane.f32.xlu2 %v5349_v25  ;;  %v3791_v26 = vpop.eup %3790  ;;  %1783 = vadd.xlane.f32.xlu0 %v5360_v5  ;;  %vm5522_vm7 = vcmp.eq.f32.partialorder %v1192_v52, 8.507059e+37  ;;  %v1187_v22 = vadd.f32 %v5410_v4, %v1186_v54  ;;  %v1195_v27 = vor.u32 1.1754944e-38, %v1194_v6 }
 0x182   :  { %v5526_v34 = vpop.eup %3792  ;;  %v1200_v12 = vsub.f32 1.0, %v1199_v9  ;;  %vm1203_vm8 = vweird.f32 %v5368_v2  ;;  %v5530_v5 = vadd.f32 1.0, %v3789_v11  ;;  %3800 = vpow2.f32 %v3567_v51 }
 0x183   :  { %vm1204_vm14 = vweird.f32 %v5443_v50  ;;  %v1209_v62 = vand.u32 2147483648, %v5368_v2  ;;  %v5534_v33 = vadd.f32 1.0, %v3791_v26  ;;  %v1191_v52 = vsel %vm5518_vm11, %v5410_v4, %v1187_v22 }
 0x184   :  { %v1348_v24 = vpop.xlane.xlu1 %1347  ;;  %v1201_v60 = vmul.f32 %v5443_v50, %v1200_v12  ;;  %v1207_v54 = vand.u32 2147483647, %v5368_v2  ;;  %3802 = vrcp.f32 %v5509_v21  ;;  %v1960_v51 = vmul.f32 2.0, %v1166_v55  ;;  %vm5546_vm12 = vmor %vm1203_vm8, %vm1204_vm14 }
 0x185   :  { %v1351_v1 = vpop.xlane.xlu2 %1350  ;;  %v3795_v3 = vpop.eup %3794  ;;  %v3568_v9 = vmul.f32 -1.442695, %v1348_v24  ;;  %v1961_v36 = vmul.f32 2.0, %v1181_v16  ;;  %3804 = vrcp.f32 %v5511_v56  ;;  %v1196_v20 = vsel %vm5522_vm7, %v1195_v27, %v1191_v52 }
 0x186   :  { %v1354_v15 = vpop.xlane.xlu0 %1353  ;;  %v5541_v6 = vpop.eup %3796  ;;  %v5551_v4 = vadd.f32 1.0, %v3795_v3  ;;  %v1202_v22 = vadd.f32 %v5443_v50, %v1201_v60  ;;  %3806 = vrcp.f32 %v5530_v5  ;;  %v1775_v2 = vsel %vm764_vm0, %v5212_v37, 0.0 }
 0x187   :  { %v3799_v26 = vpop.eup %3798  ;;  %v1776_v55 = vsel %vm764_vm0, %v5232_v8, 0.0  ;;  %v1210_v16 = vor.u32 1.1754944e-38, %v1209_v62  ;;  %v8853_v12 = vand.u32 2147483647, %v4748_v23  ;;  %3808 = vrcp.f32 %v5534_v33 }
 0x188   :  { %v3569_v25 = vmul.f32 -1.442695, %v1351_v1  ;;  %1786 = vadd.xlane.f32.xlu1 %v5402_v45  ;;  %v1206_v37 = vsel %vm5546_vm12, %v5443_v50, %v1202_v22  ;;  %vm1208_vm10 = vcmp.eq.f32.partialorder %v1207_v54, 8.507059e+37  ;;  %v3801_v8 = vpop.eup %3800  ;;  %v5575_v27 = vadd.f32 1.0, %v3799_v26 }
 0x189   :  { %vm5565_vm13 = vcmp.eq.f32.partialorder %v8853_v12, 8.507059e+37  ;;  %1789 = vadd.xlane.f32.xlu2 %v5405_v18  ;;  %3810 = vpow2.f32 %v3568_v9  ;;  %1792 = vadd.xlane.f32.xlu0 %v5408_v10  ;;  %v1777_v23 = vsel %vm764_vm0, %v5247_v31, 0.0  ;;  %v1962_v1 = vmul.f32 2.0, %v1196_v20 }
 0x18a   :  { %3812 = vrcp.f32 %v5551_v4  ;;  %v3570_v45 = vmul.f32 -1.442695, %v1354_v15  ;;  %v5582_v18 = vmul.f32 %v1960_v51, %v1960_v51  ;;  %v5585_v62 = vsel %vm1729_vm9, %v1775_v2, 0.0  ;;  %v5587_v50 = vpop.eup %3802 }
 0x18b   :  { %v1211_v60 = vsel %vm1208_vm10, %v1210_v16, %v1206_v37  ;;  %v1778_v10 = vsel %vm764_vm0, %v5287_v47, 0.0  ;;  %v1815_v31 = vsel %vm1041_vm2, %v4976_v58, 0.0  ;;  %v1214_v15 = vmul.f32 %v5461_v61, %v5379_v53  ;;  %v5597_v54 = vpop.eup %3804 }
 0x18c   :  { %v1357_v3 = vpop.xlane.xlu1 %1356  ;;  %v5599_v9 = vadd.f32 1.0, %v3801_v8  ;;  %3814 = vpow2.f32 %v3569_v25  ;;  %v5604_v11 = vsel %vm1729_vm9, %v1776_v55, 0.0  ;;  %v5607_v26 = vsel %vm1729_vm9, %v1777_v23, 0.0  ;;  %v5609_v47 = vpop.eup %3806 }
 0x18d   :  { %v1360_v52 = vpop.xlane.xlu2 %1359  ;;  %3816 = vrcp.f32 %v5575_v27  ;;  %v5612_v58 = vmul.f32 %v1961_v36, %v1961_v36  ;;  %v5614_v20 = vmul.f32 %v1962_v1, %v1962_v1  ;;  %v1215_v22 = vsub.f32 1.0, %v1214_v15  ;;  %v5616_v2 = vpop.eup %3808 }
 0x18e   :  { %8856 = vst [vmem:[#allocation81_spill] sm:$0xff] %v5599_v9  ;;  %v5601_v51 = vpop.xlane.xlu0 %1362  ;;  %3818 = vpow2.f32 %v3570_v45  ;;  %v1963_v16 = vmul.f32 2.0, %v1211_v60  ;;  %v5619_v12 = vsel %vm1763_vm6, %v1778_v10, 0.0  ;;  %v5622_v55 = vsel %vm1729_vm9, %v1815_v31, 0.0 }
 0x18f   :  { %v3811_v25 = vpop.eup %3810  ;;  %v1816_v37 = vsel %vm1041_vm2, %v4990_v7, 0.0  ;;  %v1216_v36 = vmul.f32 %v5461_v61, %v1215_v22  ;;  %vm1219_vm11 = vweird.f32 %v5461_v61  ;;  %v8857_v8 = vsub.f32 1.0, %v4888_v30 }
 0x190   :  { %v5632_v1 = vpop.eup %3812  ;;  %3820 = vrcp.f32 %v5599_v9  ;;  %1795 = vadd.xlane.f32.xlu1 %v5464_v39  ;;  %v8858_v7 = vsel %vm5280_vm5, %v4826_v17, %v5235_v40  ;;  %vm1218_vm7 = vweird.f32 %v5379_v53  ;;  %v1224_v30 = vand.u32 2147483648, %v5379_v53 }
 0x191   :  { %v677_v23 = vmul.f32 %v4851_v44, %v8857_v8  ;;  %1798 = vadd.xlane.f32.xlu2 %v5467_v35  ;;  %v672_v45 = vsel %vm5565_vm13, %v5335_v28, %v8858_v7  ;;  %v3571_v60 = vmul.f32 -1.442695, %v1357_v3  ;;  %1801 = vadd.xlane.f32.xlu0 %v5500_v13  ;;  %v1217_v39 = vadd.f32 %v5461_v61, %v1216_v36  ;;  %vm5658_vm5 = vmor %vm1218_vm7, %vm1219_vm11 }
 0x192   :  { %v1222_v35 = vand.u32 2147483647, %v5379_v53  ;;  %vm679_vm8 = vweird.f32 %v4760_v48  ;;  %v3815_v32 = vpop.eup %3814  ;;  %v5651_v10 = vadd.f32 1.0, %v3811_v25  ;;  %v3572_v17 = vmul.f32 -1.442695, %v1360_v52 }
 0x193   :  { %v5654_v40 = vsel %vm1729_vm9, %v1816_v37, 0.0  ;;  %vm680_vm14 = vweird.f32 %v4851_v44  ;;  %v5663_v13 = vpop.eup %3816  ;;  %v1221_v3 = vsel %vm5658_vm5, %v5461_v61, %v1217_v39  ;;  %v678_v52 = vadd.f32 %v4851_v44, %v677_v23 }
 0x194   :  { %v5665_v53 = vpop.xlane.xlu1 %1365  ;;  %v685_v31 = vand.u32 2147483648, %v4760_v48  ;;  %v1229_v15 = vmul.f32 %v5469_v63, %v5387_v29  ;;  %v5674_v22 = vpop.eup %3818  ;;  %v1975_v36 = vmul.f32 %v1963_v16, %v1963_v16  ;;  %v1225_v8 = vor.u32 1.1754944e-38, %v1224_v30  ;;  %vm5679_vm12 = vmor %vm679_vm8, %vm680_vm14 }
 0x195   :  { %8861 = vst [vmem:[#allocation82_spill] sm:$0xff] %v5665_v53  ;;  %v1634_v24 = vpop.xlane.xlu2 %1633  ;;  %v683_v61 = vand.u32 2147483647, %v4760_v48  ;;  %3822 = vpow2.f32 %v3571_v60  ;;  %vm1223_vm13 = vcmp.eq.f32.partialorder %v1222_v35, 8.507059e+37  ;;  %v1916_v39 = vmul.f32 2.0, %v672_v45 }
 0x196   :  { %v1983_v25 = vmul.f32 %v5504_v59, %v1634_v24  ;;  %v1637_v37 = vpop.xlane.xlu0 %1636  ;;  %v5685_v28 = vpop.eup %3820  ;;  %3824 = vrcp.f32 %v5651_v10  ;;  %v1226_v16 = vsel %vm1223_vm13, %v1225_v8, %v1221_v3  ;;  %v1230_v30 = vsub.f32 1.0, %v1229_v15 }
 0x197   :  { %v1984_v23 = vmul.f32 %v5582_v18, %v1637_v37  ;;  %v682_v53 = vsel %vm5679_vm12, %v4851_v44, %v678_v52  ;;  %v686_v9 = vor.u32 1.1754944e-38, %v685_v31  ;;  %vm1233_vm10 = vweird.f32 %v5387_v29 }
 0x198   :  { %v2031_v59 = vmul.f32 0.5, %v1983_v25  ;;  %1804 = vadd.xlane.f32.xlu1 %v5585_v62  ;;  %vm5700_vm11 = vcmp.eq.f32.partialorder %v683_v61, 8.507059e+37  ;;  %vm1234_vm7 = vweird.f32 %v5469_v63  ;;  %v5705_v44 = vadd.f32 1.0, %v3815_v32 }
 0x199   :  { %v2032_v24 = vmul.f32 0.5, %v1984_v23  ;;  %1807 = vadd.xlane.f32.xlu2 %v5604_v11  ;;  %1810 = vadd.xlane.f32.xlu0 %v5607_v26  ;;  %v1231_v11 = vmul.f32 %v5469_v63, %v1230_v30  ;;  %v1237_v3 = vand.u32 2147483647, %v5387_v29  ;;  %v1239_v32 = vand.u32 2147483648, %v5387_v29  ;;  %vm5733_vm8 = vmor %vm1233_vm10, %vm1234_vm7 }
 0x19a   :  { %v5693_v48 = vsub.f32 %v4919_v49, %v2031_v59  ;;  %v5696_v18 = vadd.f32 %v4919_v49, %v2031_v59  ;;  %v1964_v49 = vmul.f32 2.0, %v1226_v16  ;;  %3826 = vpow2.f32 %v3572_v17 }
 0x19b   :  { %v5708_v60 = vsub.f32 %v4965_v19, %v2032_v24  ;;  %v5711_v35 = vadd.f32 %v4965_v19, %v2032_v24  ;;  %v5721_v52 = vpop.eup %3822  ;;  %v687_v15 = vsel %vm5700_vm11, %v686_v9, %v682_v53  ;;  %v8870_v37 = vsub.f32 1.0, %v4899_v0 }
 0x19c   :  { %v5716_v62 = vsub.f32 %v5696_v18, %v5693_v48  ;;  %v1640_v31 = vpop.xlane.xlu1 %1639  ;;  %v5740_v8 = vpop.eup %3824  ;;  %v1232_v9 = vadd.f32 %v5469_v63, %v1231_v11  ;;  %vm1238_vm5 = vcmp.eq.f32.partialorder %v1237_v3, 8.507059e+37  ;;  %v3580_v29 = vadd.f32 -0.5, %v1916_v39  ;;  %v8871_v11 = vld [vmem:[#allocation71_spill] sm:$0xff] }
 0x19d   :  { %v5725_v19 = vsub.f32 %v5711_v35, %v5708_v60  ;;  %v1643_v26 = vpop.xlane.xlu2 %1642  ;;  %v692_v17 = vmul.f32 %v4861_v41, %v8870_v37  ;;  %v1985_v7 = vmul.f32 %v5612_v58, %v1640_v31  ;;  %v1976_v59 = vmul.f32 %v1964_v49, %v1964_v49 }
 0x19e   :  { %8866 = vst [vmem:[#allocation83_spill] sm:$0xff] %v5716_v62  ;;  %v1986_v61 = vmul.f32 %v5614_v20, %v1643_v26  ;;  %v1646_v23 = vpop.xlane.xlu0 %1645  ;;  %v1240_v16 = vor.u32 1.1754944e-38, %v1239_v32  ;;  %v1236_v0 = vsel %vm5733_vm8, %v5469_v63, %v1232_v9  ;;  %v1917_v45 = vmul.f32 2.0, %v687_v15 }
 0x19f   :  { %8867 = vst [vmem:[#allocation84_spill] sm:$0xff] %v5725_v19  ;;  %v1987_v53 = vmul.f32 %v1975_v36, %v1646_v23  ;;  %v2033_v30 = vmul.f32 0.5, %v1985_v7  ;;  %v693_v58 = vadd.f32 %v4861_v41, %v692_v17  ;;  %vm694_vm14 = vweird.f32 %v4770_v14  ;;  %v8877_v7 = vld [vmem:[#allocation79_spill] sm:$0xff] }
 0x1a0   :  { %v2034_v24 = vmul.f32 0.5, %v1986_v61  ;;  %v1241_v19 = vsel %vm1238_vm5, %v1240_v16, %v1236_v0  ;;  %1813 = vadd.xlane.f32.xlu1 %v5619_v12  ;;  %v5763_v63 = vpop.eup %3826  ;;  %vm695_vm12 = vweird.f32 %v4861_v41  ;;  %v1244_v61 = vmul.f32 %v5496_v57, %v8877_v7 }
 0x1a1   :  { %v2035_v37 = vmul.f32 0.5, %v1987_v53  ;;  %v5751_v20 = vsub.f32 %v5042_v38, %v2033_v30  ;;  %v5754_v36 = vadd.f32 %v5042_v38, %v2033_v30  ;;  %1828 = vadd.xlane.f32.xlu2 %v5622_v55  ;;  %1831 = vadd.xlane.f32.xlu0 %v5654_v40  ;;  %v1965_v38 = vmul.f32 2.0, %v1241_v19  ;;  %vm5784_vm13 = vmor %vm694_vm14, %vm695_vm12 }
 0x1a2   :  { %v5757_v39 = vsub.f32 %v5175_v46, %v2034_v24  ;;  %v5760_v49 = vadd.f32 %v5175_v46, %v2034_v24  ;;  %v698_v55 = vand.u32 2147483647, %v4770_v14  ;;  %v700_v40 = vand.u32 2147483648, %v4770_v14 }
 0x1a3   :  { %v5766_v3 = vsub.f32 %v8871_v11, %v2035_v37  ;;  %v5769_v32 = vadd.f32 %v8871_v11, %v2035_v37  ;;  %v5776_v46 = vsub.f32 %v5754_v36, %v5751_v20  ;;  %v1977_v15 = vmul.f32 %v1965_v38, %v1965_v38  ;;  %v8878_v37 = vld [vmem:[#allocation49_spill] sm:$0xff] }
 0x1a4   :  { %v5780_v12 = vsub.f32 %v5760_v49, %v5757_v39  ;;  %v1649_v26 = vpop.xlane.xlu1 %1648  ;;  %v697_v17 = vsel %vm5784_vm13, %v4861_v41, %v693_v58  ;;  %vm699_vm10 = vcmp.eq.f32.partialorder %v698_v55, 8.507059e+37  ;;  %v701_v9 = vor.u32 1.1754944e-38, %v700_v40 }
 0x1a5   :  { %8872 = vst [vmem:[#allocation71_spill] sm:$0xff] %v5776_v46  ;;  %v5792_v19 = vsub.f32 %v5769_v32, %v5766_v3  ;;  %v1652_v25 = vpop.xlane.xlu2 %1651  ;;  %v1988_v23 = vmul.f32 %v1976_v59, %v1649_v26  ;;  %vm1248_vm11 = vweird.f32 %v8877_v7  ;;  %v1245_v53 = vsub.f32 1.0, %v1244_v61 }
 0x1a6   :  { %8873 = vst [vmem:[#allocation85_spill] sm:$0xff] %v5780_v12  ;;  %v1989_v14 = vmul.f32 %v1977_v15, %v1652_v25  ;;  %vm1249_vm7 = vweird.f32 %v5496_v57  ;;  %v1252_v16 = vand.u32 2147483647, %v8877_v7  ;;  %v702_v24 = vsel %vm699_vm10, %v701_v9, %v697_v17  ;;  %v8889_v9 = vld [vmem:[#allocation54_spill] sm:$0xff] }
 0x1a7   :  { %8876 = vst [vmem:[#allocation86_spill] sm:$0xff] %v5792_v19  ;;  %v2036_v30 = vmul.f32 0.5, %v1988_v23  ;;  %v1254_v0 = vand.u32 2147483648, %v8877_v7  ;;  %v1817_v41 = vsel %vm1041_vm2, %v8878_v37, 0.0  ;;  %v3581_v58 = vadd.f32 -0.5, %v1917_v45  ;;  %vm5817_vm5 = vmor %vm1248_vm11, %vm1249_vm7  ;;  %v8888_v7 = vld [vmem:[#allocation50_spill] sm:$0xff] }
 0x1a8   :  { %v2037_v59 = vmul.f32 0.5, %v1989_v14  ;;  %v1246_v11 = vmul.f32 %v5496_v57, %v1245_v53  ;;  %vm5807_vm8 = vcmp.eq.f32.partialorder %v1252_v16, 8.507059e+37  ;;  %v1833_v45 = vsel %vm1729_vm9, %v1817_v41, 0.0  ;;  %v8890_v53 = vld [vmem:[#allocation34_spill] sm:$0xff]  ;;  %v8935_v19 = vld [vmem:[#allocation43_spill] sm:$0xff] }
 0x1a9   :  { %v5811_v31 = vsub.f32 %v3580_v29, %v2036_v30  ;;  %v5813_v55 = vadd.f32 %v3580_v29, %v2036_v30  ;;  %v1255_v26 = vor.u32 1.1754944e-38, %v1254_v0  ;;  %v1918_v61 = vmul.f32 2.0, %v702_v24  ;;  %1834 = vadd.xlane.f32.xlu1 %v1833_v45  ;;  %v8892_v30 = vld [vmem:[#allocation31_spill] sm:$0xff] }
 0x1aa   :  { %v5822_v15 = vsub.f32 %v3581_v58, %v2037_v59  ;;  %v5824_v25 = vadd.f32 %v3581_v58, %v2037_v59  ;;  %v1247_v17 = vadd.f32 %v5496_v57, %v1246_v11  ;;  %v1818_v23 = vsel %vm1041_vm2, %v8888_v7, 0.0  ;;  %v8894_v45 = vld [vmem:[#allocation27_spill] sm:$0xff] }
 0x1ab   :  { %8881 = vst [vmem:[#allocation79_spill] sm:$0xff] %v5811_v31  ;;  %v5829_v29 = vsub.f32 %v5813_v55, %v5811_v31  ;;  %v1819_v14 = vsel %vm1041_vm2, %v8889_v9, 0.0  ;;  %v8891_v16 = vsub.f32 1.0, %v8890_v53  ;;  %v1836_v41 = vsel %vm1729_vm9, %v1818_v23, 0.0  ;;  %v9043_v31 = vld [vmem:[#allocation73_spill] sm:$0xff] }
 0x1ac   :  { %8882 = vst [vmem:[#allocation49_spill] sm:$0xff] %v5813_v55  ;;  %v5842_v24 = vsub.f32 %v5824_v25, %v5822_v15  ;;  %v1251_v37 = vsel %vm5817_vm5, %v5496_v57, %v1247_v17  ;;  %v1839_v58 = vsel %vm1729_vm9, %v1819_v14, 0.0  ;;  %1837 = vadd.xlane.f32.xlu2 %v1836_v41  ;;  %vm709_vm14 = vweird.f32 %v8894_v45  ;;  %v1655_v17 = vpop.xlane.xlu0 %1654  ;;  %v8897_v41 = vld [vmem:[#allocation39_spill] sm:$0xff] }
 0x1ad   :  { %8885 = vst [vmem:[#allocation87_spill] sm:$0xff] %v5822_v15  ;;  %v707_v0 = vmul.f32 %v8892_v30, %v8891_v16  ;;  %v1256_v59 = vsel %vm5807_vm8, %v1255_v26, %v1251_v37  ;;  %1840 = vadd.xlane.f32.xlu0 %v1839_v58  ;;  %vm710_vm12 = vweird.f32 %v8892_v30  ;;  %v713_v57 = vand.u32 2147483647, %v8894_v45  ;;  %v9046_v55 = vld [vmem:[#allocation63_spill] sm:$0xff] }
 0x1ae   :  { %8886 = vst [vmem:[#allocation88_spill] sm:$0xff] %v5824_v25  ;;  %v1966_v7 = vmul.f32 2.0, %v1256_v59  ;;  %vm5854_vm13 = vmor %vm709_vm14, %vm710_vm12  ;;  %v715_v40 = vand.u32 2147483648, %v8894_v45  ;;  %v1259_v38 = vmul.f32 %v5526_v34, %v5437_v43  ;;  %v3582_v26 = vadd.f32 -0.5, %v1918_v61  ;;  %v8899_v61 = vld [vmem:[#allocation33_spill] sm:$0xff]  ;;  %v8900_v45 = vld [vmem:[#allocation28_spill] sm:$0xff] }
 0x1af   :  { %8887 = vst [vmem:[#allocation89_spill] sm:$0xff] %v5829_v29  ;;  %v708_v11 = vadd.f32 %v8892_v30, %v707_v0  ;;  %vm1263_vm10 = vweird.f32 %v5437_v43  ;;  %v1267_v14 = vand.u32 2147483647, %v5437_v43  ;;  %vm1264_vm11 = vweird.f32 %v5526_v34 }
 0x1b0   :  { %8893 = vst [vmem:[#allocation50_spill] sm:$0xff] %v5842_v24  ;;  %v1978_v53 = vmul.f32 %v1966_v7, %v1966_v7  ;;  %v716_v16 = vor.u32 1.1754944e-38, %v715_v40  ;;  %v1260_v0 = vsub.f32 1.0, %v1259_v38  ;;  %vm714_vm7 = vcmp.eq.f32.partialorder %v713_v57, 8.507059e+37 }
 0x1b1   :  { %v712_v23 = vsel %vm5854_vm13, %v8892_v30, %v708_v11  ;;  %v1269_v37 = vand.u32 2147483648, %v5437_v43  ;;  %v8898_v58 = vsub.f32 1.0, %v8897_v41  ;;  %vm724_vm8 = vweird.f32 %v8900_v45  ;;  %vm1265_vm13 = vmor %vm1263_vm10, %vm1264_vm11 }
 0x1b2   :  { %v1990_v9 = vmul.f32 %v1978_v53, %v1655_v17  ;;  %v717_v30 = vsel %vm714_vm7, %v716_v16, %v712_v23  ;;  %v1261_v11 = vmul.f32 %v5526_v34, %v1260_v0  ;;  %vm725_vm5 = vweird.f32 %v8899_v61  ;;  %v8905_v53 = vld [vmem:[#allocation80_spill] sm:$0xff] }
 0x1b3   :  { %v722_v59 = vmul.f32 %v8899_v61, %v8898_v58  ;;  %vm5875_vm14 = vcmp.eq.f32.partialorder %v1267_v14, 8.507059e+37  ;;  %v1270_v40 = vor.u32 1.1754944e-38, %v1269_v37  ;;  %vm5880_vm12 = vmor %vm724_vm8, %vm725_vm5  ;;  %v728_v41 = vand.u32 2147483647, %v8900_v45 }
 0x1b4   :  { %v2038_v58 = vmul.f32 0.5, %v1990_v9  ;;  %v1262_v17 = vadd.f32 %v5526_v34, %v1261_v11  ;;  %v730_v23 = vand.u32 2147483648, %v8900_v45  ;;  %v1274_v14 = vmul.f32 %v5541_v6, %v8905_v53 }
 0x1b5   :  { %v723_v57 = vadd.f32 %v8899_v61, %v722_v59  ;;  %v1919_v16 = vmul.f32 2.0, %v717_v30  ;;  %vm729_vm7 = vcmp.eq.f32.partialorder %v728_v41, 8.507059e+37  ;;  %vm1278_vm8 = vweird.f32 %v8905_v53 }
 0x1b6   :  { %v5897_v37 = vsub.f32 %v3582_v26, %v2038_v58  ;;  %v5899_v59 = vadd.f32 %v3582_v26, %v2038_v58  ;;  %v1266_v45 = vsel %vm1265_vm13, %v5526_v34, %v1262_v17  ;;  %v731_v9 = vor.u32 1.1754944e-38, %v730_v23  ;;  %v1658_v58 = vpop.xlane.xlu1 %1657  ;;  %v8913_v23 = vld [vmem:[#allocation36_spill] sm:$0xff] }
 0x1b7   :  { %v727_v0 = vsel %vm5880_vm12, %v8899_v61, %v723_v57  ;;  %v1271_v11 = vsel %vm5875_vm14, %v1270_v40, %v1266_v45  ;;  %v1275_v43 = vsub.f32 1.0, %v1274_v14  ;;  %vm1279_vm10 = vweird.f32 %v5541_v6  ;;  %v8911_v40 = vld [vmem:[#allocation41_spill] sm:$0xff] }
 0x1b8   :  { %8906 = vst [vmem:[#allocation54_spill] sm:$0xff] %v5897_v37  ;;  %v1282_v30 = vand.u32 2147483647, %v8905_v53  ;;  %v5908_v61 = vsub.f32 %v5899_v59, %v5897_v37  ;;  %v1967_v57 = vmul.f32 2.0, %v1271_v11  ;;  %v732_v38 = vsel %vm729_vm7, %v731_v9, %v727_v0  ;;  %vm5921_vm5 = vmor %vm1278_vm8, %vm1279_vm10 }
 0x1b9   :  { %8907 = vst [vmem:[#allocation34_spill] sm:$0xff] %v5899_v59  ;;  %v1284_v26 = vand.u32 2147483648, %v8905_v53  ;;  %v3583_v41 = vadd.f32 -0.5, %v1919_v16  ;;  %v1276_v34 = vmul.f32 %v5541_v6, %v1275_v43  ;;  %v8912_v17 = vsub.f32 1.0, %v8911_v40  ;;  %v8916_v16 = vld [vmem:[#allocation29_spill] sm:$0xff]  ;;  %v9028_v59 = vld [vmem:[#allocation72_spill] sm:$0xff] }
 0x1ba   :  { %8908 = vst [vmem:[#allocation31_spill] sm:$0xff] %v5908_v61  ;;  %vm5912_vm11 = vcmp.eq.f32.partialorder %v1282_v30, 8.507059e+37  ;;  %v1979_v45 = vmul.f32 %v1967_v57, %v1967_v57  ;;  %vm739_vm14 = vweird.f32 %v8916_v16  ;;  %vm740_vm12 = vweird.f32 %v8913_v23 }
 0x1bb   :  { %v737_v14 = vmul.f32 %v8913_v23, %v8912_v17  ;;  %v1285_v0 = vor.u32 1.1754944e-38, %v1284_v26  ;;  %v1277_v9 = vadd.f32 %v5541_v6, %v1276_v34  ;;  %v1920_v43 = vmul.f32 2.0, %v732_v38  ;;  %vm5929_vm13 = vmor %vm739_vm14, %vm740_vm12 }
 0x1bc   :  { %v743_v53 = vand.u32 2147483647, %v8916_v16  ;;  %v1991_v57 = vmul.f32 %v1979_v45, %v1658_v58  ;;  %v745_v17 = vand.u32 2147483648, %v8916_v16  ;;  %v1289_v26 = vmul.f32 %v5587_v50, %v5509_v21 }
 0x1bd   :  { %v738_v30 = vadd.f32 %v8913_v23, %v737_v14  ;;  %vm1293_vm7 = vweird.f32 %v5509_v21  ;;  %v1281_v38 = vsel %vm5921_vm5, %v5541_v6, %v1277_v9  ;;  %vm1294_vm10 = vweird.f32 %v5587_v50  ;;  %v5952_v6 = vld [vmem:[%s8440_s1 + $0x28] sm:$0xff] }
 0x1be   :  { %vm744_vm8 = vcmp.eq.f32.partialorder %v743_v53, 8.507059e+37  ;;  %v2039_v14 = vmul.f32 0.5, %v1991_v57  ;;  %v1286_v58 = vsel %vm5912_vm11, %v1285_v0, %v1281_v38  ;;  %v746_v45 = vor.u32 1.1754944e-38, %v745_v17  ;;  %v1661_v0 = vpop.xlane.xlu2 %1660  ;;  %vm5966_vm11 = vmor %vm1293_vm7, %vm1294_vm10  ;;  %v1664_v17 = vpop.xlane.xlu0 %1663 }
 0x1bf   :  { %v742_v34 = vsel %vm5929_vm13, %v8913_v23, %v738_v30  ;;  %v1290_v16 = vsub.f32 1.0, %v1289_v26  ;;  %v1968_v61 = vmul.f32 2.0, %v1286_v58  ;;  %v1297_v24 = vand.u32 2147483647, %v5509_v21 }
 0x1c0   :  { %v1299_v29 = vand.u32 2147483648, %v5509_v21  ;;  %v1820_v23 = vsel %vm1041_vm2, %v5952_v6, 0.0  ;;  %v5957_v11 = vsub.f32 %v3583_v41, %v2039_v14  ;;  %v5959_v7 = vadd.f32 %v3583_v41, %v2039_v14  ;;  %v5983_v21 = vld [vmem:[%s8440_s1 + $0x30] sm:$0xff]  ;;  %v5992_v14 = vld [vmem:[%s8440_s1 + $0x38] sm:$0xff] }
 0x1c1   :  { %v747_v9 = vsel %vm744_vm8, %v746_v45, %v742_v34  ;;  %v1291_v30 = vmul.f32 %v5587_v50, %v1290_v16  ;;  %v3584_v40 = vadd.f32 -0.5, %v1920_v43  ;;  %v1980_v53 = vmul.f32 %v1968_v61, %v1968_v61 }
 0x1c2   :  { %8919 = vst [vmem:[#allocation27_spill] sm:$0xff] %v5957_v11  ;;  %vm5970_vm5 = vcmp.eq.f32.partialorder %v1297_v24, 8.507059e+37  ;;  %v1300_v41 = vor.u32 1.1754944e-38, %v1299_v29  ;;  %v5976_v26 = vsub.f32 %v5959_v7, %v5957_v11  ;;  %v1842_v61 = vsel %vm1729_vm9, %v1820_v23, 0.0  ;;  %v8926_v23 = vld [vmem:[#allocation44_spill] sm:$0xff] }
 0x1c3   :  { %8920 = vst [vmem:[#allocation39_spill] sm:$0xff] %v5959_v7  ;;  %v1292_v43 = vadd.f32 %v5587_v50, %v1291_v30  ;;  %v1821_v24 = vsel %vm1041_vm2, %v5983_v21, 0.0  ;;  %v1992_v38 = vmul.f32 %v1980_v53, %v1661_v0  ;;  %v1921_v34 = vmul.f32 2.0, %v747_v9  ;;  %1843 = vadd.xlane.f32.xlu1 %v1842_v61  ;;  %v8928_v9 = vld [vmem:[#allocation37_spill] sm:$0xff]  ;;  %v8929_v53 = vld [vmem:[#allocation30_spill] sm:$0xff]  ;;  %v8996_v7 = vld [vmem:[#allocation64_spill] sm:$0xff] }
 0x1c4   :  { %8925 = vst [vmem:[#allocation33_spill] sm:$0xff] %v5976_v26  ;;  %v1845_v29 = vsel %vm1729_vm9, %v1821_v24, 0.0  ;;  %v1822_v58 = vsel %vm1041_vm2, %v5992_v14, 0.0  ;;  %v8927_v0 = vsub.f32 1.0, %v8926_v23  ;;  %vm754_vm14 = vweird.f32 %v8929_v53 }
 0x1c5   :  { %v1296_v45 = vsel %vm5966_vm11, %v5587_v50, %v1292_v43  ;;  %1846 = vadd.xlane.f32.xlu2 %v1845_v29  ;;  %v1848_v16 = vsel %vm1729_vm9, %v1822_v58, 0.0  ;;  %v2040_v61 = vmul.f32 0.5, %v1992_v38  ;;  %vm755_vm12 = vweird.f32 %v8928_v9 }
 0x1c6   :  { %v752_v30 = vmul.f32 %v8928_v9, %v8927_v0  ;;  %v1301_v24 = vsel %vm5970_vm5, %v1300_v41, %v1296_v45  ;;  %1849 = vadd.xlane.f32.xlu0 %v1848_v16  ;;  %v758_v26 = vand.u32 2147483647, %v8929_v53  ;;  %v760_v43 = vand.u32 2147483648, %v8929_v53  ;;  %vm756_vm13 = vmor %vm754_vm14, %vm755_vm12 }
 0x1c7   :  { %v1969_v57 = vmul.f32 2.0, %v1301_v24  ;;  %v1304_v29 = vmul.f32 %v5597_v54, %v5511_v56  ;;  %v6013_v58 = vsub.f32 %v3584_v40, %v2040_v61  ;;  %v6015_v23 = vadd.f32 %v3584_v40, %v2040_v61 }
 0x1c8   :  { %v753_v50 = vadd.f32 %v8928_v9, %v752_v30  ;;  %v3585_v38 = vadd.f32 -0.5, %v1921_v34  ;;  %vm759_vm7 = vcmp.eq.f32.partialorder %v758_v26, 8.507059e+37  ;;  %v761_v16 = vor.u32 1.1754944e-38, %v760_v43  ;;  %v8933_v26 = vld [vmem:[#allocation46_spill] sm:$0xff] }
 0x1c9   :  { %8930 = vst [vmem:[#allocation28_spill] sm:$0xff] %v6013_v58  ;;  %v1981_v41 = vmul.f32 %v1969_v57, %v1969_v57  ;;  %v1305_v0 = vsub.f32 1.0, %v1304_v29  ;;  %v6020_v30 = vsub.f32 %v6015_v23, %v6013_v58  ;;  %vm1309_vm8 = vweird.f32 %v5597_v54  ;;  %v8938_v29 = vld [vmem:[#allocation32_spill] sm:$0xff]  ;;  %v8989_v58 = vld [vmem:[#allocation62_spill] sm:$0xff] }
 0x1ca   :  { %8931 = vst [vmem:[#allocation80_spill] sm:$0xff] %v6015_v23  ;;  %v757_v45 = vsel %vm756_vm13, %v8928_v9, %v753_v50  ;;  %v1312_v53 = vand.u32 2147483647, %v5511_v56  ;;  %v1314_v40 = vand.u32 2147483648, %v5511_v56  ;;  %v8934_v57 = vsub.f32 1.0, %v8933_v26 }
 0x1cb   :  { %8932 = vst [vmem:[#allocation41_spill] sm:$0xff] %v6020_v30  ;;  %v1993_v61 = vmul.f32 %v1981_v41, %v1664_v17  ;;  %v762_v34 = vsel %vm759_vm7, %v761_v16, %v757_v45  ;;  %v1306_v24 = vmul.f32 %v5597_v54, %v1305_v0  ;;  %vm1308_vm10 = vweird.f32 %v5511_v56  ;;  %v8946_v45 = vld [vmem:[#allocation52_spill] sm:$0xff] }
 0x1cc   :  { %v864_v9 = vmul.f32 %v8935_v19, %v8934_v57  ;;  %vm6030_vm11 = vcmp.eq.f32.partialorder %v1312_v53, 8.507059e+37  ;;  %v1315_v43 = vor.u32 1.1754944e-38, %v1314_v40  ;;  %vm866_vm5 = vweird.f32 %v8938_v29  ;;  %vm1310_vm14 = vmor %vm1308_vm10, %vm1309_vm8 }
 0x1cd   :  { %v2041_v30 = vmul.f32 0.5, %v1993_v61  ;;  %v1307_v12 = vadd.f32 %v5597_v54, %v1306_v24  ;;  %vm867_vm12 = vweird.f32 %v8935_v19  ;;  %v1922_v41 = vmul.f32 2.0, %v762_v34 }
 0x1ce   :  { %v865_v17 = vadd.f32 %v8935_v19, %v864_v9  ;;  %vm6038_vm13 = vmor %vm866_vm5, %vm867_vm12  ;;  %v870_v56 = vand.u32 2147483647, %v8938_v29  ;;  %v872_v16 = vand.u32 2147483648, %v8938_v29  ;;  %v1416_v0 = vmul.f32 %v5609_v47, %v5530_v5 }
 0x1cf   :  { %v6046_v53 = vsub.f32 %v3585_v38, %v2041_v30  ;;  %v6048_v40 = vadd.f32 %v3585_v38, %v2041_v30  ;;  %v1311_v61 = vsel %vm1310_vm14, %v5597_v54, %v1307_v12  ;;  %vm1420_vm8 = vweird.f32 %v5530_v5  ;;  %v1668_v54 = vpop.xlane.xlu1 %1667 }
 0x1d0   :  { %v869_v34 = vsel %vm6038_vm13, %v8935_v19, %v865_v17  ;;  %v1316_v24 = vsel %vm6030_vm11, %v1315_v43, %v1311_v61  ;;  %vm871_vm7 = vcmp.eq.f32.partialorder %v870_v56, 8.507059e+37  ;;  %v873_v26 = vor.u32 1.1754944e-38, %v872_v16  ;;  %v8948_v16 = vld [vmem:[#allocation45_spill] sm:$0xff]  ;;  %v8949_v61 = vld [vmem:[#allocation35_spill] sm:$0xff] }
 0x1d1   :  { %8941 = vst [vmem:[#allocation36_spill] sm:$0xff] %v6046_v53  ;;  %v1417_v57 = vsub.f32 1.0, %v1416_v0  ;;  %v6058_v9 = vsub.f32 %v6048_v40, %v6046_v53  ;;  %v1970_v29 = vmul.f32 2.0, %v1316_v24  ;;  %vm1421_vm10 = vweird.f32 %v5609_v47 }
 0x1d2   :  { %8942 = vst [vmem:[#allocation29_spill] sm:$0xff] %v6048_v40  ;;  %v874_v12 = vsel %vm871_vm7, %v873_v26, %v869_v34  ;;  %v1424_v19 = vand.u32 2147483647, %v5530_v5  ;;  %v1426_v30 = vand.u32 2147483648, %v5530_v5  ;;  %v3586_v50 = vadd.f32 -0.5, %v1922_v41  ;;  %vm6065_vm11 = vmor %vm1420_vm8, %vm1421_vm10  ;;  %v8968_v40 = vld [vmem:[#allocation40_spill] sm:$0xff] }
 0x1d3   :  { %8943 = vst [vmem:[#allocation44_spill] sm:$0xff] %v6058_v9  ;;  %v1418_v38 = vmul.f32 %v5609_v47, %v1417_v57  ;;  %v1982_v43 = vmul.f32 %v1970_v29, %v1970_v29  ;;  %v8947_v56 = vsub.f32 1.0, %v8946_v45  ;;  %vm881_vm5 = vweird.f32 %v8949_v61 }
 0x1d4   :  { %vm1425_vm14 = vcmp.eq.f32.partialorder %v1424_v19, 8.507059e+37  ;;  %v1427_v24 = vor.u32 1.1754944e-38, %v1426_v30  ;;  %vm882_vm12 = vweird.f32 %v8948_v16  ;;  %v1935_v5 = vmul.f32 2.0, %v874_v12 }
 0x1d5   :  { %v879_v0 = vmul.f32 %v8948_v16, %v8947_v56  ;;  %v1419_v34 = vadd.f32 %v5609_v47, %v1418_v38  ;;  %v1994_v26 = vmul.f32 %v1982_v43, %v1668_v54  ;;  %vm6076_vm13 = vmor %vm881_vm5, %vm882_vm12  ;;  %v885_v29 = vand.u32 2147483647, %v8949_v61 }
 0x1d6   :  { %v887_v38 = vand.u32 2147483648, %v8949_v61  ;;  %v1431_v19 = vmul.f32 %v5616_v2, %v5534_v33  ;;  %vm1435_vm7 = vweird.f32 %v5534_v33  ;;  %vm1436_vm10 = vweird.f32 %v5616_v2  ;;  %v1683_v61 = vpop.xlane.xlu2 %1682 }
 0x1d7   :  { %v880_v41 = vadd.f32 %v8948_v16, %v879_v0  ;;  %v1423_v45 = vsel %vm6065_vm11, %v5609_v47, %v1419_v34  ;;  %v2042_v54 = vmul.f32 0.5, %v1994_v26  ;;  %vm886_vm8 = vcmp.eq.f32.partialorder %v885_v29, 8.507059e+37  ;;  %vm6113_vm11 = vmor %vm1435_vm7, %vm1436_vm10 }
 0x1d8   :  { %v1428_v12 = vsel %vm1425_vm14, %v1427_v24, %v1423_v45  ;;  %v888_v56 = vor.u32 1.1754944e-38, %v887_v38  ;;  %v1432_v0 = vsub.f32 1.0, %v1431_v19  ;;  %v1439_v34 = vand.u32 2147483647, %v5534_v33 }
 0x1d9   :  { %v884_v30 = vsel %vm6076_vm13, %v8948_v16, %v880_v41  ;;  %v1995_v43 = vmul.f32 2.0, %v1428_v12  ;;  %v6092_v47 = vsub.f32 %v3586_v50, %v2042_v54  ;;  %v6094_v17 = vadd.f32 %v3586_v50, %v2042_v54  ;;  %v6102_v16 = vld [vmem:[%s8440_s1 + $0x40] sm:$0xff] }
 0x1da   :  { %v1441_v26 = vand.u32 2147483648, %v5534_v33  ;;  %v889_v45 = vsel %vm886_vm8, %v888_v56, %v884_v30  ;;  %v1433_v57 = vmul.f32 %v5616_v2, %v1432_v0  ;;  %v1823_v41 = vsel %vm1041_vm2, %v6102_v16, 0.0 }
 0x1db   :  { %8952 = vst [vmem:[#allocation37_spill] sm:$0xff] %v6092_v47  ;;  %v2007_v24 = vmul.f32 %v1995_v43, %v1995_v43  ;;  %v6109_v50 = vsub.f32 %v6094_v17, %v6092_v47  ;;  %v3587_v29 = vadd.f32 -0.5, %v1935_v5  ;;  %vm6117_vm5 = vcmp.eq.f32.partialorder %v1439_v34, 8.507059e+37  ;;  %v6126_v5 = vld [vmem:[%s8440_s1 + $0x48] sm:$0xff] }
 0x1dc   :  { %8953 = vst [vmem:[#allocation30_spill] sm:$0xff] %v6094_v17  ;;  %v1442_v54 = vor.u32 1.1754944e-38, %v1441_v26  ;;  %v1434_v30 = vadd.f32 %v5616_v2, %v1433_v57  ;;  %v1851_v43 = vsel %vm1729_vm9, %v1823_v41, 0.0  ;;  %v1824_v33 = vsel %vm1041_vm2, %v6126_v5, 0.0  ;;  %v8959_v26 = vld [vmem:[#allocation57_spill] sm:$0xff]  ;;  %v8961_v57 = vld [vmem:[#allocation51_spill] sm:$0xff] }
 0x1dd   :  { %8954 = vst [vmem:[#allocation46_spill] sm:$0xff] %v6109_v50  ;;  %v2019_v12 = vmul.f32 %v2007_v24, %v1683_v61  ;;  %v1936_v56 = vmul.f32 2.0, %v889_v45  ;;  %1852 = vadd.xlane.f32.xlu1 %v1851_v43  ;;  %v1854_v0 = vsel %vm1729_vm9, %v1824_v33, 0.0  ;;  %v6135_v61 = vld [vmem:[%s8440_s1 + $0x50] sm:$0xff]  ;;  %v8960_v24 = vsub.f32 1.0, %v8959_v26  ;;  %v8962_v33 = vld [vmem:[#allocation38_spill] sm:$0xff] }
 0x1de   :  { %v1825_v34 = vsel %vm1041_vm2, %v6135_v61, 0.0  ;;  %v1438_v45 = vsel %vm6113_vm11, %v5616_v2, %v1434_v30  ;;  %1855 = vadd.xlane.f32.xlu2 %v1854_v0  ;;  %vm896_vm14 = vweird.f32 %v8962_v33  ;;  %vm897_vm12 = vweird.f32 %v8961_v57  ;;  %v8967_v47 = vld [vmem:[#allocation55_spill] sm:$0xff] }
 0x1df   :  { %v894_v41 = vmul.f32 %v8961_v57, %v8960_v24  ;;  %v2067_v50 = vmul.f32 0.5, %v2019_v12  ;;  %v1857_v43 = vsel %vm1729_vm9, %v1825_v34, 0.0  ;;  %v1443_v9 = vsel %vm6117_vm5, %v1442_v54, %v1438_v45  ;;  %vm6157_vm13 = vmor %vm896_vm14, %vm897_vm12  ;;  %v1686_v54 = vpop.xlane.xlu0 %1685 }
 0x1e0   :  { %1858 = vadd.xlane.f32.xlu0 %v1857_v43  ;;  %v900_v26 = vand.u32 2147483647, %v8962_v33  ;;  %v1996_v2 = vmul.f32 2.0, %v1443_v9  ;;  %v902_v30 = vand.u32 2147483648, %v8962_v33  ;;  %3828 = vrcp.f32 %v5705_v44 }
 0x1e1   :  { %v895_v46 = vadd.f32 %v8961_v57, %v894_v41  ;;  %v6153_v12 = vsub.f32 %v3587_v29, %v2067_v50  ;;  %v6155_v24 = vadd.f32 %v3587_v29, %v2067_v50  ;;  %v3573_v19 = vmul.f32 -1.442695, %v5601_v51  ;;  %v8965_v51 = vld [vmem:[#allocation58_spill] sm:$0xff] }
 0x1e2   :  { %v1446_v50 = vmul.f32 %v5632_v1, %v5551_v4  ;;  %v2008_v29 = vmul.f32 %v1996_v2, %v1996_v2  ;;  %vm901_vm7 = vcmp.eq.f32.partialorder %v900_v26, 8.507059e+37  ;;  %v903_v34 = vor.u32 1.1754944e-38, %v902_v30  ;;  %v8975_v26 = vld [vmem:[#allocation56_spill] sm:$0xff] }
 0x1e3   :  { %v899_v0 = vsel %vm6157_vm13, %v8961_v57, %v895_v46  ;;  %v1454_v45 = vand.u32 2147483647, %v5551_v4  ;;  %v1456_v43 = vand.u32 2147483648, %v5551_v4  ;;  %v8966_v33 = vsub.f32 1.0, %v8965_v51 }
 0x1e4   :  { %v1447_v41 = vsub.f32 1.0, %v1446_v50  ;;  %v3588_v38 = vadd.f32 -0.5, %v1936_v56  ;;  %v2020_v46 = vmul.f32 %v2008_v29, %v1686_v54  ;;  %v904_v57 = vsel %vm901_vm7, %v903_v34, %v899_v0  ;;  %v8973_v29 = vld [vmem:[#allocation59_spill] sm:$0xff] }
 0x1e5   :  { %v909_v17 = vmul.f32 %v8967_v47, %v8966_v33  ;;  %vm911_vm8 = vweird.f32 %v8968_v40  ;;  %vm1450_vm10 = vweird.f32 %v5551_v4  ;;  %vm1451_vm11 = vweird.f32 %v5632_v1 }
 0x1e6   :  { %v1448_v53 = vmul.f32 %v5632_v1, %v1447_v41  ;;  %vm6180_vm5 = vcmp.eq.f32.partialorder %v1454_v45, 8.507059e+37  ;;  %v2068_v2 = vmul.f32 0.5, %v2020_v46  ;;  %v1457_v30 = vor.u32 1.1754944e-38, %v1456_v43  ;;  %v6186_v56 = vpop.eup %3828  ;;  %vm1452_vm13 = vmor %vm1450_vm10, %vm1451_vm11 }
 0x1e7   :  { %v910_v50 = vadd.f32 %v8967_v47, %v909_v17  ;;  %vm912_vm14 = vweird.f32 %v8967_v47  ;;  %v1937_v0 = vmul.f32 2.0, %v904_v57  ;;  %v915_v34 = vand.u32 2147483647, %v8968_v40 }
 0x1e8   :  { %v1449_v54 = vadd.f32 %v5632_v1, %v1448_v53  ;;  %vm6189_vm12 = vmor %vm911_vm8, %vm912_vm14  ;;  %v917_v41 = vand.u32 2147483648, %v8968_v40  ;;  %v6195_v45 = vsub.f32 %v3588_v38, %v2068_v2  ;;  %v6197_v43 = vadd.f32 %v3588_v38, %v2068_v2  ;;  %v1692_v40 = vpop.xlane.xlu2 %1691 }
 0x1e9   :  { %v914_v53 = vsel %vm6189_vm12, %v8967_v47, %v910_v50  ;;  %v1461_v17 = vmul.f32 %v5663_v13, %v5575_v27  ;;  %vm916_vm7 = vcmp.eq.f32.partialorder %v915_v34, 8.507059e+37  ;;  %vm1465_vm8 = vweird.f32 %v5575_v27  ;;  %v1689_v50 = vpop.xlane.xlu1 %1688 }
 0x1ea   :  { %v1453_v51 = vsel %vm1452_vm13, %v5632_v1, %v1449_v54  ;;  %v918_v33 = vor.u32 1.1754944e-38, %v917_v41  ;;  %vm1466_vm10 = vweird.f32 %v5663_v13  ;;  %v1469_v57 = vand.u32 2147483647, %v5575_v27 }
 0x1eb   :  { %v1458_v4 = vsel %vm6180_vm5, %v1457_v30, %v1453_v51  ;;  %v1462_v38 = vsub.f32 1.0, %v1461_v17  ;;  %v1471_v2 = vand.u32 2147483648, %v5575_v27  ;;  %v6216_v1 = vadd.f32 1.0, %v5674_v22  ;;  %vm6224_vm11 = vmor %vm1465_vm8, %vm1466_vm10 }
 0x1ec   :  { %v1997_v46 = vmul.f32 2.0, %v1458_v4  ;;  %v919_v47 = vsel %vm916_vm7, %v918_v33, %v914_v53  ;;  %3830 = vpow2.f32 %v3573_v19  ;;  %v8974_v34 = vsub.f32 1.0, %v8973_v29  ;;  %v8978_v33 = vld [vmem:[#allocation42_spill] sm:$0xff] }
 0x1ed   :  { %v1463_v54 = vmul.f32 %v5663_v13, %v1462_v38  ;;  %v3589_v41 = vadd.f32 -0.5, %v1937_v0  ;;  %v1472_v51 = vor.u32 1.1754944e-38, %v1471_v2  ;;  %vm926_vm5 = vweird.f32 %v8978_v33 }
 0x1ee   :  { %v924_v30 = vmul.f32 %v8975_v26, %v8974_v34  ;;  %v2009_v17 = vmul.f32 %v1997_v46, %v1997_v46  ;;  %vm1470_vm14 = vcmp.eq.f32.partialorder %v1469_v57, 8.507059e+37  ;;  %v1938_v19 = vmul.f32 2.0, %v919_v47 }
 0x1ef   :  { %v1464_v22 = vadd.f32 %v5663_v13, %v1463_v54  ;;  %vm927_vm12 = vweird.f32 %v8975_v26  ;;  %v930_v0 = vand.u32 2147483647, %v8978_v33  ;;  %v932_v27 = vand.u32 2147483648, %v8978_v33  ;;  %v8981_v54 = vld [vmem:[#allocation81_spill] sm:$0xff] }
 0x1f0   :  { %v925_v4 = vadd.f32 %v8975_v26, %v924_v30  ;;  %v2021_v38 = vmul.f32 %v2009_v17, %v1689_v50  ;;  %vm6237_vm13 = vmor %vm926_vm5, %vm927_vm12  ;;  %v1476_v47 = vmul.f32 %v5685_v28, %v8981_v54  ;;  %vm1480_vm7 = vweird.f32 %v8981_v54 }
 0x1f1   :  { %v1468_v46 = vsel %vm6224_vm11, %v5663_v13, %v1464_v22  ;;  %vm1481_vm8 = vweird.f32 %v5685_v28  ;;  %vm931_vm10 = vcmp.eq.f32.partialorder %v930_v0, 8.507059e+37  ;;  %v933_v30 = vor.u32 1.1754944e-38, %v932_v27 }
 0x1f2   :  { %v2069_v57 = vmul.f32 0.5, %v2021_v38  ;;  %v1473_v50 = vsel %vm1470_vm14, %v1472_v51, %v1468_v46  ;;  %v929_v29 = vsel %vm6237_vm13, %v8975_v26, %v925_v4  ;;  %v6248_v34 = vpop.eup %3830  ;;  %v1477_v17 = vsub.f32 1.0, %v1476_v47  ;;  %v6259_v51 = vld [vmem:[%s8440_s1 + $0x58] sm:$0x3]  ;;  %vm6272_vm11 = vmor %vm1480_vm7, %vm1481_vm8 }
 0x1f3   :  { %v1998_v13 = vmul.f32 2.0, %v1473_v50  ;;  %v1484_v53 = vand.u32 2147483647, %v8981_v54  ;;  %v1486_v38 = vand.u32 2147483648, %v8981_v54  ;;  %v1826_v26 = vsel %vm1041_vm2, %v6259_v51, 0.0 }
 0x1f4   :  { %v6251_v33 = vsub.f32 %v3589_v41, %v2069_v57  ;;  %v6253_v22 = vadd.f32 %v3589_v41, %v2069_v57  ;;  %3832 = vrcp.f32 %v6216_v1  ;;  %v934_v0 = vsel %vm931_vm10, %v933_v30, %v929_v29  ;;  %v3953_v30 = vld [vmem:[%s8440_s1 + $0x8] sm:$0xff]  ;;  %v8987_v41 = vld [vmem:[#allocation66_spill] sm:$0xff] }
 0x1f5   :  { %v2010_v4 = vmul.f32 %v1998_v13, %v1998_v13  ;;  %v1478_v27 = vmul.f32 %v5685_v28, %v1477_v17  ;;  %vm6276_vm5 = vcmp.eq.f32.partialorder %v1484_v53, 8.507059e+37  ;;  %v1487_v47 = vor.u32 1.1754944e-38, %v1486_v38  ;;  %v3952_v13 = vld [vmem:[%s8440_s1] sm:$0xff] }
 0x1f6   :  { %v1860_v57 = vsel %vm1763_vm6, %v1826_v26, 0.0  ;;  %v1863_v54 = vsel %vm1318_vm4, %v3952_v13, 0.0  ;;  %v1864_v17 = vsel %vm1318_vm4, %v3953_v30, 0.0  ;;  %v8986_v53 = vld [vmem:[#allocation82_spill] sm:$0xff]  ;;  %v1939_v13 = vmul.f32 2.0, %v934_v0 }
 0x1f7   :  { %v2022_v50 = vmul.f32 %v2010_v4, %v1692_v40  ;;  %v1479_v29 = vadd.f32 %v5685_v28, %v1478_v27  ;;  %1861 = vadd.xlane.f32.xlu1 %v1860_v57  ;;  %v3574_v38 = vmul.f32 -1.442695, %v8986_v53  ;;  %v3590_v40 = vadd.f32 -0.5, %v1938_v19  ;;  %v8990_v19 = vld [vmem:[#allocation47_spill] sm:$0xff] }
 0x1f8   :  { %v1875_v26 = vsel %vm1729_vm9, %v1863_v54, 0.0  ;;  %v1878_v4 = vsel %vm1729_vm9, %v1864_v17, 0.0  ;;  %v8988_v9 = vsub.f32 1.0, %v8987_v41  ;;  %vm941_vm14 = vweird.f32 %v8990_v19 }
 0x1f9   :  { %v2070_v27 = vmul.f32 0.5, %v2022_v50  ;;  %v1483_v57 = vsel %vm6272_vm11, %v5685_v28, %v1479_v29  ;;  %1876 = vadd.xlane.f32.xlu2 %v1875_v26  ;;  %1879 = vadd.xlane.f32.xlu0 %v1878_v4  ;;  %vm942_vm12 = vweird.f32 %v8989_v58  ;;  %v945_v50 = vand.u32 2147483647, %v8990_v19 }
 0x1fa   :  { %v939_v23 = vmul.f32 %v8989_v58, %v8988_v9  ;;  %v1488_v30 = vsel %vm6276_vm5, %v1487_v47, %v1483_v57  ;;  %v6306_v54 = vpop.eup %3832  ;;  %v6314_v9 = vadd.f32 1.0, %v5721_v52  ;;  %v6317_v2 = vadd.f32 1.0, %v5763_v63  ;;  %v1695_v47 = vpop.xlane.xlu0 %1694  ;;  %vm6319_vm13 = vmor %vm941_vm14, %vm942_vm12 }
 0x1fb   :  { %v6308_v46 = vsub.f32 %v3590_v40, %v2070_v27  ;;  %v6310_v28 = vadd.f32 %v3590_v40, %v2070_v27  ;;  %v1999_v0 = vmul.f32 2.0, %v1488_v30  ;;  %v947_v17 = vand.u32 2147483648, %v8990_v19  ;;  %v8994_v19 = vld [vmem:[#allocation67_spill] sm:$0xff] }
 0x1fc   :  { %v940_v41 = vadd.f32 %v8989_v58, %v939_v23  ;;  %v1491_v53 = vmul.f32 %v5740_v8, %v5651_v10  ;;  %v3591_v23 = vadd.f32 -0.5, %v1939_v13  ;;  %v1499_v27 = vand.u32 2147483647, %v5651_v10 }
 0x1fd   :  { %8991 = vst [vmem:[#allocation43_spill] sm:$0xff] %v6308_v46  ;;  %v2011_v26 = vmul.f32 %v1999_v0, %v1999_v0  ;;  %v948_v63 = vor.u32 1.1754944e-38, %v947_v17  ;;  %v1501_v57 = vand.u32 2147483648, %v5651_v10  ;;  %vm946_vm7 = vcmp.eq.f32.partialorder %v945_v50, 8.507059e+37 }
 0x1fe   :  { %v944_v52 = vsel %vm6319_vm13, %v8989_v58, %v940_v41  ;;  %v1492_v4 = vsub.f32 1.0, %v1491_v53  ;;  %vm1496_vm8 = vweird.f32 %v5740_v8  ;;  %v8995_v11 = vsub.f32 1.0, %v8994_v19  ;;  %v8997_v58 = vld [vmem:[#allocation48_spill] sm:$0xff] }
 0x1ff   :  { %v2023_v30 = vmul.f32 %v2011_v26, %v1695_v47  ;;  %v949_v13 = vsel %vm946_vm7, %v948_v63, %v944_v52  ;;  %vm1495_vm10 = vweird.f32 %v5651_v10  ;;  %vm956_vm11 = vweird.f32 %v8997_v58 }
 0x200   :  { %v954_v40 = vmul.f32 %v8996_v7, %v8995_v11  ;;  %v1493_v0 = vmul.f32 %v5740_v8, %v1492_v4  ;;  %vm6340_vm5 = vcmp.eq.f32.partialorder %v1499_v27, 8.507059e+37  ;;  %v1502_v47 = vor.u32 1.1754944e-38, %v1501_v57  ;;  %vm1497_vm14 = vmor %vm1495_vm10, %vm1496_vm8 }
 0x201   :  { %v2071_v41 = vmul.f32 0.5, %v2023_v30  ;;  %vm957_vm12 = vweird.f32 %v8996_v7  ;;  %v960_v11 = vand.u32 2147483647, %v8997_v58  ;;  %v962_v53 = vand.u32 2147483648, %v8997_v58 }
 0x202   :  { %v955_v50 = vadd.f32 %v8996_v7, %v954_v40  ;;  %v1494_v17 = vadd.f32 %v5740_v8, %v1493_v0  ;;  %v1940_v52 = vmul.f32 2.0, %v949_v13  ;;  %vm6353_vm13 = vmor %vm956_vm11, %vm957_vm12  ;;  %v1506_v40 = vmul.f32 %v6186_v56, %v5705_v44 }
 0x203   :  { %v6349_v10 = vsub.f32 %v3591_v23, %v2071_v41  ;;  %v6351_v26 = vadd.f32 %v3591_v23, %v2071_v41  ;;  %vm961_vm7 = vcmp.eq.f32.partialorder %v960_v11, 8.507059e+37  ;;  %v963_v57 = vor.u32 1.1754944e-38, %v962_v53  ;;  %v9009_v53 = vld [vmem:[#allocation53_spill] sm:$0xff] }
 0x204   :  { %v1498_v4 = vsel %vm1497_vm14, %v5740_v8, %v1494_v17  ;;  %v959_v27 = vsel %vm6353_vm13, %v8996_v7, %v955_v50  ;;  %v1507_v19 = vsub.f32 1.0, %v1506_v40  ;;  %vm1510_vm8 = vweird.f32 %v5705_v44  ;;  %v1698_v7 = vpop.xlane.xlu1 %1697  ;;  %v9008_v17 = vld [vmem:[#allocation65_spill] sm:$0xff] }
 0x205   :  { %9000 = vst [vmem:[#allocation32_spill] sm:$0xff] %v6349_v10  ;;  %v1503_v30 = vsel %vm6340_vm5, %v1502_v47, %v1498_v4  ;;  %3834 = vpow2.f32 %v3574_v38  ;;  %vm1511_vm10 = vweird.f32 %v6186_v56  ;;  %v1514_v8 = vand.u32 2147483647, %v5705_v44  ;;  %v9006_v38 = vld [vmem:[#allocation69_spill] sm:$0xff] }
 0x206   :  { %9001 = vst [vmem:[#allocation52_spill] sm:$0xff] %v6351_v26  ;;  %v2000_v13 = vmul.f32 2.0, %v1503_v30  ;;  %3836 = vrcp.f32 %v6314_v9  ;;  %v964_v0 = vsel %vm961_vm7, %v963_v57, %v959_v27  ;;  %v1508_v58 = vmul.f32 %v6186_v56, %v1507_v19  ;;  %vm6374_vm11 = vmor %vm1510_vm8, %vm1511_vm10 }
 0x207   :  { %v1516_v41 = vand.u32 2147483648, %v5705_v44  ;;  %3838 = vrcp.f32 %v6317_v2  ;;  %v9007_v50 = vsub.f32 1.0, %v9006_v38  ;;  %vm971_vm5 = vweird.f32 %v9009_v53 }
 0x208   :  { %v2012_v29 = vmul.f32 %v2000_v13, %v2000_v13  ;;  %v3592_v63 = vadd.f32 -0.5, %v1940_v52  ;;  %v1509_v40 = vadd.f32 %v6186_v56, %v1508_v58  ;;  %vm1515_vm14 = vcmp.eq.f32.partialorder %v1514_v8, 8.507059e+37 }
 0x209   :  { %v969_v11 = vmul.f32 %v9008_v17, %v9007_v50  ;;  %v1517_v4 = vor.u32 1.1754944e-38, %v1516_v41  ;;  %v1941_v44 = vmul.f32 2.0, %v964_v0  ;;  %vm972_vm12 = vweird.f32 %v9008_v17 }
 0x20a   :  { %v2024_v27 = vmul.f32 %v2012_v29, %v1698_v7  ;;  %v1513_v30 = vsel %vm6374_vm11, %v6186_v56, %v1509_v40  ;;  %vm6388_vm13 = vmor %vm971_vm5, %vm972_vm12  ;;  %v975_v52 = vand.u32 2147483647, %v9009_v53  ;;  %v977_v13 = vand.u32 2147483648, %v9009_v53  ;;  %v1701_v40 = vpop.xlane.xlu2 %1700 }
 0x20b   :  { %v970_v57 = vadd.f32 %v9008_v17, %v969_v11  ;;  %v1521_v8 = vmul.f32 %v6306_v54, %v6216_v1  ;;  %v3835_v7 = vpop.eup %3834  ;;  %v1518_v58 = vsel %vm1515_vm14, %v1517_v4, %v1513_v30  ;;  %vm1525_vm7 = vweird.f32 %v6216_v1  ;;  %v3954_v30 = vld [vmem:[%s8440_s1 + $0x10] sm:$0xff] }
 0x20c   :  { %v2072_v0 = vmul.f32 0.5, %v2024_v27  ;;  %v6400_v56 = vpop.eup %3836  ;;  %v2001_v29 = vmul.f32 2.0, %v1518_v58  ;;  %v978_v47 = vor.u32 1.1754944e-38, %v977_v13  ;;  %vm1526_vm8 = vweird.f32 %v6306_v54 }
 0x20d   :  { %v974_v41 = vsel %vm6388_vm13, %v9008_v17, %v970_v57  ;;  %v1522_v38 = vsub.f32 1.0, %v1521_v8  ;;  %v6403_v50 = vpop.eup %3838  ;;  %v1529_v4 = vand.u32 2147483647, %v6216_v1  ;;  %v1531_v17 = vand.u32 2147483648, %v6216_v1  ;;  %vm6424_vm11 = vmor %vm1525_vm7, %vm1526_vm8 }
 0x20e   :  { %v6405_v11 = vsub.f32 %v3592_v63, %v2072_v0  ;;  %v6407_v53 = vadd.f32 %v3592_v63, %v2072_v0  ;;  %v2013_v27 = vmul.f32 %v2001_v29, %v2001_v29  ;;  %vm976_vm10 = vcmp.eq.f32.partialorder %v975_v52, 8.507059e+37 }
 0x20f   :  { %v1523_v57 = vmul.f32 %v6306_v54, %v1522_v38  ;;  %v1865_v19 = vsel %vm1318_vm4, %v3954_v30, 0.0  ;;  %v6418_v13 = vadd.f32 1.0, %v6248_v34  ;;  %vm6428_vm5 = vcmp.eq.f32.partialorder %v1529_v4, 8.507059e+37  ;;  %v3955_v38 = vld [vmem:[%s8440_s1 + $0x18] sm:$0xff] }
 0x210   :  { %9012 = vst [vmem:[#allocation45_spill] sm:$0xff] %v6405_v11  ;;  %v1532_v0 = vor.u32 1.1754944e-38, %v1531_v17  ;;  %v2025_v58 = vmul.f32 %v2013_v27, %v1701_v40  ;;  %v1881_v34 = vsel %vm1729_vm9, %v1865_v19, 0.0  ;;  %v1866_v1 = vsel %vm1318_vm4, %v3955_v38, 0.0  ;;  %v3956_v40 = vld [vmem:[%s8440_s1 + $0x20] sm:$0xff] }
 0x211   :  { %9013 = vst [vmem:[#allocation35_spill] sm:$0xff] %v6407_v53  ;;  %v1524_v29 = vadd.f32 %v6306_v54, %v1523_v57  ;;  %v3593_v30 = vadd.f32 -0.5, %v1941_v44  ;;  %v979_v63 = vsel %vm976_vm10, %v978_v47, %v974_v41  ;;  %1882 = vadd.xlane.f32.xlu1 %v1881_v34  ;;  %v1884_v4 = vsel %vm1729_vm9, %v1866_v1, 0.0  ;;  %v9018_v44 = vld [vmem:[#allocation74_spill] sm:$0xff]  ;;  %v1704_v1 = vpop.xlane.xlu0 %1703 }
 0x212   :  { %v1867_v17 = vsel %vm1318_vm4, %v3956_v40, 0.0  ;;  %v2073_v27 = vmul.f32 0.5, %v2025_v58  ;;  %1885 = vadd.xlane.f32.xlu2 %v1884_v4  ;;  %v9019_v41 = vsub.f32 1.0, %v9018_v44  ;;  %v9020_v47 = vld [vmem:[#allocation70_spill] sm:$0xff]  ;;  %3840 = vrcp.f32 %v6418_v13  ;;  %v9021_v40 = vld [vmem:[#allocation60_spill] sm:$0xff]  ;;  %v6462_v4 = vpop.xlane.xlu1 %1706 }
 0x213   :  { %v1528_v57 = vsel %vm6424_vm11, %v6306_v54, %v1524_v29  ;;  %v1887_v19 = vsel %vm1729_vm9, %v1867_v17, 0.0  ;;  %vm986_vm14 = vweird.f32 %v9021_v40  ;;  %vm987_vm12 = vweird.f32 %v9020_v47 }
 0x214   :  { %v984_v34 = vmul.f32 %v9020_v47, %v9019_v41  ;;  %v1533_v38 = vsel %vm6428_vm5, %v1532_v0, %v1528_v57  ;;  %1888 = vadd.xlane.f32.xlu0 %v1887_v19  ;;  %v6457_v8 = vsub.f32 %v3593_v30, %v2073_v27  ;;  %v6459_v54 = vadd.f32 %v3593_v30, %v2073_v27  ;;  %vm6464_vm13 = vmor %vm986_vm14, %vm987_vm12 }
 0x215   :  { %v2002_v58 = vmul.f32 2.0, %v1533_v38  ;;  %v1942_v17 = vmul.f32 2.0, %v979_v63  ;;  %v990_v52 = vand.u32 2147483647, %v9021_v40  ;;  %v992_v0 = vand.u32 2147483648, %v9021_v40 }
 0x216   :  { %9022 = vst [vmem:[#allocation57_spill] sm:$0xff] %v6457_v8  ;;  %v985_v29 = vadd.f32 %v9020_v47, %v984_v34  ;;  %v1536_v57 = vmul.f32 %v6400_v56, %v6314_v9  ;;  %v6472_v19 = vadd.f32 1.0, %v3835_v7  ;;  %vm1541_vm7 = vweird.f32 %v6400_v56  ;;  %v9026_v7 = vld [vmem:[#allocation75_spill] sm:$0xff] }
 0x217   :  { %9023 = vst [vmem:[#allocation51_spill] sm:$0xff] %v6459_v54  ;;  %v2014_v27 = vmul.f32 %v2002_v58, %v2002_v58  ;;  %v993_v41 = vor.u32 1.1754944e-38, %v992_v0  ;;  %v1544_v38 = vand.u32 2147483647, %v6314_v9  ;;  %vm991_vm8 = vcmp.eq.f32.partialorder %v990_v52, 8.507059e+37 }
 0x218   :  { %v989_v63 = vsel %vm6464_vm13, %v9020_v47, %v985_v29  ;;  %v1537_v34 = vsub.f32 1.0, %v1536_v57  ;;  %v1546_v23 = vand.u32 2147483648, %v6314_v9  ;;  %v9027_v37 = vsub.f32 1.0, %v9026_v7  ;;  %v6485_v30 = vpop.eup %3840  ;;  %v9029_v29 = vld [vmem:[#allocation61_spill] sm:$0xff] }
 0x219   :  { %v2026_v40 = vmul.f32 %v2014_v27, %v1704_v1  ;;  %v3594_v58 = vadd.f32 -0.5, %v1942_v17  ;;  %v994_v25 = vsel %vm991_vm8, %v993_v41, %v989_v63  ;;  %vm1001_vm10 = vweird.f32 %v9029_v29  ;;  %v6525_v7 = vpop.xlane.xlu0 %1712 }
 0x21a   :  { %v999_v15 = vmul.f32 %v9028_v59, %v9027_v37  ;;  %v1538_v47 = vmul.f32 %v6400_v56, %v1537_v34  ;;  %vm1540_vm11 = vweird.f32 %v6314_v9  ;;  %vm6490_vm5 = vcmp.eq.f32.partialorder %v1544_v38, 8.507059e+37  ;;  %v9040_v37 = vld [vmem:[#allocation78_spill] sm:$0xff] }
 0x21b   :  { %v2074_v44 = vmul.f32 0.5, %v2026_v40  ;;  %v1547_v52 = vor.u32 1.1754944e-38, %v1546_v23  ;;  %vm6497_vm14 = vmor %vm1540_vm11, %vm1541_vm7  ;;  %vm1002_vm12 = vweird.f32 %v9028_v59  ;;  %v1005_v57 = vand.u32 2147483647, %v9029_v29  ;;  %v1710_v40 = vpop.xlane.xlu2 %1709  ;;  %v9041_v23 = vld [vmem:[#allocation76_spill] sm:$0xff] }
 0x21c   :  { %v1539_v0 = vadd.f32 %v6400_v56, %v1538_v47  ;;  %v1000_v17 = vadd.f32 %v9028_v59, %v999_v15  ;;  %v1943_v63 = vmul.f32 2.0, %v994_v25  ;;  %vm6508_vm13 = vmor %vm1001_vm10, %vm1002_vm12  ;;  %v1007_v41 = vand.u32 2147483648, %v9029_v29 }
 0x21d   :  { %v6504_v9 = vsub.f32 %v3594_v58, %v2074_v44  ;;  %v6506_v27 = vadd.f32 %v3594_v58, %v2074_v44  ;;  %vm6519_vm7 = vcmp.eq.f32.partialorder %v1005_v57, 8.507059e+37  ;;  %v1551_v25 = vmul.f32 %v6403_v50, %v6317_v2 }
 0x21e   :  { %v1543_v34 = vsel %vm6497_vm14, %v6400_v56, %v1539_v0  ;;  %v1004_v15 = vsel %vm6508_vm13, %v9028_v59, %v1000_v17  ;;  %v1008_v47 = vor.u32 1.1754944e-38, %v1007_v41  ;;  %vm1555_vm8 = vweird.f32 %v6317_v2  ;;  %v6532_v59 = vpop.xlane.xlu1 %1715 }
 0x21f   :  { %9034 = vst [vmem:[#allocation38_spill] sm:$0xff] %v6504_v9  ;;  %v1548_v56 = vsel %vm6490_vm5, %v1547_v52, %v1543_v34  ;;  %v1552_v44 = vsub.f32 1.0, %v1551_v25  ;;  %vm1556_vm10 = vweird.f32 %v6403_v50  ;;  %v1559_v0 = vand.u32 2147483647, %v6317_v2 }
 0x220   :  { %9035 = vst [vmem:[#allocation58_spill] sm:$0xff] %v6506_v27  ;;  %v2003_v29 = vmul.f32 2.0, %v1548_v56  ;;  %v1028_v17 = vsub.f32 1.0, %v9040_v37  ;;  %v1561_v57 = vand.u32 2147483648, %v6317_v2  ;;  %v9042_v58 = vsub.f32 1.0, %v9041_v23  ;;  %vm6545_vm11 = vmor %vm1555_vm8, %vm1556_vm10 }
 0x221   :  { %3842 = vrcp.f32 %v6472_v19  ;;  %v3595_v52 = vadd.f32 -0.5, %v1943_v63  ;;  %v1553_v34 = vmul.f32 %v6403_v50, %v1552_v44  ;;  %v1009_v25 = vsel %vm6519_vm7, %v1008_v47, %v1004_v15 }
 0x222   :  { %v1014_v1 = vmul.f32 %v9043_v31, %v9042_v58  ;;  %v2015_v41 = vmul.f32 %v2003_v29, %v2003_v29  ;;  %v1562_v37 = vor.u32 1.1754944e-38, %v1561_v57  ;;  %vm1016_vm5 = vweird.f32 %v9046_v55 }
 0x223   :  { %v1554_v23 = vadd.f32 %v6403_v50, %v1553_v34  ;;  %vm1560_vm14 = vcmp.eq.f32.partialorder %v1559_v0, 8.507059e+37  ;;  %vm1017_vm12 = vweird.f32 %v9043_v31  ;;  %v1020_v15 = vand.u32 2147483647, %v9046_v55 }
 0x224   :  { %v1015_v2 = vadd.f32 %v9043_v31, %v1014_v1  ;;  %v2027_v58 = vmul.f32 %v2015_v41, %v6462_v4  ;;  %vm6554_vm13 = vmor %vm1016_vm5, %vm1017_vm12  ;;  %v1022_v38 = vand.u32 2147483648, %v9046_v55  ;;  %v1566_v47 = vmul.f32 %v6485_v30, %v6418_v13 }
 0x225   :  { %vm1570_vm7 = vweird.f32 %v6418_v13  ;;  %v1558_v4 = vsel %vm6545_vm11, %v6403_v50, %v1554_v23  ;;  %vm1571_vm8 = vweird.f32 %v6485_v30  ;;  %vm6570_vm10 = vcmp.eq.f32.partialorder %v1020_v15, 8.507059e+37  ;;  %v6581_v23 = vpop.xlane.xlu2 %1731 }
 0x226   :  { %v2075_v29 = vmul.f32 0.5, %v2027_v58  ;;  %v1019_v44 = vsel %vm6554_vm13, %v9043_v31, %v1015_v2  ;;  %v1563_v0 = vsel %vm1560_vm14, %v1562_v37, %v1558_v4  ;;  %v1023_v55 = vor.u32 1.1754944e-38, %v1022_v38  ;;  %v6583_v31 = vpop.xlane.xlu0 %1734  ;;  %v6590_v38 = vpop.xlane.xlu1 %1737  ;;  %vm6600_vm11 = vmor %vm1570_vm7, %vm1571_vm8 }
 0x227   :  { %v1567_v1 = vsub.f32 1.0, %v1566_v47  ;;  %v6574_v41 = vpop.eup %3842  ;;  %v2004_v50 = vmul.f32 2.0, %v1563_v0  ;;  %v1574_v56 = vand.u32 2147483647, %v6418_v13  ;;  %v1944_v37 = vmul.f32 2.0, %v1009_v25 }
 0x228   :  { %v6576_v34 = vsub.f32 %v3595_v52, %v2075_v29  ;;  %v6578_v58 = vadd.f32 %v3595_v52, %v2075_v29  ;;  %v1576_v63 = vand.u32 2147483648, %v6418_v13  ;;  %v1868_v15 = vsel %vm1318_vm4, %v5952_v6, 0.0 }
 0x229   :  { %v1568_v2 = vmul.f32 %v6485_v30, %v1567_v1  ;;  %v2016_v47 = vmul.f32 %v2004_v50, %v2004_v50  ;;  %v1024_v29 = vsel %vm6570_vm10, %v1023_v55, %v1019_v44  ;;  %vm1575_vm5 = vcmp.eq.f32.partialorder %v1574_v56, 8.507059e+37  ;;  %v9055_v56 = vld [vmem:[#allocation77_spill] sm:$0xff] }
 0x22a   :  { %9051 = vst [vmem:[#allocation55_spill] sm:$0xff] %v6576_v34  ;;  %v1577_v4 = vor.u32 1.1754944e-38, %v1576_v63  ;;  %v1890_v0 = vsel %vm1729_vm9, %v1868_v15, 0.0  ;;  %v1869_v1 = vsel %vm1318_vm4, %v5983_v21, 0.0  ;;  %v3596_v55 = vadd.f32 -0.5, %v1944_v37 }
 0x22b   :  { %9052 = vst [vmem:[#allocation40_spill] sm:$0xff] %v6578_v58  ;;  %v1569_v6 = vadd.f32 %v6485_v30, %v1568_v2  ;;  %v2028_v57 = vmul.f32 %v2016_v47, %v1710_v40  ;;  %1891 = vadd.xlane.f32.xlu1 %v1890_v0  ;;  %v1893_v44 = vsel %vm1729_vm9, %v1869_v1, 0.0  ;;  %v1870_v50 = vsel %vm1318_vm4, %v5992_v14, 0.0  ;;  %v38_v1 = vld [vmem:[%s8441_s4 + $0x30] sm:$0xff] }
 0x22c   :  { %1894 = vadd.xlane.f32.xlu2 %v1893_v44  ;;  %v1029_v2 = vmul.f32 %v9055_v56, %v1028_v17  ;;  %v1945_v52 = vmul.f32 2.0, %v1024_v29  ;;  %v1896_v21 = vsel %vm1729_vm9, %v1870_v50, 0.0  ;;  %vm1032_vm14 = vweird.f32 %v9055_v56  ;;  %v9058_v29 = vld [vmem:[#allocation68_spill] sm:$0xff] }
 0x22d   :  { %v1573_v13 = vsel %vm6600_vm11, %v6485_v30, %v1569_v6  ;;  %v2076_v63 = vmul.f32 0.5, %v2028_v57  ;;  %1897 = vadd.xlane.f32.xlu0 %v1896_v21  ;;  %v1581_v30 = vmul.f32 %v6574_v41, %v6472_v19  ;;  %v6624_v25 = vpop.xlane.xlu2 %1740  ;;  %v1037_v44 = vand.u32 2147483648, %v9058_v29 }
 0x22e   :  { %v1578_v15 = vsel %vm1575_vm5, %v1577_v4, %v1573_v13  ;;  %v6626_v6 = vpop.xlane.xlu0 %1743  ;;  %v1030_v17 = vadd.f32 %v9055_v56, %v1029_v2  ;;  %v1035_v4 = vand.u32 2147483647, %v9058_v29  ;;  %v6631_v0 = vpop.xlane.xlu1 %1746  ;;  %v3597_v57 = vadd.f32 -0.5, %v1945_v52 }
 0x22f   :  { %v2005_v40 = vmul.f32 2.0, %v1578_v15  ;;  %v6618_v47 = vsub.f32 %v3596_v55, %v2076_v63  ;;  %v6620_v37 = vadd.f32 %v3596_v55, %v2076_v63  ;;  %v1582_v55 = vsub.f32 1.0, %v1581_v30 }
 0x230   :  { %vm1031_vm12 = vweird.f32 %v9058_v29  ;;  %v1591_v50 = vand.u32 2147483648, %v6472_v19  ;;  %v1871_v2 = vsel %vm1318_vm4, %v6102_v16, 0.0  ;;  %vm1586_vm7 = vweird.f32 %v6574_v41 }
 0x231   :  { %9056 = vst [vmem:[#allocation59_spill] sm:$0xff] %v6618_v47  ;;  %v2017_v14 = vmul.f32 %v2005_v40, %v2005_v40  ;;  %vm6642_vm13 = vmor %vm1031_vm12, %vm1032_vm14  ;;  %v1583_v15 = vmul.f32 %v6574_v41, %v1582_v55  ;;  %v1589_v52 = vand.u32 2147483647, %v6472_v19  ;;  %vm6653_vm8 = vcmp.eq.f32.partialorder %v1035_v4, 8.507059e+37 }
 0x232   :  { %9057 = vst [vmem:[#allocation56_spill] sm:$0xff] %v6620_v37  ;;  %v1034_v40 = vsel %vm6642_vm13, %v9055_v56, %v1030_v17  ;;  %vm1585_vm10 = vweird.f32 %v6472_v19  ;;  %v1038_v16 = vor.u32 1.1754944e-38, %v1037_v44  ;;  %v1872_v29 = vsel %vm1318_vm4, %v6126_v5, 0.0 }
 0x233   :  { %v2029_v13 = vmul.f32 %v2017_v14, %v6525_v7  ;;  %v1899_v7 = vsel %vm1729_vm9, %v1871_v2, 0.0  ;;  %v1584_v14 = vadd.f32 %v6574_v41, %v1583_v15  ;;  %v1873_v55 = vsel %vm1318_vm4, %v6135_v61, 0.0  ;;  %vm1587_vm11 = vmor %vm1585_vm10, %vm1586_vm7 }
 0x234   :  { %1900 = vadd.xlane.f32.xlu1 %v1899_v7  ;;  %v1592_v17 = vor.u32 1.1754944e-38, %v1591_v50  ;;  %v1902_v19 = vsel %vm1729_vm9, %v1872_v29, 0.0  ;;  %vm1590_vm5 = vcmp.eq.f32.partialorder %v1589_v52, 8.507059e+37  ;;  %v1905_v44 = vsel %vm1729_vm9, %v1873_v55, 0.0 }
 0x235   :  { %v2077_v21 = vmul.f32 0.5, %v2029_v13  ;;  %v1588_v4 = vsel %vm1587_vm11, %v6574_v41, %v1584_v14  ;;  %1903 = vadd.xlane.f32.xlu2 %v1902_v19  ;;  %v1874_v5 = vsel %vm1318_vm4, %v6259_v51, 0.0  ;;  %v6675_v2 = vpop.xlane.xlu2 %1749  ;;  %v1039_v50 = vsel %vm6653_vm8, %v1038_v16, %v1034_v40  ;;  %1906 = vadd.xlane.f32.xlu0 %v1905_v44 }
 0x236   :  { %v6677_v61 = vpop.xlane.xlu0 %1752  ;;  %v1593_v63 = vsel %vm1590_vm5, %v1592_v17, %v1588_v4  ;;  %v6683_v41 = vpop.xlane.xlu1 %1755  ;;  %v1908_v52 = vsel %vm1763_vm6, %v1874_v5, 0.0  ;;  %v1946_v7 = vmul.f32 2.0, %v1039_v50  ;;  %v33_v4 = vld [vmem:[%s8441_s4 + $0x8] sm:$0xff]  ;;  %v32_v50 = vld [vmem:[%s8441_s4] sm:$0xff] }
 0x237   :  { %v6665_v13 = vsub.f32 %v3597_v57, %v2077_v21  ;;  %v6667_v56 = vadd.f32 %v3597_v57, %v2077_v21  ;;  %v2006_v15 = vmul.f32 2.0, %v1593_v63  ;;  %v9067_v63 = vld [vmem:[#allocation17_spill] sm:$0xff]  ;;  %v9072_v57 = vld [vmem:[#allocation18_spill] sm:$0xff] }
 0x238   :  { %v3598_v14 = vadd.f32 -0.5, %v1946_v7 }
 0x239   :  { %9063 = vst [vmem:[#allocation42_spill] sm:$0xff] %v6665_v13  ;;  %v2018_v21 = vmul.f32 %v2006_v15, %v2006_v15  ;;  %v413_v15 = vmul.f32 %v9067_v63, %v33_v4  ;;  %v9073_v63 = vld [vmem:[#allocation15_spill] sm:$0xff] }
 0x23a   :  { %9064 = vst [vmem:[#allocation81_spill] sm:$0xff] %v6667_v56 }
 0x23b   :  { %v2030_v51 = vmul.f32 %v2018_v21, %v6532_v59  ;;  %v35_v21 = vld [vmem:[%s8441_s4 + $0x18] sm:$0xff] }
 0x23c   :  { %1909 = vadd.xlane.f32.xlu1 %v1908_v52  ;;  %v9068_v52 = vld [vmem:[#allocation16_spill] sm:$0xff]  ;;  %v415_v4 = vmul.f32 %v9072_v57, %v35_v21  ;;  %v37_v57 = vld [vmem:[%s8441_s4 + $0x28] sm:$0xff] }
 0x23d   :  { %v2078_v29 = vmul.f32 0.5, %v2030_v51  ;;  %v6687_v55 = vpop.xlane.xlu2 %1758  ;;  %v412_v7 = vmul.f32 %v9068_v52, %v32_v50  ;;  %v36_v50 = vld [vmem:[%s8441_s4 + $0x20] sm:$0xff]  ;;  %v9074_v52 = vld [vmem:[#allocation19_spill] sm:$0xff] }
 0x23e   :  { %v6689_v19 = vpop.xlane.xlu0 %1761  ;;  %v6691_v30 = vpop.xlane.xlu1 %1765 }
 0x23f   :  { %v6693_v40 = vsub.f32 %v3598_v14, %v2078_v29  ;;  %v6695_v16 = vadd.f32 %v3598_v14, %v2078_v29  ;;  %v34_v29 = vld [vmem:[%s8441_s4 + $0x10] sm:$0xff] }
 0x241   :  { %9065 = vst [vmem:[#allocation82_spill] sm:$0xff] %v6693_v40 }
 0x242   :  { %9066 = vst [vmem:[#allocation66_spill] sm:$0xff] %v6695_v16 }
 0x245   :  { %v6702_v59 = vpop.xlane.xlu2 %1780 }
 0x246   :  { %v6704_v44 = vpop.xlane.xlu0 %1783  ;;  %v6706_v5 = vpop.xlane.xlu1 %1786 }
 0x249   :  { %3443 = vperm.xlu0 %3601, %v413_v15   ;;  %v414_v15 = vmul.f32 %v9073_v63, %v34_v29  ;;  %v9078_v29 = vld [vmem:[#allocation21_spill] sm:$0xff]  ;;  %v9079_v63 = vld [vmem:[#allocation20_spill] sm:$0xff] }
 0x24d   :  { %3438 = vperm.xlu2 %3603, %v412_v7   ;;  %v6716_v51 = vpop.xlane.xlu2 %1789  ;;  %v416_v7 = vmul.f32 %v9074_v52, %v36_v50  ;;  %v39_v50 = vld [vmem:[%s8441_s4 + $0x38] sm:$0xff]  ;;  %v9080_v52 = vld [vmem:[#allocation22_spill] sm:$0xff] }
 0x24e   :  { %9069 = vst [vmem:[#allocation62_spill] sm:$0xff] %v6716_v51  ;;  %v6718_v14 = vpop.xlane.xlu0 %1792  ;;  %v6723_v17 = vpop.xlane.xlu1 %1795  ;;  %v9094_v51 = vld [vmem:[#allocation23_spill] sm:$0xff] }
 0x24f   :  { %9070 = vst [vmem:[#allocation47_spill] sm:$0xff] %v6718_v14  ;;  %v9093_v14 = vsub.f32 %v6351_v26, %v6349_v10  ;;  %v9099_v26 = vld [vmem:[#allocation25_spill] sm:$0xff] }
 0x250   :  { %9071 = vst [vmem:[#allocation67_spill] sm:$0xff] %v6723_v17 }
 0x251   :  { %3453 = vperm.xlu0 %3601, %v415_v4   ;;  %v418_v4 = vmul.f32 %v9078_v29, %v38_v1  ;;  %v9083_v1 = vsub.f32 %v6197_v43, %v6195_v45 }
 0x253   :  { %v6760_v29 = vadd.f32 1e-07, %v9083_v1 }
 0x255   :  { %3448 = vperm.xlu1 %3602, %v414_v15   ;;  %3458 = vperm.xlu2 %3603, %v416_v7   ;;  %v6734_v42 = vpop.xlane.xlu2 %1798  ;;  %v417_v15 = vmul.f32 %v9079_v63, %v37_v57  ;;  %v419_v7 = vmul.f32 %v9080_v52, %v39_v50  ;;  %9084 = vst [vmem:[#allocation53_spill] sm:$0xff] %v6760_v29  ;;  %v40_v50 = vld [vmem:[%s8441_s4 + $0x40] sm:$0xff] }
 0x256   :  { %9075 = vst [vmem:[#allocation64_spill] sm:$0xff] %v6734_v42  ;;  %v6736_v17 = vpop.xlane.xlu0 %1801  ;;  %v6741_v21 = vpop.xlane.xlu1 %1804  ;;  %v9090_v52 = vsub.f32 %v6310_v28, %v6308_v46 }
 0x257   :  { %9076 = vst [vmem:[#allocation48_spill] sm:$0xff] %v6736_v17  ;;  %v9081_v17 = vsub.f32 %v6155_v24, %v6153_v12 }
 0x258   :  { %9077 = vst [vmem:[#allocation69_spill] sm:$0xff] %v6741_v21  ;;  %v41_v21 = vld [vmem:[%s8441_s4 + $0x48] sm:$0xff]  ;;  %v6779_v1 = vadd.f32 1e-07, %v9090_v52  ;;  %v9095_v52 = vsub.f32 %v6407_v53, %v6405_v11 }
 0x259   :  { %3468 = vperm.xlu0 %3601, %v418_v4   ;;  %v6752_v42 = vadd.f32 1e-07, %v9081_v17  ;;  %v9087_v17 = vsub.f32 %v6253_v22, %v6251_v33 }
 0x25a   :  { %9091 = vst [vmem:[#allocation72_spill] sm:$0xff] %v6779_v1  ;;  %v6796_v46 = vadd.f32 1e-07, %v9095_v52  ;;  %v43_v52 = vld [vmem:[%s8441_s4 + $0x58] sm:$0x3] }
 0x25b   :  { %9082 = vst [vmem:[#allocation65_spill] sm:$0xff] %v6752_v42  ;;  %v6772_v63 = vadd.f32 1e-07, %v9087_v17  ;;  %3844 = vrcp.f32 %v6752_v42  ;;  %v6789_v17 = vadd.f32 1e-07, %v9093_v14 }
 0x25c   :  { %3846 = vrcp.f32 %v6760_v29  ;;  %9096 = vst [vmem:[#allocation61_spill] sm:$0xff] %v6796_v46 }
 0x25d   :  { %3463 = vperm.xlu1 %3602, %v417_v15   ;;  %3473 = vperm.xlu2 %3603, %v419_v7   ;;  %v6762_v57 = vpop.xlane.xlu2 %1807  ;;  %9088 = vst [vmem:[#allocation60_spill] sm:$0xff] %v6772_v63  ;;  %v9092_v7 = vld [vmem:[#allocation24_spill] sm:$0xff]  ;;  %3848 = vrcp.f32 %v6772_v63 }
 0x25e   :  { %9085 = vst [vmem:[#allocation74_spill] sm:$0xff] %v6762_v57  ;;  %v6764_v4 = vpop.xlane.xlu0 %1810  ;;  %v6774_v15 = vpop.xlane.xlu1 %1813  ;;  %v421_v57 = vmul.f32 %v9092_v7, %v41_v21  ;;  %v9097_v21 = vsub.f32 %v6459_v54, %v6457_v8  ;;  %3850 = vrcp.f32 %v6779_v1  ;;  %v9106_v54 = vld [vmem:[#allocation26_spill] sm:$0xff] }
 0x25f   :  { %9086 = vst [vmem:[#allocation70_spill] sm:$0xff] %v6764_v4  ;;  %v42_v4 = vld [vmem:[%s8441_s4 + $0x50] sm:$0xff]  ;;  %3852 = vrcp.f32 %v6789_v17  ;;  %v423_v11 = vmul.f32 %v9106_v54, %v43_v52  ;;  %v9111_v54 = vsub.f32 %v6667_v56, %v6665_v13 }
 0x260   :  { %9089 = vst [vmem:[#allocation75_spill] sm:$0xff] %v6774_v15  ;;  %v420_v15 = vmul.f32 %v9094_v51, %v40_v50  ;;  %v6802_v7 = vadd.f32 1e-07, %v9097_v21  ;;  %v422_v14 = vmul.f32 %v9099_v26, %v42_v4  ;;  %v9100_v51 = vsub.f32 %v6506_v27, %v6504_v9 }
 0x261   :  { %3483 = vperm.xlu0 %3601, %v421_v57   ;;  %3854 = vrcp.f32 %v6796_v46  ;;  %v9102_v57 = vsub.f32 %v6578_v58, %v6576_v34  ;;  %v6821_v9 = vpop.eup %3844  ;;  %v6845_v52 = vadd.f32 1e-07, %v9111_v54 }
 0x262   :  { %9098 = vst [vmem:[#allocation78_spill] sm:$0xff] %v6802_v7  ;;  %v6809_v50 = vadd.f32 1e-07, %v9100_v51  ;;  %3856 = vrcp.f32 %v6802_v7  ;;  %v6824_v8 = vpop.eup %3846 }
 0x263   :  { %v6819_v26 = vadd.f32 1e-07, %v9102_v57  ;;  %9104 = vst [vmem:[#allocation63_spill] sm:$0xff] %v6821_v9  ;;  %v9107_v57 = vsub.f32 %v6620_v37, %v6618_v47  ;;  %v6833_v34 = vpop.eup %3848 }
 0x264   :  { %9101 = vst [vmem:[#allocation76_spill] sm:$0xff] %v6809_v50  ;;  %3858 = vrcp.f32 %v6809_v50  ;;  %v6839_v7 = vpop.eup %3850 }
 0x265   :  { %3478 = vperm.xlu1 %3602, %v420_v15   ;;  %9103 = vst [vmem:[#allocation73_spill] sm:$0xff] %v6819_v26  ;;  %3488 = vperm.xlu2 %3603, %v422_v14   ;;  %v1829_v4 = vpop.xlane.xlu2 %1828  ;;  %v6831_v58 = vadd.f32 1e-07, %v9107_v57  ;;  %3860 = vrcp.f32 %v6819_v26 }
 0x266   :  { %v1832_v21 = vpop.xlane.xlu0 %1831  ;;  %v2103_v15 = vmul.f32 0.5, %v1829_v4  ;;  %v1835_v27 = vpop.xlane.xlu1 %1834  ;;  %9105 = vst [vmem:[#allocation77_spill] sm:$0xff] %v6824_v8 }
 0x267   :  { %v2104_v51 = vmul.f32 0.5, %v1832_v21  ;;  %9108 = vst [vmem:[#allocation68_spill] sm:$0xff] %v6831_v58  ;;  %v2105_v14 = vmul.f32 0.5, %v1835_v27  ;;  %v9113_v27 = vsub.f32 %v6695_v16, %v6693_v40  ;;  %3862 = vrcp.f32 %v6831_v58 }
 0x268   :  { %9109 = vst [vmem:[#allocation17_spill] sm:$0xff] %v6833_v34  ;;  %v2115_v9 = vsub.f32 %v6581_v23, %v2103_v15  ;;  %v2127_v4 = vadd.f32 %v2103_v15, %v6581_v23  ;;  %v6853_v15 = vpop.eup %3852  ;;  %3864 = vrcp.f32 %v6845_v52 }
 0x269   :  { %v2116_v21 = vsub.f32 %v6583_v31, %v2104_v51  ;;  %v2128_v8 = vadd.f32 %v2104_v51, %v6583_v31  ;;  %9110 = vst [vmem:[#allocation16_spill] sm:$0xff] %v6839_v7  ;;  %v6850_v57 = vadd.f32 1e-07, %v9113_v27  ;;  %v2117_v23 = vsub.f32 %v6590_v38, %v2105_v14  ;;  %v6859_v13 = vpop.eup %3854 }
 0x26a   :  { %9112 = vst [vmem:[#allocation18_spill] sm:$0xff] %v6845_v52  ;;  %v2175_v31 = vmin.f32 %v5696_v18, %v2127_v4  ;;  %v2187_v51 = vmax.f32 %v5693_v48, %v2115_v9  ;;  %v2595_v34 = vmax.f32 %v5696_v18, %v2127_v4  ;;  %v2129_v7 = vadd.f32 %v2105_v14, %v6590_v38  ;;  %v6864_v56 = vpop.eup %3856  ;;  %v9129_v52 = vld [vmem:[#allocation79_spill] sm:$0xff] }
 0x26b   :  { %9114 = vst [vmem:[#allocation15_spill] sm:$0xff] %v6850_v57  ;;  %v2607_v54 = vmin.f32 %v5693_v48, %v2115_v9  ;;  %v2715_v40 = vadd.f32 %v2127_v4, %v2115_v9  ;;  %v2176_v27 = vmin.f32 %v5711_v35, %v2128_v8  ;;  %v2188_v16 = vmax.f32 %v5708_v60, %v2116_v21  ;;  %v6871_v14 = vpop.eup %3858 }
 0x26c   :  { %9115 = vst [vmem:[#allocation19_spill] sm:$0xff] %v6853_v15  ;;  %v6867_v15 = vsub.f32 %v2175_v31, %v2187_v51  ;;  %v2596_v47 = vmax.f32 %v5711_v35, %v2128_v8  ;;  %v2608_v38 = vmin.f32 %v5708_v60, %v2116_v21  ;;  %v2716_v26 = vadd.f32 %v2128_v8, %v2116_v21  ;;  %v6879_v51 = vpop.eup %3860 }
 0x26d   :  { %9116 = vst [vmem:[#allocation21_spill] sm:$0xff] %v6859_v13  ;;  %3493 = vperm.xlu1 %3602, %v423_v11   ;;  %v2619_v11 = vsub.f32 %v2595_v34, %v2607_v54  ;;  %v2727_v13 = vsub.f32 %v2715_v40, %v5693_v48  ;;  %v6874_v37 = vsub.f32 %v2176_v27, %v2188_v16  ;;  %v1838_v50 = vpop.xlane.xlu2 %1837  ;;  %3866 = vrcp.f32 %v6850_v57 }
 0x26e   :  { %9117 = vst [vmem:[#allocation20_spill] sm:$0xff] %v6864_v56  ;;  %v2620_v56 = vsub.f32 %v2596_v47, %v2608_v38  ;;  %v2177_v58 = vmin.f32 %v5754_v36, %v2129_v7  ;;  %v2189_v31 = vmax.f32 %v5751_v20, %v2117_v23  ;;  %v6882_v53 = vsub.f32 %v2127_v4, %v2115_v9  ;;  %v1841_v40 = vpop.xlane.xlu0 %1840  ;;  %v1844_v16 = vpop.xlane.xlu1 %1843 }
 0x26f   :  { %9118 = vst [vmem:[#allocation22_spill] sm:$0xff] %v6871_v14  ;;  %v2739_v34 = vsub.f32 %v2727_v13, %v5696_v18  ;;  %v2728_v48 = vsub.f32 %v2716_v26, %v5708_v60  ;;  %v6887_v27 = vsub.f32 %v2128_v8, %v2116_v21  ;;  %v2597_v38 = vmax.f32 %v5754_v36, %v2129_v7  ;;  %v6896_v18 = vpop.eup %3862 }
 0x270   :  { %9119 = vst [vmem:[#allocation24_spill] sm:$0xff] %v6879_v51  ;;  %v6889_v47 = vsub.f32 %v2177_v58, %v2189_v31  ;;  %v6892_v14 = vmul.f32 %v2619_v11, %v2619_v11  ;;  %v2609_v9 = vmin.f32 %v5751_v20, %v2117_v23  ;;  %v2717_v4 = vadd.f32 %v2129_v7, %v2117_v23 }
 0x271   :  { %9120 = vst [vmem:[#allocation23_spill] sm:$0xff] %v6882_v53  ;;  %v2740_v51 = vsub.f32 %v2728_v48, %v5711_v35  ;;  %v2106_v13 = vmul.f32 0.5, %v1838_v50  ;;  %v2107_v26 = vmul.f32 0.5, %v1841_v40  ;;  %v2108_v54 = vmul.f32 0.5, %v1844_v16  ;;  %v6906_v35 = vpop.eup %3864 }
 0x272   :  { %9121 = vst [vmem:[#allocation25_spill] sm:$0xff] %v6887_v27  ;;  %v6899_v8 = vmul.f32 %v2620_v56, %v2620_v56  ;;  %v2621_v58 = vsub.f32 %v2597_v38, %v2609_v9  ;;  %v2729_v21 = vsub.f32 %v2717_v4, %v5751_v20  ;;  %v6904_v11 = vmul.f32 %v6752_v42, %v5716_v62 }
 0x273   :  { %9122 = vst [vmem:[#allocation26_spill] sm:$0xff] %v6896_v18  ;;  %v2118_v31 = vsub.f32 %v6624_v25, %v2106_v13  ;;  %v2130_v48 = vadd.f32 %v2106_v13, %v6624_v25  ;;  %v2119_v60 = vsub.f32 %v6626_v6, %v2107_v26  ;;  %v2131_v50 = vadd.f32 %v2107_v26, %v6626_v6  ;;  %v6912_v40 = vpop.eup %3866 }
 0x274   :  { %9123 = vst [vmem:[#allocation90_spill] sm:$0xff] %v6906_v35  ;;  %v6914_v56 = vsub.f32 %v2129_v7, %v2117_v23  ;;  %v2741_v20 = vsub.f32 %v2729_v21, %v5754_v36  ;;  %v2120_v16 = vsub.f32 %v6631_v0, %v2108_v54  ;;  %v2132_v38 = vadd.f32 %v2108_v54, %v6631_v0 }
 0x275   :  { %9124 = vst [vmem:[#allocation91_spill] sm:$0xff] %v6912_v40  ;;  %v2178_v9 = vmin.f32 %v5760_v49, %v2130_v48  ;;  %v2190_v4 = vmax.f32 %v5757_v39, %v2118_v31  ;;  %v6921_v18 = vsub.f32 %v2130_v48, %v2118_v31  ;;  %v2598_v25 = vmax.f32 %v5760_v49, %v2130_v48  ;;  %v1847_v36 = vpop.xlane.xlu2 %1846 }
 0x276   :  { %9125 = vst [vmem:[#allocation92_spill] sm:$0xff] %v6914_v56  ;;  %v6924_v13 = vmul.f32 %v2739_v34, %v2739_v34  ;;  %v2610_v6 = vmin.f32 %v5757_v39, %v2118_v31  ;;  %v2718_v7 = vadd.f32 %v2130_v48, %v2118_v31  ;;  %v2179_v23 = vmin.f32 %v5769_v32, %v2131_v50  ;;  %v9128_v48 = vld [vmem:[#allocation49_spill] sm:$0xff] }
 0x277   :  { %9126 = vst [vmem:[#allocation93_spill] sm:$0xff] %v6921_v18  ;;  %v6929_v21 = vsub.f32 %v2178_v9, %v2190_v4  ;;  %v2191_v0 = vmax.f32 %v5766_v3, %v2119_v60  ;;  %v2599_v54 = vmax.f32 %v5769_v32, %v2131_v50  ;;  %v2611_v34 = vmin.f32 %v5766_v3, %v2119_v60 }
 0x278   :  { %v2622_v40 = vsub.f32 %v2598_v25, %v2610_v6  ;;  %v2730_v35 = vsub.f32 %v2718_v7, %v5757_v39  ;;  %v2719_v62 = vadd.f32 %v2131_v50, %v2119_v60  ;;  %v6935_v42 = vmul.f32 %v2740_v51, %v2740_v51  ;;  %v1850_v6 = vpop.xlane.xlu0 %1849 }
 0x279   :  { %v6937_v31 = vsub.f32 %v2179_v23, %v2191_v0  ;;  %v2180_v57 = vmin.f32 %v9128_v48, %v2132_v38  ;;  %v2192_v26 = vmax.f32 %v9129_v52, %v2120_v16  ;;  %v6941_v9 = vmul.f32 %v2621_v58, %v2621_v58  ;;  %v1853_v0 = vpop.xlane.xlu1 %1852 }
 0x27a   :  { %v2742_v4 = vsub.f32 %v2730_v35, %v5760_v49  ;;  %v2623_v46 = vsub.f32 %v2599_v54, %v2611_v34  ;;  %v2731_v25 = vsub.f32 %v2719_v62, %v5766_v3  ;;  %v6945_v39 = vmul.f32 %v2741_v20, %v2741_v20 }
 0x27b   :  { %9127 = vst [vmem:[#allocation94_spill] sm:$0xff] %v6937_v31  ;;  %v6947_v7 = vsub.f32 %v2180_v57, %v2192_v26  ;;  %v6949_v51 = vsub.f32 %v2132_v38, %v2120_v16  ;;  %v2600_v23 = vmax.f32 %v9128_v48, %v2132_v38  ;;  %v6953_v18 = vsub.f32 %v2131_v50, %v2119_v60 }
 0x27c   :  { %v2743_v58 = vsub.f32 %v2731_v25, %v5769_v32  ;;  %v2612_v49 = vmin.f32 %v9129_v52, %v2120_v16  ;;  %v6957_v35 = vmul.f32 %v2622_v40, %v2622_v40  ;;  %v2720_v62 = vadd.f32 %v2132_v38, %v2120_v16 }
 0x27d   :  { %9130 = vst [vmem:[#allocation49_spill] sm:$0xff] %v6947_v7  ;;  %v2109_v3 = vmul.f32 0.5, %v1847_v36  ;;  %v2110_v20 = vmul.f32 0.5, %v1850_v6  ;;  %v6959_v57 = vmul.f32 %v2742_v4, %v2742_v4  ;;  %v2111_v34 = vmul.f32 0.5, %v1853_v0  ;;  %v1856_v36 = vpop.xlane.xlu2 %1855  ;;  %v9136_v6 = vld [vmem:[#allocation88_spill] sm:$0xff] }
 0x27e   :  { %9131 = vst [vmem:[#allocation79_spill] sm:$0xff] %v6949_v51  ;;  %v2624_v54 = vsub.f32 %v2600_v23, %v2612_v49  ;;  %v2732_v51 = vsub.f32 %v2720_v62, %v9129_v52  ;;  %v6966_v25 = vmul.f32 %v2623_v46, %v2623_v46  ;;  %v9137_v52 = vld [vmem:[#allocation87_spill] sm:$0xff]  ;;  %v6978_v26 = vmul.f32 %v2743_v58, %v2743_v58 }
 0x27f   :  { %9132 = vst [vmem:[#allocation95_spill] sm:$0xff] %v6953_v18  ;;  %v2121_v60 = vsub.f32 %v6675_v2, %v2109_v3  ;;  %v2133_v50 = vadd.f32 %v2109_v3, %v6675_v2  ;;  %v2122_v32 = vsub.f32 %v6677_v61, %v2110_v20  ;;  %v2134_v16 = vadd.f32 %v2110_v20, %v6677_v61  ;;  %v9138_v3 = vld [vmem:[#allocation34_spill] sm:$0xff] }
 0x280   :  { %9133 = vst [vmem:[#allocation96_spill] sm:$0xff] %v6957_v35  ;;  %v2123_v38 = vsub.f32 %v6683_v41, %v2111_v34  ;;  %v2744_v4 = vsub.f32 %v2732_v51, %v9128_v48  ;;  %v2135_v49 = vadd.f32 %v2111_v34, %v6683_v41  ;;  %v9140_v20 = vld [vmem:[#allocation54_spill] sm:$0xff]  ;;  %v2112_v48 = vmul.f32 0.5, %v1856_v36  ;;  %v9144_v36 = vld [vmem:[#allocation27_spill] sm:$0xff] }
 0x281   :  { %9134 = vst [vmem:[#allocation97_spill] sm:$0xff] %v6959_v57  ;;  %v2181_v23 = vmin.f32 %v9136_v6, %v2133_v50  ;;  %v2193_v0 = vmax.f32 %v9137_v52, %v2121_v60  ;;  %v2601_v2 = vmax.f32 %v9136_v6, %v2133_v50  ;;  %v2613_v46 = vmin.f32 %v9137_v52, %v2121_v60  ;;  %v9142_v57 = vld [vmem:[#allocation39_spill] sm:$0xff] }
 0x282   :  { %9135 = vst [vmem:[#allocation98_spill] sm:$0xff] %v6966_v25  ;;  %v2721_v62 = vadd.f32 %v2133_v50, %v2121_v60  ;;  %v2182_v40 = vmin.f32 %v9138_v3, %v2134_v16  ;;  %v2194_v10 = vmax.f32 %v9140_v20, %v2122_v32  ;;  %v2602_v25 = vmax.f32 %v9138_v3, %v2134_v16 }
 0x283   :  { %9139 = vst [vmem:[#allocation88_spill] sm:$0xff] %v6978_v26  ;;  %v6980_v61 = vsub.f32 %v2181_v23, %v2193_v0  ;;  %v2625_v51 = vsub.f32 %v2601_v2, %v2613_v46  ;;  %v2614_v41 = vmin.f32 %v9140_v20, %v2122_v32  ;;  %v6986_v34 = vmul.f32 %v2624_v54, %v2624_v54 }
 0x284   :  { %v2733_v7 = vsub.f32 %v2721_v62, %v9137_v52  ;;  %v6988_v31 = vsub.f32 %v2182_v40, %v2194_v10  ;;  %v2722_v18 = vadd.f32 %v2134_v16, %v2122_v32  ;;  %v2183_v58 = vmin.f32 %v9142_v57, %v2135_v49  ;;  %v1859_v10 = vpop.xlane.xlu0 %1858  ;;  %v1862_v40 = vpop.xlane.xlu1 %1861 }
 0x285   :  { %9141 = vst [vmem:[#allocation87_spill] sm:$0xff] %v6986_v34  ;;  %v6991_v26 = vsub.f32 %v2133_v50, %v2121_v60  ;;  %v2626_v0 = vsub.f32 %v2602_v25, %v2614_v41  ;;  %v2195_v2 = vmax.f32 %v9144_v36, %v2123_v38  ;;  %v6995_v46 = vmul.f32 %v2744_v4, %v2744_v4  ;;  %v9150_v34 = vld [vmem:[#allocation28_spill] sm:$0xff] }
 0x286   :  { %v2745_v23 = vsub.f32 %v2733_v7, %v9136_v6  ;;  %v6997_v52 = vsub.f32 %v2134_v16, %v2122_v32  ;;  %v2734_v62 = vsub.f32 %v2722_v18, %v9140_v20  ;;  %v2603_v54 = vmax.f32 %v9142_v57, %v2135_v49  ;;  %v9153_v18 = vld [vmem:[#allocation36_spill] sm:$0xff] }
 0x287   :  { %9143 = vst [vmem:[#allocation34_spill] sm:$0xff] %v6991_v26  ;;  %v7002_v35 = vmul.f32 %v2625_v51, %v2625_v51  ;;  %v7004_v60 = vsub.f32 %v2183_v58, %v2195_v2  ;;  %v2615_v7 = vmin.f32 %v9144_v36, %v2123_v38  ;;  %v2723_v25 = vadd.f32 %v2135_v49, %v2123_v38  ;;  %v9149_v58 = vld [vmem:[#allocation80_spill] sm:$0xff] }
 0x288   :  { %9145 = vst [vmem:[#allocation54_spill] sm:$0xff] %v6997_v52  ;;  %v2746_v50 = vsub.f32 %v2734_v62, %v9138_v3  ;;  %v2124_v32 = vsub.f32 %v6687_v55, %v2112_v48  ;;  %v2136_v16 = vadd.f32 %v2112_v48, %v6687_v55  ;;  %v2113_v6 = vmul.f32 0.5, %v1859_v10 }
 0x289   :  { %9146 = vst [vmem:[#allocation39_spill] sm:$0xff] %v7002_v35  ;;  %v2627_v4 = vsub.f32 %v2603_v54, %v2615_v7  ;;  %v2114_v20 = vmul.f32 0.5, %v1862_v40  ;;  %v7011_v41 = vsub.f32 %v2135_v49, %v2123_v38  ;;  %v2735_v51 = vsub.f32 %v2723_v25, %v9144_v36  ;;  %v1877_v7 = vpop.xlane.xlu2 %1876 }
 0x28a   :  { %9147 = vst [vmem:[#allocation27_spill] sm:$0xff] %v7004_v60  ;;  %v2184_v2 = vmin.f32 %v9149_v58, %v2136_v16  ;;  %v2196_v52 = vmax.f32 %v9150_v34, %v2124_v32  ;;  %v7016_v35 = vmul.f32 %v2745_v23, %v2745_v23  ;;  %v7018_v3 = vmul.f32 %v2626_v0, %v2626_v0 }
 0x28b   :  { %9148 = vst [vmem:[#allocation99_spill] sm:$0xff] %v7011_v41  ;;  %v2604_v62 = vmax.f32 %v9149_v58, %v2136_v16  ;;  %v2616_v55 = vmin.f32 %v9150_v34, %v2124_v32  ;;  %v2747_v48 = vsub.f32 %v2735_v51, %v9142_v57  ;;  %v2724_v38 = vadd.f32 %v2136_v16, %v2124_v32 }
 0x28c   :  { %9151 = vst [vmem:[#allocation80_spill] sm:$0xff] %v7018_v3  ;;  %v7023_v54 = vsub.f32 %v2184_v2, %v2196_v52  ;;  %v2125_v49 = vsub.f32 %v6689_v19, %v2113_v6  ;;  %v2137_v10 = vadd.f32 %v2113_v6, %v6689_v19  ;;  %v2126_v40 = vsub.f32 %v6691_v30, %v2114_v20  ;;  %v9156_v2 = vld [vmem:[#allocation29_spill] sm:$0xff] }
 0x28d   :  { %v2628_v36 = vsub.f32 %v2604_v62, %v2616_v55  ;;  %v2138_v23 = vadd.f32 %v2114_v20, %v6691_v30  ;;  %v7029_v0 = vmul.f32 %v2746_v50, %v2746_v50  ;;  %v2736_v25 = vsub.f32 %v2724_v38, %v9150_v34  ;;  %v9157_v20 = vld [vmem:[#allocation30_spill] sm:$0xff] }
 0x28e   :  { %v2197_v57 = vmax.f32 %v9153_v18, %v2125_v49  ;;  %v7034_v52 = vmul.f32 %v2627_v4, %v2627_v4  ;;  %v7036_v51 = vsub.f32 %v2136_v16, %v2124_v32  ;;  %v2185_v62 = vmin.f32 %v9156_v2, %v2137_v10  ;;  %v9159_v4 = vld [vmem:[#allocation37_spill] sm:$0xff]  ;;  %v9162_v16 = vld [vmem:[#allocation84_spill] sm:$0xff] }
 0x28f   :  { %9152 = vst [vmem:[#allocation28_spill] sm:$0xff] %v7029_v0  ;;  %v2605_v19 = vmax.f32 %v9156_v2, %v2137_v10  ;;  %v2748_v6 = vsub.f32 %v2736_v25, %v9149_v58  ;;  %v2617_v30 = vmin.f32 %v9153_v18, %v2125_v49  ;;  %v2725_v50 = vadd.f32 %v2137_v10, %v2125_v49 }
 0x290   :  { %9154 = vst [vmem:[#allocation36_spill] sm:$0xff] %v7034_v52  ;;  %v2186_v55 = vmin.f32 %v9157_v20, %v2138_v23  ;;  %v7043_v60 = vmul.f32 %v2747_v48, %v2747_v48  ;;  %v7045_v34 = vsub.f32 %v2185_v62, %v2197_v57  ;;  %v2198_v38 = vmax.f32 %v9159_v4, %v2126_v40 }
 0x291   :  { %9155 = vst [vmem:[#allocation100_spill] sm:$0xff] %v7036_v51  ;;  %v2606_v32 = vmax.f32 %v9157_v20, %v2138_v23  ;;  %v2629_v51 = vsub.f32 %v2605_v19, %v2617_v30  ;;  %v2737_v52 = vsub.f32 %v2725_v50, %v9153_v18  ;;  %v2618_v58 = vmin.f32 %v9159_v4, %v2126_v40 }
 0x292   :  { %9158 = vst [vmem:[#allocation29_spill] sm:$0xff] %v7043_v60  ;;  %v7052_v25 = vmul.f32 %v2628_v36, %v2628_v36  ;;  %v7054_v41 = vsub.f32 %v2186_v55, %v2198_v38  ;;  %v2726_v0 = vadd.f32 %v2138_v23, %v2126_v40  ;;  %v2139_v48 = vmul.f32 0.5, %v1877_v7  ;;  %v1880_v60 = vpop.xlane.xlu0 %1879 }
 0x293   :  { %v7056_v57 = vsub.f32 %v2137_v10, %v2125_v49  ;;  %v7059_v62 = vsub.f32 %v2737_v52, %v9156_v2  ;;  %v7061_v3 = vsub.f32 %v2606_v32, %v2618_v58  ;;  %v2356_v19 = vmul.f32 %v6760_v29, %v9162_v16  ;;  %v9164_v52 = vld [vmem:[#allocation71_spill] sm:$0xff] }
 0x294   :  { %9160 = vst [vmem:[#allocation30_spill] sm:$0xff] %v7054_v41  ;;  %v7065_v18 = vsub.f32 %v2138_v23, %v2126_v40  ;;  %v2738_v36 = vsub.f32 %v2726_v0, %v9159_v4  ;;  %v2151_v30 = vsub.f32 %v6702_v59, %v2139_v48  ;;  %v2163_v50 = vadd.f32 %v2139_v48, %v6702_v59 }
 0x295   :  { %9161 = vst [vmem:[#allocation37_spill] sm:$0xff] %v7056_v57  ;;  %v7070_v7 = vmul.f32 %v2748_v6, %v2748_v6  ;;  %v2140_v10 = vmul.f32 0.5, %v1880_v60  ;;  %v7075_v2 = vmul.f32 %v6772_v63, %v9164_v52  ;;  %v7085_v60 = vmul.f32 %v2629_v51, %v2629_v51 }
 0x296   :  { %9163 = vst [vmem:[#allocation101_spill] sm:$0xff] %v7065_v18  ;;  %v7078_v55 = vsub.f32 %v2738_v36, %v9157_v20  ;;  %v2223_v40 = vmin.f32 %v6155_v24, %v2163_v50  ;;  %v2235_v23 = vmax.f32 %v6153_v12, %v2151_v30  ;;  %v2331_v0 = vsub.f32 %v2163_v50, %v2151_v30 }
 0x297   :  { %v2631_v4 = vmax.f32 %v6155_v24, %v2163_v50  ;;  %v2643_v59 = vmin.f32 %v6153_v12, %v2151_v30  ;;  %v2763_v6 = vadd.f32 %v2163_v50, %v2151_v30  ;;  %v2152_v38 = vsub.f32 %v6704_v44, %v2140_v10 }
 0x298   :  { %v2247_v32 = vsub.f32 %v2223_v40, %v2235_v23  ;;  %v7087_v58 = vadd.f32 1e-07, %v2331_v0  ;;  %v2164_v20 = vadd.f32 %v2140_v10, %v6704_v44  ;;  %v1883_v10 = vpop.xlane.xlu1 %1882 }
 0x299   :  { %v2655_v48 = vsub.f32 %v2631_v4, %v2643_v59  ;;  %v2775_v36 = vsub.f32 %v2763_v6, %v6153_v12  ;;  %v2236_v49 = vmax.f32 %v6195_v45, %v2152_v38  ;;  %v2644_v52 = vmin.f32 %v6195_v45, %v2152_v38 }
 0x29a   :  { %v2259_v16 = vmax.f32 %v2247_v32, 0.0  ;;  %v2367_v30 = vmul.f32 %v7087_v58, %v6882_v53  ;;  %v2224_v51 = vmin.f32 %v6197_v43, %v2164_v20  ;;  %v2332_v23 = vsub.f32 %v2164_v20, %v2152_v38 }
 0x29b   :  { %v2679_v50 = vmul.f32 %v2655_v48, %v2655_v48  ;;  %v2787_v40 = vsub.f32 %v2775_v36, %v6155_v24  ;;  %v2632_v44 = vmax.f32 %v6197_v43, %v2164_v20  ;;  %v9165_v12 = vmax.f32 %v6867_v15, 0.0 }
 0x29c   :  { %v2379_v4 = vadd.f32 %v2367_v30, %v6904_v11  ;;  %v2248_v59 = vsub.f32 %v2224_v51, %v2236_v49  ;;  %v2764_v6 = vadd.f32 %v2164_v20, %v2152_v38  ;;  %v7105_v29 = vadd.f32 1e-07, %v2332_v23  ;;  %v9169_v51 = vld [vmem:[#allocation85_spill] sm:$0xff] }
 0x29d   :  { %v7101_v0 = vmul.f32 %v2259_v16, %v9165_v12  ;;  %v2691_v32 = vadd.f32 %v2679_v50, %v6892_v14  ;;  %v2799_v63 = vmul.f32 %v2787_v40, %v2787_v40  ;;  %v2656_v48 = vsub.f32 %v2632_v44, %v2644_v52 }
 0x29e   :  { %9166 = vst [vmem:[#allocation102_spill] sm:$0xff] %v7105_v29  ;;  %v2260_v36 = vmax.f32 %v2248_v59, 0.0  ;;  %v2776_v53 = vsub.f32 %v2764_v6, %v6195_v45  ;;  %v2141_v41 = vmul.f32 0.5, %v1883_v10  ;;  %v2368_v11 = vmul.f32 %v7105_v29, %v6887_v27 }
 0x29f   :  { %v2391_v24 = vsub.f32 %v2379_v4, %v7101_v0  ;;  %v7109_v18 = vadd.f32 1e-07, %v2691_v32  ;;  %v7112_v15 = vadd.f32 %v2799_v63, %v6924_v13  ;;  %v2680_v16 = vmul.f32 %v2656_v48, %v2656_v48  ;;  %v9172_v48 = vld [vmem:[#allocation86_spill] sm:$0xff] }
 0x2a0   :  { %3868 = vrcp.f32 %v7087_v58  ;;  %v9167_v49 = vmax.f32 %v6874_v37, 0.0  ;;  %v2788_v45 = vsub.f32 %v2776_v53, %v6197_v43  ;;  %v2380_v38 = vadd.f32 %v2368_v11, %v2356_v19  ;;  %v1886_v37 = vpop.xlane.xlu2 %1885  ;;  %v9174_v11 = vld [vmem:[#allocation62_spill] sm:$0xff] }
 0x2a1   :  { %v7116_v14 = vadd.f32 1e-07, %v2391_v24  ;;  %v2692_v20 = vadd.f32 %v2680_v16, %v6899_v8  ;;  %3870 = vrcp.f32 %v7105_v29  ;;  %v2153_v63 = vsub.f32 %v6706_v5, %v2141_v41 }
 0x2a2   :  { %v7121_v52 = vmul.f32 %v2260_v36, %v9167_v49  ;;  %3872 = vrcp.f32 %v7109_v18  ;;  %v2800_v13 = vmul.f32 %v2788_v45, %v2788_v45  ;;  %v2165_v30 = vadd.f32 %v2141_v41, %v6706_v5 }
 0x2a3   :  { %v2358_v50 = vmul.f32 %v6779_v1, %v9169_v51  ;;  %v7132_v23 = vadd.f32 1e-07, %v2692_v20  ;;  %v2237_v43 = vmax.f32 %v6251_v33, %v2153_v63  ;;  %v2645_v53 = vmin.f32 %v6251_v33, %v2153_v63 }
 0x2a4   :  { %9168 = vst [vmem:[#allocation103_spill] sm:$0xff] %v7121_v52  ;;  %v2392_v40 = vsub.f32 %v2380_v38, %v7121_v52  ;;  %v7137_v8 = vadd.f32 %v2800_v13, %v6935_v42  ;;  %v2225_v19 = vmin.f32 %v6253_v22, %v2165_v30  ;;  %v2333_v44 = vsub.f32 %v2165_v30, %v2153_v63 }
 0x2a5   :  { %v2633_v5 = vmax.f32 %v6253_v22, %v2165_v30  ;;  %3874 = vrcp.f32 %v7116_v14  ;;  %v2765_v10 = vadd.f32 %v2165_v30, %v2153_v63  ;;  %v2142_v12 = vmul.f32 0.5, %v1886_v37  ;;  %v9175_v37 = vld [vmem:[#allocation43_spill] sm:$0xff] }
 0x2a6   :  { %9170 = vst [vmem:[#allocation104_spill] sm:$0xff] %v7137_v8  ;;  %v7142_v41 = vadd.f32 1e-07, %v2392_v40  ;;  %v7144_v4 = vpop.eup %3868  ;;  %v2249_v59 = vsub.f32 %v2225_v19, %v2237_v43  ;;  %v7146_v6 = vadd.f32 1e-07, %v2333_v44  ;;  %v7150_v42 = vmul.f32 %v6789_v17, %v9172_v48  ;;  %v1889_v43 = vpop.xlane.xlu0 %1888 }
 0x2a7   :  { %v2657_v32 = vsub.f32 %v2633_v5, %v2645_v53  ;;  %v7152_v24 = vpop.eup %3870  ;;  %3876 = vrcp.f32 %v7132_v23  ;;  %v2777_v36 = vsub.f32 %v2765_v10, %v6251_v33  ;;  %v2154_v16 = vsub.f32 %v9174_v11, %v2142_v12 }
 0x2a8   :  { %9171 = vst [vmem:[#allocation105_spill] sm:$0xff] %v7146_v6  ;;  %v2166_v49 = vadd.f32 %v2142_v12, %v9174_v11  ;;  %v7158_v45 = vpop.eup %3872  ;;  %3878 = vrcp.f32 %v7142_v41  ;;  %v2261_v38 = vmax.f32 %v2249_v59, 0.0  ;;  %v2369_v20 = vmul.f32 %v7146_v6, %v6914_v56 }
 0x2a9   :  { %9173 = vst [vmem:[#allocation86_spill] sm:$0xff] %v7152_v24  ;;  %v2681_v63 = vmul.f32 %v2657_v32, %v2657_v32  ;;  %v2789_v13 = vsub.f32 %v2777_v36, %v6253_v22  ;;  %v2238_v40 = vmax.f32 %v9175_v37, %v2154_v16  ;;  %v9176_v53 = vmax.f32 %v6889_v47, 0.0 }
 0x2aa   :  { %v2226_v30 = vmin.f32 %v6310_v28, %v2166_v49  ;;  %v2334_v33 = vsub.f32 %v2166_v49, %v2154_v16  ;;  %v2381_v44 = vadd.f32 %v2369_v20, %v7075_v2  ;;  %v2634_v10 = vmax.f32 %v6310_v28, %v2166_v49  ;;  %v9182_v20 = vld [vmem:[#allocation93_spill] sm:$0xff] }
 0x2ab   :  { %v7168_v19 = vmul.f32 %v2261_v38, %v9176_v53  ;;  %v2693_v5 = vadd.f32 %v2681_v63, %v6941_v9  ;;  %v7173_v12 = vpop.eup %3874  ;;  %v2801_v59 = vmul.f32 %v2789_v13, %v2789_v13  ;;  %v2646_v36 = vmin.f32 %v9175_v37, %v2154_v16 }
 0x2ac   :  { %v2250_v22 = vsub.f32 %v2226_v30, %v2238_v40  ;;  %v7175_v32 = vadd.f32 1e-07, %v2334_v33  ;;  %v2766_v47 = vadd.f32 %v2166_v49, %v2154_v16  ;;  %v2143_v38 = vmul.f32 0.5, %v1889_v43  ;;  %v9183_v49 = vld [vmem:[#allocation47_spill] sm:$0xff] }
 0x2ad   :  { %9177 = vst [vmem:[#allocation62_spill] sm:$0xff] %v7168_v19  ;;  %v2393_v11 = vsub.f32 %v2381_v44, %v7168_v19  ;;  %v7179_v56 = vadd.f32 1e-07, %v2693_v5  ;;  %v7181_v53 = vpop.eup %3876  ;;  %v7184_v9 = vadd.f32 %v2801_v59, %v6945_v39  ;;  %v2658_v13 = vsub.f32 %v2634_v10, %v2646_v36 }
 0x2ae   :  { %9178 = vst [vmem:[#allocation43_spill] sm:$0xff] %v7175_v32  ;;  %v2262_v2 = vmax.f32 %v2250_v22, 0.0  ;;  %v2370_v63 = vmul.f32 %v7175_v32, %v9182_v20  ;;  %v7188_v30 = vpop.eup %3878  ;;  %v7192_v40 = vmul.f32 %v7059_v62, %v7059_v62  ;;  %3880 = vrcp.f32 %v7146_v6  ;;  %v9187_v22 = vld [vmem:[#allocation32_spill] sm:$0xff]  ;;  %v1892_v6 = vpop.xlane.xlu1 %1891 }
 0x2af   :  { %9179 = vst [vmem:[#allocation106_spill] sm:$0xff] %v7179_v56  ;;  %v2778_v16 = vsub.f32 %v2766_v47, %v9175_v37  ;;  %v2155_v33 = vsub.f32 %v9183_v49, %v2143_v38  ;;  %v7197_v43 = vadd.f32 1e-07, %v2393_v11  ;;  %v9185_v39 = vmax.f32 %v6929_v21, 0.0  ;;  %v9188_v47 = vld [vmem:[#allocation96_spill] sm:$0xff]  ;;  %v9189_v21 = vld [vmem:[#allocation89_spill] sm:$0xff] }
 0x2b0   :  { %9180 = vst [vmem:[#allocation107_spill] sm:$0xff] %v7181_v53  ;;  %v2382_v5 = vadd.f32 %v2370_v63, %v2358_v50  ;;  %v2682_v10 = vmul.f32 %v2658_v13, %v2658_v13  ;;  %3882 = vrcp.f32 %v7179_v56  ;;  %v2167_v62 = vadd.f32 %v2143_v38, %v9183_v49  ;;  %v9191_v63 = vld [vmem:[#allocation52_spill] sm:$0xff] }
 0x2b1   :  { %9181 = vst [vmem:[#allocation108_spill] sm:$0xff] %v7184_v9  ;;  %v7201_v44 = vmul.f32 %v2262_v2, %v9185_v39  ;;  %v2790_v59 = vsub.f32 %v2778_v16, %v6310_v28  ;;  %v2239_v36 = vmax.f32 %v9187_v22, %v2155_v33  ;;  %v2647_v19 = vmin.f32 %v9187_v22, %v2155_v33  ;;  %v9190_v2 = vld [vmem:[#allocation61_spill] sm:$0xff] }
 0x2b2   :  { %9184 = vst [vmem:[#allocation47_spill] sm:$0xff] %v7197_v43  ;;  %v2694_v11 = vadd.f32 %v2682_v10, %v9188_v47  ;;  %v2360_v39 = vmul.f32 %v9190_v2, %v9189_v21  ;;  %v2227_v13 = vmin.f32 %v9191_v63, %v2167_v62  ;;  %v2335_v20 = vsub.f32 %v2167_v62, %v2155_v33  ;;  %v9194_v10 = vld [vmem:[#allocation97_spill] sm:$0xff]  ;;  %v9196_v2 = vld [vmem:[#allocation67_spill] sm:$0xff] }
 0x2b3   :  { %9186 = vst [vmem:[#allocation109_spill] sm:$0xff] %v7201_v44  ;;  %v2394_v37 = vsub.f32 %v2382_v5, %v7201_v44  ;;  %v2802_v50 = vmul.f32 %v2790_v59, %v2790_v59  ;;  %v2635_v28 = vmax.f32 %v9191_v63, %v2167_v62  ;;  %3884 = vrcp.f32 %v7175_v32 }
 0x2b4   :  { %v2767_v38 = vadd.f32 %v2167_v62, %v2155_v33  ;;  %v2144_v49 = vmul.f32 0.5, %v1892_v6  ;;  %v7217_v5 = vpop.eup %3880  ;;  %v2251_v9 = vsub.f32 %v2227_v13, %v2239_v36  ;;  %v7222_v56 = vadd.f32 1e-07, %v2335_v20  ;;  %v9199_v62 = vld [vmem:[#allocation95_spill] sm:$0xff] }
 0x2b5   :  { %v7214_v16 = vadd.f32 1e-07, %v2394_v37  ;;  %9193 = vst [vmem:[#allocation96_spill] sm:$0xff] %v7217_v5  ;;  %v7220_v47 = vadd.f32 %v2802_v50, %v9194_v10  ;;  %v2659_v59 = vsub.f32 %v2635_v28, %v2647_v19  ;;  %3886 = vrcp.f32 %v7197_v43  ;;  %v9200_v20 = vld [vmem:[#allocation35_spill] sm:$0xff] }
 0x2b6   :  { %v2779_v21 = vsub.f32 %v2767_v38, %v9187_v22  ;;  %v2156_v37 = vsub.f32 %v9196_v2, %v2144_v49  ;;  %v2168_v51 = vadd.f32 %v2144_v49, %v9196_v2  ;;  %v7228_v32 = vpop.eup %3882  ;;  %v7230_v6 = vadd.f32 1e-07, %v2694_v11  ;;  %v9201_v22 = vld [vmem:[#allocation45_spill] sm:$0xff]  ;;  %v9202_v38 = vld [vmem:[#allocation94_spill] sm:$0xff] }
 0x2b7   :  { %9192 = vst [vmem:[#allocation32_spill] sm:$0xff] %v7214_v16  ;;  %v2263_v33 = vmax.f32 %v2251_v9, 0.0  ;;  %v2371_v50 = vmul.f32 %v7222_v56, %v9199_v62  ;;  %v2683_v36 = vmul.f32 %v2659_v59, %v2659_v59  ;;  %3888 = vrcp.f32 %v7214_v16  ;;  %v9204_v49 = vld [vmem:[#allocation98_spill] sm:$0xff] }
 0x2b8   :  { %9195 = vst [vmem:[#allocation52_spill] sm:$0xff] %v7220_v47  ;;  %v2791_v19 = vsub.f32 %v2779_v21, %v9191_v63  ;;  %v2228_v13 = vmin.f32 %v9200_v20, %v2168_v51  ;;  %v2240_v28 = vmax.f32 %v9201_v22, %v2156_v37  ;;  %v9203_v10 = vmax.f32 %v9202_v38, 0.0 }
 0x2b9   :  { %9197 = vst [vmem:[#allocation97_spill] sm:$0xff] %v7228_v32  ;;  %v2383_v11 = vadd.f32 %v2371_v50, %v7150_v42  ;;  %v2695_v9 = vadd.f32 %v2683_v36, %v9204_v49  ;;  %v2336_v5 = vsub.f32 %v2168_v51, %v2156_v37  ;;  %v7244_v32 = vpop.eup %3884  ;;  %v2636_v44 = vmax.f32 %v9200_v20, %v2168_v51  ;;  %v9208_v50 = vld [vmem:[#allocation88_spill] sm:$0xff] }
 0x2ba   :  { %9198 = vst [vmem:[#allocation67_spill] sm:$0xff] %v7230_v6  ;;  %v7240_v2 = vmul.f32 %v2263_v33, %v9203_v10  ;;  %v2803_v59 = vmul.f32 %v2791_v19, %v2791_v19  ;;  %v2252_v43 = vsub.f32 %v2228_v13, %v2240_v28  ;;  %v2648_v21 = vmin.f32 %v9201_v22, %v2156_v37  ;;  %v1895_v10 = vpop.xlane.xlu2 %1894  ;;  %v9209_v13 = vld [vmem:[#allocation50_spill] sm:$0xff] }
 0x2bb   :  { %9205 = vst [vmem:[#allocation35_spill] sm:$0xff] %v7244_v32  ;;  %v7249_v1 = vadd.f32 1e-07, %v2695_v9  ;;  %v7251_v38 = vadd.f32 1e-07, %v2336_v5  ;;  %v2768_v33 = vadd.f32 %v2168_v51, %v2156_v37  ;;  %v7253_v42 = vpop.eup %3886  ;;  %v9210_v28 = vld [vmem:[#allocation78_spill] sm:$0xff]  ;;  %v7262_v47 = vmul.f32 %v7061_v3, %v7061_v3 }
 0x2bc   :  { %v2395_v63 = vsub.f32 %v2383_v11, %v7240_v2  ;;  %9207 = vst [vmem:[#allocation94_spill] sm:$0xff] %v7253_v42  ;;  %v7256_v36 = vadd.f32 %v2803_v59, %v9208_v50  ;;  %v2264_v49 = vmax.f32 %v2252_v43, 0.0  ;;  %v2660_v19 = vsub.f32 %v2636_v44, %v2648_v21  ;;  %v9211_v5 = vld [vmem:[#allocation79_spill] sm:$0xff]  ;;  %v9213_v43 = vld [vmem:[#allocation49_spill] sm:$0xff]  ;;  %v1898_v50 = vpop.xlane.xlu0 %1897 }
 0x2bd   :  { %9206 = vst [vmem:[#allocation45_spill] sm:$0xff] %v7251_v38  ;;  %v2361_v32 = vmul.f32 %v9210_v28, %v9209_v13  ;;  %3890 = vrcp.f32 %v7230_v6  ;;  %v2372_v51 = vmul.f32 %v7251_v38, %v9211_v5  ;;  %v2780_v37 = vsub.f32 %v2768_v33, %v9201_v22  ;;  %v7268_v11 = vpop.eup %3888  ;;  %v9216_v42 = vld [vmem:[#allocation31_spill] sm:$0xff]  ;;  %v9217_v5 = vld [vmem:[#allocation76_spill] sm:$0xff] }
 0x2be   :  { %9212 = vst [vmem:[#allocation98_spill] sm:$0xff] %v7268_v11  ;;  %3892 = vrcp.f32 %v7222_v56  ;;  %v9214_v44 = vmax.f32 %v9213_v43, 0.0  ;;  %v2684_v59 = vmul.f32 %v2660_v19, %v2660_v19  ;;  %v2145_v21 = vmul.f32 0.5, %v1895_v10  ;;  %v9218_v22 = vld [vmem:[#allocation87_spill] sm:$0xff]  ;;  %v9219_v11 = vld [vmem:[#allocation64_spill] sm:$0xff] }
 0x2bf   :  { %v7275_v3 = vadd.f32 1e-07, %v2395_v63  ;;  %v2384_v13 = vadd.f32 %v2372_v51, %v2360_v39  ;;  %v2792_v28 = vsub.f32 %v2780_v37, %v9200_v20  ;;  %v2362_v6 = vmul.f32 %v9217_v5, %v9216_v42  ;;  %v9220_v63 = vld [vmem:[#allocation33_spill] sm:$0xff]  ;;  %v1901_v20 = vpop.xlane.xlu1 %1900  ;;  %v9222_v51 = vld [vmem:[#allocation51_spill] sm:$0xff] }
 0x2c0   :  { %v7273_v9 = vmul.f32 %v2264_v49, %v9214_v44  ;;  %3894 = vrcp.f32 %v7249_v1  ;;  %v2696_v33 = vadd.f32 %v2684_v59, %v9218_v22  ;;  %v2157_v16 = vsub.f32 %v9219_v11, %v2145_v21  ;;  %v9221_v44 = vld [vmem:[#allocation73_spill] sm:$0xff] }
 0x2c1   :  { %v2169_v49 = vadd.f32 %v2145_v21, %v9219_v11  ;;  %v2804_v10 = vmul.f32 %v2792_v28, %v2792_v28  ;;  %v2146_v43 = vmul.f32 0.5, %v1898_v50  ;;  %v7287_v39 = vmul.f32 %v9221_v44, %v9220_v63  ;;  %v9223_v42 = vld [vmem:[#allocation57_spill] sm:$0xff] }
 0x2c2   :  { %9215 = vst [vmem:[#allocation88_spill] sm:$0xff] %v7273_v9  ;;  %v2396_v19 = vsub.f32 %v2384_v13, %v7273_v9  ;;  %3896 = vrcp.f32 %v7251_v38  ;;  %v2241_v5 = vmax.f32 %v9223_v42, %v2157_v16  ;;  %v2649_v11 = vmin.f32 %v9223_v42, %v2157_v16 }
 0x2c3   :  { %v2229_v37 = vmin.f32 %v9222_v51, %v2169_v49  ;;  %v2337_v59 = vsub.f32 %v2169_v49, %v2157_v16  ;;  %v7292_v22 = vpop.eup %3890  ;;  %3898 = vrcp.f32 %v7275_v3  ;;  %v7296_v13 = vadd.f32 %v2804_v10, %v6995_v46 }
 0x2c4   :  { %9224 = vst [vmem:[#allocation49_spill] sm:$0xff] %v7292_v22  ;;  %v2637_v28 = vmax.f32 %v9222_v51, %v2169_v49  ;;  %v7300_v21 = vpop.eup %3892  ;;  %v2769_v44 = vadd.f32 %v2169_v49, %v2157_v16  ;;  %v2147_v38 = vmul.f32 0.5, %v1901_v20  ;;  %v7304_v9 = vadd.f32 1e-07, %v2696_v33  ;;  %v9228_v22 = vld [vmem:[#allocation48_spill] sm:$0xff]  ;;  %v9230_v16 = vld [vmem:[#allocation58_spill] sm:$0xff] }
 0x2c5   :  { %9225 = vst [vmem:[#allocation87_spill] sm:$0xff] %v7296_v13  ;;  %v2253_v50 = vsub.f32 %v2229_v37, %v2241_v5  ;;  %v7302_v63 = vadd.f32 1e-07, %v2337_v59  ;;  %v2158_v24 = vsub.f32 %v9228_v22, %v2146_v43  ;;  %v2170_v29 = vadd.f32 %v2146_v43, %v9228_v22  ;;  %v9231_v33 = vld [vmem:[#allocation38_spill] sm:$0xff] }
 0x2c6   :  { %9227 = vst [vmem:[#allocation51_spill] sm:$0xff] %v7304_v9  ;;  %v2661_v27 = vsub.f32 %v2637_v28, %v2649_v11  ;;  %v7308_v46 = vpop.eup %3894  ;;  %v7310_v10 = vadd.f32 1e-07, %v2396_v19  ;;  %v2781_v5 = vsub.f32 %v2769_v44, %v9223_v42  ;;  %v9233_v43 = vmax.f32 %v6980_v61, 0.0  ;;  %v9235_v42 = vld [vmem:[#allocation39_spill] sm:$0xff] }
 0x2c7   :  { %9226 = vst [vmem:[#allocation64_spill] sm:$0xff] %v7302_v63  ;;  %v2265_v13 = vmax.f32 %v2253_v50, 0.0  ;;  %v2373_v52 = vmul.f32 %v7302_v63, %v6991_v26  ;;  %v2230_v49 = vmin.f32 %v9230_v16, %v2170_v29  ;;  %v2242_v20 = vmax.f32 %v9231_v33, %v2158_v24 }
 0x2c8   :  { %9229 = vst [vmem:[#allocation57_spill] sm:$0xff] %v7310_v10  ;;  %v2685_v37 = vmul.f32 %v2661_v27, %v2661_v27  ;;  %v2338_v59 = vsub.f32 %v2170_v29, %v2158_v24  ;;  %v7317_v28 = vpop.eup %3896  ;;  %v2793_v11 = vsub.f32 %v2781_v5, %v9222_v51  ;;  %v2638_v50 = vmax.f32 %v9230_v16, %v2170_v29 }
 0x2c9   :  { %9232 = vst [vmem:[#allocation48_spill] sm:$0xff] %v7317_v28  ;;  %v7321_v22 = vmul.f32 %v2265_v13, %v9233_v43  ;;  %v2385_v19 = vadd.f32 %v2373_v52, %v2361_v32  ;;  %v7325_v26 = vpop.eup %3898  ;;  %v2254_v44 = vsub.f32 %v2230_v49, %v2242_v20  ;;  %v2650_v8 = vmin.f32 %v9231_v33, %v2158_v24  ;;  %v9236_v13 = vld [vmem:[#allocation69_spill] sm:$0xff]  ;;  %v9237_v32 = vld [vmem:[#allocation54_spill] sm:$0xff] }
 0x2ca   :  { %v2697_v27 = vadd.f32 %v2685_v37, %v9235_v42  ;;  %v7328_v62 = vadd.f32 1e-07, %v2338_v59  ;;  %v2805_v53 = vmul.f32 %v2793_v11, %v2793_v11  ;;  %v2770_v61 = vadd.f32 %v2170_v29, %v2158_v24 }
 0x2cb   :  { %9234 = vst [vmem:[#allocation58_spill] sm:$0xff] %v7321_v22  ;;  %v2397_v28 = vsub.f32 %v2385_v19, %v7321_v22  ;;  %v2159_v43 = vsub.f32 %v9236_v13, %v2147_v38  ;;  %3900 = vrcp.f32 %v7304_v9  ;;  %v2266_v52 = vmax.f32 %v2254_v44, 0.0 }
 0x2cc   :  { %v2374_v51 = vmul.f32 %v7328_v62, %v9237_v32  ;;  %v2662_v5 = vsub.f32 %v2638_v50, %v2650_v8  ;;  %v7338_v37 = vmul.f32 %v7078_v55, %v7078_v55  ;;  %3902 = vrcp.f32 %v7310_v10  ;;  %v9241_v50 = vld [vmem:[#allocation55_spill] sm:$0xff] }
 0x2cd   :  { %v7342_v49 = vadd.f32 %v2805_v53, %v7016_v35  ;;  %v2782_v29 = vsub.f32 %v2770_v61, %v9231_v33  ;;  %3904 = vrcp.f32 %v7302_v63  ;;  %v9239_v24 = vmax.f32 %v6988_v31, 0.0  ;;  %v1904_v35 = vpop.xlane.xlu2 %1903  ;;  %v9242_v33 = vld [vmem:[#allocation80_spill] sm:$0xff]  ;;  %v9243_v31 = vld [vmem:[#allocation41_spill] sm:$0xff] }
 0x2ce   :  { %v2386_v59 = vadd.f32 %v2374_v51, %v2362_v6  ;;  %v2686_v19 = vmul.f32 %v2662_v5, %v2662_v5  ;;  %v7350_v8 = vadd.f32 1e-07, %v2697_v27  ;;  %v2171_v11 = vadd.f32 %v2147_v38, %v9236_v13  ;;  %v9245_v51 = vld [vmem:[#allocation40_spill] sm:$0xff] }
 0x2cf   :  { %9238 = vst [vmem:[#allocation38_spill] sm:$0xff] %v7342_v49  ;;  %v7348_v20 = vmul.f32 %v2266_v52, %v9239_v24  ;;  %v2794_v55 = vsub.f32 %v2782_v29, %v9230_v16  ;;  %v2243_v42 = vmax.f32 %v9241_v50, %v2159_v43  ;;  %v2651_v61 = vmin.f32 %v9241_v50, %v2159_v43  ;;  %v9244_v52 = vld [vmem:[#allocation68_spill] sm:$0xff] }
 0x2d0   :  { %9240 = vst [vmem:[#allocation39_spill] sm:$0xff] %v7350_v8  ;;  %v2698_v44 = vadd.f32 %v2686_v19, %v9242_v33  ;;  %v2364_v24 = vmul.f32 %v9244_v52, %v9243_v31  ;;  %v2231_v27 = vmin.f32 %v9245_v51, %v2171_v11  ;;  %v2339_v5 = vsub.f32 %v2171_v11, %v2159_v43  ;;  %v9249_v33 = vld [vmem:[#allocation28_spill] sm:$0xff] }
 0x2d1   :  { %v2398_v53 = vsub.f32 %v2386_v59, %v7348_v20  ;;  %v2806_v6 = vmul.f32 %v2794_v55, %v2794_v55  ;;  %v2639_v16 = vmax.f32 %v9245_v51, %v2171_v11  ;;  %v7362_v29 = vpop.eup %3900  ;;  %v7364_v38 = vadd.f32 1e-07, %v2397_v28 }
 0x2d2   :  { %9246 = vst [vmem:[#allocation69_spill] sm:$0xff] %v7362_v29  ;;  %3906 = vrcp.f32 %v7328_v62  ;;  %v2771_v13 = vadd.f32 %v2171_v11, %v2159_v43  ;;  %v2148_v59 = vmul.f32 0.5, %v1904_v35  ;;  %v7367_v19 = vpop.eup %3902  ;;  %v2255_v31 = vsub.f32 %v2231_v27, %v2243_v42  ;;  %v9252_v29 = vld [vmem:[#allocation74_spill] sm:$0xff] }
 0x2d3   :  { %9247 = vst [vmem:[#allocation55_spill] sm:$0xff] %v7364_v38  ;;  %v7370_v9 = vadd.f32 %v2806_v6, %v9249_v33  ;;  %v7372_v55 = vadd.f32 1e-07, %v2339_v5  ;;  %v2663_v52 = vsub.f32 %v2639_v16, %v2651_v61  ;;  %v7374_v10 = vpop.eup %3904  ;;  %3908 = vrcp.f32 %v7350_v8  ;;  %v9254_v5 = vld [vmem:[#allocation56_spill] sm:$0xff]  ;;  %v9255_v33 = vld [vmem:[#allocation59_spill] sm:$0xff] }
 0x2d4   :  { %9248 = vst [vmem:[#allocation80_spill] sm:$0xff] %v7367_v19  ;;  %v2783_v28 = vsub.f32 %v2771_v13, %v9241_v50  ;;  %v2160_v63 = vsub.f32 %v9252_v29, %v2148_v59  ;;  %v2172_v43 = vadd.f32 %v2148_v59, %v9252_v29  ;;  %v7380_v11 = vadd.f32 1e-07, %v2398_v53  ;;  %v9253_v19 = vld [vmem:[#allocation99_spill] sm:$0xff]  ;;  %v9259_v29 = vld [vmem:[#allocation36_spill] sm:$0xff] }
 0x2d5   :  { %9250 = vst [vmem:[#allocation40_spill] sm:$0xff] %v7372_v55  ;;  %v2267_v35 = vmax.f32 %v2255_v31, 0.0  ;;  %v2375_v6 = vmul.f32 %v7372_v55, %v9253_v19  ;;  %v2687_v42 = vmul.f32 %v2663_v52, %v2663_v52  ;;  %v7384_v27 = vadd.f32 1e-07, %v2698_v44  ;;  %v9256_v50 = vld [vmem:[#allocation27_spill] sm:$0xff] }
 0x2d6   :  { %9251 = vst [vmem:[#allocation28_spill] sm:$0xff] %v7374_v10  ;;  %v2795_v61 = vsub.f32 %v2783_v28, %v9245_v51  ;;  %v2232_v16 = vmin.f32 %v9254_v5, %v2172_v43  ;;  %v2244_v10 = vmax.f32 %v9255_v33, %v2160_v63  ;;  %v9257_v13 = vmax.f32 %v9256_v50, 0.0 }
 0x2d7   :  { %v2387_v53 = vadd.f32 %v2375_v6, %v7287_v39  ;;  %v2699_v31 = vadd.f32 %v2687_v42, %v9259_v29  ;;  %v2340_v59 = vsub.f32 %v2172_v43, %v2160_v63  ;;  %v2640_v19 = vmax.f32 %v9254_v5, %v2172_v43  ;;  %v9262_v6 = vld [vmem:[#allocation29_spill] sm:$0xff] }
 0x2d8   :  { %v7391_v22 = vmul.f32 %v2267_v35, %v9257_v13  ;;  %v7395_v49 = vpop.eup %3906  ;;  %v2807_v52 = vmul.f32 %v2795_v61, %v2795_v61  ;;  %v2256_v44 = vsub.f32 %v2232_v16, %v2244_v10  ;;  %v2652_v51 = vmin.f32 %v9255_v33, %v2160_v63  ;;  %v1907_v13 = vpop.xlane.xlu0 %1906  ;;  %v9264_v10 = vld [vmem:[#allocation44_spill] sm:$0xff]  ;;  %v9265_v16 = vld [vmem:[#allocation18_spill] sm:$0xff] }
 0x2d9   :  { %3910 = vrcp.f32 %v7364_v38  ;;  %v7401_v50 = vadd.f32 1e-07, %v2340_v59  ;;  %v2772_v35 = vadd.f32 %v2172_v43, %v2160_v63  ;;  %v7403_v39 = vpop.eup %3908  ;;  %v2365_v8 = vmul.f32 %v9265_v16, %v9264_v10  ;;  %v9267_v38 = vld [vmem:[#allocation100_spill] sm:$0xff] }
 0x2da   :  { %9258 = vst [vmem:[#allocation74_spill] sm:$0xff] %v7391_v22  ;;  %v2399_v28 = vsub.f32 %v2387_v53, %v7391_v22  ;;  %v7406_v42 = vadd.f32 %v2807_v52, %v9262_v6  ;;  %v2268_v29 = vmax.f32 %v2256_v44, 0.0  ;;  %v2664_v61 = vsub.f32 %v2640_v19, %v2652_v51  ;;  %v1910_v44 = vpop.xlane.xlu1 %1909  ;;  %v9271_v22 = vld [vmem:[#allocation46_spill] sm:$0xff] }
 0x2db   :  { %9260 = vst [vmem:[#allocation56_spill] sm:$0xff] %v7401_v50  ;;  %3912 = vrcp.f32 %v7380_v11  ;;  %v7411_v32 = vadd.f32 1e-07, %v2699_v31  ;;  %v2376_v53 = vmul.f32 %v7401_v50, %v9267_v38  ;;  %v2784_v63 = vsub.f32 %v2772_v35, %v9255_v33  ;;  %v9273_v35 = vld [vmem:[#allocation70_spill] sm:$0xff] }
 0x2dc   :  { %9261 = vst [vmem:[#allocation59_spill] sm:$0xff] %v7403_v39  ;;  %3914 = vrcp.f32 %v7384_v27  ;;  %v9268_v43 = vmax.f32 %v7023_v54, 0.0  ;;  %v2688_v52 = vmul.f32 %v2664_v61, %v2664_v61  ;;  %v2149_v19 = vmul.f32 0.5, %v1907_v13  ;;  %v9275_v13 = vld [vmem:[#allocation81_spill] sm:$0xff] }
 0x2dd   :  { %9263 = vst [vmem:[#allocation27_spill] sm:$0xff] %v7406_v42  ;;  %v7421_v51 = vadd.f32 1e-07, %v2399_v28  ;;  %v2388_v6 = vadd.f32 %v2376_v53, %v2364_v24  ;;  %v2796_v31 = vsub.f32 %v2784_v63, %v9254_v5  ;;  %v9272_v42 = vld [vmem:[#allocation15_spill] sm:$0xff]  ;;  %3916 = vrcp.f32 %v7372_v55  ;;  %v9276_v63 = vld [vmem:[#allocation42_spill] sm:$0xff] }
 0x2de   :  { %9266 = vst [vmem:[#allocation36_spill] sm:$0xff] %v7411_v32  ;;  %v7419_v59 = vmul.f32 %v2268_v29, %v9268_v43  ;;  %v7426_v39 = vmul.f32 %v9272_v42, %v9271_v22  ;;  %v2700_v33 = vadd.f32 %v2688_v52, %v7052_v25  ;;  %v2161_v54 = vsub.f32 %v9273_v35, %v2149_v19 }
 0x2df   :  { %9270 = vst [vmem:[#allocation18_spill] sm:$0xff] %v7421_v51  ;;  %v2173_v29 = vadd.f32 %v2149_v19, %v9273_v35  ;;  %v7432_v61 = vpop.eup %3910  ;;  %3918 = vrcp.f32 %v7411_v32  ;;  %v2808_v28 = vmul.f32 %v2796_v31, %v2796_v31  ;;  %v2150_v5 = vmul.f32 0.5, %v1910_v44 }
 0x2e0   :  { %9269 = vst [vmem:[#allocation29_spill] sm:$0xff] %v7419_v59  ;;  %v2400_v24 = vsub.f32 %v2388_v6, %v7419_v59  ;;  %3920 = vrcp.f32 %v7401_v50  ;;  %v2245_v43 = vmax.f32 %v9276_v63, %v2161_v54  ;;  %v2653_v6 = vmin.f32 %v9276_v63, %v2161_v54 }
 0x2e1   :  { %9274 = vst [vmem:[#allocation70_spill] sm:$0xff] %v7432_v61  ;;  %v2233_v53 = vmin.f32 %v9275_v13, %v2173_v29  ;;  %v2341_v22 = vsub.f32 %v2173_v29, %v2161_v54  ;;  %v7439_v25 = vpop.eup %3912  ;;  %3922 = vrcp.f32 %v7421_v51  ;;  %v7443_v52 = vadd.f32 %v2808_v28, %v7070_v7  ;;  %v9278_v51 = vld [vmem:[#allocation75_spill] sm:$0xff] }
 0x2e2   :  { %v2641_v19 = vmax.f32 %v9275_v13, %v2173_v29  ;;  %v7447_v31 = vpop.eup %3914  ;;  %v2773_v42 = vadd.f32 %v2173_v29, %v2161_v54  ;;  %v2416_v55 = vmul.f32 %v7173_v12, %v7116_v14  ;;  %v7453_v38 = vadd.f32 1e-07, %v2700_v33  ;;  %v9281_v33 = vld [vmem:[#allocation66_spill] sm:$0xff] }
 0x2e3   :  { %9277 = vst [vmem:[#allocation81_spill] sm:$0xff] %v7443_v52  ;;  %v2257_v44 = vsub.f32 %v2233_v53, %v2245_v43  ;;  %v7449_v35 = vadd.f32 1e-07, %v2341_v22  ;;  %v2162_v50 = vsub.f32 %v9278_v51, %v2150_v5  ;;  %v2174_v7 = vadd.f32 %v2150_v5, %v9278_v51  ;;  %v7457_v28 = vpop.eup %3916 }
 0x2e4   :  { %v2665_v32 = vsub.f32 %v2641_v19, %v2653_v6  ;;  %9279 = vst [vmem:[#allocation42_spill] sm:$0xff] %v7457_v28  ;;  %v7459_v59 = vadd.f32 1e-07, %v2400_v24  ;;  %v2785_v54 = vsub.f32 %v2773_v42, %v9276_v63  ;;  %v9282_v19 = vld [vmem:[#allocation82_spill] sm:$0xff]  ;;  %v9284_v51 = vmax.f32 %v7045_v34, 0.0 }
 0x2e5   :  { %v2269_v52 = vmax.f32 %v2257_v44, 0.0  ;;  %v2377_v22 = vmul.f32 %v7449_v35, %v7056_v57  ;;  %v7464_v29 = vpop.eup %3918  ;;  %v2234_v43 = vmin.f32 %v9281_v33, %v2174_v7  ;;  %v2246_v6 = vmax.f32 %v9282_v19, %v2162_v50 }
 0x2e6   :  { %9280 = vst [vmem:[#allocation75_spill] sm:$0xff] %v7464_v29  ;;  %v2689_v53 = vmul.f32 %v2665_v32, %v2665_v32  ;;  %v2342_v10 = vsub.f32 %v2174_v7, %v2162_v50  ;;  %v7468_v61 = vpop.eup %3920  ;;  %v2797_v44 = vsub.f32 %v2785_v54, %v9275_v13  ;;  %v2642_v28 = vmax.f32 %v9281_v33, %v2174_v7 }
 0x2e7   :  { %9283 = vst [vmem:[#allocation66_spill] sm:$0xff] %v7468_v61  ;;  %v7472_v24 = vmul.f32 %v2269_v52, %v9284_v51  ;;  %v2389_v5 = vadd.f32 %v2377_v22, %v2365_v8  ;;  %vm2420_vm9 = vweird.f32 %v7116_v14  ;;  %v7477_v42 = vpop.eup %3922  ;;  %v2258_v63 = vsub.f32 %v2234_v43, %v2246_v6  ;;  %v9285_v22 = vld [vmem:[#allocation101_spill] sm:$0xff] }
 0x2e8   :  { %v2701_v32 = vadd.f32 %v2689_v53, %v7085_v60  ;;  %v7480_v29 = vadd.f32 1e-07, %v2342_v10  ;;  %v2654_v61 = vmin.f32 %v9282_v19, %v2162_v50  ;;  %v2809_v52 = vmul.f32 %v2797_v44, %v2797_v44 }
 0x2e9   :  { %v2401_v34 = vsub.f32 %v2389_v5, %v7472_v24  ;;  %v2774_v51 = vadd.f32 %v2174_v7, %v2162_v50  ;;  %v2417_v8 = vsub.f32 1.0, %v2416_v55  ;;  %3924 = vrcp.f32 %v7453_v38  ;;  %v9286_v50 = vld [vmem:[#allocation30_spill] sm:$0xff] }
 0x2ea   :  { %v2270_v13 = vmax.f32 %v2258_v63, 0.0  ;;  %v2378_v54 = vmul.f32 %v7480_v29, %v9285_v22  ;;  %v2666_v57 = vsub.f32 %v2642_v28, %v2654_v61  ;;  %3926 = vrcp.f32 %v7459_v59 }
 0x2eb   :  { %v7488_v60 = vadd.f32 1e-07, %v2701_v32  ;;  %v7491_v10 = vadd.f32 %v2809_v52, %v7192_v40  ;;  %v2786_v53 = vsub.f32 %v2774_v51, %v9282_v19  ;;  %v7494_v43 = vadd.f32 1e-07, %v2401_v34 }
 0x2ec   :  { %v9287_v55 = vmax.f32 %v9286_v50, 0.0  ;;  %v2390_v6 = vadd.f32 %v2378_v54, %v7426_v39  ;;  %v2690_v5 = vmul.f32 %v2666_v57, %v2666_v57  ;;  %3928 = vrcp.f32 %v7449_v35 }
 0x2ed   :  { %v2798_v61 = vsub.f32 %v2786_v53, %v9281_v33  ;;  %v2418_v28 = vmul.f32 %v7173_v12, %v2417_v8  ;;  %vm2421_vm6 = vweird.f32 %v7173_v12  ;;  %v2424_v44 = vand.u32 2147483647, %v7116_v14 }
 0x2ee   :  { %v7498_v7 = vmul.f32 %v2270_v13, %v9287_v55  ;;  %v2702_v19 = vadd.f32 %v2690_v5, %v7262_v47  ;;  %v2426_v32 = vand.u32 2147483648, %v7116_v14  ;;  %3930 = vrcp.f32 %v7488_v60  ;;  %vm2422_vm14 = vmor %vm2420_vm9, %vm2421_vm6 }
 0x2ef   :  { %v2810_v39 = vmul.f32 %v2798_v61, %v2798_v61  ;;  %v2419_v57 = vadd.f32 %v7173_v12, %v2418_v28  ;;  %v2836_v33 = vmul.f32 %v7158_v45, %v7109_v18  ;;  %v7513_v63 = vpop.eup %3924  ;;  %3932 = vrcp.f32 %v7494_v43  ;;  %v9293_v61 = vld [vmem:[#allocation63_spill] sm:$0xff] }
 0x2f0   :  { %9288 = vst [vmem:[#allocation82_spill] sm:$0xff] %v7498_v7  ;;  %v2402_v40 = vsub.f32 %v2390_v6, %v7498_v7  ;;  %v7518_v52 = vadd.f32 1e-07, %v2702_v19  ;;  %v2427_v47 = vor.u32 1.1754944e-38, %v2426_v32  ;;  %v7522_v51 = vpop.eup %3926  ;;  %vm2425_vm12 = vcmp.eq.f32.partialorder %v2424_v44, 8.507059e+37 }
 0x2f1   :  { %v7525_v8 = vadd.f32 %v2810_v39, %v7338_v37  ;;  %v2423_v13 = vsel %vm2422_vm14, %v7173_v12, %v2419_v57  ;;  %v2837_v54 = vsub.f32 1.0, %v2836_v33  ;;  %v2823_v50 = vmul.f32 0.25, %v7112_v15  ;;  %v9292_v15 = vld [vmem:[#allocation65_spill] sm:$0xff] }
 0x2f2   :  { %v7516_v34 = vadd.f32 1e-07, %v2402_v40  ;;  %v2428_v53 = vsel %vm2425_vm12, %v2427_v47, %v2423_v13  ;;  %v2844_v55 = vand.u32 2147483647, %v7109_v18  ;;  %v7531_v6 = vpop.eup %3928  ;;  %vm2841_vm13 = vweird.f32 %v7158_v45 }
 0x2f3   :  { %9289 = vst [vmem:[#allocation30_spill] sm:$0xff] %v7525_v8  ;;  %v2429_v14 = vmul.f32 %v2428_v53, %v7101_v0  ;;  %v2838_v5 = vmul.f32 %v7158_v45, %v2837_v54  ;;  %v2846_v37 = vand.u32 2147483648, %v7109_v18  ;;  %vm2840_vm7 = vweird.f32 %v7109_v18 }
 0x2f4   :  { %3934 = vrcp.f32 %v7516_v34  ;;  %vm7539_vm8 = vcmp.eq.f32.partialorder %v2844_v55, 8.507059e+37  ;;  %v3016_v28 = vmul.f32 %v9293_v61, %v9292_v15  ;;  %v7545_v40 = vpop.eup %3930  ;;  %vm3020_vm10 = vweird.f32 %v9292_v15  ;;  %vm2842_vm11 = vmor %vm2840_vm7, %vm2841_vm13 }
 0x2f5   :  { %3936 = vrcp.f32 %v7518_v52  ;;  %v2839_v0 = vadd.f32 %v7158_v45, %v2838_v5  ;;  %v3024_v19 = vand.u32 2147483647, %v9292_v15  ;;  %v3026_v44 = vand.u32 2147483648, %v9292_v15  ;;  %v7551_v32 = vpop.eup %3932 }
 0x2f6   :  { %v2847_v18 = vor.u32 1.1754944e-38, %v2846_v37  ;;  %v3017_v39 = vsub.f32 1.0, %v3016_v28  ;;  %vm3021_vm5 = vweird.f32 %v9293_v61  ;;  %v3196_v57 = vmul.f32 %v7144_v4, %v7087_v58 }
 0x2f7   :  { %v2843_v33 = vsel %vm2842_vm11, %v7158_v45, %v2839_v0  ;;  %vm3200_vm9 = vweird.f32 %v7087_v58  ;;  %vm3201_vm6 = vweird.f32 %v7144_v4  ;;  %v3204_v47 = vand.u32 2147483647, %v7087_v58  ;;  %v9296_v0 = vld [vmem:[#allocation2_spill] sm:$0xff]  ;;  %vm3022_vm13 = vmor %vm3020_vm10, %vm3021_vm5 }
 0x2f8   :  { %v2848_v54 = vsel %vm7539_vm8, %v2847_v18, %v2843_v33  ;;  %v3018_v53 = vmul.f32 %v9293_v61, %v3017_v39  ;;  %v3197_v55 = vsub.f32 1.0, %v3196_v57  ;;  %v3206_v5 = vand.u32 2147483648, %v7087_v58  ;;  %vm3202_vm8 = vmor %vm3200_vm9, %vm3201_vm6 }
 0x2f9   :  { %v2849_v37 = vmul.f32 %v2848_v54, %v2823_v50  ;;  %vm7566_vm14 = vcmp.eq.f32.partialorder %v3024_v19, 8.507059e+37  ;;  %v3027_v45 = vor.u32 1.1754944e-38, %v3026_v44  ;;  %v3375_v22 = vsel %vm487_vm15, %v2429_v14, 0.0 }
 0x2fa   :  { %v7560_v13 = vpop.eup %3934  ;;  %v3019_v8 = vadd.f32 %v9293_v61, %v3018_v53  ;;  %v3198_v12 = vmul.f32 %v7144_v4, %v3197_v55  ;;  %vm7576_vm12 = vcmp.eq.f32.partialorder %v3204_v47, 8.507059e+37  ;;  %v2476_v50 = vmul.f32 %v7325_v26, %v7275_v3 }
 0x2fb   :  { %v7572_v7 = vpop.eup %3936  ;;  %v3207_v19 = vor.u32 1.1754944e-38, %v3206_v5  ;;  %v3387_v14 = vsel %vm764_vm0, %v2849_v37, %v3375_v22  ;;  %vm3435_vm7 = vcmp.eq.s32.totalorder %v9296_v0, 5  ;;  %v2484_v44 = vand.u32 2147483647, %v7275_v3 }
 0x2fc   :  { %v3023_v39 = vsel %vm3022_vm13, %v9293_v61, %v3019_v8  ;;  %v3199_v57 = vadd.f32 %v7144_v4, %v3198_v12  ;;  %v2477_v33 = vsub.f32 1.0, %v2476_v50  ;;  %v2486_v47 = vand.u32 2147483648, %v7275_v3  ;;  %v9299_v8 = vld [vmem:[#allocation83_spill] sm:$0xff] }
 0x2fd   :  { %v3028_v54 = vsel %vm7566_vm14, %v3027_v45, %v3023_v39  ;;  %vm2480_vm10 = vweird.f32 %v7275_v3  ;;  %vm2481_vm11 = vweird.f32 %v7325_v26  ;;  %v2896_v22 = vmul.f32 %v7308_v46, %v7249_v1  ;;  %v9302_v45 = vld [vmem:[#allocation23_spill] sm:$0xff]  ;;  %v9304_v3 = vld [vmem:[#allocation4_spill] sm:$0xff] }
 0x2fe   :  { %v3029_v15 = vmul.f32 %v3028_v54, %v9299_v8  ;;  %v3203_v61 = vsel %vm3202_vm8, %v7144_v4, %v3199_v57  ;;  %v2478_v53 = vmul.f32 %v7325_v26, %v2477_v33  ;;  %vm7606_vm5 = vcmp.eq.f32.partialorder %v2484_v44, 8.507059e+37  ;;  %vm2482_vm6 = vmor %vm2480_vm10, %vm2481_vm11 }
 0x2ff   :  { %v3208_v58 = vsel %vm7576_vm12, %v3207_v19, %v3203_v61  ;;  %v2487_v5 = vor.u32 1.1754944e-38, %v2486_v47  ;;  %v2827_v37 = vmul.f32 0.25, %v7256_v36  ;;  %v2897_v28 = vsub.f32 1.0, %v2896_v22  ;;  %v9303_v36 = vld [vmem:[#allocation19_spill] sm:$0xff]  ;;  %v3439_v47 = vpop.permute.xlu2 %3438 }
 0x300   :  { %v3209_v12 = vmul.f32 %v3208_v58, %v9302_v45  ;;  %v3399_v50 = vsel %vm1041_vm2, %v3029_v15, %v3387_v14  ;;  %v2479_v4 = vadd.f32 %v7325_v26, %v2478_v53  ;;  %vm2901_vm9 = vweird.f32 %v7308_v46 }
 0x301   :  { %v2898_v44 = vmul.f32 %v7308_v46, %v2897_v28  ;;  %v2904_v18 = vand.u32 2147483647, %v7249_v1  ;;  %v2906_v19 = vand.u32 2147483648, %v7249_v1  ;;  %v3076_v39 = vmul.f32 %v9303_v36, %v6789_v17 }
 0x302   :  { %v3411_v57 = vsel %vm1318_vm4, %v3209_v12, %v3399_v50  ;;  %v2483_v14 = vsel %vm2482_vm6, %v7325_v26, %v2479_v4  ;;  %vm2900_vm14 = vweird.f32 %v7249_v1  ;;  %vm3080_vm12 = vweird.f32 %v6789_v17 }
 0x303   :  { %v3423_v33 = vsel %vm424_vm1, %v9304_v3, %v3411_v57  ;;  %v2488_v54 = vsel %vm7606_vm5, %v2487_v5, %v2483_v14  ;;  %v2899_v22 = vadd.f32 %v7308_v46, %v2898_v44  ;;  %v2907_v8 = vor.u32 1.1754944e-38, %v2906_v19  ;;  %vm2902_vm13 = vmor %vm2900_vm14, %vm2901_vm9  ;;  %v9319_v14 = vld [vmem:[#allocation103_spill] sm:$0xff] }
 0x304   :  { %v3496_v15 = vsel %vm3435_vm7, %v3439_v47, %v3423_v33  ;;  %v2489_v26 = vmul.f32 %v2488_v54, %v7240_v2  ;;  %v3077_v1 = vsub.f32 1.0, %v3076_v39  ;;  %v3084_v61 = vand.u32 2147483647, %v6789_v17 }
 0x305   :  { %3508 = vst.msk [vmem:[%s8442_s5] sm:$0xff] %vm374_vm3, %v3496_v15  ;;  %v2903_v53 = vsel %vm2902_vm13, %v7308_v46, %v2899_v22  ;;  %vm2905_vm8 = vcmp.eq.f32.partialorder %v2904_v18, 8.507059e+37  ;;  %v3086_v55 = vand.u32 2147483648, %v6789_v17  ;;  %v3256_v58 = vmul.f32 %v7300_v21, %v7222_v56  ;;  %v9309_v15 = vld [vmem:[#allocation107_spill] sm:$0xff] }
 0x306   :  { %v2908_v2 = vsel %vm2905_vm8, %v2907_v8, %v2903_v53  ;;  %v3078_v5 = vmul.f32 %v9303_v36, %v3077_v1  ;;  %vm3081_vm10 = vweird.f32 %v9303_v36  ;;  %vm3260_vm11 = vweird.f32 %v7222_v56  ;;  %v9312_v53 = vld [vmem:[#allocation104_spill] sm:$0xff] }
 0x307   :  { %v2909_v28 = vmul.f32 %v2908_v2, %v2827_v37  ;;  %vm7653_vm5 = vcmp.eq.f32.partialorder %v3084_v61, 8.507059e+37  ;;  %v3257_v12 = vsub.f32 1.0, %v3256_v58  ;;  %v3264_v46 = vand.u32 2147483647, %v7222_v56  ;;  %vm3082_vm9 = vmor %vm3080_vm12, %vm3081_vm10 }
 0x308   :  { %v3079_v50 = vadd.f32 %v9303_v36, %v3078_v5  ;;  %v3266_v4 = vand.u32 2147483648, %v7222_v56  ;;  %v3379_v44 = vsel %vm487_vm15, %v2489_v26, 0.0  ;;  %v2431_v18 = vmul.f32 %v7188_v30, %v7142_v41  ;;  %v9313_v5 = vld [vmem:[#allocation95_spill] sm:$0xff] }
 0x309   :  { %v3087_v37 = vor.u32 1.1754944e-38, %v3086_v55  ;;  %v3258_v19 = vmul.f32 %v7300_v21, %v3257_v12  ;;  %vm3261_vm6 = vweird.f32 %v7300_v21  ;;  %v3391_v39 = vsel %vm764_vm0, %v2909_v28, %v3379_v44 }
 0x30a   :  { %v3083_v57 = vsel %vm3082_vm9, %v9303_v36, %v3079_v50  ;;  %vm7671_vm14 = vcmp.eq.f32.partialorder %v3264_v46, 8.507059e+37  ;;  %v3267_v3 = vor.u32 1.1754944e-38, %v3266_v4  ;;  %v2432_v33 = vsub.f32 1.0, %v2431_v18  ;;  %vm3262_vm12 = vmor %vm3260_vm11, %vm3261_vm6  ;;  %v9314_v50 = vld [vmem:[#allocation53_spill] sm:$0xff] }
 0x30b   :  { %v3088_v17 = vsel %vm7653_vm5, %v3087_v37, %v3083_v57  ;;  %v3259_v47 = vadd.f32 %v7300_v21, %v3258_v19  ;;  %v2439_v54 = vand.u32 2147483647, %v7142_v41  ;;  %v2441_v22 = vand.u32 2147483648, %v7142_v41  ;;  %v9315_v4 = vld [vmem:[#allocation77_spill] sm:$0xff] }
 0x30c   :  { %v3089_v8 = vmul.f32 %v3088_v17, %v9172_v48  ;;  %v2433_v36 = vmul.f32 %v7188_v30, %v2432_v33  ;;  %vm2436_vm13 = vweird.f32 %v7188_v30  ;;  %v2851_v26 = vmul.f32 %v9309_v15, %v7132_v23 }
 0x30d   :  { %v3263_v1 = vsel %vm3262_vm12, %v7300_v21, %v3259_v47  ;;  %vm2435_vm8 = vweird.f32 %v7142_v41  ;;  %vm7689_vm10 = vcmp.eq.f32.partialorder %v2439_v54, 8.507059e+37  ;;  %v2824_v48 = vmul.f32 0.25, %v9312_v53 }
 0x30e   :  { %v3268_v56 = vsel %vm7671_vm14, %v3267_v3, %v3263_v1  ;;  %v3403_v55 = vsel %vm1041_vm2, %v3089_v8, %v3391_v39  ;;  %v2434_v58 = vadd.f32 %v7188_v30, %v2433_v36  ;;  %v2852_v2 = vsub.f32 1.0, %v2851_v26  ;;  %vm2437_vm11 = vmor %vm2435_vm8, %vm2436_vm13  ;;  %v9318_v39 = vld [vmem:[#allocation6_spill] sm:$0xff] }
 0x30f   :  { %v3269_v28 = vmul.f32 %v3268_v56, %v9313_v5  ;;  %v2442_v21 = vor.u32 1.1754944e-38, %v2441_v22  ;;  %v2859_v41 = vand.u32 2147483647, %v7132_v23  ;;  %v2861_v45 = vand.u32 2147483648, %v7132_v23  ;;  %v9320_v26 = vld [vmem:[#allocation102_spill] sm:$0xff] }
 0x310   :  { %v2438_v12 = vsel %vm2437_vm11, %v7188_v30, %v2434_v58  ;;  %v2853_v46 = vmul.f32 %v9309_v15, %v2852_v2  ;;  %vm2856_vm5 = vweird.f32 %v9309_v15  ;;  %v3031_v44 = vmul.f32 %v9315_v4, %v9314_v50  ;;  %v3459_v30 = vpop.permute.xlu2 %3458  ;;  %v9321_v1 = vld [vmem:[#allocation86_spill] sm:$0xff] }
 0x311   :  { %v3415_v18 = vsel %vm1318_vm4, %v3269_v28, %v3403_v55  ;;  %v2443_v37 = vsel %vm7689_vm10, %v2442_v21, %v2438_v12  ;;  %vm2855_vm9 = vweird.f32 %v7132_v23  ;;  %vm7712_vm6 = vcmp.eq.f32.partialorder %v2859_v41, 8.507059e+37 }
 0x312   :  { %v3427_v57 = vsel %vm424_vm1, %v9318_v39, %v3415_v18  ;;  %v2444_v3 = vmul.f32 %v2443_v37, %v9319_v14  ;;  %v2854_v33 = vadd.f32 %v9309_v15, %v2853_v46  ;;  %v3032_v17 = vsub.f32 1.0, %v3031_v44  ;;  %vm2857_vm14 = vmor %vm2855_vm9, %vm2856_vm5  ;;  %v9324_v44 = vld [vmem:[#allocation84_spill] sm:$0xff] }
 0x313   :  { %v3500_v47 = vsel %vm3435_vm7, %v3459_v30, %v3427_v57  ;;  %v2862_v54 = vor.u32 1.1754944e-38, %v2861_v45  ;;  %v3039_v23 = vand.u32 2147483647, %v9314_v50  ;;  %v3041_v22 = vand.u32 2147483648, %v9314_v50 }
 0x314   :  { %3512 = vst.msk [vmem:[%s8442_s5 + $0x20] sm:$0xff] %vm374_vm3, %v3500_v47  ;;  %v2858_v8 = vsel %vm2857_vm14, %v9309_v15, %v2854_v33  ;;  %v3033_v36 = vmul.f32 %v9315_v4, %v3032_v17  ;;  %vm3036_vm12 = vweird.f32 %v9315_v4  ;;  %v3211_v61 = vmul.f32 %v9321_v1, %v9320_v26 }
 0x315   :  { %v2863_v53 = vsel %vm7712_vm6, %v2862_v54, %v2858_v8  ;;  %vm3035_vm13 = vweird.f32 %v9314_v50  ;;  %vm3040_vm8 = vcmp.eq.f32.partialorder %v3039_v23, 8.507059e+37  ;;  %vm3215_vm10 = vweird.f32 %v9320_v26  ;;  %v9325_v23 = vld [vmem:[#allocation25_spill] sm:$0xff] }
 0x316   :  { %v2864_v56 = vmul.f32 %v2863_v53, %v2824_v48  ;;  %v3034_v55 = vadd.f32 %v9315_v4, %v3033_v36  ;;  %v3212_v58 = vsub.f32 1.0, %v3211_v61  ;;  %v3219_v15 = vand.u32 2147483647, %v9320_v26  ;;  %vm3037_vm11 = vmor %vm3035_vm13, %vm3036_vm12  ;;  %v3444_v61 = vpop.permute.xlu0 %3443 }
 0x317   :  { %v3042_v2 = vor.u32 1.1754944e-38, %v3041_v22  ;;  %v3221_v5 = vand.u32 2147483648, %v9320_v26  ;;  %v3376_v28 = vsel %vm487_vm15, %v2444_v3, 0.0  ;;  %v2521_v21 = vmul.f32 %v7439_v25, %v7380_v11  ;;  %v9326_v26 = vld [vmem:[#allocation76_spill] sm:$0xff] }
 0x318   :  { %v3038_v41 = vsel %vm3037_vm11, %v9315_v4, %v3034_v55  ;;  %v3213_v45 = vmul.f32 %v9321_v1, %v3212_v58  ;;  %vm3216_vm5 = vweird.f32 %v9321_v1  ;;  %v3388_v48 = vsel %vm764_vm0, %v2864_v56, %v3376_v28 }
 0x319   :  { %v3043_v12 = vsel %vm3040_vm8, %v3042_v2, %v3038_v41  ;;  %vm7750_vm9 = vcmp.eq.f32.partialorder %v3219_v15, 8.507059e+37  ;;  %v2522_v50 = vsub.f32 1.0, %v2521_v21  ;;  %vm2525_vm6 = vweird.f32 %v7380_v11  ;;  %vm3217_vm14 = vmor %vm3215_vm10, %vm3216_vm5  ;;  %v9328_v15 = vld [vmem:[#allocation3_spill] sm:$0xff] }
 0x31a   :  { %v3044_v18 = vmul.f32 %v3043_v12, %v9324_v44  ;;  %v3214_v37 = vadd.f32 %v9321_v1, %v3213_v45  ;;  %v2529_v4 = vand.u32 2147483647, %v7380_v11  ;;  %v2531_v19 = vand.u32 2147483648, %v7380_v11 }
 0x31b   :  { %v3222_v30 = vor.u32 1.1754944e-38, %v3221_v5  ;;  %v2523_v39 = vmul.f32 %v7439_v25, %v2522_v50  ;;  %vm2526_vm12 = vweird.f32 %v7439_v25  ;;  %v2941_v57 = vmul.f32 %v7447_v31, %v7384_v27 }
 0x31c   :  { %v3218_v14 = vsel %vm3217_vm14, %v9321_v1, %v3214_v37  ;;  %v3400_v3 = vsel %vm1041_vm2, %v3044_v18, %v3388_v48  ;;  %v2830_v33 = vmul.f32 0.25, %v7370_v9  ;;  %vm2945_vm13 = vweird.f32 %v7384_v27  ;;  %vm2527_vm10 = vmor %vm2525_vm6, %vm2526_vm12  ;;  %v9327_v1 = vld [vmem:[#allocation22_spill] sm:$0xff] }
 0x31d   :  { %v3223_v17 = vsel %vm7750_vm9, %v3222_v30, %v3218_v14  ;;  %v2524_v47 = vadd.f32 %v7439_v25, %v2523_v39  ;;  %vm2530_vm8 = vcmp.eq.f32.partialorder %v2529_v4, 8.507059e+37  ;;  %v2942_v54 = vsub.f32 1.0, %v2941_v57  ;;  %v9329_v39 = vld [vmem:[#allocation32_spill] sm:$0xff]  ;;  %v9330_v57 = vld [vmem:[#allocation98_spill] sm:$0xff] }
 0x31e   :  { %v3224_v22 = vmul.f32 %v3223_v17, %v9325_v23  ;;  %v2532_v8 = vor.u32 1.1754944e-38, %v2531_v19  ;;  %v2951_v36 = vand.u32 2147483648, %v7384_v27  ;;  %v3121_v9 = vmul.f32 %v9327_v1, %v9326_v26  ;;  %v9331_v23 = vld [vmem:[#allocation31_spill] sm:$0xff] }
 0x31f   :  { %v2528_v53 = vsel %vm2527_vm10, %v7439_v25, %v2524_v47  ;;  %v2943_v56 = vmul.f32 %v7447_v31, %v2942_v54  ;;  %vm2946_vm11 = vweird.f32 %v7447_v31  ;;  %v2949_v55 = vand.u32 2147483647, %v7384_v27 }
 0x320   :  { %v3412_v58 = vsel %vm1318_vm4, %v3224_v22, %v3400_v3  ;;  %v2533_v11 = vsel %vm2530_vm8, %v2532_v8, %v2528_v53  ;;  %vm3125_vm5 = vweird.f32 %v9326_v26  ;;  %vm3126_vm9 = vweird.f32 %v9327_v1  ;;  %vm2947_vm6 = vmor %vm2945_vm13, %vm2946_vm11  ;;  %v9333_v53 = vld [vmem:[#allocation49_spill] sm:$0xff] }
 0x321   :  { %v3424_v2 = vsel %vm424_vm1, %v9328_v15, %v3412_v58  ;;  %v2534_v25 = vmul.f32 %v2533_v11, %v7348_v20  ;;  %v2944_v5 = vadd.f32 %v7447_v31, %v2943_v56  ;;  %v3122_v28 = vsub.f32 1.0, %v3121_v9  ;;  %vm3127_vm8 = vmor %vm3125_vm5, %vm3126_vm9  ;;  %v9335_v15 = vld [vmem:[#allocation54_spill] sm:$0xff] }
 0x322   :  { %v3497_v21 = vsel %vm3435_vm7, %v3444_v61, %v3424_v2  ;;  %v2952_v41 = vor.u32 1.1754944e-38, %v2951_v36  ;;  %v3131_v45 = vand.u32 2147483648, %v9326_v26  ;;  %v3301_v48 = vmul.f32 %v7395_v49, %v7328_v62  ;;  %v9332_v61 = vld [vmem:[#allocation67_spill] sm:$0xff] }
 0x323   :  { %3509 = vst.msk [vmem:[%s8442_s5 + $0x8] sm:$0xff] %vm374_vm3, %v3497_v21  ;;  %v2948_v20 = vsel %vm2947_vm6, %v7447_v31, %v2944_v5  ;;  %vm2950_vm14 = vcmp.eq.f32.partialorder %v2949_v55, 8.507059e+37  ;;  %v3123_v12 = vmul.f32 %v9327_v1, %v3122_v28  ;;  %v3129_v46 = vand.u32 2147483647, %v9326_v26  ;;  %v9336_v21 = vld [vmem:[#allocation72_spill] sm:$0xff] }
 0x324   :  { %v2953_v27 = vsel %vm2950_vm14, %v2952_v41, %v2948_v20  ;;  %v3302_v50 = vsub.f32 1.0, %v3301_v48  ;;  %vm3305_vm12 = vweird.f32 %v7328_v62  ;;  %vm3306_vm13 = vweird.f32 %v7395_v49  ;;  %v9337_v41 = vld [vmem:[#allocation16_spill] sm:$0xff] }
 0x325   :  { %v2954_v44 = vmul.f32 %v2953_v27, %v2830_v33  ;;  %v3124_v18 = vadd.f32 %v9327_v1, %v3123_v12  ;;  %v3309_v37 = vand.u32 2147483647, %v7328_v62  ;;  %v3311_v4 = vand.u32 2147483648, %v7328_v62  ;;  %vm3307_vm9 = vmor %vm3305_vm12, %vm3306_vm13  ;;  %v9334_v62 = vld [vmem:[#allocation52_spill] sm:$0xff]  ;;  %v3474_v27 = vpop.permute.xlu2 %3473 }
 0x326   :  { %v3132_v31 = vor.u32 1.1754944e-38, %v3131_v45  ;;  %v3303_v19 = vmul.f32 %v7395_v49, %v3302_v50  ;;  %v3382_v30 = vsel %vm487_vm15, %v2534_v25, 0.0  ;;  %v2461_v14 = vmul.f32 %v9330_v57, %v9329_v39  ;;  %v9338_v50 = vld [vmem:[#allocation9_spill] sm:$0xff] }
 0x327   :  { %v3128_v3 = vsel %vm3127_vm8, %v9327_v1, %v3124_v18  ;;  %vm3130_vm10 = vcmp.eq.f32.partialorder %v3129_v46, 8.507059e+37  ;;  %v3394_v33 = vsel %vm764_vm0, %v2954_v44, %v3382_v30  ;;  %vm2465_vm11 = vweird.f32 %v9329_v39 }
 0x328   :  { %v3133_v17 = vsel %vm3130_vm10, %v3132_v31, %v3128_v3  ;;  %v3304_v47 = vadd.f32 %v7395_v49, %v3303_v19  ;;  %vm3310_vm5 = vcmp.eq.f32.partialorder %v3309_v37, 8.507059e+37  ;;  %v2462_v54 = vsub.f32 1.0, %v2461_v14  ;;  %v9340_v3 = vld [vmem:[#allocation43_spill] sm:$0xff] }
 0x329   :  { %v3134_v22 = vmul.f32 %v3133_v17, %v9331_v23  ;;  %v3312_v8 = vor.u32 1.1754944e-38, %v3311_v4  ;;  %v2469_v36 = vand.u32 2147483647, %v9329_v39  ;;  %v2471_v26 = vand.u32 2147483648, %v9329_v39  ;;  %v9339_v4 = vld [vmem:[#allocation109_spill] sm:$0xff] }
 0x32a   :  { %v3308_v1 = vsel %vm3307_vm9, %v7395_v49, %v3304_v47  ;;  %v2463_v9 = vmul.f32 %v9330_v57, %v2462_v54  ;;  %vm2466_vm6 = vweird.f32 %v9330_v57  ;;  %v2881_v56 = vmul.f32 %v9333_v53, %v9332_v61 }
 0x32b   :  { %v3313_v55 = vsel %vm3310_vm5, %v3312_v8, %v3308_v1  ;;  %v3406_v58 = vsel %vm1041_vm2, %v3134_v22, %v3394_v33  ;;  %v2826_v11 = vmul.f32 0.25, %v9334_v62  ;;  %vm2885_vm14 = vweird.f32 %v9332_v61  ;;  %vm2467_vm13 = vmor %vm2465_vm11, %vm2466_vm6  ;;  %v9341_v33 = vld [vmem:[#allocation35_spill] sm:$0xff] }
 0x32c   :  { %v3314_v2 = vmul.f32 %v3313_v55, %v9335_v15  ;;  %v2464_v25 = vadd.f32 %v9330_v57, %v2463_v9  ;;  %vm2470_vm12 = vcmp.eq.f32.partialorder %v2469_v36, 8.507059e+37  ;;  %v2882_v49 = vsub.f32 1.0, %v2881_v56  ;;  %v9342_v56 = vld [vmem:[#allocation47_spill] sm:$0xff]  ;;  %v9343_v55 = vld [vmem:[#allocation94_spill] sm:$0xff] }
 0x32d   :  { %v2472_v5 = vor.u32 1.1754944e-38, %v2471_v26  ;;  %vm2886_vm8 = vweird.f32 %v9333_v53  ;;  %v2891_v28 = vand.u32 2147483648, %v9332_v61  ;;  %v3061_v45 = vmul.f32 %v9337_v41, %v9336_v21 }
 0x32e   :  { %v3418_v48 = vsel %vm1318_vm4, %v3314_v2, %v3406_v58  ;;  %v2468_v20 = vsel %vm2467_vm13, %v9330_v57, %v2464_v25  ;;  %v2883_v12 = vmul.f32 %v9333_v53, %v2882_v49  ;;  %v2889_v46 = vand.u32 2147483647, %v9332_v61  ;;  %vm2887_vm5 = vmor %vm2885_vm14, %vm2886_vm8 }
 0x32f   :  { %v3430_v44 = vsel %vm424_vm1, %v9338_v50, %v3418_v48  ;;  %v2473_v18 = vsel %vm2470_vm12, %v2472_v5, %v2468_v20  ;;  %vm3065_vm10 = vweird.f32 %v9336_v21  ;;  %vm3066_vm11 = vweird.f32 %v9337_v41  ;;  %v9347_v48 = vld [vmem:[#allocation106_spill] sm:$0xff]  ;;  %v9348_v20 = vld [vmem:[#allocation97_spill] sm:$0xff]  ;;  %v9349_v50 = vld [vmem:[#allocation108_spill] sm:$0xff] }
 0x330   :  { %v3503_v37 = vsel %vm3435_vm7, %v3474_v27, %v3430_v44  ;;  %v2474_v31 = vmul.f32 %v2473_v18, %v9339_v4  ;;  %v2884_v19 = vadd.f32 %v9333_v53, %v2883_v12  ;;  %v3062_v30 = vsub.f32 1.0, %v3061_v45  ;;  %vm3067_vm13 = vmor %vm3065_vm10, %vm3066_vm11  ;;  %v9369_v4 = vld [vmem:[#allocation55_spill] sm:$0xff] }
 0x331   :  { %3515 = vst.msk [vmem:[%s8442_s5 + $0x38] sm:$0xff] %vm374_vm3, %v3503_v37  ;;  %v2892_v39 = vor.u32 1.1754944e-38, %v2891_v28  ;;  %v3069_v57 = vand.u32 2147483647, %v9336_v21  ;;  %v3071_v14 = vand.u32 2147483648, %v9336_v21  ;;  %v3241_v17 = vmul.f32 %v9341_v33, %v9340_v3  ;;  %v9346_v28 = vld [vmem:[#allocation85_spill] sm:$0xff] }
 0x332   :  { %v2888_v47 = vsel %vm2887_vm5, %v9333_v53, %v2884_v19  ;;  %vm2890_vm9 = vcmp.eq.f32.partialorder %v2889_v46, 8.507059e+37  ;;  %v3063_v54 = vmul.f32 %v9337_v41, %v3062_v30  ;;  %v3249_v23 = vand.u32 2147483647, %v9340_v3  ;;  %v9352_v19 = vld [vmem:[#allocation93_spill] sm:$0xff] }
 0x333   :  { %v2893_v22 = vsel %vm2890_vm9, %v2892_v39, %v2888_v47  ;;  %v3242_v8 = vsub.f32 1.0, %v3241_v17  ;;  %vm3245_vm6 = vweird.f32 %v9340_v3  ;;  %vm3246_vm14 = vweird.f32 %v9341_v33  ;;  %v9353_v47 = vld [vmem:[#allocation60_spill] sm:$0xff] }
 0x334   :  { %v2894_v36 = vmul.f32 %v2893_v22, %v2826_v11  ;;  %v3064_v26 = vadd.f32 %v9337_v41, %v3063_v54  ;;  %vm3070_vm12 = vcmp.eq.f32.partialorder %v3069_v57, 8.507059e+37  ;;  %v3251_v1 = vand.u32 2147483648, %v9340_v3  ;;  %vm3247_vm11 = vmor %vm3245_vm6, %vm3246_vm14  ;;  %v9354_v54 = vld [vmem:[#allocation17_spill] sm:$0xff] }
 0x335   :  { %v3072_v9 = vor.u32 1.1754944e-38, %v3071_v14  ;;  %v3243_v61 = vmul.f32 %v9341_v33, %v3242_v8  ;;  %v3378_v53 = vsel %vm487_vm15, %v2474_v31, 0.0  ;;  %v2446_v58 = vmul.f32 %v9343_v55, %v9342_v56  ;;  %v3454_v14 = vpop.permute.xlu0 %3453 }
 0x336   :  { %v3068_v62 = vsel %vm3067_vm13, %v9337_v41, %v3064_v26  ;;  %vm7892_vm8 = vcmp.eq.f32.partialorder %v3249_v23, 8.507059e+37  ;;  %v3390_v15 = vsel %vm764_vm0, %v2894_v36, %v3378_v53  ;;  %vm2450_vm10 = vweird.f32 %v9342_v56  ;;  %v9355_v36 = vld [vmem:[#allocation7_spill] sm:$0xff] }
 0x337   :  { %v3073_v2 = vsel %vm3070_vm12, %v3072_v9, %v3068_v62  ;;  %v3244_v25 = vadd.f32 %v9341_v33, %v3243_v61  ;;  %v2447_v49 = vsub.f32 1.0, %v2446_v58  ;;  %v2454_v5 = vand.u32 2147483647, %v9342_v56 }
 0x338   :  { %v3074_v21 = vmul.f32 %v3073_v2, %v9346_v28  ;;  %v3252_v41 = vor.u32 1.1754944e-38, %v3251_v1  ;;  %v2456_v45 = vand.u32 2147483648, %v9342_v56  ;;  %v2866_v12 = vmul.f32 %v9348_v20, %v9347_v48  ;;  %v9356_v56 = vld [vmem:[#allocation62_spill] sm:$0xff]  ;;  %v9357_v2 = vld [vmem:[#allocation105_spill] sm:$0xff] }
 0x339   :  { %v3248_v46 = vsel %vm3247_vm11, %v9341_v33, %v3244_v25  ;;  %v2448_v27 = vmul.f32 %v9343_v55, %v2447_v49  ;;  %vm2451_vm5 = vweird.f32 %v9343_v55  ;;  %v2825_v44 = vmul.f32 0.25, %v9349_v50  ;;  %v9358_v25 = vld [vmem:[#allocation96_spill] sm:$0xff] }
 0x33a   :  { %v3253_v18 = vsel %vm7892_vm8, %v3252_v41, %v3248_v46  ;;  %v3402_v37 = vsel %vm1041_vm2, %v3074_v21, %v3390_v15  ;;  %vm7917_vm9 = vcmp.eq.f32.partialorder %v2454_v5, 8.507059e+37  ;;  %v2867_v31 = vsub.f32 1.0, %v2866_v12  ;;  %vm2452_vm14 = vmor %vm2450_vm10, %vm2451_vm5 }
 0x33b   :  { %v3254_v30 = vmul.f32 %v3253_v18, %v9352_v19  ;;  %v2449_v39 = vadd.f32 %v9343_v55, %v2448_v27  ;;  %v2457_v57 = vor.u32 1.1754944e-38, %v2456_v45  ;;  %vm2871_vm6 = vweird.f32 %v9348_v20 }
 0x33c   :  { %v2868_v3 = vmul.f32 %v9348_v20, %v2867_v31  ;;  %v2874_v33 = vand.u32 2147483647, %v9347_v48  ;;  %v2876_v17 = vand.u32 2147483648, %v9347_v48  ;;  %v3046_v23 = vmul.f32 %v9354_v54, %v9353_v47 }
 0x33d   :  { %v3414_v22 = vsel %vm1318_vm4, %v3254_v30, %v3402_v37  ;;  %v2453_v8 = vsel %vm2452_vm14, %v9343_v55, %v2449_v39  ;;  %vm2870_vm12 = vweird.f32 %v9347_v48  ;;  %vm3050_vm13 = vweird.f32 %v9353_v47 }
 0x33e   :  { %v3426_v26 = vsel %vm424_vm1, %v9355_v36, %v3414_v22  ;;  %v2458_v1 = vsel %vm7917_vm9, %v2457_v57, %v2453_v8  ;;  %v2869_v9 = vadd.f32 %v9348_v20, %v2868_v3  ;;  %v2877_v61 = vor.u32 1.1754944e-38, %v2876_v17  ;;  %vm2872_vm8 = vmor %vm2870_vm12, %vm2871_vm6  ;;  %v9363_v3 = vld [vmem:[#allocation71_spill] sm:$0xff] }
 0x33f   :  { %v3499_v53 = vsel %vm3435_vm7, %v3454_v14, %v3426_v26  ;;  %v2459_v58 = vmul.f32 %v2458_v1, %v9356_v56  ;;  %v3047_v55 = vsub.f32 1.0, %v3046_v23  ;;  %v3054_v62 = vand.u32 2147483647, %v9353_v47 }
 0x340   :  { %3511 = vst.msk [vmem:[%s8442_s5 + $0x18] sm:$0xff] %vm374_vm3, %v3499_v53  ;;  %v2873_v11 = vsel %vm2872_vm8, %v9348_v20, %v2869_v9  ;;  %vm2875_vm10 = vcmp.eq.f32.partialorder %v2874_v33, 8.507059e+37  ;;  %v3056_v15 = vand.u32 2147483648, %v9353_v47  ;;  %v3226_v49 = vmul.f32 %v9358_v25, %v9357_v2  ;;  %v9366_v9 = vld [vmem:[#allocation92_spill] sm:$0xff] }
 0x341   :  { %v2878_v5 = vsel %vm2875_vm10, %v2877_v61, %v2873_v11  ;;  %v3048_v28 = vmul.f32 %v9354_v54, %v3047_v55  ;;  %vm3051_vm11 = vweird.f32 %v9354_v54  ;;  %vm3230_vm5 = vweird.f32 %v9357_v2 }
 0x342   :  { %v2879_v21 = vmul.f32 %v2878_v5, %v2825_v44  ;;  %vm7959_vm9 = vcmp.eq.f32.partialorder %v3054_v62, 8.507059e+37  ;;  %v3227_v45 = vsub.f32 1.0, %v3226_v49  ;;  %v3234_v48 = vand.u32 2147483647, %v9357_v2  ;;  %vm3052_vm6 = vmor %vm3050_vm13, %vm3051_vm11  ;;  %v9367_v62 = vld [vmem:[#allocation90_spill] sm:$0xff] }
 0x343   :  { %v3049_v20 = vadd.f32 %v9354_v54, %v3048_v28  ;;  %v3236_v12 = vand.u32 2147483648, %v9357_v2  ;;  %v3377_v46 = vsel %vm487_vm15, %v2459_v58, 0.0  ;;  %v2566_v27 = vmul.f32 %v7551_v32, %v7494_v43  ;;  %v3449_v58 = vpop.permute.xlu1 %3448 }
 0x344   :  { %v3057_v50 = vor.u32 1.1754944e-38, %v3056_v15  ;;  %v3228_v44 = vmul.f32 %v9358_v25, %v3227_v45  ;;  %vm3231_vm14 = vweird.f32 %v9358_v25  ;;  %v3389_v18 = vsel %vm764_vm0, %v2879_v21, %v3377_v46 }
 0x345   :  { %v3053_v37 = vsel %vm3052_vm6, %v9354_v54, %v3049_v20  ;;  %vm7977_vm12 = vcmp.eq.f32.partialorder %v3234_v48, 8.507059e+37  ;;  %v3237_v31 = vor.u32 1.1754944e-38, %v3236_v12  ;;  %v2567_v19 = vsub.f32 1.0, %v2566_v27  ;;  %vm3232_vm13 = vmor %vm3230_vm5, %vm3231_vm14 }
 0x346   :  { %v3058_v30 = vsel %vm7959_vm9, %v3057_v50, %v3053_v37  ;;  %v3229_v39 = vadd.f32 %v9358_v25, %v3228_v44  ;;  %v2574_v57 = vand.u32 2147483647, %v7494_v43  ;;  %v2576_v14 = vand.u32 2147483648, %v7494_v43 }
 0x347   :  { %v3059_v33 = vmul.f32 %v3058_v30, %v9363_v3  ;;  %v2568_v17 = vmul.f32 %v7551_v32, %v2567_v19  ;;  %vm2571_vm8 = vweird.f32 %v7551_v32  ;;  %v2986_v47 = vmul.f32 %v7545_v40, %v7488_v60 }
 0x348   :  { %v3233_v54 = vsel %vm3232_vm13, %v9358_v25, %v3229_v39  ;;  %vm2570_vm10 = vweird.f32 %v7494_v43  ;;  %vm7995_vm11 = vcmp.eq.f32.partialorder %v2574_v57, 8.507059e+37  ;;  %v2833_v22 = vmul.f32 0.25, %v7491_v10  ;;  %v9368_v25 = vld [vmem:[#allocation5_spill] sm:$0xff] }
 0x349   :  { %v3238_v8 = vsel %vm7977_vm12, %v3237_v31, %v3233_v54  ;;  %v3401_v36 = vsel %vm1041_vm2, %v3059_v33, %v3389_v18  ;;  %v2569_v26 = vadd.f32 %v7551_v32, %v2568_v17  ;;  %v2987_v1 = vsub.f32 1.0, %v2986_v47  ;;  %vm2572_vm5 = vmor %vm2570_vm10, %vm2571_vm8  ;;  %v9370_v31 = vld [vmem:[#allocation70_spill] sm:$0xff]  ;;  %v9373_v33 = vld [vmem:[#allocation44_spill] sm:$0xff] }
 0x34a   :  { %v3239_v61 = vmul.f32 %v3238_v8, %v9366_v9  ;;  %v2577_v53 = vor.u32 1.1754944e-38, %v2576_v14  ;;  %v2994_v43 = vand.u32 2147483647, %v7488_v60  ;;  %v2996_v56 = vand.u32 2147483648, %v7488_v60 }
 0x34b   :  { %v2573_v10 = vsel %vm2572_vm5, %v7551_v32, %v2569_v26  ;;  %v2988_v55 = vmul.f32 %v7545_v40, %v2987_v1  ;;  %vm2991_vm9 = vweird.f32 %v7545_v40  ;;  %v3166_v11 = vmul.f32 %v9367_v62, %v9265_v16  ;;  %v9375_v26 = vld [vmem:[#allocation59_spill] sm:$0xff] }
 0x34c   :  { %v3413_v15 = vsel %vm1318_vm4, %v3239_v61, %v3401_v36  ;;  %v2578_v2 = vsel %vm7995_vm11, %v2577_v53, %v2573_v10  ;;  %vm2990_vm6 = vweird.f32 %v7488_v60  ;;  %vm2995_vm14 = vcmp.eq.f32.partialorder %v2994_v43, 8.507059e+37  ;;  %v9374_v36 = vld [vmem:[#allocation39_spill] sm:$0xff]  ;;  %v9376_v53 = vld [vmem:[#allocation38_spill] sm:$0xff]  ;;  %v9377_v10 = vld [vmem:[#allocation37_spill] sm:$0xff] }
 0x34d   :  { %v3425_v32 = vsel %vm424_vm1, %v9368_v25, %v3413_v15  ;;  %v2579_v49 = vmul.f32 %v2578_v2, %v7472_v24  ;;  %v2989_v5 = vadd.f32 %v7545_v40, %v2988_v55  ;;  %v3167_v28 = vsub.f32 1.0, %v3166_v11  ;;  %vm2992_vm12 = vmor %vm2990_vm6, %vm2991_vm9  ;;  %v9378_v11 = vld [vmem:[#allocation78_spill] sm:$0xff]  ;;  %v9379_v15 = vld [vmem:[#allocation20_spill] sm:$0xff] }
 0x34e   :  { %v3498_v21 = vsel %vm3435_vm7, %v3449_v58, %v3425_v32  ;;  %v2997_v41 = vor.u32 1.1754944e-38, %v2996_v56  ;;  %v3174_v45 = vand.u32 2147483647, %v9265_v16  ;;  %v3176_v48 = vand.u32 2147483648, %v9265_v16 }
 0x34f   :  { %3510 = vst.msk [vmem:[%s8442_s5 + $0x10] sm:$0xff] %vm374_vm3, %v3498_v21  ;;  %v2993_v60 = vsel %vm2992_vm12, %v7545_v40, %v2989_v5  ;;  %v3168_v24 = vmul.f32 %v9367_v62, %v3167_v28  ;;  %vm3171_vm13 = vweird.f32 %v9367_v62  ;;  %v3346_v20 = vmul.f32 %v7531_v6, %v7449_v35  ;;  %v3489_v21 = vpop.permute.xlu2 %3488 }
 0x350   :  { %v2998_v12 = vsel %vm2995_vm14, %v2997_v41, %v2993_v60  ;;  %vm3170_vm8 = vweird.f32 %v9265_v16  ;;  %vm3175_vm10 = vcmp.eq.f32.partialorder %v3174_v45, 8.507059e+37  ;;  %vm3350_vm11 = vweird.f32 %v7449_v35  ;;  %v9380_v41 = vld [vmem:[#allocation12_spill] sm:$0xff] }
 0x351   :  { %v2999_v46 = vmul.f32 %v2998_v12, %v2833_v22  ;;  %v3169_v27 = vadd.f32 %v9367_v62, %v3168_v24  ;;  %v3347_v50 = vsub.f32 1.0, %v3346_v20  ;;  %v3354_v44 = vand.u32 2147483647, %v7449_v35  ;;  %vm3172_vm5 = vmor %vm3170_vm8, %vm3171_vm13 }
 0x352   :  { %v3177_v40 = vor.u32 1.1754944e-38, %v3176_v48  ;;  %v3356_v18 = vand.u32 2147483648, %v7449_v35  ;;  %v3385_v37 = vsel %vm487_vm15, %v2579_v49, 0.0  ;;  %v2506_v19 = vmul.f32 %v9370_v31, %v9369_v4  ;;  %v9381_v48 = vld [vmem:[#allocation58_spill] sm:$0xff] }
 0x353   :  { %v3173_v16 = vsel %vm3172_vm5, %v9367_v62, %v3169_v27  ;;  %v3348_v30 = vmul.f32 %v7531_v6, %v3347_v50  ;;  %vm3351_vm9 = vweird.f32 %v7531_v6  ;;  %v3397_v39 = vsel %vm764_vm0, %v2999_v46, %v3385_v37  ;;  %v9382_v50 = vld [vmem:[#allocation64_spill] sm:$0xff] }
 0x354   :  { %v3178_v57 = vsel %vm3175_vm10, %v3177_v40, %v3173_v16  ;;  %vm8050_vm6 = vcmp.eq.f32.partialorder %v3354_v44, 8.507059e+37  ;;  %v2507_v3 = vsub.f32 1.0, %v2506_v19  ;;  %vm2510_vm14 = vweird.f32 %v9369_v4  ;;  %vm3352_vm12 = vmor %vm3350_vm11, %vm3351_vm9  ;;  %v9383_v44 = vld [vmem:[#allocation28_spill] sm:$0xff] }
 0x355   :  { %v3179_v17 = vmul.f32 %v3178_v57, %v9373_v33  ;;  %v3349_v47 = vadd.f32 %v7531_v6, %v3348_v30  ;;  %v2514_v54 = vand.u32 2147483647, %v9369_v4  ;;  %v2516_v23 = vand.u32 2147483648, %v9369_v4 }
 0x356   :  { %v3357_v22 = vor.u32 1.1754944e-38, %v3356_v18  ;;  %v2508_v8 = vmul.f32 %v9370_v31, %v2507_v3  ;;  %vm2511_vm13 = vweird.f32 %v9370_v31  ;;  %v2926_v1 = vmul.f32 %v9375_v26, %v9374_v36 }
 0x357   :  { %v3353_v9 = vsel %vm3352_vm12, %v7531_v6, %v3349_v47  ;;  %v3409_v61 = vsel %vm1041_vm2, %v3179_v17, %v3397_v39  ;;  %v2829_v43 = vmul.f32 0.25, %v9376_v53  ;;  %vm2930_vm8 = vweird.f32 %v9374_v36  ;;  %vm2512_vm11 = vmor %vm2510_vm14, %vm2511_vm13  ;;  %v9384_v17 = vld [vmem:[#allocation57_spill] sm:$0xff]  ;;  %v9385_v47 = vld [vmem:[#allocation80_spill] sm:$0xff] }
 0x358   :  { %v3358_v35 = vsel %vm8050_vm6, %v3357_v22, %v3353_v9  ;;  %v2509_v56 = vadd.f32 %v9370_v31, %v2508_v8  ;;  %vm2515_vm10 = vcmp.eq.f32.partialorder %v2514_v54, 8.507059e+37  ;;  %v2927_v58 = vsub.f32 1.0, %v2926_v1  ;;  %v9386_v1 = vld [vmem:[#allocation50_spill] sm:$0xff] }
 0x359   :  { %v3359_v55 = vmul.f32 %v3358_v35, %v9377_v10  ;;  %v2517_v6 = vor.u32 1.1754944e-38, %v2516_v23  ;;  %v2936_v62 = vand.u32 2147483648, %v9374_v36  ;;  %v3106_v2 = vmul.f32 %v9379_v15, %v9378_v11  ;;  %v9388_v10 = vld [vmem:[#allocation69_spill] sm:$0xff] }
 0x35a   :  { %v2513_v25 = vsel %vm2512_vm11, %v9370_v31, %v2509_v56  ;;  %v2928_v32 = vmul.f32 %v9375_v26, %v2927_v58  ;;  %vm2931_vm5 = vweird.f32 %v9375_v26  ;;  %v2934_v49 = vand.u32 2147483647, %v9374_v36  ;;  %v9387_v58 = vld [vmem:[#allocation51_spill] sm:$0xff] }
 0x35b   :  { %v3421_v5 = vsel %vm1318_vm4, %v3359_v55, %v3409_v61  ;;  %v2518_v28 = vsel %vm2515_vm10, %v2517_v6, %v2513_v25  ;;  %vm3110_vm9 = vweird.f32 %v9378_v11  ;;  %vm3111_vm6 = vweird.f32 %v9379_v15  ;;  %vm2932_vm14 = vmor %vm2930_vm8, %vm2931_vm5 }
 0x35c   :  { %v3433_v45 = vsel %vm424_vm1, %v9380_v41, %v3421_v5  ;;  %v2519_v60 = vmul.f32 %v2518_v28, %v9381_v48  ;;  %v2929_v24 = vadd.f32 %v9375_v26, %v2928_v32  ;;  %v3107_v20 = vsub.f32 1.0, %v3106_v2  ;;  %vm3112_vm10 = vmor %vm3110_vm9, %vm3111_vm6  ;;  %v9390_v2 = vld [vmem:[#allocation34_spill] sm:$0xff]  ;;  %v3469_v5 = vpop.permute.xlu0 %3468  ;;  %v9391_v41 = vld [vmem:[#allocation61_spill] sm:$0xff] }
 0x35d   :  { %v3506_v12 = vsel %vm3435_vm7, %v3489_v21, %v3433_v45  ;;  %v2937_v46 = vor.u32 1.1754944e-38, %v2936_v62  ;;  %v3116_v27 = vand.u32 2147483648, %v9378_v11  ;;  %v3286_v40 = vmul.f32 %v9383_v44, %v9382_v50  ;;  %v9392_v45 = vld [vmem:[#allocation21_spill] sm:$0xff] }
 0x35e   :  { %3518 = vst.msk [vmem:[%s8442_s5 + $0x50] sm:$0xff] %vm374_vm3, %v3506_v12  ;;  %v2933_v18 = vsel %vm2932_vm14, %v9375_v26, %v2929_v24  ;;  %vm2935_vm12 = vcmp.eq.f32.partialorder %v2934_v49, 8.507059e+37  ;;  %v3108_v37 = vmul.f32 %v9379_v15, %v3107_v20  ;;  %v3114_v4 = vand.u32 2147483647, %v9378_v11  ;;  %v9389_v11 = vld [vmem:[#allocation87_spill] sm:$0xff] }
 0x35f   :  { %v2938_v31 = vsel %vm2935_vm12, %v2937_v46, %v2933_v18  ;;  %v3287_v19 = vsub.f32 1.0, %v3286_v40  ;;  %vm3290_vm13 = vweird.f32 %v9382_v50  ;;  %vm3291_vm8 = vweird.f32 %v9383_v44  ;;  %v9393_v46 = vld [vmem:[#allocation10_spill] sm:$0xff]  ;;  %v9394_v40 = vld [vmem:[#allocation88_spill] sm:$0xff] }
 0x360   :  { %v2939_v16 = vmul.f32 %v2938_v31, %v2829_v43  ;;  %v3109_v30 = vadd.f32 %v9379_v15, %v3108_v37  ;;  %v3294_v39 = vand.u32 2147483647, %v9382_v50  ;;  %v3296_v57 = vand.u32 2147483648, %v9382_v50  ;;  %vm3292_vm6 = vmor %vm3290_vm13, %vm3291_vm8 }
 0x361   :  { %v3117_v14 = vor.u32 1.1754944e-38, %v3116_v27  ;;  %v3288_v3 = vmul.f32 %v9383_v44, %v3287_v19  ;;  %v3381_v33 = vsel %vm487_vm15, %v2519_v60, 0.0  ;;  %v2491_v54 = vmul.f32 %v9385_v47, %v9384_v17 }
 0x362   :  { %v3113_v23 = vsel %vm3112_vm10, %v9379_v15, %v3109_v30  ;;  %vm3115_vm11 = vcmp.eq.f32.partialorder %v3114_v4, 8.507059e+37  ;;  %v3393_v22 = vsel %vm764_vm0, %v2939_v16, %v3381_v33  ;;  %vm2495_vm5 = vweird.f32 %v9384_v17  ;;  %v9395_v30 = vld [vmem:[#allocation45_spill] sm:$0xff] }
 0x363   :  { %v3118_v8 = vsel %vm3115_vm11, %v3117_v14, %v3113_v23  ;;  %v3289_v36 = vadd.f32 %v9383_v44, %v3288_v3  ;;  %vm3295_vm9 = vcmp.eq.f32.partialorder %v3294_v39, 8.507059e+37  ;;  %v2492_v26 = vsub.f32 1.0, %v2491_v54  ;;  %v9396_v39 = vld [vmem:[#allocation48_spill] sm:$0xff] }
 0x364   :  { %v3119_v9 = vmul.f32 %v3118_v8, %v9386_v1  ;;  %v3297_v61 = vor.u32 1.1754944e-38, %v3296_v57  ;;  %v2499_v53 = vand.u32 2147483647, %v9384_v17  ;;  %v2501_v43 = vand.u32 2147483648, %v9384_v17 }
 0x365   :  { %v3293_v35 = vsel %vm3292_vm6, %v9383_v44, %v3289_v36  ;;  %v2493_v56 = vmul.f32 %v9385_v47, %v2492_v26  ;;  %vm2496_vm14 = vweird.f32 %v9385_v47  ;;  %v2911_v55 = vmul.f32 %v9388_v10, %v9387_v58 }
 0x366   :  { %v3298_v6 = vsel %vm3295_vm9, %v3297_v61, %v3293_v35  ;;  %v3405_v62 = vsel %vm1041_vm2, %v3119_v9, %v3393_v22  ;;  %v2828_v15 = vmul.f32 0.25, %v9389_v11  ;;  %vm2915_vm12 = vweird.f32 %v9387_v58  ;;  %vm2497_vm8 = vmor %vm2495_vm5, %vm2496_vm14 }
 0x367   :  { %v3299_v25 = vmul.f32 %v3298_v6, %v9390_v2  ;;  %v2494_v32 = vadd.f32 %v9385_v47, %v2493_v56  ;;  %vm2500_vm13 = vcmp.eq.f32.partialorder %v2499_v53, 8.507059e+37  ;;  %v2912_v49 = vsub.f32 1.0, %v2911_v55 }
 0x368   :  { %v2502_v28 = vor.u32 1.1754944e-38, %v2501_v43  ;;  %vm2916_vm10 = vweird.f32 %v9388_v10  ;;  %v2921_v21 = vand.u32 2147483648, %v9387_v58  ;;  %v3091_v48 = vmul.f32 %v9392_v45, %v9391_v41 }
 0x369   :  { %v3417_v60 = vsel %vm1318_vm4, %v3299_v25, %v3405_v62  ;;  %v2498_v24 = vsel %vm2497_vm8, %v9385_v47, %v2494_v32  ;;  %v2913_v20 = vmul.f32 %v9388_v10, %v2912_v49  ;;  %v2919_v12 = vand.u32 2147483647, %v9387_v58  ;;  %vm2917_vm9 = vmor %vm2915_vm12, %vm2916_vm10  ;;  %v9400_v25 = vld [vmem:[#allocation81_spill] sm:$0xff] }
 0x36a   :  { %v3429_v27 = vsel %vm424_vm1, %v9393_v46, %v3417_v60  ;;  %v2503_v50 = vsel %vm2500_vm13, %v2502_v28, %v2498_v24  ;;  %vm3095_vm11 = vweird.f32 %v9391_v41  ;;  %vm3096_vm5 = vweird.f32 %v9392_v45  ;;  %v3464_v24 = vpop.permute.xlu1 %3463 }
 0x36b   :  { %v3502_v44 = vsel %vm3435_vm7, %v3469_v5, %v3429_v27  ;;  %v2504_v18 = vmul.f32 %v2503_v50, %v9394_v40  ;;  %v2914_v37 = vadd.f32 %v9388_v10, %v2913_v20  ;;  %v3092_v4 = vsub.f32 1.0, %v3091_v48  ;;  %vm3097_vm8 = vmor %vm3095_vm11, %vm3096_vm5  ;;  %v9404_v27 = vld [vmem:[#allocation68_spill] sm:$0xff]  ;;  %v9405_v50 = vld [vmem:[#allocation26_spill] sm:$0xff] }
 0x36c   :  { %3514 = vst.msk [vmem:[%s8442_s5 + $0x30] sm:$0xff] %vm374_vm3, %v3502_v44  ;;  %v2922_v31 = vor.u32 1.1754944e-38, %v2921_v21  ;;  %v3099_v19 = vand.u32 2147483647, %v9391_v41  ;;  %v3101_v16 = vand.u32 2147483648, %v9391_v41  ;;  %v3271_v57 = vmul.f32 %v9396_v39, %v9395_v30  ;;  %v9403_v41 = vld [vmem:[#allocation79_spill] sm:$0xff] }
 0x36d   :  { %v2918_v14 = vsel %vm2917_vm9, %v9388_v10, %v2914_v37  ;;  %vm2920_vm6 = vcmp.eq.f32.partialorder %v2919_v12, 8.507059e+37  ;;  %v3093_v3 = vmul.f32 %v9392_v45, %v3092_v4  ;;  %v3279_v33 = vand.u32 2147483647, %v9395_v30  ;;  %v9399_v10 = vld [vmem:[#allocation89_spill] sm:$0xff] }
 0x36e   :  { %v2923_v17 = vsel %vm2920_vm6, %v2922_v31, %v2918_v14  ;;  %v3272_v47 = vsub.f32 1.0, %v3271_v57  ;;  %vm3275_vm14 = vweird.f32 %v9395_v30  ;;  %vm3276_vm12 = vweird.f32 %v9396_v39 }
 0x36f   :  { %v2924_v54 = vmul.f32 %v2923_v17, %v2828_v15  ;;  %v3094_v23 = vadd.f32 %v9392_v45, %v3093_v3  ;;  %vm3100_vm13 = vcmp.eq.f32.partialorder %v3099_v19, 8.507059e+37  ;;  %v3281_v22 = vand.u32 2147483648, %v9395_v30  ;;  %vm3277_vm5 = vmor %vm3275_vm14, %vm3276_vm12  ;;  %v9407_v30 = vld [vmem:[#allocation29_spill] sm:$0xff]  ;;  %v9408_v3 = vld [vmem:[#allocation56_spill] sm:$0xff] }
 0x370   :  { %v3102_v8 = vor.u32 1.1754944e-38, %v3101_v16  ;;  %v3273_v36 = vmul.f32 %v9396_v39, %v3272_v47  ;;  %v3380_v26 = vsel %vm487_vm15, %v2504_v18, 0.0  ;;  %v2551_v1 = vmul.f32 %v7522_v51, %v7459_v59 }
 0x371   :  { %v3098_v9 = vsel %vm3097_vm8, %v9392_v45, %v3094_v23  ;;  %vm8192_vm10 = vcmp.eq.f32.partialorder %v3279_v33, 8.507059e+37  ;;  %v3392_v53 = vsel %vm764_vm0, %v2924_v54, %v3380_v26  ;;  %vm2555_vm11 = vweird.f32 %v7459_v59  ;;  %v9409_v33 = vld [vmem:[#allocation66_spill] sm:$0xff] }
 0x372   :  { %v3103_v43 = vsel %vm3100_vm13, %v3102_v8, %v3098_v9  ;;  %v3274_v35 = vadd.f32 %v9396_v39, %v3273_v36  ;;  %v2552_v56 = vsub.f32 1.0, %v2551_v1  ;;  %v2559_v58 = vand.u32 2147483647, %v7459_v59  ;;  %v9412_v9 = vld [vmem:[#allocation18_spill] sm:$0xff] }
 0x373   :  { %v3104_v55 = vmul.f32 %v3103_v43, %v9399_v10  ;;  %v3282_v6 = vor.u32 1.1754944e-38, %v3281_v22  ;;  %v2561_v62 = vand.u32 2147483648, %v7459_v59  ;;  %v2971_v11 = vmul.f32 %v7513_v63, %v7453_v38  ;;  %v9406_v59 = vld [vmem:[#allocation8_spill] sm:$0xff] }
 0x374   :  { %v3278_v15 = vsel %vm3277_vm5, %v9396_v39, %v3274_v35  ;;  %v2553_v2 = vmul.f32 %v7522_v51, %v2552_v56  ;;  %vm2556_vm9 = vweird.f32 %v7522_v51  ;;  %v2832_v32 = vmul.f32 0.25, %v9400_v25 }
 0x375   :  { %v3283_v49 = vsel %vm8192_vm10, %v3282_v6, %v3278_v15  ;;  %v3404_v5 = vsel %vm1041_vm2, %v3104_v55, %v3392_v53  ;;  %vm8217_vm6 = vcmp.eq.f32.partialorder %v2559_v58, 8.507059e+37  ;;  %v2972_v21 = vsub.f32 1.0, %v2971_v11  ;;  %vm2557_vm12 = vmor %vm2555_vm11, %vm2556_vm9 }
 0x376   :  { %v3284_v45 = vmul.f32 %v3283_v49, %v9403_v41  ;;  %v2554_v48 = vadd.f32 %v7522_v51, %v2553_v2  ;;  %v2562_v60 = vor.u32 1.1754944e-38, %v2561_v62  ;;  %vm2976_vm14 = vweird.f32 %v7513_v63  ;;  %v9415_v2 = vld [vmem:[#allocation41_spill] sm:$0xff]  ;;  %v9416_v49 = vld [vmem:[#allocation36_spill] sm:$0xff] }
 0x377   :  { %v2973_v20 = vmul.f32 %v7513_v63, %v2972_v21  ;;  %v2979_v12 = vand.u32 2147483647, %v7453_v38  ;;  %v2981_v46 = vand.u32 2147483648, %v7453_v38  ;;  %v3151_v44 = vmul.f32 %v9405_v50, %v9404_v27 }
 0x378   :  { %v3416_v40 = vsel %vm1318_vm4, %v3284_v45, %v3404_v5  ;;  %v2558_v18 = vsel %vm2557_vm12, %v7522_v51, %v2554_v48  ;;  %vm2975_vm13 = vweird.f32 %v7453_v38  ;;  %vm3155_vm8 = vweird.f32 %v9404_v27  ;;  %v9417_v5 = vld [vmem:[#allocation75_spill] sm:$0xff] }
 0x379   :  { %v3428_v37 = vsel %vm424_vm1, %v9406_v59, %v3416_v40  ;;  %v2563_v4 = vsel %vm8217_vm6, %v2562_v60, %v2558_v18  ;;  %v2974_v31 = vadd.f32 %v7513_v63, %v2973_v20  ;;  %v2982_v19 = vor.u32 1.1754944e-38, %v2981_v46  ;;  %vm2977_vm10 = vmor %vm2975_vm13, %vm2976_vm14  ;;  %v9420_v45 = vld [vmem:[#allocation27_spill] sm:$0xff]  ;;  %v9421_v46 = vld [vmem:[#allocation100_spill] sm:$0xff]  ;;  %v3484_v18 = vpop.permute.xlu0 %3483 }
 0x37a   :  { %v3501_v16 = vsel %vm3435_vm7, %v3464_v24, %v3428_v37  ;;  %v2564_v39 = vmul.f32 %v2563_v4, %v9407_v30  ;;  %v3152_v38 = vsub.f32 1.0, %v3151_v44  ;;  %v3159_v51 = vand.u32 2147483647, %v9404_v27  ;;  %v9422_v4 = vld [vmem:[#allocation73_spill] sm:$0xff] }
 0x37b   :  { %3513 = vst.msk [vmem:[%s8442_s5 + $0x28] sm:$0xff] %vm374_vm3, %v3501_v16  ;;  %v2978_v57 = vsel %vm2977_vm10, %v7513_v63, %v2974_v31  ;;  %vm2980_vm11 = vcmp.eq.f32.partialorder %v2979_v12, 8.507059e+37  ;;  %v3161_v14 = vand.u32 2147483648, %v9404_v27  ;;  %v3331_v17 = vmul.f32 %v9409_v33, %v9408_v3  ;;  %v9423_v31 = vld [vmem:[#allocation24_spill] sm:$0xff] }
 0x37c   :  { %v2983_v47 = vsel %vm2980_vm11, %v2982_v19, %v2978_v57  ;;  %v3153_v54 = vmul.f32 %v9405_v50, %v3152_v38  ;;  %vm3156_vm5 = vweird.f32 %v9405_v50  ;;  %vm3335_vm9 = vweird.f32 %v9408_v3 }
 0x37d   :  { %v2984_v23 = vmul.f32 %v2983_v47, %v2832_v32  ;;  %vm8259_vm6 = vcmp.eq.f32.partialorder %v3159_v51, 8.507059e+37  ;;  %v3332_v8 = vsub.f32 1.0, %v3331_v17  ;;  %v3339_v63 = vand.u32 2147483647, %v9408_v3  ;;  %vm3157_vm14 = vmor %vm3155_vm8, %vm3156_vm5  ;;  %v9427_v51 = vld [vmem:[#allocation74_spill] sm:$0xff] }
 0x37e   :  { %v3154_v36 = vadd.f32 %v9405_v50, %v3153_v54  ;;  %v3341_v26 = vand.u32 2147483648, %v9408_v3  ;;  %v3384_v1 = vsel %vm487_vm15, %v2564_v39, 0.0  ;;  %v2536_v61 = vmul.f32 %v7477_v42, %v9412_v9  ;;  %v9435_v39 = vld [vmem:[#allocation11_spill] sm:$0xff] }
 0x37f   :  { %v3162_v53 = vor.u32 1.1754944e-38, %v3161_v14  ;;  %v3333_v43 = vmul.f32 %v9409_v33, %v3332_v8  ;;  %vm3336_vm12 = vweird.f32 %v9409_v33  ;;  %v3396_v35 = vsel %vm764_vm0, %v2984_v23, %v3384_v1  ;;  %v9428_v8 = vld [vmem:[#allocation40_spill] sm:$0xff] }
 0x380   :  { %v3158_v56 = vsel %vm3157_vm14, %v9405_v50, %v3154_v36  ;;  %vm8277_vm13 = vcmp.eq.f32.partialorder %v3339_v63, 8.507059e+37  ;;  %v3342_v10 = vor.u32 1.1754944e-38, %v3341_v26  ;;  %v2537_v55 = vsub.f32 1.0, %v2536_v61  ;;  %vm3337_vm8 = vmor %vm3335_vm9, %vm3336_vm12  ;;  %v9429_v63 = vld [vmem:[#allocation42_spill] sm:$0xff] }
 0x381   :  { %v3163_v6 = vsel %vm8259_vm6, %v3162_v53, %v3158_v56  ;;  %v3334_v62 = vadd.f32 %v9409_v33, %v3333_v43  ;;  %v2544_v11 = vand.u32 2147483647, %v9412_v9  ;;  %v2546_v15 = vand.u32 2147483648, %v9412_v9 }
 0x382   :  { %v3164_v25 = vmul.f32 %v3163_v6, %v9415_v2  ;;  %v2538_v32 = vmul.f32 %v7477_v42, %v2537_v55  ;;  %vm2541_vm10 = vweird.f32 %v7477_v42  ;;  %v2956_v28 = vmul.f32 %v9417_v5, %v9416_v49 }
 0x383   :  { %v3338_v21 = vsel %vm3337_vm8, %v9409_v33, %v3334_v62  ;;  %vm2540_vm11 = vweird.f32 %v9412_v9  ;;  %vm8295_vm5 = vcmp.eq.f32.partialorder %v2544_v11, 8.507059e+37  ;;  %v2831_v48 = vmul.f32 0.25, %v9420_v45 }
 0x384   :  { %v3343_v60 = vsel %vm8277_vm13, %v3342_v10, %v3338_v21  ;;  %v3408_v24 = vsel %vm1041_vm2, %v3164_v25, %v3396_v35  ;;  %v2539_v20 = vadd.f32 %v7477_v42, %v2538_v32  ;;  %v2957_v12 = vsub.f32 1.0, %v2956_v28  ;;  %vm2542_vm9 = vmor %vm2540_vm11, %vm2541_vm10 }
 0x385   :  { %v3344_v27 = vmul.f32 %v3343_v60, %v9421_v46  ;;  %v2547_v50 = vor.u32 1.1754944e-38, %v2546_v15  ;;  %v2964_v44 = vand.u32 2147483647, %v9416_v49  ;;  %v2966_v40 = vand.u32 2147483648, %v9416_v49  ;;  %v9430_v15 = vld [vmem:[#allocation33_spill] sm:$0xff]  ;;  %v9431_v60 = vld [vmem:[#allocation30_spill] sm:$0xff] }
 0x386   :  { %v2543_v59 = vsel %vm2542_vm9, %v7477_v42, %v2539_v20  ;;  %v2958_v37 = vmul.f32 %v9417_v5, %v2957_v12  ;;  %vm2961_vm6 = vweird.f32 %v9417_v5  ;;  %v3136_v19 = vmul.f32 %v9423_v31, %v9422_v4  ;;  %v9426_v42 = vld [vmem:[#allocation13_spill] sm:$0xff] }
 0x387   :  { %v3420_v16 = vsel %vm1318_vm4, %v3344_v27, %v3408_v24  ;;  %v2548_v30 = vsel %vm8295_vm5, %v2547_v50, %v2543_v59  ;;  %vm2960_vm14 = vweird.f32 %v9416_v49  ;;  %vm8318_vm12 = vcmp.eq.f32.partialorder %v2964_v44, 8.507059e+37  ;;  %v9432_v27 = vld [vmem:[#allocation99_spill] sm:$0xff] }
 0x388   :  { %v3432_v38 = vsel %vm424_vm1, %v9426_v42, %v3420_v16  ;;  %v2549_v57 = vmul.f32 %v2548_v30, %v9427_v51  ;;  %v2959_v14 = vadd.f32 %v9417_v5, %v2958_v37  ;;  %v3137_v3 = vsub.f32 1.0, %v3136_v19  ;;  %vm2962_vm13 = vmor %vm2960_vm14, %vm2961_vm6  ;;  %v9434_v59 = vld [vmem:[#allocation91_spill] sm:$0xff] }
 0x389   :  { %v3505_v33 = vsel %vm3435_vm7, %v3484_v18, %v3432_v38  ;;  %v2967_v17 = vor.u32 1.1754944e-38, %v2966_v40  ;;  %v3144_v47 = vand.u32 2147483647, %v9422_v4  ;;  %v3146_v54 = vand.u32 2147483648, %v9422_v4  ;;  %v9433_v18 = vld [vmem:[#allocation15_spill] sm:$0xff]  ;;  %v9436_v38 = vld [vmem:[#allocation82_spill] sm:$0xff] }
 0x38a   :  { %3517 = vst.msk [vmem:[%s8442_s5 + $0x48] sm:$0xff] %vm374_vm3, %v3505_v33  ;;  %v2963_v23 = vsel %vm2962_vm13, %v9417_v5, %v2959_v14  ;;  %v3138_v22 = vmul.f32 %v9423_v31, %v3137_v3  ;;  %vm3141_vm8 = vweird.f32 %v9423_v31  ;;  %v3316_v36 = vmul.f32 %v9429_v63, %v9428_v8 }
 0x38b   :  { %3938 = vrcp.f32 %v7480_v29  ;;  %v2968_v26 = vsel %vm8318_vm12, %v2967_v17, %v2963_v23  ;;  %vm3140_vm10 = vweird.f32 %v9422_v4  ;;  %vm3145_vm11 = vcmp.eq.f32.partialorder %v3144_v47, 8.507059e+37  ;;  %v3479_v4 = vpop.permute.xlu1 %3478 }
 0x38c   :  { %v2969_v1 = vmul.f32 %v2968_v26, %v2831_v48  ;;  %v3139_v9 = vadd.f32 %v9423_v31, %v3138_v22  ;;  %v3147_v61 = vor.u32 1.1754944e-38, %v3146_v54  ;;  %v3317_v53 = vsub.f32 1.0, %v3316_v36  ;;  %vm3142_vm5 = vmor %vm3140_vm10, %vm3141_vm8 }
 0x38d   :  { %vm3321_vm9 = vweird.f32 %v9429_v63  ;;  %v3326_v43 = vand.u32 2147483648, %v9428_v8  ;;  %v3383_v35 = vsel %vm487_vm15, %v2549_v57, 0.0  ;;  %v2581_v56 = vmul.f32 %v7560_v13, %v7516_v34 }
 0x38e   :  { %v3143_v58 = vsel %vm3142_vm5, %v9423_v31, %v3139_v9  ;;  %v3318_v10 = vmul.f32 %v9429_v63, %v3317_v53  ;;  %v3324_v55 = vand.u32 2147483647, %v9428_v8  ;;  %v3395_v6 = vsel %vm764_vm0, %v2969_v1, %v3383_v35 }
 0x38f   :  { %v3148_v62 = vsel %vm3145_vm11, %v3147_v61, %v3143_v58  ;;  %vm3320_vm6 = vweird.f32 %v9428_v8  ;;  %v2582_v11 = vsub.f32 1.0, %v2581_v56  ;;  %vm2585_vm14 = vweird.f32 %v7516_v34  ;;  %v9437_v56 = vld [vmem:[#allocation46_spill] sm:$0xff] }
 0x390   :  { %v3149_v2 = vmul.f32 %v3148_v62, %v9430_v15  ;;  %v3319_v25 = vadd.f32 %v9429_v63, %v3318_v10  ;;  %v2589_v32 = vand.u32 2147483647, %v7516_v34  ;;  %v2591_v49 = vand.u32 2147483648, %v7516_v34  ;;  %vm3322_vm12 = vmor %vm3320_vm6, %vm3321_vm9 }
 0x391   :  { %v8362_v5 = vpop.eup %3938  ;;  %v3327_v28 = vor.u32 1.1754944e-38, %v3326_v43  ;;  %v2583_v21 = vmul.f32 %v7560_v13, %v2582_v11  ;;  %vm2586_vm13 = vweird.f32 %v7560_v13  ;;  %v3001_v41 = vmul.f32 %v7572_v7, %v7518_v52  ;;  %v9438_v11 = vld [vmem:[#allocation101_spill] sm:$0xff] }
 0x392   :  { %v3323_v45 = vsel %vm3322_vm12, %v9429_v63, %v3319_v25  ;;  %vm3325_vm8 = vcmp.eq.f32.partialorder %v3324_v55, 8.507059e+37  ;;  %v3407_v48 = vsel %vm1041_vm2, %v3149_v2, %v3395_v6  ;;  %v2834_v24 = vmul.f32 0.25, %v9431_v60  ;;  %vm2587_vm11 = vmor %vm2585_vm14, %vm2586_vm13 }
 0x393   :  { %v3328_v20 = vsel %vm3325_vm8, %v3327_v28, %v3323_v45  ;;  %v2584_v12 = vadd.f32 %v7560_v13, %v2583_v21  ;;  %vm2590_vm10 = vcmp.eq.f32.partialorder %v2589_v32, 8.507059e+37  ;;  %v3002_v46 = vsub.f32 1.0, %v3001_v41  ;;  %v3494_v2 = vpop.permute.xlu1 %3493  ;;  %v9439_v32 = vld [vmem:[#allocation14_spill] sm:$0xff] }
 0x394   :  { %v3329_v50 = vmul.f32 %v3328_v20, %v9432_v27  ;;  %v2592_v44 = vor.u32 1.1754944e-38, %v2591_v49  ;;  %v3011_v40 = vand.u32 2147483648, %v7518_v52  ;;  %v3181_v37 = vmul.f32 %v9434_v59, %v9433_v18 }
 0x395   :  { %v2588_v31 = vsel %vm2587_vm11, %v7560_v13, %v2584_v12  ;;  %v3003_v19 = vmul.f32 %v7572_v7, %v3002_v46  ;;  %vm3006_vm5 = vweird.f32 %v7572_v7  ;;  %v3009_v16 = vand.u32 2147483647, %v7518_v52 }
 0x396   :  { %v3419_v30 = vsel %vm1318_vm4, %v3329_v50, %v3407_v48  ;;  %v2593_v34 = vsel %vm2590_vm10, %v2592_v44, %v2588_v31  ;;  %vm3005_vm9 = vweird.f32 %v7518_v52  ;;  %vm3186_vm6 = vweird.f32 %v9434_v59 }
 0x397   :  { %v3431_v42 = vsel %vm424_vm1, %v9435_v39, %v3419_v30  ;;  %v2594_v13 = vmul.f32 %v2593_v34, %v9436_v38  ;;  %v3004_v51 = vadd.f32 %v7572_v7, %v3003_v19  ;;  %v3182_v57 = vsub.f32 1.0, %v3181_v37  ;;  %vm3007_vm14 = vmor %vm3005_vm9, %vm3006_vm5 }
 0x398   :  { %v3504_v14 = vsel %vm3435_vm7, %v3479_v4, %v3431_v42  ;;  %v3012_v3 = vor.u32 1.1754944e-38, %v3011_v40  ;;  %v3191_v33 = vand.u32 2147483648, %v9433_v18  ;;  %v3361_v52 = vmul.f32 %v8362_v5, %v7480_v29 }
 0x399   :  { %3516 = vst.msk [vmem:[%s8442_s5 + $0x40] sm:$0xff] %vm374_vm3, %v3504_v14  ;;  %v3008_v17 = vsel %vm3007_vm14, %v7572_v7, %v3004_v51  ;;  %vm3010_vm12 = vcmp.eq.f32.partialorder %v3009_v16, 8.507059e+37  ;;  %v3183_v47 = vmul.f32 %v9434_v59, %v3182_v57  ;;  %v3189_v54 = vand.u32 2147483647, %v9433_v18 }
 0x39a   :  { %v3013_v23 = vsel %vm3010_vm12, %v3012_v3, %v3008_v17  ;;  %vm3185_vm13 = vweird.f32 %v9433_v18  ;;  %v3362_v22 = vsub.f32 1.0, %v3361_v52  ;;  %vm3366_vm8 = vweird.f32 %v8362_v5 }
 0x39b   :  { %v3014_v8 = vmul.f32 %v3013_v23, %v2834_v24  ;;  %v3184_v63 = vadd.f32 %v9434_v59, %v3183_v47  ;;  %v3371_v36 = vand.u32 2147483648, %v7480_v29  ;;  %vm3187_vm3 = vmor %vm3185_vm13, %vm3186_vm6  ;;  %v3192_v7 = vor.u32 1.1754944e-38, %v3191_v33 }
 0x39c   :  { %v3363_v26 = vmul.f32 %v8362_v5, %v3362_v22  ;;  %v3369_v1 = vand.u32 2147483647, %v7480_v29  ;;  %v3386_v9 = vsel %vm487_vm15, %v2594_v13, 0.0  ;;  %vm3190_vm10 = vcmp.eq.f32.partialorder %v3189_v54, 8.507059e+37 }
 0x39d   :  { %v3188_v61 = vsel %vm3187_vm3, %v9434_v59, %v3184_v63  ;;  %v3398_v53 = vsel %vm764_vm0, %v3014_v8, %v3386_v9  ;;  %vm3365_vm11 = vweird.f32 %v7480_v29  ;;  %v3372_v10 = vor.u32 1.1754944e-38, %v3371_v36 }
 0x39e   :  { %v3193_v43 = vsel %vm3190_vm10, %v3192_v7, %v3188_v61  ;;  %v3364_v35 = vadd.f32 %v8362_v5, %v3363_v26  ;;  %vm3367_vm5 = vmor %vm3365_vm11, %vm3366_vm8  ;;  %vm3370_vm9 = vcmp.eq.f32.partialorder %v3369_v1, 8.507059e+37  ;;  %vm9440_vm15 = vcmask 58368  }
 0x39f   :  { %v3194_v58 = vmul.f32 %v3193_v43, %v9437_v56 }
 0x3a0   :  { %v3368_v55 = vsel %vm3367_vm5, %v8362_v5, %v3364_v35 }
 0x3a1   :  { %v3373_v6 = vsel %vm3370_vm9, %v3372_v10, %v3368_v55  ;;  %v3410_v62 = vsel %vm1041_vm2, %v3194_v58, %v3398_v53 }
 0x3a2   :  { %v3374_v15 = vmul.f32 %v3373_v6, %v9438_v11 }
 0x3a4   :  { %v3422_v25 = vsel %vm1318_vm4, %v3374_v15, %v3410_v62 }
 0x3a5   :  { %v3434_v29 = vsel %vm424_vm1, %v9439_v32, %v3422_v25 }
 0x3a6   :  { %v3507_v49 = vsel %vm3435_vm7, %v3494_v2, %v3434_v29 }
 0x3a7   :  { %3519 = vst.msk [vmem:[%s8442_s5 + $0x58] sm:$0x3] %vm9440_vm15, %v3507_v49 }

// kernel: set_criterion_forward.6
= control target key start
LH: loop header
LB: loop body
LE: loop exit
PB: predicated region body
PF: predicated region fallthrough
CT: control target
= control target key end

     0   :  { %s494_s9 = smov 0   ;;  %s574_s0 = inlined_call_operand.vmem [shape: f32[48,64], index: 0, kind: input, shape index: {}]   ;;  %s575_s1 = inlined_call_operand.vmem [shape: f32[64,8], index: 1, kind: input, shape index: {}]   ;;  %s576_s2 = inlined_call_operand.vmem [shape: f32[2,8,128], index: 2, kind: output, shape index: {}]  }
   0x1 LB: > { %s500_s10 = sadd.s32 4294967295, %s476_s9   ;;  %p404_p0 = scmp.ge.s32.totalorder %s476_s9, 1  ;;  %s476_s9 = sphi %s494_s9, %s12_s9  }
   0x2   : > { %p113_p1 = scmp.lt.s32.totalorder %s476_s9, 3 }
   0x4   : > { %p114_p2 = pnand %p404_p0, %p113_p1 }
   0x5   : > { %p140_p3 = scmp.lt.s32.totalorder (!%p114_p2), %s500_s10, 1  ;;  %s134_s15 = smul.u32 (!%p114_p2), 3, %s500_s10 }
   0x6   : > { %117 = sbr.rel (%p114_p2) target bundleno = 603 (0x25b), region = 28  ;;  %p410_p5 = scmp.ge.s32.totalorder (!%p114_p2), %s500_s10, 1 }
   0x7   : > { %p135_p4 = scmp.lt.s32.totalorder (!%p114_p2), %s134_s15, 5 }
   0xb   : > { %v154_v0 = vld [vmem:[%s575_s1 + $0x38] sm:$0xff]  ;;  %v153_v1 = vld [vmem:[%s575_s1 + $0x30] sm:$0xff]  ;;  %v152_v2 = vld [vmem:[%s575_s1 + $0x28] sm:$0xff]  ;;  %s141_s18 = scalar_select %p140_p3, %s500_s10, 1  ;;  %vm155_vm0 = vcmask 523264  }
   0xc   : > { %418 = vmatpush.msra.mxu2 %v154_v0  ;;  %173 = vmatpush.msra.mxu0 %v154_v0  ;;  %v151_v3 = vld [vmem:[%s575_s1 + $0x20] sm:$0xff]  ;;  %v150_v4 = vld [vmem:[%s575_s1 + $0x18] sm:$0xff]  ;;  %s580_s15 = smov (!%p135_p4, %s134_s15), 5  ;;  %v149_v5 = vld [vmem:[%s575_s1 + $0x10] sm:$0xff] }
   0xd   : > { %417 = vmatpush.msra.mxu1 %v154_v0  ;;  %s406_s19 = sshll.u32 %s141_s18, 3  ;;  %s405_s29 = sshll.u32 %s580_s15, 3  ;;  %v148_v6 = vld [vmem:[%s575_s1 + $0x8] sm:$0xff]  ;;  %v147_v7 = vld [vmem:[%s575_s1] sm:$0xff] }
   0xe   : > { %420 = vmatpush.msra.mxu2 %v153_v1  ;;  %174 = vmatpush.msra.mxu0 %v153_v1  ;;  %s522_s24 = scalar_lea.vmem %s576_s2, %s406_s19  ;;  %s138_s6 = scalar_lea.vmem %s574_s0, %s405_s29 }
   0xf   : > { %419 = vmatpush.msra.mxu1 %v153_v1  ;;  %v146_v8 = vld [vmem:[%s138_s6 + $0x10] sm:$0xff]  ;;  %v144_v9 = vld [vmem:[%s138_s6] sm:$0xff]  ;;  %v145_v10 = vld [vmem:[%s138_s6 + $0x8] sm:$0xff] }
  0x10   : > { %422 = vmatpush.msra.mxu2 %v152_v2  ;;  %175 = vmatpush.msra.mxu0 %v152_v2 }
  0x11   : > { %421 = vmatpush.msra.mxu1 %v152_v2 }
  0x12   : > { %424 = vmatpush.msra.mxu2 %v151_v3  ;;  %176 = vmatpush.msra.mxu0 %v151_v3 }
  0x13   : > { %423 = vmatpush.msra.mxu1 %v151_v3 }
  0x14   : > { %426 = vmatpush.msra.mxu2 %v150_v4  ;;  %177 = vmatpush.msra.mxu0 %v150_v4 }
  0x15   : > { %425 = vmatpush.msra.mxu1 %v150_v4 }
  0x16   : > { %428 = vmatpush.msra.mxu2 %v149_v5  ;;  %178 = vmatpush.msra.mxu0 %v149_v5 }
  0x17   : > { %427 = vmatpush.msra.mxu1 %v149_v5 }
  0x18   : > { %430 = vmatpush.msra.mxu2 %v148_v6  ;;  %179 = vmatpush.msra.mxu0 %v148_v6 }
  0x19   : > { %429 = vmatpush.msra.mxu1 %v148_v6 }
  0x1a   : > { %432 = vmatpush.msra.mxu2 %v147_v7  ;;  %180 = vmatpush.msra.mxu0 %v147_v7 }
  0x1b   : > { %409 = vmatmul.msk.f32.vlgmr.msra.gmra.mxu2 %vm155_vm0, %v146_v8  ;;  %431 = vmatpush.msra.mxu1 %v147_v7 }
  0x1c   : > { %407 = vmatmul.msk.f32.vlgmr.msra.gmra.mxu0 %vm155_vm0, %v144_v9  ;;  %408 = vmatmul.msk.f32.vlgmr.msra.gmra.mxu1 %vm155_vm0, %v145_v10 }
  0x99   : > { %v539_v11 = vpop.f32.mrf.mxu0  ;;  %v541_v12 = vpop.f32.mrf.mxu1 }
  0x9a   : > { %194 = sbr.rel (%p410_p5) target bundleno = 372 (0x174), region = 32 }
  0x9e   : > { %v543_v13 = vpop.f32.mrf.mxu2 }
  0x9f   : > { %v198_v14 = vand.u32 2147483647, %v539_v11  ;;  %v199_v15 = vand.u32 2147483647, %v541_v12  ;;  %v200_v16 = vand.u32 2147483647, %v543_v13 }
  0xa0   : > { %v195_v40 = vmax.f32 %v539_v11, 0.0  ;;  %v196_v43 = vmax.f32 %v541_v12, 0.0  ;;  %v197_v47 = vmax.f32 %v543_v13, 0.0  ;;  %vm240_vm4 = vcmask 64512  }
  0xa1   : > { %v201_v17 = vsub.f32 0.0, %v198_v14  ;;  %v202_v18 = vsub.f32 0.0, %v199_v15  ;;  %v203_v19 = vsub.f32 0.0, %v200_v16 }
  0xa3   : > { %v204_v20 = vmul.f32 1.442695, %v201_v17  ;;  %v206_v21 = vmul.f32 1.442695, %v202_v18  ;;  %v208_v22 = vmul.f32 1.442695, %v203_v19 }
  0xa5   : > { %446 = vpow2.f32 %v204_v20 }
  0xa6   : > { %448 = vpow2.f32 %v206_v21 }
  0xa7   : > { %450 = vpow2.f32 %v208_v22 }
  0xab   : > { %v447_v23 = vpop.eup %446 }
  0xac   : > { %v449_v24 = vpop.eup %448  ;;  %v210_v25 = vadd.f32 1.0, %v447_v23  ;;  %v213_v26 = vmul.f32 -0.5, %v447_v23  ;;  %v216_v33 = vand.u32 2147483647, %v447_v23 }
  0xad   : > { %v451_v27 = vpop.eup %450  ;;  %v219_v28 = vadd.f32 1.0, %v449_v24  ;;  %v222_v29 = vmul.f32 -0.5, %v449_v24  ;;  %v225_v35 = vand.u32 2147483647, %v449_v24 }
  0xae   : > { %452 = vlog2.f32 %v210_v25  ;;  %v228_v30 = vadd.f32 1.0, %v451_v27  ;;  %v214_v31 = vadd.f32 1.0, %v213_v26  ;;  %v231_v32 = vmul.f32 -0.5, %v451_v27 }
  0xaf   : > { %454 = vlog2.f32 %v219_v28  ;;  %v223_v34 = vadd.f32 1.0, %v222_v29  ;;  %v234_v37 = vand.u32 2147483647, %v451_v27  ;;  %vm217_vm1 = vcmp.lt.f32.partialorder %v216_v33, 0.0004427343 }
  0xb0   : > { %456 = vlog2.f32 %v228_v30  ;;  %v232_v36 = vadd.f32 1.0, %v231_v32  ;;  %v215_v38 = vmul.f32 %v447_v23, %v214_v31  ;;  %vm226_vm2 = vcmp.lt.f32.partialorder %v225_v35, 0.0004427343 }
  0xb1   : > { %v224_v41 = vmul.f32 %v449_v24, %v223_v34  ;;  %vm235_vm3 = vcmp.lt.f32.partialorder %v234_v37, 0.0004427343 }
  0xb2   : > { %v233_v45 = vmul.f32 %v451_v27, %v232_v36 }
  0xb4   : > { %v453_v39 = vpop.eup %452 }
  0xb5   : > { %v455_v42 = vpop.eup %454  ;;  %v212_v44 = vmul.f32 0.6931472, %v453_v39 }
  0xb6   : > { %v457_v46 = vpop.eup %456  ;;  %v221_v48 = vmul.f32 0.6931472, %v455_v42 }
  0xb7   : > { %v218_v49 = vsel %vm217_vm1, %v215_v38, %v212_v44  ;;  %v230_v50 = vmul.f32 0.6931472, %v457_v46 }
  0xb8   : > { %v227_v51 = vsel %vm226_vm2, %v224_v41, %v221_v48  ;;  %v237_v52 = vadd.f32 %v218_v49, %v195_v40 }
  0xb9   : > { %v236_v53 = vsel %vm235_vm3, %v233_v45, %v230_v50  ;;  %v238_v54 = vadd.f32 %v227_v51, %v196_v43 }
  0xba   : > { %v239_v55 = vadd.f32 %v236_v53, %v197_v47  ;;  %v241_v56 = vsel %vm240_vm4, %v237_v52, 0.0 }
  0xbb   : > { %v242_v57 = vsel %vm240_vm4, %v238_v54, 0.0 }
  0xbc   : > { %v243_v58 = vadd.f32 %v242_v57, %v241_v56  ;;  %v244_v59 = vsel %vm240_vm4, %v239_v55, 0.0 }
  0xbe   : > { %v245_v60 = vadd.f32 %v244_v59, %v243_v58 }
  0xc0   : > { %246 = vadd.xlane.f32.xlu0 %v245_v60 }
 0x133   : > { %v247_v61 = vpop.xlane.xlu0 %246 }
 0x134   : > { %v248_v62 = vrot.slane %v247_v61, 4 }
 0x136   : > { %v249_v63 = vadd.f32 %v248_v62, %v247_v61 }
 0x138   : > { %v250_v0 = vrot.slane %v249_v63, 2 }
 0x13a   : > { %v251_v1 = vadd.f32 %v250_v0, %v249_v63 }
 0x13c   : > { %v252_v2 = vrot.slane %v251_v1, 1 }
 0x13e   : > { %v253_v3 = vadd.f32 %v252_v2, %v251_v1 }
 0x140   : > { %433 = vpush %v253_v3 }
 0x171   : > { %s434_s11 = spop %433 }
 0x172   : > { %v255_v4 = vstv %s434_s11 }
 0x173   : > { %256 = vst [vmem:[%s522_s24] sm:$0xff] %v255_v4 }
 0x174 PF: > { %p411_p6 = scmp.ne.s32.totalorder %s500_s10, 1 }
 0x175   : > { %s265_s12 = smul.u32 (!%p411_p6), 24, %s500_s10 }
 0x176   : > { %260 = sbr.rel (%p411_p6) target bundleno = 603 (0x25b), region = 36 }
 0x17b   : > { %v261_v5 = vlaneseq  ;;  %v266_v7 = vstv %s265_s12  ;;  %v478_v54 = vmov 0.0   ;;  %vm330_vm11 = vcmask 64512  }
 0x17d   : > { %v262_v6 = vshrl.u32 %v261_v5, 7 }
 0x17f   : > { %v263_v8 = vadd.s32 8, %v262_v6  ;;  %v264_v9 = vadd.s32 16, %v262_v6  ;;  %v267_v10 = vadd.s32 %v266_v7, %v262_v6 }
 0x181   : > { %v268_v14 = vadd.s32 %v266_v7, %v263_v8  ;;  %v269_v15 = vadd.s32 %v266_v7, %v264_v9  ;;  %vm270_vm5 = vcmp.lt.s32.totalorder %v267_v10, 48 }
 0x182   : > { %v273_v16 = vsel %vm270_vm5, %v539_v11, 0.0  ;;  %v412_v55 = vsel %vm270_vm5, 1.0, %v478_v54 }
 0x183   : > { %vm271_vm6 = vcmp.lt.s32.totalorder %v268_v14, 48  ;;  %vm272_vm7 = vcmp.lt.s32.totalorder %v269_v15, 48  ;;  %v279_v17 = vand.u32 2147483647, %v273_v16  ;;  %v276_v42 = vmax.f32 %v273_v16, 0.0 }
 0x184   : > { %v274_v18 = vsel %vm271_vm6, %v541_v12, 0.0  ;;  %v275_v19 = vsel %vm272_vm7, %v543_v13, 0.0  ;;  %v413_v58 = vsel %vm271_vm6, 1.0, %v478_v54  ;;  %v414_v61 = vsel %vm272_vm7, 1.0, %v478_v54 }
 0x185   : > { %v280_v20 = vand.u32 2147483647, %v274_v18  ;;  %v281_v21 = vand.u32 2147483647, %v275_v19  ;;  %v282_v22 = vsub.f32 0.0, %v279_v17  ;;  %v277_v46 = vmax.f32 %v274_v18, 0.0 }
 0x186   : > { %v278_v50 = vmax.f32 %v275_v19, 0.0 }
 0x187   : > { %v283_v23 = vsub.f32 0.0, %v280_v20  ;;  %v284_v24 = vsub.f32 0.0, %v281_v21  ;;  %v285_v25 = vmul.f32 1.442695, %v282_v22 }
 0x189   : > { %v287_v26 = vmul.f32 1.442695, %v283_v23  ;;  %v289_v27 = vmul.f32 1.442695, %v284_v24  ;;  %458 = vpow2.f32 %v285_v25 }
 0x18b   : > { %460 = vpow2.f32 %v287_v26 }
 0x18c   : > { %462 = vpow2.f32 %v289_v27 }
 0x18f   : > { %v459_v11 = vpop.eup %458 }
 0x190   : > { %v291_v29 = vadd.f32 1.0, %v459_v11  ;;  %v294_v30 = vmul.f32 -0.5, %v459_v11  ;;  %v297_v35 = vand.u32 2147483647, %v459_v11 }
 0x191   : > { %v461_v28 = vpop.eup %460 }
 0x192   : > { %v463_v31 = vpop.eup %462  ;;  %v300_v12 = vadd.f32 1.0, %v461_v28  ;;  %v303_v32 = vmul.f32 -0.5, %v461_v28  ;;  %464 = vlog2.f32 %v291_v29  ;;  %v295_v33 = vadd.f32 1.0, %v294_v30 }
 0x193   : > { %v309_v13 = vadd.f32 1.0, %v463_v31  ;;  %v312_v34 = vmul.f32 -0.5, %v463_v31  ;;  %v306_v37 = vand.u32 2147483647, %v461_v28  ;;  %v315_v39 = vand.u32 2147483647, %v463_v31 }
 0x194   : > { %466 = vlog2.f32 %v300_v12  ;;  %v304_v36 = vadd.f32 1.0, %v303_v32  ;;  %v296_v40 = vmul.f32 %v459_v11, %v295_v33  ;;  %vm561_vm8 = vcmp.lt.f32.partialorder %v297_v35, 0.0004427343 }
 0x195   : > { %468 = vlog2.f32 %v309_v13  ;;  %v313_v38 = vadd.f32 1.0, %v312_v34  ;;  %vm307_vm9 = vcmp.lt.f32.partialorder %v306_v37, 0.0004427343  ;;  %vm316_vm10 = vcmp.lt.f32.partialorder %v315_v39, 0.0004427343 }
 0x196   : > { %v305_v44 = vmul.f32 %v461_v28, %v304_v36 }
 0x197   : > { %v314_v48 = vmul.f32 %v463_v31, %v313_v38 }
 0x198   : > { %v465_v41 = vpop.eup %464 }
 0x199   : > { %v293_v47 = vmul.f32 0.6931472, %v465_v41 }
 0x19a   : > { %v467_v45 = vpop.eup %466 }
 0x19b   : > { %v469_v49 = vpop.eup %468  ;;  %v302_v51 = vmul.f32 0.6931472, %v467_v45  ;;  %v299_v52 = vsel %vm561_vm8, %v296_v40, %v293_v47 }
 0x19c   : > { %v311_v53 = vmul.f32 0.6931472, %v469_v49  ;;  %v318_v57 = vadd.f32 %v299_v52, %v276_v42 }
 0x19d   : > { %v308_v56 = vsel %vm307_vm9, %v305_v44, %v302_v51 }
 0x19e   : > { %v317_v59 = vsel %vm316_vm10, %v314_v48, %v311_v53  ;;  %v319_v60 = vadd.f32 %v308_v56, %v277_v46  ;;  %v327_v63 = vmul.f32 %v412_v55, %v318_v57 }
 0x19f   : > { %v320_v62 = vadd.f32 %v317_v59, %v278_v50 }
 0x1a0   : > { %v328_v0 = vmul.f32 %v413_v58, %v319_v60  ;;  %v331_v2 = vsel %vm330_vm11, %v327_v63, 0.0 }
 0x1a1   : > { %v329_v1 = vmul.f32 %v414_v61, %v320_v62 }
 0x1a2   : > { %v332_v3 = vsel %vm330_vm11, %v328_v0, 0.0 }
 0x1a3   : > { %v333_v4 = vadd.f32 %v332_v3, %v331_v2  ;;  %v334_v5 = vsel %vm330_vm11, %v329_v1, 0.0 }
 0x1a5   : > { %v335_v6 = vadd.f32 %v334_v5, %v333_v4 }
 0x1a7   : > { %336 = vadd.xlane.f32.xlu0 %v335_v6 }
 0x21a   : > { %v337_v7 = vpop.xlane.xlu0 %336 }
 0x21b   : > { %v338_v8 = vrot.slane %v337_v7, 4 }
 0x21d   : > { %v339_v9 = vadd.f32 %v338_v8, %v337_v7 }
 0x21f   : > { %v340_v10 = vrot.slane %v339_v9, 2 }
 0x221   : > { %v341_v14 = vadd.f32 %v340_v10, %v339_v9 }
 0x223   : > { %v342_v16 = vrot.slane %v341_v14, 1 }
 0x225   : > { %v343_v15 = vadd.f32 %v342_v16, %v341_v14 }
 0x227   : > { %435 = vpush %v343_v15 }
 0x258   : > { %s436_s10 = spop %435 }
 0x259   : > { %v345_v17 = vstv %s436_s10 }
 0x25a   : > { %346 = vst [vmem:[%s522_s24] sm:$0xff] %v345_v17 }
 0x25b PF: > { %s12_s9 = sadd.s32 1, %s476_s9  }
 0x25c   : > { %p9_p7 = scmp.ge.s32.totalorder %s12_s9, 4  }
 0x25e   :  { %11 = sbr.rel (!%p9_p7) target bundleno = 1 (0x1), region = 66 }

// kernel: set_criterion_forward.8
= control target key start
LH: loop header
LB: loop body
LE: loop exit
PB: predicated region body
PF: predicated region fallthrough
CT: control target
= control target key end

     0   :  { %s442_s9 = smov 0   ;;  %s497_s0 = inlined_call_operand.vmem [shape: f32[24,32], index: 0, kind: input, shape index: {}]   ;;  %s498_s1 = inlined_call_operand.vmem [shape: f32[32,4], index: 1, kind: input, shape index: {}]   ;;  %s499_s2 = inlined_call_operand.vmem [shape: f32[2,8,128], index: 2, kind: output, shape index: {}]  }
   0x1 LB: > { %s448_s10 = sadd.s32 4294967295, %s424_s9   ;;  %p372_p0 = scmp.ge.s32.totalorder %s424_s9, 1  ;;  %s424_s9 = sphi %s442_s9, %s12_s9  }
   0x2   : > { %p121_p1 = scmp.lt.s32.totalorder %s424_s9, 3 }
   0x4   : > { %p122_p2 = pnand %p372_p0, %p121_p1 }
   0x5   : > { %p160_p3 = scmp.lt.s32.totalorder (!%p122_p2), %s448_s10, 1  ;;  %s373_s15 = sshll.u32 (!%p122_p2), %s448_s10, 1 }
   0x6   : > { %125 = sbr.rel (%p122_p2) target bundleno = 585 (0x249), region = 28  ;;  %p151_p4 = scmp.lt.s32.totalorder (!%p122_p2), %s373_s15, 2 }
   0x7   : > { %p378_p5 = scmp.ge.s32.totalorder (!%p122_p2), %s448_s10, 1 }
   0xb   : > { %v169_v0 = vld [vmem:[%s498_s1 + $0x18] sm:$0xff]  ;;  %v168_v1 = vld [vmem:[%s498_s1 + $0x10] sm:$0xff]  ;;  %s161_s16 = scalar_select %p160_p3, %s448_s10, 1  ;;  %v167_v2 = vld [vmem:[%s498_s1 + $0x8] sm:$0xff]  ;;  %vm170_vm0 = vcmask 261120  }
   0xc   : > { %189 = vmatpush.msra.mxu0 %v169_v0  ;;  %385 = vmatpush.msra.mxu1 %v169_v0  ;;  %s501_s15 = smov (!%p151_p4, %s373_s15), 2  ;;  %v166_v3 = vld [vmem:[%s498_s1] sm:$0xff] }
   0xd   : > { %s375_s19 = sshll.u32 %s161_s16, 3  ;;  %s374_s25 = sshll.u32 %s501_s15, 3 }
   0xe   : > { %190 = vmatpush.msra.mxu0 %v168_v1  ;;  %386 = vmatpush.msra.mxu1 %v168_v1  ;;  %s470_s24 = scalar_lea.vmem %s499_s2, %s375_s19  ;;  %s154_s28 = scalar_lea.vmem %s497_s0, %s374_s25 }
   0xf   : > { %v164_v4 = vld [vmem:[%s154_s28] sm:$0xff]  ;;  %v165_v5 = vld [vmem:[%s154_s28 + $0x8] sm:$0xff] }
  0x10   : > { %191 = vmatpush.msra.mxu0 %v167_v2  ;;  %387 = vmatpush.msra.mxu1 %v167_v2 }
  0x12   : > { %192 = vmatpush.msra.mxu0 %v166_v3  ;;  %388 = vmatpush.msra.mxu1 %v166_v3 }
  0x13   : > { %376 = vmatmul.msk.f32.vlgmr.msra.gmra.mxu0 %vm170_vm0, %v164_v4  ;;  %377 = vmatmul.msk.f32.vlgmr.msra.gmra.mxu1 %vm170_vm0, %v165_v5 }
  0x8c   : > { %203 = sbr.rel (%p378_p5) target bundleno = 356 (0x164), region = 32 }
  0x90   : > { %v475_v6 = vpop.f32.mrf.mxu0  ;;  %v477_v7 = vpop.f32.mrf.mxu1 }
  0x91   : > { %v206_v8 = vand.u32 2147483647, %v475_v6  ;;  %v207_v9 = vand.u32 2147483647, %v477_v7  ;;  %v204_v26 = vmax.f32 %v475_v6, 0.0  ;;  %v205_v29 = vmax.f32 %v477_v7, 0.0 }
  0x92   : > { %vm234_vm3 = vcmask 31744  }
  0x93   : > { %v208_v10 = vsub.f32 0.0, %v206_v8  ;;  %v209_v11 = vsub.f32 0.0, %v207_v9 }
  0x95   : > { %v210_v12 = vmul.f32 1.442695, %v208_v10  ;;  %v212_v13 = vmul.f32 1.442695, %v209_v11 }
  0x97   : > { %402 = vpow2.f32 %v210_v12 }
  0x98   : > { %404 = vpow2.f32 %v212_v13 }
  0x9d   : > { %v403_v14 = vpop.eup %402 }
  0x9e   : > { %v405_v15 = vpop.eup %404  ;;  %v214_v16 = vadd.f32 1.0, %v403_v14  ;;  %v217_v17 = vmul.f32 -0.5, %v403_v14  ;;  %v220_v21 = vand.u32 2147483647, %v403_v14 }
  0x9f   : > { %v223_v18 = vadd.f32 1.0, %v405_v15  ;;  %v226_v19 = vmul.f32 -0.5, %v405_v15  ;;  %v229_v23 = vand.u32 2147483647, %v405_v15 }
  0xa0   : > { %406 = vlog2.f32 %v214_v16  ;;  %v218_v20 = vadd.f32 1.0, %v217_v17  ;;  %vm221_vm1 = vcmp.lt.f32.partialorder %v220_v21, 0.0004427343 }
  0xa1   : > { %408 = vlog2.f32 %v223_v18  ;;  %v227_v22 = vadd.f32 1.0, %v226_v19  ;;  %vm230_vm2 = vcmp.lt.f32.partialorder %v229_v23, 0.0004427343 }
  0xa2   : > { %v219_v24 = vmul.f32 %v403_v14, %v218_v20 }
  0xa3   : > { %v228_v27 = vmul.f32 %v405_v15, %v227_v22 }
  0xa6   : > { %v407_v25 = vpop.eup %406 }
  0xa7   : > { %v409_v28 = vpop.eup %408  ;;  %v216_v30 = vmul.f32 0.6931472, %v407_v25 }
  0xa8   : > { %v225_v31 = vmul.f32 0.6931472, %v409_v28 }
  0xa9   : > { %v222_v32 = vsel %vm221_vm1, %v219_v24, %v216_v30 }
  0xaa   : > { %v231_v33 = vsel %vm230_vm2, %v228_v27, %v225_v31  ;;  %v232_v34 = vadd.f32 %v222_v32, %v204_v26 }
  0xab   : > { %v233_v35 = vadd.f32 %v231_v33, %v205_v29 }
  0xac   : > { %v235_v36 = vsel %vm234_vm3, %v232_v34, 0.0 }
  0xad   : > { %v236_v37 = vsel %vm234_vm3, %v233_v35, 0.0 }
  0xae   : > { %v237_v38 = vadd.f32 %v236_v37, %v235_v36 }
  0xb0   : > { %238 = vadd.xlane.f32.xlu0 %v237_v38 }
 0x123   : > { %v239_v39 = vpop.xlane.xlu0 %238 }
 0x124   : > { %v240_v40 = vrot.slane %v239_v39, 4 }
 0x126   : > { %v241_v41 = vadd.f32 %v240_v40, %v239_v39 }
 0x128   : > { %v242_v42 = vrot.slane %v241_v41, 2 }
 0x12a   : > { %v243_v43 = vadd.f32 %v242_v42, %v241_v41 }
 0x12c   : > { %v244_v44 = vrot.slane %v243_v43, 1 }
 0x12e   : > { %v245_v45 = vadd.f32 %v244_v44, %v243_v43 }
 0x130   : > { %389 = vpush %v245_v45 }
 0x161   : > { %s390_s29 = spop %389 }
 0x162   : > { %v247_v46 = vstv %s390_s29 }
 0x163   : > { %248 = vst [vmem:[%s470_s24] sm:$0xff] %v247_v46 }
 0x164 PF: > { %p379_p6 = scmp.ne.s32.totalorder %s448_s10, 1 }
 0x165   : > { %s380_s30 = sshll.u32 (!%p379_p6), %s448_s10, 4 }
 0x166   : > { %252 = sbr.rel (%p379_p6) target bundleno = 585 (0x249), region = 36 }
 0x16b   : > { %v253_v47 = vlaneseq  ;;  %v257_v48 = vstv %s380_s30  ;;  %v426_v16 = vmov 0.0   ;;  %vm300_vm8 = vcmask 31744  }
 0x16d   : > { %v254_v49 = vshrl.u32 %v253_v47, 7 }
 0x16f   : > { %v255_v50 = vadd.s32 8, %v254_v49  ;;  %v258_v51 = vadd.s32 %v257_v48, %v254_v49 }
 0x171   : > { %v259_v52 = vadd.s32 %v257_v48, %v255_v50  ;;  %vm260_vm4 = vcmp.lt.s32.totalorder %v258_v51, 24 }
 0x172   : > { %v262_v53 = vsel %vm260_vm4, %v475_v6, 0.0  ;;  %v381_v17 = vsel %vm260_vm4, 1.0, %v426_v16 }
 0x173   : > { %vm261_vm5 = vcmp.lt.s32.totalorder %v259_v52, 24  ;;  %v266_v54 = vand.u32 2147483647, %v262_v53  ;;  %v264_v9 = vmax.f32 %v262_v53, 0.0 }
 0x174   : > { %v263_v55 = vsel %vm261_vm5, %v477_v7, 0.0  ;;  %v382_v20 = vsel %vm261_vm5, 1.0, %v426_v16 }
 0x175   : > { %v267_v56 = vand.u32 2147483647, %v263_v55  ;;  %v268_v57 = vsub.f32 0.0, %v266_v54  ;;  %v265_v13 = vmax.f32 %v263_v55, 0.0 }
 0x177   : > { %v269_v58 = vsub.f32 0.0, %v267_v56  ;;  %v270_v59 = vmul.f32 1.442695, %v268_v57 }
 0x179   : > { %410 = vpow2.f32 %v270_v59  ;;  %v272_v60 = vmul.f32 1.442695, %v269_v58 }
 0x17b   : > { %412 = vpow2.f32 %v272_v60 }
 0x17f   : > { %v411_v61 = vpop.eup %410 }
 0x180   : > { %v274_v62 = vadd.f32 1.0, %v411_v61  ;;  %v277_v63 = vmul.f32 -0.5, %v411_v61  ;;  %v280_v4 = vand.u32 2147483647, %v411_v61 }
 0x181   : > { %v413_v0 = vpop.eup %412 }
 0x182   : > { %414 = vlog2.f32 %v274_v62  ;;  %v283_v1 = vadd.f32 1.0, %v413_v0  ;;  %v278_v2 = vadd.f32 1.0, %v277_v63  ;;  %v286_v3 = vmul.f32 -0.5, %v413_v0 }
 0x183   : > { %v289_v6 = vand.u32 2147483647, %v413_v0  ;;  %vm281_vm6 = vcmp.lt.f32.partialorder %v280_v4, 0.0004427343 }
 0x184   : > { %416 = vlog2.f32 %v283_v1  ;;  %v287_v5 = vadd.f32 1.0, %v286_v3  ;;  %v279_v7 = vmul.f32 %v411_v61, %v278_v2 }
 0x185   : > { %vm290_vm7 = vcmp.lt.f32.partialorder %v289_v6, 0.0004427343 }
 0x186   : > { %v288_v11 = vmul.f32 %v413_v0, %v287_v5 }
 0x188   : > { %v415_v8 = vpop.eup %414 }
 0x189   : > { %v276_v10 = vmul.f32 0.6931472, %v415_v8 }
 0x18a   : > { %v417_v12 = vpop.eup %416 }
 0x18b   : > { %v282_v14 = vsel %vm281_vm6, %v279_v7, %v276_v10  ;;  %v285_v15 = vmul.f32 0.6931472, %v417_v12 }
 0x18c   : > { %v292_v18 = vadd.f32 %v282_v14, %v264_v9 }
 0x18d   : > { %v291_v19 = vsel %vm290_vm7, %v288_v11, %v285_v15 }
 0x18e   : > { %v293_v21 = vadd.f32 %v291_v19, %v265_v13  ;;  %v298_v22 = vmul.f32 %v381_v17, %v292_v18 }
 0x190   : > { %v299_v23 = vmul.f32 %v382_v20, %v293_v21  ;;  %v301_v24 = vsel %vm300_vm8, %v298_v22, 0.0 }
 0x192   : > { %v302_v25 = vsel %vm300_vm8, %v299_v23, 0.0 }
 0x193   : > { %v303_v26 = vadd.f32 %v302_v25, %v301_v24 }
 0x195   : > { %304 = vadd.xlane.f32.xlu0 %v303_v26 }
 0x208   : > { %v305_v27 = vpop.xlane.xlu0 %304 }
 0x209   : > { %v306_v28 = vrot.slane %v305_v27, 4 }
 0x20b   : > { %v307_v29 = vadd.f32 %v306_v28, %v305_v27 }
 0x20d   : > { %v308_v30 = vrot.slane %v307_v29, 2 }
 0x20f   : > { %v309_v31 = vadd.f32 %v308_v30, %v307_v29 }
 0x211   : > { %v310_v32 = vrot.slane %v309_v31, 1 }
 0x213   : > { %v311_v33 = vadd.f32 %v310_v32, %v309_v31 }
 0x215   : > { %391 = vpush %v311_v33 }
 0x246   : > { %s392_s3 = spop %391 }
 0x247   : > { %v313_v34 = vstv %s392_s3 }
 0x248   : > { %314 = vst [vmem:[%s470_s24] sm:$0xff] %v313_v34 }
 0x249 PF: > { %s12_s9 = sadd.s32 1, %s424_s9  }
 0x24a   : > { %p9_p7 = scmp.ge.s32.totalorder %s12_s9, 4  }
 0x24c   :  { %11 = sbr.rel (!%p9_p7) target bundleno = 1 (0x1), region = 66 }

// kernel: set_criterion_forward.10
= control target key start
LH: loop header
LB: loop body
LE: loop exit
PB: predicated region body
PF: predicated region fallthrough
CT: control target
= control target key end

     0   :  { %s352_s9 = smov 0   ;;  %s388_s0 = inlined_call_operand.vmem [shape: f32[12,16], index: 0, kind: input, shape index: {}]   ;;  %s389_s1 = inlined_call_operand.vmem [shape: f32[16,2], index: 1, kind: input, shape index: {}]   ;;  %s390_s2 = inlined_call_operand.vmem [shape: f32[2,8,128], index: 2, kind: output, shape index: {}]  }
   0x1 LB: > { %s358_s10 = sadd.s32 4294967295, %s334_s9   ;;  %p297_p0 = scmp.ge.s32.totalorder %s334_s9, 1  ;;  %s334_s9 = sphi %s352_s9, %s12_s9  }
   0x2   : > { %p111_p1 = scmp.lt.s32.totalorder %s334_s9, 3 }
   0x4   : > { %p112_p2 = pnand %p297_p0, %p111_p1 }
   0x5   : > { %p131_p3 = scmp.lt.s32.totalorder (!%p112_p2), %s358_s10, 1  ;;  %p301_p4 = scmp.ge.s32.totalorder (!%p112_p2), %s358_s10, 1 }
   0x6   : > { %115 = sbr.rel (%p112_p2) target bundleno = 575 (0x23f), region = 28 }
   0xb   : > { %v141_v0 = vld [vmem:[%s389_s1 + $0x8] sm:$0xff]  ;;  %v140_v1 = vld [vmem:[%s389_s1] sm:$0xff]  ;;  %s132_s15 = scalar_select %p131_p3, %s358_s10, 1  ;;  %vm142_vm0 = vcmask 130048  }
   0xc   : > { %160 = vmatpush.msra.mxu0 %v141_v0 }
   0xd   : > { %s298_s16 = sshll.u32 %s132_s15, 3 }
   0xe   : > { %161 = vmatpush.msra.mxu0 %v140_v1  ;;  %s134_s19 = scalar_lea.vmem %s388_s0, %s298_s16  ;;  %s376_s22 = scalar_lea.vmem %s390_s2, %s298_s16 }
   0xf   : > { %v139_v2 = vld [vmem:[%s134_s19] sm:$0xff] }
  0x10   : > { %300 = vmatmul.msk.f32.vlgmr.msra.gmra.mxu0 %vm142_vm0, %v139_v2 }
  0x89   : > { %169 = sbr.rel (%p301_p4) target bundleno = 350 (0x15e), region = 32 }
  0x8d   : > { %v163_v3 = vpop.f32.mrf.mxu0 }
  0x8e   : > { %v171_v4 = vand.u32 2147483647, %v163_v3  ;;  %v170_v14 = vmax.f32 %v163_v3, 0.0  ;;  %vm185_vm2 = vcmask 15360  }
  0x90   : > { %v172_v5 = vsub.f32 0.0, %v171_v4 }
  0x92   : > { %v173_v6 = vmul.f32 1.442695, %v172_v5 }
  0x94   : > { %320 = vpow2.f32 %v173_v6 }
  0x9a   : > { %v321_v7 = vpop.eup %320 }
  0x9b   : > { %v175_v8 = vadd.f32 1.0, %v321_v7  ;;  %v178_v9 = vmul.f32 -0.5, %v321_v7  ;;  %v181_v11 = vand.u32 2147483647, %v321_v7 }
  0x9d   : > { %322 = vlog2.f32 %v175_v8  ;;  %v179_v10 = vadd.f32 1.0, %v178_v9  ;;  %vm182_vm1 = vcmp.lt.f32.partialorder %v181_v11, 0.0004427343 }
  0x9f   : > { %v180_v12 = vmul.f32 %v321_v7, %v179_v10 }
  0xa3   : > { %v323_v13 = vpop.eup %322 }
  0xa4   : > { %v177_v15 = vmul.f32 0.6931472, %v323_v13 }
  0xa6   : > { %v183_v16 = vsel %vm182_vm1, %v180_v12, %v177_v15 }
  0xa7   : > { %v184_v17 = vadd.f32 %v183_v16, %v170_v14 }
  0xa9   : > { %v186_v18 = vsel %vm185_vm2, %v184_v17, 0.0 }
  0xaa   : > { %187 = vadd.xlane.f32.xlu0 %v186_v18 }
 0x11d   : > { %v188_v19 = vpop.xlane.xlu0 %187 }
 0x11e   : > { %v189_v20 = vrot.slane %v188_v19, 4 }
 0x120   : > { %v190_v21 = vadd.f32 %v189_v20, %v188_v19 }
 0x122   : > { %v191_v22 = vrot.slane %v190_v21, 2 }
 0x124   : > { %v192_v23 = vadd.f32 %v191_v22, %v190_v21 }
 0x126   : > { %v193_v24 = vrot.slane %v192_v23, 1 }
 0x128   : > { %v194_v25 = vadd.f32 %v193_v24, %v192_v23 }
 0x12a   : > { %307 = vpush %v194_v25 }
 0x15b   : > { %s308_s23 = spop %307 }
 0x15c   : > { %v196_v26 = vstv %s308_s23 }
 0x15d   : > { %197 = vst [vmem:[%s376_s22] sm:$0xff] %v196_v26 }
 0x15e PF: > { %p302_p5 = scmp.ne.s32.totalorder %s358_s10, 1 }
 0x15f   : > { %s303_s24 = sshll.u32 (!%p302_p5), %s358_s10, 3 }
 0x160   : > { %201 = sbr.rel (%p302_p5) target bundleno = 575 (0x23f), region = 36 }
 0x165   : > { %v202_v27 = vlaneseq  ;;  %v205_v28 = vstv %s303_s24  ;;  %v336_v45 = vmov 0.0   ;;  %vm227_vm5 = vcmask 15360  }
 0x167   : > { %v203_v29 = vshrl.u32 %v202_v27, 7 }
 0x169   : > { %v206_v30 = vadd.s32 %v205_v28, %v203_v29 }
 0x16b   : > { %vm207_vm3 = vcmp.lt.s32.totalorder %v206_v30, 12 }
 0x16c   : > { %v208_v31 = vsel %vm207_vm3, %v163_v3, 0.0  ;;  %v304_v46 = vsel %vm207_vm3, 1.0, %v336_v45 }
 0x16d   : > { %v210_v32 = vand.u32 2147483647, %v208_v31  ;;  %v209_v42 = vmax.f32 %v208_v31, 0.0 }
 0x16f   : > { %v211_v33 = vsub.f32 0.0, %v210_v32 }
 0x171   : > { %v212_v34 = vmul.f32 1.442695, %v211_v33 }
 0x173   : > { %324 = vpow2.f32 %v212_v34 }
 0x179   : > { %v325_v35 = vpop.eup %324 }
 0x17a   : > { %v214_v36 = vadd.f32 1.0, %v325_v35  ;;  %v217_v37 = vmul.f32 -0.5, %v325_v35  ;;  %v220_v39 = vand.u32 2147483647, %v325_v35 }
 0x17c   : > { %326 = vlog2.f32 %v214_v36  ;;  %v218_v38 = vadd.f32 1.0, %v217_v37  ;;  %vm221_vm4 = vcmp.lt.f32.partialorder %v220_v39, 0.0004427343 }
 0x17e   : > { %v219_v40 = vmul.f32 %v325_v35, %v218_v38 }
 0x182   : > { %v327_v41 = vpop.eup %326 }
 0x183   : > { %v216_v43 = vmul.f32 0.6931472, %v327_v41 }
 0x185   : > { %v222_v44 = vsel %vm221_vm4, %v219_v40, %v216_v43 }
 0x186   : > { %v223_v47 = vadd.f32 %v222_v44, %v209_v42 }
 0x188   : > { %v226_v48 = vmul.f32 %v304_v46, %v223_v47 }
 0x18a   : > { %v228_v49 = vsel %vm227_vm5, %v226_v48, 0.0 }
 0x18b   : > { %229 = vadd.xlane.f32.xlu0 %v228_v49 }
 0x1fe   : > { %v230_v50 = vpop.xlane.xlu0 %229 }
 0x1ff   : > { %v231_v51 = vrot.slane %v230_v50, 4 }
 0x201   : > { %v232_v52 = vadd.f32 %v231_v51, %v230_v50 }
 0x203   : > { %v233_v53 = vrot.slane %v232_v52, 2 }
 0x205   : > { %v234_v54 = vadd.f32 %v233_v53, %v232_v52 }
 0x207   : > { %v235_v55 = vrot.slane %v234_v54, 1 }
 0x209   : > { %v236_v56 = vadd.f32 %v235_v55, %v234_v54 }
 0x20b   : > { %309 = vpush %v236_v56 }
 0x23c   : > { %s310_s25 = spop %309 }
 0x23d   : > { %v238_v57 = vstv %s310_s25 }
 0x23e   : > { %239 = vst [vmem:[%s376_s22] sm:$0xff] %v238_v57 }
 0x23f PF: > { %s12_s9 = sadd.s32 1, %s334_s9  }
 0x240   : > { %p9_p6 = scmp.ge.s32.totalorder %s12_s9, 4  }
 0x242   :  { %11 = sbr.rel (!%p9_p6) target bundleno = 1 (0x1), region = 66 }

</bundles_post_ra>
